<compile_context>
chip_gen: v7x
topology: tpu7x:2x2x1
jax: 0.10.0
libtpu: 0.0.40
codegen_flags: <defaults>
</compile_context>

<pallas_src>
import jax
import jax.numpy as jnp
from jax.experimental import pallas as pl
from jax.experimental.pallas import tpu as pltpu


def _round_up(a, m):
    return (a + m - 1) // m * m


def _gelu_tanh(x):
    # tanh-approximate GELU (same helper used by kernel and reference).
    c = 0.7978845608028654  # sqrt(2/pi)
    return 0.5 * x * (1.0 + jnp.tanh(c * (x + 0.044715 * x * x * x)))


# -----------------------------------------------------------------------------
# Kernel
# -----------------------------------------------------------------------------
def _autoencoder_kernel(x_ref,
                        we0, be0, we1, be1, we2, be2, we3, be3,
                        wd0, bd0, wd1, bd1, wd2, bd2, wd3, bd3,
                        wm0, bm0, wm1, bm1,
                        xhat_ref, z_ref, q_ref):
    f32 = jnp.float32
    bf16 = jnp.bfloat16

    def dense(h, w_ref, b_ref):
        # bf16 operands on the MXU, f32 accumulation, f32 bias add.
        return jnp.dot(h.astype(w_ref.dtype), w_ref[...],
                       preferred_element_type=f32) + b_ref[...]

    def relu_bf16(t):
        # ReLU on the f32 accumulator, materialize only a bf16 copy in VMEM.
        return jnp.maximum(t, 0.0).astype(bf16)

    x = x_ref[...]                                   # (TR, D_in), f32; cast in dense()

    # ---- encoder: D_in -> H1 -> H2 -> H2 -> F ----
    h = relu_bf16(dense(x, we0, be0))
    h = relu_bf16(dense(h, we1, be1))
    h = relu_bf16(dense(h, we2, be2))
    z = dense(h, we3, be3)                           # (TR, F), f32
    z_ref[...] = z.astype(z_ref.dtype)

    # ---- decoder: F -> H2 -> H2 -> H1 -> D_in ----
    d = relu_bf16(dense(z, wd0, bd0))
    d = relu_bf16(dense(d, wd1, bd1))
    d = relu_bf16(dense(d, wd2, bd2))
    xhat_ref[...] = dense(d, wd3, bd3).astype(xhat_ref.dtype)

    # ---- mlp head + softmax over clusters (lane-padded to 128) ----
    m = _gelu_tanh(dense(z, wm0, bm0)).astype(bf16)  # (TR, F)
    logits = dense(m, wm1, bm1)                      # (TR, K_pad); pad cols carry -1e30 bias
    logits = logits - jnp.max(logits, axis=-1, keepdims=True)
    e = jnp.exp(logits)                              # padded cols underflow to exactly 0
    inv = pl.reciprocal(jnp.sum(e, axis=-1, keepdims=True), approx=True)
    q_ref[...] = (e * inv).astype(q_ref.dtype)


# -----------------------------------------------------------------------------
# Wrapper
# -----------------------------------------------------------------------------
def autoencoder_forward(x, params, *, n_clusters):
    """x: (bs, len, input_dim) f32; params: PyTorch-layout weights (out,in)/(out,)."""
    f32 = jnp.float32
    bf16 = jnp.bfloat16

    bs, seq, d_in = x.shape
    R = bs * seq
    h1 = params["enc_w0"].shape[0]
    h2 = params["enc_w1"].shape[0]
    feat = params["enc_w3"].shape[0]
    K = n_clusters

    # Pad interior hidden dims and the cluster dim to lane-dense multiples of 128.
    h1p = _round_up(h1, 128)
    h2p = _round_up(h2, 128)
    K_pad = max(_round_up(K, 128), 128)

    # Row tiling over the flattened (bs*len, D_in) token matrix. Guarantee >= 2
    # grid steps when R > 8 so a v7x chip can shard across both TensorCores; cap
    # the tile at 512 rows to amortize per-step overhead on big batches.
    MAX_TR = 512
    if R <= 8:
        TR = 8
    else:
        TR = min(MAX_TR, _round_up((R + 1) // 2, 8))
    R_pad = _round_up(R, TR)

    # Input stays f32 (cast to bf16 happens on the tile inside the kernel).
    xf = x.reshape(R, d_in).astype(f32)
    if R_pad != R:
        xf = jnp.pad(xf, ((0, R_pad - R), (0, 0)))

    # Glue: weights as (in, out) bf16 with zero padding of interior dims,
    # biases as (1, out) f32 (zero padded; -1e30 for the cluster padding).
    def wpad(name, in_pad=None, out_pad=None):
        w = params[name].T.astype(bf16)              # (in, out)
        ip = in_pad if in_pad is not None else w.shape[0]
        op = out_pad if out_pad is not None else w.shape[1]
        return jnp.pad(w, ((0, ip - w.shape[0]), (0, op - w.shape[1])))

    def bpad(name, out_pad=None, fill=0.0):
        b = params[name].astype(f32)
        op = out_pad if out_pad is not None else b.shape[0]
        return jnp.pad(b, (0, op - b.shape[0]), constant_values=fill)[None, :]

    weights = [
        wpad("enc_w0", None, h1p),   bpad("enc_b0", h1p),
        wpad("enc_w1", h1p, h2p),    bpad("enc_b1", h2p),
        wpad("enc_w2", h2p, h2p),    bpad("enc_b2", h2p),
        wpad("enc_w3", h2p, None),   bpad("enc_b3"),
        wpad("dec_w0", None, h2p),   bpad("dec_b0", h2p),
        wpad("dec_w1", h2p, h2p),    bpad("dec_b1", h2p),
        wpad("dec_w2", h2p, h1p),    bpad("dec_b2", h1p),
        wpad("dec_w3", h1p, None),   bpad("dec_b3"),
        wpad("mlp_w0"),              bpad("mlp_b0"),
        wpad("mlp_w1", None, K_pad), bpad("mlp_b1", K_pad, fill=-1e30),
    ]

    out_specs = [
        pl.BlockSpec((TR, d_in), lambda r: (r, 0)),
        pl.BlockSpec((TR, feat), lambda r: (r, 0)),
        pl.BlockSpec((TR, K_pad), lambda r: (r, 0)),
    ]
    out_shape = (
        jax.ShapeDtypeStruct((R_pad, d_in), f32),
        jax.ShapeDtypeStruct((R_pad, feat), f32),
        jax.ShapeDtypeStruct((R_pad, K_pad), f32),
    )

    # Advisory cost estimate for the XLA scheduler (padded dims).
    lin_dims = [(d_in, h1p), (h1p, h2p), (h2p, h2p), (h2p, feat),
                (feat, h2p), (h2p, h2p), (h2p, h1p), (h1p, d_in),
                (feat, feat), (feat, K_pad)]
    flops = int(2 * R_pad * sum(a * b for a, b in lin_dims))
    transcendentals = int(R_pad * (feat + K_pad))
    weight_bytes = sum(int(w.size) * w.dtype.itemsize for w in weights)
    bytes_in = int(xf.size) * xf.dtype.itemsize + weight_bytes
    bytes_out = R_pad * (d_in + feat + K_pad) * 4
    cost = pl.CostEstimate(flops=flops, transcendentals=transcendentals,
                           bytes_accessed=int(bytes_in + bytes_out))

    # VMEM budget pieces (per-tile, bytes).
    in_tile_bytes = TR * d_in * 4
    out_tile_bytes = TR * (d_in + feat + K_pad) * 4
    max_w = max(d_in, h1p, h2p, feat, K_pad)
    act_bytes = 8 * TR * max_w * 4        # generous live-activation headroom

    result = None
    last_err = None
    # Preferred config: weights single-buffered (grid-invariant). Fallback keeps
    # default double-buffering if this JAX build rejects Buffered(1).
    for single_buffer in (True, False):
        in_specs = [pl.BlockSpec((TR, d_in), lambda r: (r, 0))]
        for w in weights:
            if single_buffer:
                in_specs.append(pl.BlockSpec(w.shape, lambda r: (0, 0),
                                             pipeline_mode=pl.Buffered(1)))
            else:
                in_specs.append(pl.BlockSpec(w.shape, lambda r: (0, 0)))

        wbytes = weight_bytes * (1 if single_buffer else 2)
        vmem_need = (wbytes + 2 * in_tile_bytes + 2 * out_tile_bytes
                     + act_bytes + (2 << 20))
        vmem_limit = int(min(max(vmem_need, 32 << 20), 60 << 20))

        try:
            call = pl.pallas_call(
                _autoencoder_kernel,
                out_shape=out_shape,
                grid_spec=pltpu.PrefetchScalarGridSpec(
                    num_scalar_prefetch=0,
                    grid=(R_pad // TR,),
                    in_specs=in_specs,
                    out_specs=out_specs,
                ),
                compiler_params=pltpu.CompilerParams(
                    dimension_semantics=("parallel",),
                    vmem_limit_bytes=vmem_limit),
                cost_estimate=cost,
            )
            result = call(xf, *weights)
            break
        except Exception as e:  # pragma: no cover - fallback path
            last_err = e
    if result is None:
        raise last_err
    x_hat, z, q_pad = result

    x_hat = x_hat[:R].reshape(bs, seq, d_in)
    z = z[:R].reshape(bs, seq, feat)
    q = q_pad[:R, :K].reshape(bs, seq, K)
    return x_hat, z, q


# -----------------------------------------------------------------------------
# Pure-JAX reference (same bf16-operand / f32-accumulate numerics as the kernel)
# -----------------------------------------------------------------------------
def autoencoder_ref(x, params, *, n_clusters):
    f32 = jnp.float32
    bf16 = jnp.bfloat16
    bs, seq, d_in = x.shape

    def dense(h, w, b):
        return jnp.dot(h.astype(bf16), w.T.astype(bf16),
                       preferred_element_type=f32) + b.astype(f32)

    def relu(t):
        return jnp.maximum(t, 0.0)

    h = x.reshape(bs * seq, d_in)
    e = relu(dense(h, params["enc_w0"], params["enc_b0"]))
    e = relu(dense(e, params["enc_w1"], params["enc_b1"]))
    e = relu(dense(e, params["enc_w2"], params["enc_b2"]))
    z = dense(e, params["enc_w3"], params["enc_b3"])

    d = relu(dense(z, params["dec_w0"], params["dec_b0"]))
    d = relu(dense(d, params["dec_w1"], params["dec_b1"]))
    d = relu(dense(d, params["dec_w2"], params["dec_b2"]))
    x_hat = dense(d, params["dec_w3"], params["dec_b3"])

    m = _gelu_tanh(dense(z, params["mlp_w0"], params["mlp_b0"]))
    logits = dense(m, params["mlp_w1"], params["mlp_b1"])
    q = jax.nn.softmax(logits, axis=-1)

    feat = z.shape[-1]
    return (x_hat.reshape(bs, seq, d_in),
            z.reshape(bs, seq, feat),
            q.reshape(bs, seq, n_clusters))


# -----------------------------------------------------------------------------
# Self-test
# -----------------------------------------------------------------------------
if __name__ == "__main__":
    # Small shapes consistent with the module architecture (scaled-down
    # input_dim=768 / hidden 500,1000 / feature_dim=512 / n_clusters=10).
    # h1/h2 are deliberately NOT multiples of 128 to exercise the zero-padding.
    bs, seq = 2, 8
    d_in, h1, h2, feat, K = 128, 250, 500, 128, 10

    weight_dims = {
        "enc_w0": (h1, d_in), "enc_w1": (h2, h1),
        "enc_w2": (h2, h2),   "enc_w3": (feat, h2),
        "dec_w0": (h2, feat), "dec_w1": (h2, h2),
        "dec_w2": (h1, h2),   "dec_w3": (d_in, h1),
        "mlp_w0": (feat, feat), "mlp_w1": (K, feat),
    }

    key = jax.random.PRNGKey(0)
    keys = iter(jax.random.split(key, 2 * len(weight_dims) + 1))
    x = jax.random.normal(next(keys), (bs, seq, d_in), dtype=jnp.float32)

    params = {}
    for name, (out_d, in_d) in weight_dims.items():
        params[name] = 0.05 * jax.random.normal(next(keys), (out_d, in_d),
                                                dtype=jnp.float32)
        params[name.replace("_w", "_b")] = 0.05 * jax.random.normal(
            next(keys), (out_d,), dtype=jnp.float32)

    x_hat, z, q = autoencoder_forward(x, params, n_clusters=K)
    (x_hat, z, q) = jax.block_until_ready((x_hat, z, q))

    rx, rz, rq = autoencoder_ref(x, params, n_clusters=K)
    (rx, rz, rq) = jax.block_until_ready((rx, rz, rq))

    assert x_hat.shape == (bs, seq, d_in), x_hat.shape
    assert z.shape == (bs, seq, feat), z.shape
    assert q.shape == (bs, seq, K), q.shape
    assert jnp.allclose(x_hat, rx, rtol=1e-2, atol=1e-2), (
        float(jnp.max(jnp.abs(x_hat - rx))))
    assert jnp.allclose(z, rz, rtol=1e-2, atol=1e-2), (
        float(jnp.max(jnp.abs(z - rz))))
    assert jnp.allclose(q, rq, rtol=1e-2, atol=1e-2), (
        float(jnp.max(jnp.abs(q - rq))))

    print("KERNEL_OK")
</pallas_src>

<mosaic_0001>
module attributes {stable_mosaic.version = 11 : i64} {
  func.func @_autoencoder_kernel(%arg0: i32, %arg1: memref<8x128xf32, #tpu.memory_space<vmem>>, %arg2: memref<128x256xbf16, #tpu.memory_space<vmem>>, %arg3: memref<1x256xf32, #tpu.memory_space<vmem>>, %arg4: memref<256x512xbf16, #tpu.memory_space<vmem>>, %arg5: memref<1x512xf32, #tpu.memory_space<vmem>>, %arg6: memref<512x512xbf16, #tpu.memory_space<vmem>>, %arg7: memref<1x512xf32, #tpu.memory_space<vmem>>, %arg8: memref<512x128xbf16, #tpu.memory_space<vmem>>, %arg9: memref<1x128xf32, #tpu.memory_space<vmem>>, %arg10: memref<128x512xbf16, #tpu.memory_space<vmem>>, %arg11: memref<1x512xf32, #tpu.memory_space<vmem>>, %arg12: memref<512x512xbf16, #tpu.memory_space<vmem>>, %arg13: memref<1x512xf32, #tpu.memory_space<vmem>>, %arg14: memref<512x256xbf16, #tpu.memory_space<vmem>>, %arg15: memref<1x256xf32, #tpu.memory_space<vmem>>, %arg16: memref<256x128xbf16, #tpu.memory_space<vmem>>, %arg17: memref<1x128xf32, #tpu.memory_space<vmem>>, %arg18: memref<128x128xbf16, #tpu.memory_space<vmem>>, %arg19: memref<1x128xf32, #tpu.memory_space<vmem>>, %arg20: memref<128x128xbf16, #tpu.memory_space<vmem>>, %arg21: memref<1x128xf32, #tpu.memory_space<vmem>>, %arg22: memref<8x128xf32, #tpu.memory_space<vmem>>, %arg23: memref<8x128xf32, #tpu.memory_space<vmem>>, %arg24: memref<8x128xf32, #tpu.memory_space<vmem>>) attributes {dimension_semantics = [#tpu.dimension_semantics<parallel>], iteration_bounds = array<i64: 2>, scalar_prefetch = 0 : i64, scratch_operands = 0 : i64, tpu.core_type = #tpu.core_type<tc>, window_params = [{transform_indices = @transform_0, window_bounds = array<i64: 8, 128>}, {pipeline_mode = #tpu.pipeline_mode<synchronous>, transform_indices = @transform_1, window_bounds = array<i64: 128, 256>}, {pipeline_mode = #tpu.pipeline_mode<synchronous>, transform_indices = @transform_2, window_bounds = array<i64: 1, 256>}, {pipeline_mode = #tpu.pipeline_mode<synchronous>, transform_indices = @transform_3, window_bounds = array<i64: 256, 512>}, {pipeline_mode = #tpu.pipeline_mode<synchronous>, transform_indices = @transform_4, window_bounds = array<i64: 1, 512>}, {pipeline_mode = #tpu.pipeline_mode<synchronous>, transform_indices = @transform_5, window_bounds = array<i64: 512, 512>}, {pipeline_mode = #tpu.pipeline_mode<synchronous>, transform_indices = @transform_6, window_bounds = array<i64: 1, 512>}, {pipeline_mode = #tpu.pipeline_mode<synchronous>, transform_indices = @transform_7, window_bounds = array<i64: 512, 128>}, {pipeline_mode = #tpu.pipeline_mode<synchronous>, transform_indices = @transform_8, window_bounds = array<i64: 1, 128>}, {pipeline_mode = #tpu.pipeline_mode<synchronous>, transform_indices = @transform_9, window_bounds = array<i64: 128, 512>}, {pipeline_mode = #tpu.pipeline_mode<synchronous>, transform_indices = @transform_10, window_bounds = array<i64: 1, 512>}, {pipeline_mode = #tpu.pipeline_mode<synchronous>, transform_indices = @transform_11, window_bounds = array<i64: 512, 512>}, {pipeline_mode = #tpu.pipeline_mode<synchronous>, transform_indices = @transform_12, window_bounds = array<i64: 1, 512>}, {pipeline_mode = #tpu.pipeline_mode<synchronous>, transform_indices = @transform_13, window_bounds = array<i64: 512, 256>}, {pipeline_mode = #tpu.pipeline_mode<synchronous>, transform_indices = @transform_14, window_bounds = array<i64: 1, 256>}, {pipeline_mode = #tpu.pipeline_mode<synchronous>, transform_indices = @transform_15, window_bounds = array<i64: 256, 128>}, {pipeline_mode = #tpu.pipeline_mode<synchronous>, transform_indices = @transform_16, window_bounds = array<i64: 1, 128>}, {pipeline_mode = #tpu.pipeline_mode<synchronous>, transform_indices = @transform_17, window_bounds = array<i64: 128, 128>}, {pipeline_mode = #tpu.pipeline_mode<synchronous>, transform_indices = @transform_18, window_bounds = array<i64: 1, 128>}, {pipeline_mode = #tpu.pipeline_mode<synchronous>, transform_indices = @transform_19, window_bounds = array<i64: 128, 128>}, {pipeline_mode = #tpu.pipeline_mode<synchronous>, transform_indices = @transform_20, window_bounds = array<i64: 1, 128>}, {transform_indices = @transform_21, window_bounds = array<i64: 8, 128>}, {transform_indices = @transform_22, window_bounds = array<i64: 8, 128>}, {transform_indices = @transform_23, window_bounds = array<i64: 8, 128>}]} {
    %c0 = arith.constant 0 : index
    %c0_0 = arith.constant 0 : index
    %0 = vector.load %arg1[%c0, %c0_0] : memref<8x128xf32, #tpu.memory_space<vmem>>, vector<8x128xf32>
    %1 = arith.truncf %0 : vector<8x128xf32> to vector<8x128xbf16>
    %c0_1 = arith.constant 0 : index
    %c0_2 = arith.constant 0 : index
    %2 = vector.load %arg2[%c0_1, %c0_2] : memref<128x256xbf16, #tpu.memory_space<vmem>>, vector<128x256xbf16>
    %cst = arith.constant dense<0.000000e+00> : vector<8x256xf32>
    %3 = tpu.matmul %1, %2, %cst {dimension_numbers = #tpu.dot_dimension_numbers<[1], [0], [0], [1], [0, 0, 1, 1], [], []>} : vector<8x128xbf16>, vector<128x256xbf16>, vector<8x256xf32> -> vector<8x256xf32>
    %c0_3 = arith.constant 0 : index
    %c0_4 = arith.constant 0 : index
    %4 = vector.load %arg3[%c0_3, %c0_4] : memref<1x256xf32, #tpu.memory_space<vmem>>, vector<1x256xf32>
    %5 = vector.broadcast %4 : vector<1x256xf32> to vector<8x256xf32>
    %6 = arith.addf %3, %5 : vector<8x256xf32>
    %cst_5 = arith.constant 0.000000e+00 : f32
    %7 = vector.broadcast %cst_5 : f32 to vector<8x256xf32>
    %8 = arith.maximumf %6, %7 : vector<8x256xf32>
    %9 = arith.truncf %8 : vector<8x256xf32> to vector<8x256xbf16>
    %c0_6 = arith.constant 0 : index
    %c0_7 = arith.constant 0 : index
    %10 = vector.load %arg4[%c0_6, %c0_7] : memref<256x512xbf16, #tpu.memory_space<vmem>>, vector<256x512xbf16>
    %cst_8 = arith.constant dense<0.000000e+00> : vector<8x512xf32>
    %11 = tpu.matmul %9, %10, %cst_8 {dimension_numbers = #tpu.dot_dimension_numbers<[1], [0], [0], [1], [0, 0, 1, 1], [], []>} : vector<8x256xbf16>, vector<256x512xbf16>, vector<8x512xf32> -> vector<8x512xf32>
    %c0_9 = arith.constant 0 : index
    %c0_10 = arith.constant 0 : index
    %12 = vector.load %arg5[%c0_9, %c0_10] : memref<1x512xf32, #tpu.memory_space<vmem>>, vector<1x512xf32>
    %13 = vector.broadcast %12 : vector<1x512xf32> to vector<8x512xf32>
    %14 = arith.addf %11, %13 : vector<8x512xf32>
    %cst_11 = arith.constant 0.000000e+00 : f32
    %15 = vector.broadcast %cst_11 : f32 to vector<8x512xf32>
    %16 = arith.maximumf %14, %15 : vector<8x512xf32>
    %17 = arith.truncf %16 : vector<8x512xf32> to vector<8x512xbf16>
    %c0_12 = arith.constant 0 : index
    %c0_13 = arith.constant 0 : index
    %18 = vector.load %arg6[%c0_12, %c0_13] : memref<512x512xbf16, #tpu.memory_space<vmem>>, vector<512x512xbf16>
    %cst_14 = arith.constant dense<0.000000e+00> : vector<8x512xf32>
    %19 = tpu.matmul %17, %18, %cst_14 {dimension_numbers = #tpu.dot_dimension_numbers<[1], [0], [0], [1], [0, 0, 1, 1], [], []>} : vector<8x512xbf16>, vector<512x512xbf16>, vector<8x512xf32> -> vector<8x512xf32>
    %c0_15 = arith.constant 0 : index
    %c0_16 = arith.constant 0 : index
    %20 = vector.load %arg7[%c0_15, %c0_16] : memref<1x512xf32, #tpu.memory_space<vmem>>, vector<1x512xf32>
    %21 = vector.broadcast %20 : vector<1x512xf32> to vector<8x512xf32>
    %22 = arith.addf %19, %21 : vector<8x512xf32>
    %cst_17 = arith.constant 0.000000e+00 : f32
    %23 = vector.broadcast %cst_17 : f32 to vector<8x512xf32>
    %24 = arith.maximumf %22, %23 : vector<8x512xf32>
    %25 = arith.truncf %24 : vector<8x512xf32> to vector<8x512xbf16>
    %c0_18 = arith.constant 0 : index
    %c0_19 = arith.constant 0 : index
    %26 = vector.load %arg8[%c0_18, %c0_19] : memref<512x128xbf16, #tpu.memory_space<vmem>>, vector<512x128xbf16>
    %cst_20 = arith.constant dense<0.000000e+00> : vector<8x128xf32>
    %27 = tpu.matmul %25, %26, %cst_20 {dimension_numbers = #tpu.dot_dimension_numbers<[1], [0], [0], [1], [0, 0, 1, 1], [], []>} : vector<8x512xbf16>, vector<512x128xbf16>, vector<8x128xf32> -> vector<8x128xf32>
    %c0_21 = arith.constant 0 : index
    %c0_22 = arith.constant 0 : index
    %28 = vector.load %arg9[%c0_21, %c0_22] : memref<1x128xf32, #tpu.memory_space<vmem>>, vector<1x128xf32>
    %29 = vector.broadcast %28 : vector<1x128xf32> to vector<8x128xf32>
    %30 = arith.addf %27, %29 : vector<8x128xf32>
    %c0_23 = arith.constant 0 : index
    %c0_24 = arith.constant 0 : index
    %31 = vector.load %arg23[%c0_23, %c0_24] : memref<8x128xf32, #tpu.memory_space<vmem>>, vector<8x128xf32>
    tpu.vector_store %arg23[%c0_23, %c0_24], %30 {strides = array<i32>} : memref<8x128xf32, #tpu.memory_space<vmem>>, vector<8x128xf32>,
    %32 = arith.truncf %30 : vector<8x128xf32> to vector<8x128xbf16>
    %c0_25 = arith.constant 0 : index
    %c0_26 = arith.constant 0 : index
    %33 = vector.load %arg10[%c0_25, %c0_26] : memref<128x512xbf16, #tpu.memory_space<vmem>>, vector<128x512xbf16>
    %cst_27 = arith.constant dense<0.000000e+00> : vector<8x512xf32>
    %34 = tpu.matmul %32, %33, %cst_27 {dimension_numbers = #tpu.dot_dimension_numbers<[1], [0], [0], [1], [0, 0, 1, 1], [], []>} : vector<8x128xbf16>, vector<128x512xbf16>, vector<8x512xf32> -> vector<8x512xf32>
    %c0_28 = arith.constant 0 : index
    %c0_29 = arith.constant 0 : index
    %35 = vector.load %arg11[%c0_28, %c0_29] : memref<1x512xf32, #tpu.memory_space<vmem>>, vector<1x512xf32>
    %36 = vector.broadcast %35 : vector<1x512xf32> to vector<8x512xf32>
    %37 = arith.addf %34, %36 : vector<8x512xf32>
    %cst_30 = arith.constant 0.000000e+00 : f32
    %38 = vector.broadcast %cst_30 : f32 to vector<8x512xf32>
    %39 = arith.maximumf %37, %38 : vector<8x512xf32>
    %40 = arith.truncf %39 : vector<8x512xf32> to vector<8x512xbf16>
    %c0_31 = arith.constant 0 : index
    %c0_32 = arith.constant 0 : index
    %41 = vector.load %arg12[%c0_31, %c0_32] : memref<512x512xbf16, #tpu.memory_space<vmem>>, vector<512x512xbf16>
    %cst_33 = arith.constant dense<0.000000e+00> : vector<8x512xf32>
    %42 = tpu.matmul %40, %41, %cst_33 {dimension_numbers = #tpu.dot_dimension_numbers<[1], [0], [0], [1], [0, 0, 1, 1], [], []>} : vector<8x512xbf16>, vector<512x512xbf16>, vector<8x512xf32> -> vector<8x512xf32>
    %c0_34 = arith.constant 0 : index
    %c0_35 = arith.constant 0 : index
    %43 = vector.load %arg13[%c0_34, %c0_35] : memref<1x512xf32, #tpu.memory_space<vmem>>, vector<1x512xf32>
    %44 = vector.broadcast %43 : vector<1x512xf32> to vector<8x512xf32>
    %45 = arith.addf %42, %44 : vector<8x512xf32>
    %cst_36 = arith.constant 0.000000e+00 : f32
    %46 = vector.broadcast %cst_36 : f32 to vector<8x512xf32>
    %47 = arith.maximumf %45, %46 : vector<8x512xf32>
    %48 = arith.truncf %47 : vector<8x512xf32> to vector<8x512xbf16>
    %c0_37 = arith.constant 0 : index
    %c0_38 = arith.constant 0 : index
    %49 = vector.load %arg14[%c0_37, %c0_38] : memref<512x256xbf16, #tpu.memory_space<vmem>>, vector<512x256xbf16>
    %cst_39 = arith.constant dense<0.000000e+00> : vector<8x256xf32>
    %50 = tpu.matmul %48, %49, %cst_39 {dimension_numbers = #tpu.dot_dimension_numbers<[1], [0], [0], [1], [0, 0, 1, 1], [], []>} : vector<8x512xbf16>, vector<512x256xbf16>, vector<8x256xf32> -> vector<8x256xf32>
    %c0_40 = arith.constant 0 : index
    %c0_41 = arith.constant 0 : index
    %51 = vector.load %arg15[%c0_40, %c0_41] : memref<1x256xf32, #tpu.memory_space<vmem>>, vector<1x256xf32>
    %52 = vector.broadcast %51 : vector<1x256xf32> to vector<8x256xf32>
    %53 = arith.addf %50, %52 : vector<8x256xf32>
    %cst_42 = arith.constant 0.000000e+00 : f32
    %54 = vector.broadcast %cst_42 : f32 to vector<8x256xf32>
    %55 = arith.maximumf %53, %54 : vector<8x256xf32>
    %56 = arith.truncf %55 : vector<8x256xf32> to vector<8x256xbf16>
    %c0_43 = arith.constant 0 : index
    %c0_44 = arith.constant 0 : index
    %57 = vector.load %arg16[%c0_43, %c0_44] : memref<256x128xbf16, #tpu.memory_space<vmem>>, vector<256x128xbf16>
    %cst_45 = arith.constant dense<0.000000e+00> : vector<8x128xf32>
    %58 = tpu.matmul %56, %57, %cst_45 {dimension_numbers = #tpu.dot_dimension_numbers<[1], [0], [0], [1], [0, 0, 1, 1], [], []>} : vector<8x256xbf16>, vector<256x128xbf16>, vector<8x128xf32> -> vector<8x128xf32>
    %c0_46 = arith.constant 0 : index
    %c0_47 = arith.constant 0 : index
    %59 = vector.load %arg17[%c0_46, %c0_47] : memref<1x128xf32, #tpu.memory_space<vmem>>, vector<1x128xf32>
    %60 = vector.broadcast %59 : vector<1x128xf32> to vector<8x128xf32>
    %61 = arith.addf %58, %60 : vector<8x128xf32>
    %c0_48 = arith.constant 0 : index
    %c0_49 = arith.constant 0 : index
    %62 = vector.load %arg22[%c0_48, %c0_49] : memref<8x128xf32, #tpu.memory_space<vmem>>, vector<8x128xf32>
    tpu.vector_store %arg22[%c0_48, %c0_49], %61 {strides = array<i32>} : memref<8x128xf32, #tpu.memory_space<vmem>>, vector<8x128xf32>,
    %63 = arith.truncf %30 : vector<8x128xf32> to vector<8x128xbf16>
    %c0_50 = arith.constant 0 : index
    %c0_51 = arith.constant 0 : index
    %64 = vector.load %arg18[%c0_50, %c0_51] : memref<128x128xbf16, #tpu.memory_space<vmem>>, vector<128x128xbf16>
    %cst_52 = arith.constant dense<0.000000e+00> : vector<8x128xf32>
    %65 = tpu.matmul %63, %64, %cst_52 {dimension_numbers = #tpu.dot_dimension_numbers<[1], [0], [0], [1], [0, 0, 1, 1], [], []>} : vector<8x128xbf16>, vector<128x128xbf16>, vector<8x128xf32> -> vector<8x128xf32>
    %c0_53 = arith.constant 0 : index
    %c0_54 = arith.constant 0 : index
    %66 = vector.load %arg19[%c0_53, %c0_54] : memref<1x128xf32, #tpu.memory_space<vmem>>, vector<1x128xf32>
    %67 = vector.broadcast %66 : vector<1x128xf32> to vector<8x128xf32>
    %68 = arith.addf %65, %67 : vector<8x128xf32>
    %cst_55 = arith.constant 5.000000e-01 : f32
    %69 = vector.broadcast %cst_55 : f32 to vector<8x128xf32>
    %70 = arith.mulf %69, %68 : vector<8x128xf32>
    %cst_56 = arith.constant 4.471500e-02 : f32
    %71 = vector.broadcast %cst_56 : f32 to vector<8x128xf32>
    %72 = arith.mulf %71, %68 : vector<8x128xf32>
    %73 = arith.mulf %72, %68 : vector<8x128xf32>
    %74 = arith.mulf %73, %68 : vector<8x128xf32>
    %75 = arith.addf %68, %74 : vector<8x128xf32>
    %cst_57 = arith.constant 0.797884583 : f32
    %76 = vector.broadcast %cst_57 : f32 to vector<8x128xf32>
    %77 = arith.mulf %76, %75 : vector<8x128xf32>
    %78 = math.tanh %77 : vector<8x128xf32>
    %cst_58 = arith.constant 1.000000e+00 : f32
    %79 = vector.broadcast %cst_58 : f32 to vector<8x128xf32>
    %80 = arith.addf %79, %78 : vector<8x128xf32>
    %81 = arith.mulf %70, %80 : vector<8x128xf32>
    %82 = arith.truncf %81 : vector<8x128xf32> to vector<8x128xbf16>
    %c0_59 = arith.constant 0 : index
    %c0_60 = arith.constant 0 : index
    %83 = vector.load %arg20[%c0_59, %c0_60] : memref<128x128xbf16, #tpu.memory_space<vmem>>, vector<128x128xbf16>
    %cst_61 = arith.constant dense<0.000000e+00> : vector<8x128xf32>
    %84 = tpu.matmul %82, %83, %cst_61 {dimension_numbers = #tpu.dot_dimension_numbers<[1], [0], [0], [1], [0, 0, 1, 1], [], []>} : vector<8x128xbf16>, vector<128x128xbf16>, vector<8x128xf32> -> vector<8x128xf32>
    %c0_62 = arith.constant 0 : index
    %c0_63 = arith.constant 0 : index
    %85 = vector.load %arg21[%c0_62, %c0_63] : memref<1x128xf32, #tpu.memory_space<vmem>>, vector<1x128xf32>
    %86 = vector.broadcast %85 : vector<1x128xf32> to vector<8x128xf32>
    %87 = arith.addf %84, %86 : vector<8x128xf32>
    %cst_64 = arith.constant dense<0xFF800000> : vector<8xf32>
    %88 = vector.multi_reduction <maximumf>, %87, %cst_64 [1] : vector<8x128xf32> to vector<8xf32>
    %89 = vector.shape_cast %88 : vector<8xf32> to vector<8x1xf32>
    %90 = vector.broadcast %89 : vector<8x1xf32> to vector<8x128xf32>
    %91 = arith.subf %87, %90 : vector<8x128xf32>
    %92 = math.exp %91 : vector<8x128xf32>
    %cst_65 = arith.constant dense<0.000000e+00> : vector<8xf32>
    %93 = vector.multi_reduction <add>, %92, %cst_65 [1] : vector<8x128xf32> to vector<8xf32>
    %94 = vector.shape_cast %93 : vector<8xf32> to vector<8x1xf32>
    %95 = tpu.reciprocal %94 {approx = true} : vector<8x1xf32> -> vector<8x1xf32>
    %96 = vector.broadcast %95 : vector<8x1xf32> to vector<8x128xf32>
    %97 = arith.mulf %92, %96 : vector<8x128xf32>
    %c0_66 = arith.constant 0 : index
    %c0_67 = arith.constant 0 : index
    %98 = vector.load %arg24[%c0_66, %c0_67] : memref<8x128xf32, #tpu.memory_space<vmem>>, vector<8x128xf32>
    tpu.vector_store %arg24[%c0_66, %c0_67], %97 {strides = array<i32>} : memref<8x128xf32, #tpu.memory_space<vmem>>, vector<8x128xf32>,
    return
  }
  func.func @transform_0(%arg0: i32) -> (i32, i32) {
    %c0_i32 = arith.constant 0 : i32
    %c0_i32_0 = arith.constant 0 : i32
    return %arg0, %c0_i32 : i32, i32
  }
  func.func @transform_1(%arg0: i32) -> (i32, i32) {
    %c0_i32 = arith.constant 0 : i32
    %c0_i32_0 = arith.constant 0 : i32
    %c0_i32_1 = arith.constant 0 : i32
    return %c0_i32, %c0_i32_0 : i32, i32
  }
  func.func @transform_2(%arg0: i32) -> (i32, i32) {
    %c0_i32 = arith.constant 0 : i32
    %c0_i32_0 = arith.constant 0 : i32
    %c0_i32_1 = arith.constant 0 : i32
    return %c0_i32, %c0_i32_0 : i32, i32
  }
  func.func @transform_3(%arg0: i32) -> (i32, i32) {
    %c0_i32 = arith.constant 0 : i32
    %c0_i32_0 = arith.constant 0 : i32
    %c0_i32_1 = arith.constant 0 : i32
    return %c0_i32, %c0_i32_0 : i32, i32
  }
  func.func @transform_4(%arg0: i32) -> (i32, i32) {
    %c0_i32 = arith.constant 0 : i32
    %c0_i32_0 = arith.constant 0 : i32
    %c0_i32_1 = arith.constant 0 : i32
    return %c0_i32, %c0_i32_0 : i32, i32
  }
  func.func @transform_5(%arg0: i32) -> (i32, i32) {
    %c0_i32 = arith.constant 0 : i32
    %c0_i32_0 = arith.constant 0 : i32
    %c0_i32_1 = arith.constant 0 : i32
    return %c0_i32, %c0_i32_0 : i32, i32
  }
  func.func @transform_6(%arg0: i32) -> (i32, i32) {
    %c0_i32 = arith.constant 0 : i32
    %c0_i32_0 = arith.constant 0 : i32
    %c0_i32_1 = arith.constant 0 : i32
    return %c0_i32, %c0_i32_0 : i32, i32
  }
  func.func @transform_7(%arg0: i32) -> (i32, i32) {
    %c0_i32 = arith.constant 0 : i32
    %c0_i32_0 = arith.constant 0 : i32
    %c0_i32_1 = arith.constant 0 : i32
    return %c0_i32, %c0_i32_0 : i32, i32
  }
  func.func @transform_8(%arg0: i32) -> (i32, i32) {
    %c0_i32 = arith.constant 0 : i32
    %c0_i32_0 = arith.constant 0 : i32
    %c0_i32_1 = arith.constant 0 : i32
    return %c0_i32, %c0_i32_0 : i32, i32
  }
  func.func @transform_9(%arg0: i32) -> (i32, i32) {
    %c0_i32 = arith.constant 0 : i32
    %c0_i32_0 = arith.constant 0 : i32
    %c0_i32_1 = arith.constant 0 : i32
    return %c0_i32, %c0_i32_0 : i32, i32
  }
  func.func @transform_10(%arg0: i32) -> (i32, i32) {
    %c0_i32 = arith.constant 0 : i32
    %c0_i32_0 = arith.constant 0 : i32
    %c0_i32_1 = arith.constant 0 : i32
    return %c0_i32, %c0_i32_0 : i32, i32
  }
  func.func @transform_11(%arg0: i32) -> (i32, i32) {
    %c0_i32 = arith.constant 0 : i32
    %c0_i32_0 = arith.constant 0 : i32
    %c0_i32_1 = arith.constant 0 : i32
    return %c0_i32, %c0_i32_0 : i32, i32
  }
  func.func @transform_12(%arg0: i32) -> (i32, i32) {
    %c0_i32 = arith.constant 0 : i32
    %c0_i32_0 = arith.constant 0 : i32
    %c0_i32_1 = arith.constant 0 : i32
    return %c0_i32, %c0_i32_0 : i32, i32
  }
  func.func @transform_13(%arg0: i32) -> (i32, i32) {
    %c0_i32 = arith.constant 0 : i32
    %c0_i32_0 = arith.constant 0 : i32
    %c0_i32_1 = arith.constant 0 : i32
    return %c0_i32, %c0_i32_0 : i32, i32
  }
  func.func @transform_14(%arg0: i32) -> (i32, i32) {
    %c0_i32 = arith.constant 0 : i32
    %c0_i32_0 = arith.constant 0 : i32
    %c0_i32_1 = arith.constant 0 : i32
    return %c0_i32, %c0_i32_0 : i32, i32
  }
  func.func @transform_15(%arg0: i32) -> (i32, i32) {
    %c0_i32 = arith.constant 0 : i32
    %c0_i32_0 = arith.constant 0 : i32
    %c0_i32_1 = arith.constant 0 : i32
    return %c0_i32, %c0_i32_0 : i32, i32
  }
  func.func @transform_16(%arg0: i32) -> (i32, i32) {
    %c0_i32 = arith.constant 0 : i32
    %c0_i32_0 = arith.constant 0 : i32
    %c0_i32_1 = arith.constant 0 : i32
    return %c0_i32, %c0_i32_0 : i32, i32
  }
  func.func @transform_17(%arg0: i32) -> (i32, i32) {
    %c0_i32 = arith.constant 0 : i32
    %c0_i32_0 = arith.constant 0 : i32
    %c0_i32_1 = arith.constant 0 : i32
    return %c0_i32, %c0_i32_0 : i32, i32
  }
  func.func @transform_18(%arg0: i32) -> (i32, i32) {
    %c0_i32 = arith.constant 0 : i32
    %c0_i32_0 = arith.constant 0 : i32
    %c0_i32_1 = arith.constant 0 : i32
    return %c0_i32, %c0_i32_0 : i32, i32
  }
  func.func @transform_19(%arg0: i32) -> (i32, i32) {
    %c0_i32 = arith.constant 0 : i32
    %c0_i32_0 = arith.constant 0 : i32
    %c0_i32_1 = arith.constant 0 : i32
    return %c0_i32, %c0_i32_0 : i32, i32
  }
  func.func @transform_20(%arg0: i32) -> (i32, i32) {
    %c0_i32 = arith.constant 0 : i32
    %c0_i32_0 = arith.constant 0 : i32
    %c0_i32_1 = arith.constant 0 : i32
    return %c0_i32, %c0_i32_0 : i32, i32
  }
  func.func @transform_21(%arg0: i32) -> (i32, i32) {
    %c0_i32 = arith.constant 0 : i32
    %c0_i32_0 = arith.constant 0 : i32
    return %arg0, %c0_i32 : i32, i32
  }
  func.func @transform_22(%arg0: i32) -> (i32, i32) {
    %c0_i32 = arith.constant 0 : i32
    %c0_i32_0 = arith.constant 0 : i32
    return %arg0, %c0_i32 : i32, i32
  }
  func.func @transform_23(%arg0: i32) -> (i32, i32) {
    %c0_i32 = arith.constant 0 : i32
    %c0_i32_0 = arith.constant 0 : i32
    return %arg0, %c0_i32 : i32, i32
  }
}

module attributes {stable_mosaic.version = 11 : i64} {
  func.func @_autoencoder_kernel(%arg0: i32, %arg1: memref<8x128xf32, #tpu.memory_space<vmem>>, %arg2: memref<128x256xbf16, #tpu.memory_space<vmem>>, %arg3: memref<1x256xf32, #tpu.memory_space<vmem>>, %arg4: memref<256x512xbf16, #tpu.memory_space<vmem>>, %arg5: memref<1x512xf32, #tpu.memory_space<vmem>>, %arg6: memref<512x512xbf16, #tpu.memory_space<vmem>>, %arg7: memref<1x512xf32, #tpu.memory_space<vmem>>, %arg8: memref<512x128xbf16, #tpu.memory_space<vmem>>, %arg9: memref<1x128xf32, #tpu.memory_space<vmem>>, %arg10: memref<128x512xbf16, #tpu.memory_space<vmem>>, %arg11: memref<1x512xf32, #tpu.memory_space<vmem>>, %arg12: memref<512x512xbf16, #tpu.memory_space<vmem>>, %arg13: memref<1x512xf32, #tpu.memory_space<vmem>>, %arg14: memref<512x256xbf16, #tpu.memory_space<vmem>>, %arg15: memref<1x256xf32, #tpu.memory_space<vmem>>, %arg16: memref<256x128xbf16, #tpu.memory_space<vmem>>, %arg17: memref<1x128xf32, #tpu.memory_space<vmem>>, %arg18: memref<128x128xbf16, #tpu.memory_space<vmem>>, %arg19: memref<1x128xf32, #tpu.memory_space<vmem>>, %arg20: memref<128x128xbf16, #tpu.memory_space<vmem>>, %arg21: memref<1x128xf32, #tpu.memory_space<vmem>>, %arg22: memref<8x128xf32, #tpu.memory_space<vmem>>, %arg23: memref<8x128xf32, #tpu.memory_space<vmem>>, %arg24: memref<8x128xf32, #tpu.memory_space<vmem>>) attributes {dimension_semantics = [#tpu.dimension_semantics<parallel>], iteration_bounds = array<i64: 2>, scalar_prefetch = 0 : i64, scratch_operands = 0 : i64, tpu.core_type = #tpu.core_type<tc>, window_params = [{transform_indices = @transform_0, window_bounds = array<i64: 8, 128>}, {pipeline_mode = #tpu.pipeline_mode<synchronous>, transform_indices = @transform_1, window_bounds = array<i64: 128, 256>}, {pipeline_mode = #tpu.pipeline_mode<synchronous>, transform_indices = @transform_2, window_bounds = array<i64: 1, 256>}, {pipeline_mode = #tpu.pipeline_mode<synchronous>, transform_indices = @transform_3, window_bounds = array<i64: 256, 512>}, {pipeline_mode = #tpu.pipeline_mode<synchronous>, transform_indices = @transform_4, window_bounds = array<i64: 1, 512>}, {pipeline_mode = #tpu.pipeline_mode<synchronous>, transform_indices = @transform_5, window_bounds = array<i64: 512, 512>}, {pipeline_mode = #tpu.pipeline_mode<synchronous>, transform_indices = @transform_6, window_bounds = array<i64: 1, 512>}, {pipeline_mode = #tpu.pipeline_mode<synchronous>, transform_indices = @transform_7, window_bounds = array<i64: 512, 128>}, {pipeline_mode = #tpu.pipeline_mode<synchronous>, transform_indices = @transform_8, window_bounds = array<i64: 1, 128>}, {pipeline_mode = #tpu.pipeline_mode<synchronous>, transform_indices = @transform_9, window_bounds = array<i64: 128, 512>}, {pipeline_mode = #tpu.pipeline_mode<synchronous>, transform_indices = @transform_10, window_bounds = array<i64: 1, 512>}, {pipeline_mode = #tpu.pipeline_mode<synchronous>, transform_indices = @transform_11, window_bounds = array<i64: 512, 512>}, {pipeline_mode = #tpu.pipeline_mode<synchronous>, transform_indices = @transform_12, window_bounds = array<i64: 1, 512>}, {pipeline_mode = #tpu.pipeline_mode<synchronous>, transform_indices = @transform_13, window_bounds = array<i64: 512, 256>}, {pipeline_mode = #tpu.pipeline_mode<synchronous>, transform_indices = @transform_14, window_bounds = array<i64: 1, 256>}, {pipeline_mode = #tpu.pipeline_mode<synchronous>, transform_indices = @transform_15, window_bounds = array<i64: 256, 128>}, {pipeline_mode = #tpu.pipeline_mode<synchronous>, transform_indices = @transform_16, window_bounds = array<i64: 1, 128>}, {pipeline_mode = #tpu.pipeline_mode<synchronous>, transform_indices = @transform_17, window_bounds = array<i64: 128, 128>}, {pipeline_mode = #tpu.pipeline_mode<synchronous>, transform_indices = @transform_18, window_bounds = array<i64: 1, 128>}, {pipeline_mode = #tpu.pipeline_mode<synchronous>, transform_indices = @transform_19, window_bounds = array<i64: 128, 128>}, {pipeline_mode = #tpu.pipeline_mode<synchronous>, transform_indices = @transform_20, window_bounds = array<i64: 1, 128>}, {transform_indices = @transform_21, window_bounds = array<i64: 8, 128>}, {transform_indices = @transform_22, window_bounds = array<i64: 8, 128>}, {transform_indices = @transform_23, window_bounds = array<i64: 8, 128>}]} {
    %c0 = arith.constant 0 : index
    %c0_0 = arith.constant 0 : index
    %0 = vector.load %arg1[%c0, %c0_0] : memref<8x128xf32, #tpu.memory_space<vmem>>, vector<8x128xf32>
    %1 = arith.truncf %0 : vector<8x128xf32> to vector<8x128xbf16>
    %c0_1 = arith.constant 0 : index
    %c0_2 = arith.constant 0 : index
    %2 = vector.load %arg2[%c0_1, %c0_2] : memref<128x256xbf16, #tpu.memory_space<vmem>>, vector<128x256xbf16>
    %cst = arith.constant dense<0.000000e+00> : vector<8x256xf32>
    %3 = tpu.matmul %1, %2, %cst {dimension_numbers = #tpu.dot_dimension_numbers<[1], [0], [0], [1], [0, 0, 1, 1], [], []>} : vector<8x128xbf16>, vector<128x256xbf16>, vector<8x256xf32> -> vector<8x256xf32>
    %c0_3 = arith.constant 0 : index
    %c0_4 = arith.constant 0 : index
    %4 = vector.load %arg3[%c0_3, %c0_4] : memref<1x256xf32, #tpu.memory_space<vmem>>, vector<1x256xf32>
    %5 = vector.broadcast %4 : vector<1x256xf32> to vector<8x256xf32>
    %6 = arith.addf %3, %5 : vector<8x256xf32>
    %cst_5 = arith.constant 0.000000e+00 : f32
    %7 = vector.broadcast %cst_5 : f32 to vector<8x256xf32>
    %8 = arith.maximumf %6, %7 : vector<8x256xf32>
    %9 = arith.truncf %8 : vector<8x256xf32> to vector<8x256xbf16>
    %c0_6 = arith.constant 0 : index
    %c0_7 = arith.constant 0 : index
    %10 = vector.load %arg4[%c0_6, %c0_7] : memref<256x512xbf16, #tpu.memory_space<vmem>>, vector<256x512xbf16>
    %cst_8 = arith.constant dense<0.000000e+00> : vector<8x512xf32>
    %11 = tpu.matmul %9, %10, %cst_8 {dimension_numbers = #tpu.dot_dimension_numbers<[1], [0], [0], [1], [0, 0, 1, 1], [], []>} : vector<8x256xbf16>, vector<256x512xbf16>, vector<8x512xf32> -> vector<8x512xf32>
    %c0_9 = arith.constant 0 : index
    %c0_10 = arith.constant 0 : index
    %12 = vector.load %arg5[%c0_9, %c0_10] : memref<1x512xf32, #tpu.memory_space<vmem>>, vector<1x512xf32>
    %13 = vector.broadcast %12 : vector<1x512xf32> to vector<8x512xf32>
    %14 = arith.addf %11, %13 : vector<8x512xf32>
    %cst_11 = arith.constant 0.000000e+00 : f32
    %15 = vector.broadcast %cst_11 : f32 to vector<8x512xf32>
    %16 = arith.maximumf %14, %15 : vector<8x512xf32>
    %17 = arith.truncf %16 : vector<8x512xf32> to vector<8x512xbf16>
    %c0_12 = arith.constant 0 : index
    %c0_13 = arith.constant 0 : index
    %18 = vector.load %arg6[%c0_12, %c0_13] : memref<512x512xbf16, #tpu.memory_space<vmem>>, vector<512x512xbf16>
    %cst_14 = arith.constant dense<0.000000e+00> : vector<8x512xf32>
    %19 = tpu.matmul %17, %18, %cst_14 {dimension_numbers = #tpu.dot_dimension_numbers<[1], [0], [0], [1], [0, 0, 1, 1], [], []>} : vector<8x512xbf16>, vector<512x512xbf16>, vector<8x512xf32> -> vector<8x512xf32>
    %c0_15 = arith.constant 0 : index
    %c0_16 = arith.constant 0 : index
    %20 = vector.load %arg7[%c0_15, %c0_16] : memref<1x512xf32, #tpu.memory_space<vmem>>, vector<1x512xf32>
    %21 = vector.broadcast %20 : vector<1x512xf32> to vector<8x512xf32>
    %22 = arith.addf %19, %21 : vector<8x512xf32>
    %cst_17 = arith.constant 0.000000e+00 : f32
    %23 = vector.broadcast %cst_17 : f32 to vector<8x512xf32>
    %24 = arith.maximumf %22, %23 : vector<8x512xf32>
    %25 = arith.truncf %24 : vector<8x512xf32> to vector<8x512xbf16>
    %c0_18 = arith.constant 0 : index
    %c0_19 = arith.constant 0 : index
    %26 = vector.load %arg8[%c0_18, %c0_19] : memref<512x128xbf16, #tpu.memory_space<vmem>>, vector<512x128xbf16>
    %cst_20 = arith.constant dense<0.000000e+00> : vector<8x128xf32>
    %27 = tpu.matmul %25, %26, %cst_20 {dimension_numbers = #tpu.dot_dimension_numbers<[1], [0], [0], [1], [0, 0, 1, 1], [], []>} : vector<8x512xbf16>, vector<512x128xbf16>, vector<8x128xf32> -> vector<8x128xf32>
    %c0_21 = arith.constant 0 : index
    %c0_22 = arith.constant 0 : index
    %28 = vector.load %arg9[%c0_21, %c0_22] : memref<1x128xf32, #tpu.memory_space<vmem>>, vector<1x128xf32>
    %29 = vector.broadcast %28 : vector<1x128xf32> to vector<8x128xf32>
    %30 = arith.addf %27, %29 : vector<8x128xf32>
    %c0_23 = arith.constant 0 : index
    %c0_24 = arith.constant 0 : index
    %31 = vector.load %arg23[%c0_23, %c0_24] : memref<8x128xf32, #tpu.memory_space<vmem>>, vector<8x128xf32>
    tpu.vector_store %arg23[%c0_23, %c0_24], %30 {strides = array<i32>} : memref<8x128xf32, #tpu.memory_space<vmem>>, vector<8x128xf32>,
    %32 = arith.truncf %30 : vector<8x128xf32> to vector<8x128xbf16>
    %c0_25 = arith.constant 0 : index
    %c0_26 = arith.constant 0 : index
    %33 = vector.load %arg10[%c0_25, %c0_26] : memref<128x512xbf16, #tpu.memory_space<vmem>>, vector<128x512xbf16>
    %cst_27 = arith.constant dense<0.000000e+00> : vector<8x512xf32>
    %34 = tpu.matmul %32, %33, %cst_27 {dimension_numbers = #tpu.dot_dimension_numbers<[1], [0], [0], [1], [0, 0, 1, 1], [], []>} : vector<8x128xbf16>, vector<128x512xbf16>, vector<8x512xf32> -> vector<8x512xf32>
    %c0_28 = arith.constant 0 : index
    %c0_29 = arith.constant 0 : index
    %35 = vector.load %arg11[%c0_28, %c0_29] : memref<1x512xf32, #tpu.memory_space<vmem>>, vector<1x512xf32>
    %36 = vector.broadcast %35 : vector<1x512xf32> to vector<8x512xf32>
    %37 = arith.addf %34, %36 : vector<8x512xf32>
    %cst_30 = arith.constant 0.000000e+00 : f32
    %38 = vector.broadcast %cst_30 : f32 to vector<8x512xf32>
    %39 = arith.maximumf %37, %38 : vector<8x512xf32>
    %40 = arith.truncf %39 : vector<8x512xf32> to vector<8x512xbf16>
    %c0_31 = arith.constant 0 : index
    %c0_32 = arith.constant 0 : index
    %41 = vector.load %arg12[%c0_31, %c0_32] : memref<512x512xbf16, #tpu.memory_space<vmem>>, vector<512x512xbf16>
    %cst_33 = arith.constant dense<0.000000e+00> : vector<8x512xf32>
    %42 = tpu.matmul %40, %41, %cst_33 {dimension_numbers = #tpu.dot_dimension_numbers<[1], [0], [0], [1], [0, 0, 1, 1], [], []>} : vector<8x512xbf16>, vector<512x512xbf16>, vector<8x512xf32> -> vector<8x512xf32>
    %c0_34 = arith.constant 0 : index
    %c0_35 = arith.constant 0 : index
    %43 = vector.load %arg13[%c0_34, %c0_35] : memref<1x512xf32, #tpu.memory_space<vmem>>, vector<1x512xf32>
    %44 = vector.broadcast %43 : vector<1x512xf32> to vector<8x512xf32>
    %45 = arith.addf %42, %44 : vector<8x512xf32>
    %cst_36 = arith.constant 0.000000e+00 : f32
    %46 = vector.broadcast %cst_36 : f32 to vector<8x512xf32>
    %47 = arith.maximumf %45, %46 : vector<8x512xf32>
    %48 = arith.truncf %47 : vector<8x512xf32> to vector<8x512xbf16>
    %c0_37 = arith.constant 0 : index
    %c0_38 = arith.constant 0 : index
    %49 = vector.load %arg14[%c0_37, %c0_38] : memref<512x256xbf16, #tpu.memory_space<vmem>>, vector<512x256xbf16>
    %cst_39 = arith.constant dense<0.000000e+00> : vector<8x256xf32>
    %50 = tpu.matmul %48, %49, %cst_39 {dimension_numbers = #tpu.dot_dimension_numbers<[1], [0], [0], [1], [0, 0, 1, 1], [], []>} : vector<8x512xbf16>, vector<512x256xbf16>, vector<8x256xf32> -> vector<8x256xf32>
    %c0_40 = arith.constant 0 : index
    %c0_41 = arith.constant 0 : index
    %51 = vector.load %arg15[%c0_40, %c0_41] : memref<1x256xf32, #tpu.memory_space<vmem>>, vector<1x256xf32>
    %52 = vector.broadcast %51 : vector<1x256xf32> to vector<8x256xf32>
    %53 = arith.addf %50, %52 : vector<8x256xf32>
    %cst_42 = arith.constant 0.000000e+00 : f32
    %54 = vector.broadcast %cst_42 : f32 to vector<8x256xf32>
    %55 = arith.maximumf %53, %54 : vector<8x256xf32>
    %56 = arith.truncf %55 : vector<8x256xf32> to vector<8x256xbf16>
    %c0_43 = arith.constant 0 : index
    %c0_44 = arith.constant 0 : index
    %57 = vector.load %arg16[%c0_43, %c0_44] : memref<256x128xbf16, #tpu.memory_space<vmem>>, vector<256x128xbf16>
    %cst_45 = arith.constant dense<0.000000e+00> : vector<8x128xf32>
    %58 = tpu.matmul %56, %57, %cst_45 {dimension_numbers = #tpu.dot_dimension_numbers<[1], [0], [0], [1], [0, 0, 1, 1], [], []>} : vector<8x256xbf16>, vector<256x128xbf16>, vector<8x128xf32> -> vector<8x128xf32>
    %c0_46 = arith.constant 0 : index
    %c0_47 = arith.constant 0 : index
    %59 = vector.load %arg17[%c0_46, %c0_47] : memref<1x128xf32, #tpu.memory_space<vmem>>, vector<1x128xf32>
    %60 = vector.broadcast %59 : vector<1x128xf32> to vector<8x128xf32>
    %61 = arith.addf %58, %60 : vector<8x128xf32>
    %c0_48 = arith.constant 0 : index
    %c0_49 = arith.constant 0 : index
    %62 = vector.load %arg22[%c0_48, %c0_49] : memref<8x128xf32, #tpu.memory_space<vmem>>, vector<8x128xf32>
    tpu.vector_store %arg22[%c0_48, %c0_49], %61 {strides = array<i32>} : memref<8x128xf32, #tpu.memory_space<vmem>>, vector<8x128xf32>,
    %63 = arith.truncf %30 : vector<8x128xf32> to vector<8x128xbf16>
    %c0_50 = arith.constant 0 : index
    %c0_51 = arith.constant 0 : index
    %64 = vector.load %arg18[%c0_50, %c0_51] : memref<128x128xbf16, #tpu.memory_space<vmem>>, vector<128x128xbf16>
    %cst_52 = arith.constant dense<0.000000e+00> : vector<8x128xf32>
    %65 = tpu.matmul %63, %64, %cst_52 {dimension_numbers = #tpu.dot_dimension_numbers<[1], [0], [0], [1], [0, 0, 1, 1], [], []>} : vector<8x128xbf16>, vector<128x128xbf16>, vector<8x128xf32> -> vector<8x128xf32>
    %c0_53 = arith.constant 0 : index
    %c0_54 = arith.constant 0 : index
    %66 = vector.load %arg19[%c0_53, %c0_54] : memref<1x128xf32, #tpu.memory_space<vmem>>, vector<1x128xf32>
    %67 = vector.broadcast %66 : vector<1x128xf32> to vector<8x128xf32>
    %68 = arith.addf %65, %67 : vector<8x128xf32>
    %cst_55 = arith.constant 5.000000e-01 : f32
    %69 = vector.broadcast %cst_55 : f32 to vector<8x128xf32>
    %70 = arith.mulf %69, %68 : vector<8x128xf32>
    %cst_56 = arith.constant 4.471500e-02 : f32
    %71 = vector.broadcast %cst_56 : f32 to vector<8x128xf32>
    %72 = arith.mulf %71, %68 : vector<8x128xf32>
    %73 = arith.mulf %72, %68 : vector<8x128xf32>
    %74 = arith.mulf %73, %68 : vector<8x128xf32>
    %75 = arith.addf %68, %74 : vector<8x128xf32>
    %cst_57 = arith.constant 0.797884583 : f32
    %76 = vector.broadcast %cst_57 : f32 to vector<8x128xf32>
    %77 = arith.mulf %76, %75 : vector<8x128xf32>
    %78 = math.tanh %77 : vector<8x128xf32>
    %cst_58 = arith.constant 1.000000e+00 : f32
    %79 = vector.broadcast %cst_58 : f32 to vector<8x128xf32>
    %80 = arith.addf %79, %78 : vector<8x128xf32>
    %81 = arith.mulf %70, %80 : vector<8x128xf32>
    %82 = arith.truncf %81 : vector<8x128xf32> to vector<8x128xbf16>
    %c0_59 = arith.constant 0 : index
    %c0_60 = arith.constant 0 : index
    %83 = vector.load %arg20[%c0_59, %c0_60] : memref<128x128xbf16, #tpu.memory_space<vmem>>, vector<128x128xbf16>
    %cst_61 = arith.constant dense<0.000000e+00> : vector<8x128xf32>
    %84 = tpu.matmul %82, %83, %cst_61 {dimension_numbers = #tpu.dot_dimension_numbers<[1], [0], [0], [1], [0, 0, 1, 1], [], []>} : vector<8x128xbf16>, vector<128x128xbf16>, vector<8x128xf32> -> vector<8x128xf32>
    %c0_62 = arith.constant 0 : index
    %c0_63 = arith.constant 0 : index
    %85 = vector.load %arg21[%c0_62, %c0_63] : memref<1x128xf32, #tpu.memory_space<vmem>>, vector<1x128xf32>
    %86 = vector.broadcast %85 : vector<1x128xf32> to vector<8x128xf32>
    %87 = arith.addf %84, %86 : vector<8x128xf32>
    %cst_64 = arith.constant dense<0xFF800000> : vector<8xf32>
    %88 = vector.multi_reduction <maximumf>, %87, %cst_64 [1] : vector<8x128xf32> to vector<8xf32>
    %89 = vector.shape_cast %88 : vector<8xf32> to vector<8x1xf32>
    %90 = vector.broadcast %89 : vector<8x1xf32> to vector<8x128xf32>
    %91 = arith.subf %87, %90 : vector<8x128xf32>
    %92 = math.exp %91 : vector<8x128xf32>
    %cst_65 = arith.constant dense<0.000000e+00> : vector<8xf32>
    %93 = vector.multi_reduction <add>, %92, %cst_65 [1] : vector<8x128xf32> to vector<8xf32>
    %94 = vector.shape_cast %93 : vector<8xf32> to vector<8x1xf32>
    %95 = tpu.reciprocal %94 {approx = true} : vector<8x1xf32> -> vector<8x1xf32>
    %96 = vector.broadcast %95 : vector<8x1xf32> to vector<8x128xf32>
    %97 = arith.mulf %92, %96 : vector<8x128xf32>
    %c0_66 = arith.constant 0 : index
    %c0_67 = arith.constant 0 : index
    %98 = vector.load %arg24[%c0_66, %c0_67] : memref<8x128xf32, #tpu.memory_space<vmem>>, vector<8x128xf32>
    tpu.vector_store %arg24[%c0_66, %c0_67], %97 {strides = array<i32>} : memref<8x128xf32, #tpu.memory_space<vmem>>, vector<8x128xf32>,
    return
  }
  func.func @transform_0(%arg0: i32) -> (i32, i32) {
    %c0_i32 = arith.constant 0 : i32
    %c0_i32_0 = arith.constant 0 : i32
    return %arg0, %c0_i32 : i32, i32
  }
  func.func @transform_1(%arg0: i32) -> (i32, i32) {
    %c0_i32 = arith.constant 0 : i32
    %c0_i32_0 = arith.constant 0 : i32
    %c0_i32_1 = arith.constant 0 : i32
    return %c0_i32, %c0_i32_0 : i32, i32
  }
  func.func @transform_2(%arg0: i32) -> (i32, i32) {
    %c0_i32 = arith.constant 0 : i32
    %c0_i32_0 = arith.constant 0 : i32
    %c0_i32_1 = arith.constant 0 : i32
    return %c0_i32, %c0_i32_0 : i32, i32
  }
  func.func @transform_3(%arg0: i32) -> (i32, i32) {
    %c0_i32 = arith.constant 0 : i32
    %c0_i32_0 = arith.constant 0 : i32
    %c0_i32_1 = arith.constant 0 : i32
    return %c0_i32, %c0_i32_0 : i32, i32
  }
  func.func @transform_4(%arg0: i32) -> (i32, i32) {
    %c0_i32 = arith.constant 0 : i32
    %c0_i32_0 = arith.constant 0 : i32
    %c0_i32_1 = arith.constant 0 : i32
    return %c0_i32, %c0_i32_0 : i32, i32
  }
  func.func @transform_5(%arg0: i32) -> (i32, i32) {
    %c0_i32 = arith.constant 0 : i32
    %c0_i32_0 = arith.constant 0 : i32
    %c0_i32_1 = arith.constant 0 : i32
    return %c0_i32, %c0_i32_0 : i32, i32
  }
  func.func @transform_6(%arg0: i32) -> (i32, i32) {
    %c0_i32 = arith.constant 0 : i32
    %c0_i32_0 = arith.constant 0 : i32
    %c0_i32_1 = arith.constant 0 : i32
    return %c0_i32, %c0_i32_0 : i32, i32
  }
  func.func @transform_7(%arg0: i32) -> (i32, i32) {
    %c0_i32 = arith.constant 0 : i32
    %c0_i32_0 = arith.constant 0 : i32
    %c0_i32_1 = arith.constant 0 : i32
    return %c0_i32, %c0_i32_0 : i32, i32
  }
  func.func @transform_8(%arg0: i32) -> (i32, i32) {
    %c0_i32 = arith.constant 0 : i32
    %c0_i32_0 = arith.constant 0 : i32
    %c0_i32_1 = arith.constant 0 : i32
    return %c0_i32, %c0_i32_0 : i32, i32
  }
  func.func @transform_9(%arg0: i32) -> (i32, i32) {
    %c0_i32 = arith.constant 0 : i32
    %c0_i32_0 = arith.constant 0 : i32
    %c0_i32_1 = arith.constant 0 : i32
    return %c0_i32, %c0_i32_0 : i32, i32
  }
  func.func @transform_10(%arg0: i32) -> (i32, i32) {
    %c0_i32 = arith.constant 0 : i32
    %c0_i32_0 = arith.constant 0 : i32
    %c0_i32_1 = arith.constant 0 : i32
    return %c0_i32, %c0_i32_0 : i32, i32
  }
  func.func @transform_11(%arg0: i32) -> (i32, i32) {
    %c0_i32 = arith.constant 0 : i32
    %c0_i32_0 = arith.constant 0 : i32
    %c0_i32_1 = arith.constant 0 : i32
    return %c0_i32, %c0_i32_0 : i32, i32
  }
  func.func @transform_12(%arg0: i32) -> (i32, i32) {
    %c0_i32 = arith.constant 0 : i32
    %c0_i32_0 = arith.constant 0 : i32
    %c0_i32_1 = arith.constant 0 : i32
    return %c0_i32, %c0_i32_0 : i32, i32
  }
  func.func @transform_13(%arg0: i32) -> (i32, i32) {
    %c0_i32 = arith.constant 0 : i32
    %c0_i32_0 = arith.constant 0 : i32
    %c0_i32_1 = arith.constant 0 : i32
    return %c0_i32, %c0_i32_0 : i32, i32
  }
  func.func @transform_14(%arg0: i32) -> (i32, i32) {
    %c0_i32 = arith.constant 0 : i32
    %c0_i32_0 = arith.constant 0 : i32
    %c0_i32_1 = arith.constant 0 : i32
    return %c0_i32, %c0_i32_0 : i32, i32
  }
  func.func @transform_15(%arg0: i32) -> (i32, i32) {
    %c0_i32 = arith.constant 0 : i32
    %c0_i32_0 = arith.constant 0 : i32
    %c0_i32_1 = arith.constant 0 : i32
    return %c0_i32, %c0_i32_0 : i32, i32
  }
  func.func @transform_16(%arg0: i32) -> (i32, i32) {
    %c0_i32 = arith.constant 0 : i32
    %c0_i32_0 = arith.constant 0 : i32
    %c0_i32_1 = arith.constant 0 : i32
    return %c0_i32, %c0_i32_0 : i32, i32
  }
  func.func @transform_17(%arg0: i32) -> (i32, i32) {
    %c0_i32 = arith.constant 0 : i32
    %c0_i32_0 = arith.constant 0 : i32
    %c0_i32_1 = arith.constant 0 : i32
    return %c0_i32, %c0_i32_0 : i32, i32
  }
  func.func @transform_18(%arg0: i32) -> (i32, i32) {
    %c0_i32 = arith.constant 0 : i32
    %c0_i32_0 = arith.constant 0 : i32
    %c0_i32_1 = arith.constant 0 : i32
    return %c0_i32, %c0_i32_0 : i32, i32
  }
  func.func @transform_19(%arg0: i32) -> (i32, i32) {
    %c0_i32 = arith.constant 0 : i32
    %c0_i32_0 = arith.constant 0 : i32
    %c0_i32_1 = arith.constant 0 : i32
    return %c0_i32, %c0_i32_0 : i32, i32
  }
  func.func @transform_20(%arg0: i32) -> (i32, i32) {
    %c0_i32 = arith.constant 0 : i32
    %c0_i32_0 = arith.constant 0 : i32
    %c0_i32_1 = arith.constant 0 : i32
    return %c0_i32, %c0_i32_0 : i32, i32
  }
  func.func @transform_21(%arg0: i32) -> (i32, i32) {
    %c0_i32 = arith.constant 0 : i32
    %c0_i32_0 = arith.constant 0 : i32
    return %arg0, %c0_i32 : i32, i32
  }
  func.func @transform_22(%arg0: i32) -> (i32, i32) {
    %c0_i32 = arith.constant 0 : i32
    %c0_i32_0 = arith.constant 0 : i32
    return %arg0, %c0_i32 : i32, i32
  }
  func.func @transform_23(%arg0: i32) -> (i32, i32) {
    %c0_i32 = arith.constant 0 : i32
    %c0_i32_0 = arith.constant 0 : i32
    return %arg0, %c0_i32 : i32, i32
  }
}

</mosaic_0001>

<bundles_post_ra>
// kernel: tpu_custom_call.1
= control target key start
LH: loop header
LB: loop body
LE: loop exit
PB: predicated region body
PF: predicated region fallthrough
CT: control target
= control target key end

     0   :  { %s8723_s0 = inlined_call_operand.hbm [shape: f32[16,128], index: 0, kind: input, shape index: {}]   ;;  %s8724_s1 = inlined_call_operand.hbm [shape: bf16[128,256], index: 1, kind: input, shape index: {}]   ;;  %s8725_s2 = inlined_call_operand.hbm [shape: f32[1,256], index: 2, kind: input, shape index: {}]   ;;  %s8726_s3 = inlined_call_operand.hbm [shape: bf16[256,512], index: 3, kind: input, shape index: {}]   ;;  %s8727_s4 = inlined_call_operand.hbm [shape: f32[1,512], index: 4, kind: input, shape index: {}]   ;;  %s8728_s5 = inlined_call_operand.hbm [shape: bf16[512,512], index: 5, kind: input, shape index: {}]   ;;  %s8729_s6 = inlined_call_operand.hbm [shape: f32[1,512], index: 6, kind: input, shape index: {}]   ;;  %s8730_s7 = inlined_call_operand.hbm [shape: bf16[512,128], index: 7, kind: input, shape index: {}]   ;;  %s8731_s8 = inlined_call_operand.hbm [shape: f32[1,128], index: 8, kind: input, shape index: {}]   ;;  %s8732_s9 = inlined_call_operand.hbm [shape: bf16[128,512], index: 9, kind: input, shape index: {}]   ;;  %s8733_s10 = inlined_call_operand.hbm [shape: f32[1,512], index: 10, kind: input, shape index: {}]   ;;  %s8734_s11 = inlined_call_operand.hbm [shape: bf16[512,512], index: 11, kind: input, shape index: {}]   ;;  %s8735_s12 = inlined_call_operand.hbm [shape: f32[1,512], index: 12, kind: input, shape index: {}]   ;;  %s8736_s13 = inlined_call_operand.hbm [shape: bf16[512,256], index: 13, kind: input, shape index: {}]   ;;  %s8737_s14 = inlined_call_operand.hbm [shape: f32[1,256], index: 14, kind: input, shape index: {}]   ;;  %s8738_s15 = inlined_call_operand.hbm [shape: bf16[256,128], index: 15, kind: input, shape index: {}]   ;;  %s8739_s16 = inlined_call_operand.hbm [shape: f32[1,128], index: 16, kind: input, shape index: {}]   ;;  %s8740_s17 = inlined_call_operand.vmem [shape: bf16[128,128], index: 17, kind: input, shape index: {}]   ;;  %s8741_s18 = inlined_call_operand.vmem [shape: f32[1,128], index: 18, kind: input, shape index: {}]   ;;  %s8742_s19 = inlined_call_operand.hbm [shape: bf16[128,128], index: 19, kind: input, shape index: {}]   ;;  %s8743_s20 = inlined_call_operand.vmem [shape: f32[1,128], index: 20, kind: input, shape index: {}]   ;;  %s8744_s21 = inlined_call_operand.hbm [shape: f32[16,128], index: 21, kind: output, shape index: {0}]   ;;  %s8745_s22 = inlined_call_operand.hbm [shape: f32[16,128], index: 22, kind: output, shape index: {1}]   ;;  %s8746_s23 = inlined_call_operand.hbm [shape: f32[16,128], index: 23, kind: output, shape index: {2}]  }
   0x1   :  { %8782 = sst [smem:[#allocation50_spill]] %s8723_s0 }
   0x2   :  { %8783 = sst [smem:[#allocation51_spill]] %s8724_s1 }
   0x3   :  { %8784 = sst [smem:[#allocation52_spill]] %s8725_s2 }
   0x4   :  { %8785 = sst [smem:[#allocation53_spill]] %s8726_s3 }
   0x5   :  { %8786 = sst [smem:[#allocation54_spill]] %s8727_s4 }
   0x6   :  { %8787 = sst [smem:[#allocation55_spill]] %s8728_s5 }
   0x7   :  { %8788 = sst [smem:[#allocation56_spill]] %s8729_s6 }
   0x8   :  { %8789 = sst [smem:[#allocation57_spill]] %s8730_s7 }
   0x9   :  { %8790 = sst [smem:[#allocation58_spill]] %s8731_s8 }
   0xa   :  { %8791 = sst [smem:[#allocation59_spill]] %s8732_s9 }
   0xb   :  { %8792 = sst [smem:[#allocation60_spill]] %s8733_s10 }
   0xc   :  { %8793 = sst [smem:[#allocation61_spill]] %s8734_s11 }
   0xd   :  { %8794 = sst [smem:[#allocation62_spill]] %s8735_s12 }
   0xe   :  { %8795 = sst [smem:[#allocation63_spill]] %s8736_s13 }
   0xf   :  { %8796 = sst [smem:[#allocation64_spill]] %s8737_s14 }
  0x10   :  { %8797 = sst [smem:[#allocation65_spill]] %s8738_s15 }
  0x11   :  { %8798 = sst [smem:[#allocation66_spill]] %s8740_s17 }
  0x12   :  { %8799 = sst [smem:[#allocation67_spill]] %s8741_s18 }
  0x13   :  { %8800 = sst [smem:[#allocation68_spill]] %s8743_s20 }
  0x14   :  { %8801 = sst [smem:[#allocation69_spill]] %s8744_s21 }
  0x15   :  { %8802 = sst [smem:[#allocation70_spill]] %s8745_s22 }
  0x16   :  { %8803 = sst [smem:[#allocation71_spill]] %s8746_s23 }
  0x17   :  { %29 = vsyncpa [#allocation3], 0 }
  0x18   :  { %31 = vsyncpa [#allocation3 + $0x1], 0 }
  0x19   :  { %32 = vsyncpa [#allocation6], 0 }
  0x1a   :  { %33 = vsyncpa [#allocation9], 0 }
  0x1b   :  { %34 = vsyncpa [#allocation12], 0 }
  0x1c   :  { %35 = vsyncpa [#allocation15], 0 }
  0x1d   :  { %36 = vsyncpa [#allocation18], 0 }
  0x1e   :  { %37 = vsyncpa [#allocation21], 0 }
  0x1f   :  { %38 = vsyncpa [#allocation24], 0 }
  0x20   :  { %39 = vsyncpa [#allocation27], 0 }
  0x21   :  { %40 = vsyncpa [#allocation30], 0 }
  0x22   :  { %41 = vsyncpa [#allocation4], 0 }
  0x23   :  { %43 = vsyncpa [#allocation4 + $0x1], 0 }
  0x24   :  { %44 = vsyncpa [#allocation33], 0 }
  0x25   :  { %46 = vsyncpa [#allocation33 + $0x1], 0  ;;  %s7923_s4 = smov 0   ;;  %s7925_s30 = smov 0  }
  0x26   :  { %s7927_s24 = smov 0   ;;  %s7929_s25 = smov 0  }
  0x27 LB: > { %8804 = sst [smem:[#allocation47_spill]] %s7759_s4  ;;  %s7773_s5 = smov [#allocation5]   ;;  %s7771_s25 = sphi %s7929_s25, %s8875_s25   ;;  %s7767_s24 = sphi %s7927_s24, %s8874_s24   ;;  %s7763_s30 = sphi %s7925_s30, %s8873_s30   ;;  %s7759_s4 = sphi %s7923_s4, %s8872_s4  }
  0x28   : > { %s593_s1 = sshll.u32 %s7773_s5, 4  ;;  %s7944_s26 = sadd.s32 4294967295, %s7771_s25   ;;  %s7949_s1 = int_to_ptr.vmem [resolvable:$true] %s593_s1 }
  0x29   : > { %8805 = sst [smem:[#allocation48_spill]] %s7944_s26  ;;  %p5444_p0 = scmp.ge.s32.totalorder %s7771_s25, 1 }
  0x2a   : > { %p8765_p1 = scmp.eq.s32.totalorder %s7944_s26, 0  ;;  %p581_p2 = scmp.lt.s32.totalorder %s7771_s25, 3 }
  0x2b   : > { %s7774_s6 = smov [#allocation8]   ;;  %s7775_s28 = smov [#allocation11]  }
  0x2c   : > { %p7951_p3 = pnand %p5444_p0, %p581_p2  ;;  %s617_s27 = sshll.u32 %s7774_s6, 4  ;;  %s7964_s27 = int_to_ptr.vmem [resolvable:$true] %s617_s27 }
  0x2d   : > { %s7966_s29 = sshll.u32 %s7775_s28, 4  ;;  %s8809_s5 = sld [smem:[#allocation51_spill]]  ;;  %s642_s29 = int_to_ptr.vmem [resolvable:$true] %s7966_s29 }
  0x2e   : > { %s8806_s2 = scalar_select %p7951_p3, 1, 0 }
  0x2f   : > { %p6225_p5 = pneg %p7951_p3 }
  0x30   : > { %8807 = sst [smem:[#allocation49_spill]] %s8806_s2 }
  0x31   : > { %p7960_p6 = pnand %p6225_p5, %p8765_p1 }
  0x33   : > { %s7103_s23 = scalar_lea.hbm %s8809_s5, 2048  ;;  %p7976_p8 = pneg %p7960_p6 }
  0x34   : > { %p7104_p7 = scmp.ne.s32.totalorder %s8809_s5, %s7103_s23  ;;  %p7110_p11 = scmp.lt.u32.totalorder %s7103_s23, %s8809_s5 }
  0x36   : > { %p7106_p9 = pnand %p7976_p8, %p7104_p7 }
  0x38   : > { %p7107_p10 = pneg %p7106_p9 }
  0x3a   : > { %p7112_p12 = pnand %p7110_p11, %p7107_p10 }
  0x3c   : > { %7115 = shalt.err (!%p7112_p12)
}
  0x3d   : > { %s7116_s21 = scalar_lea.vmem %s7949_s1, 2048  ;;  %p7124_p5 = scmp.lt.s32.totalorder %s7949_s1, %s7949_s1 }
  0x3e   : > { %p7117_p13 = scmp.ne.s32.totalorder %s7949_s1, %s7116_s21  ;;  %p7125_p4 = scmp.lt.s32.totalorder %s7116_s21, %s7116_s21 }
  0x40   : > { %p7119_p0 = pnand %p7117_p13, %p7976_p8  ;;  %p7126_p7 = por %p7125_p4, %p7124_p5 }
  0x42   : > { %p7120_p2 = pneg %p7119_p0 }
  0x44   : > { %p7127_p9 = pnand %p7126_p7, %p7120_p2 }
  0x46   : > { %7130 = shalt.err (!%p7127_p9)
}
  0x47   : > { %s8763_s22 = smov 128   ;;  %s8764_s20 = smov 8  }
  0x48   : > { %6228 = dma.hbm_to_vmem [thread:$0]  (!%p7960_p6), %s8809_s5, 2048, %s7949_s1, [#allocation6], %s8763_s22, %s8763_s22, %s8764_s20  }
  0x49   : > { %s8811_s18 = sld [smem:[#allocation53_spill]] }
  0x4f   : > { %s7131_s21 = scalar_lea.hbm %s8811_s18, 8192 }
  0x50   : > { %p7132_p4 = scmp.ne.s32.totalorder %s8811_s18, %s7131_s21  ;;  %p7138_p12 = scmp.lt.u32.totalorder %s7131_s21, %s8811_s18 }
  0x52   : > { %p7134_p10 = pnand %p7132_p4, %p7976_p8 }
  0x54   : > { %p7135_p11 = pneg %p7134_p10 }
  0x56   : > { %p7140_p13 = pnand %p7138_p12, %p7135_p11 }
  0x58   : > { %7143 = shalt.err (!%p7140_p13)
}
  0x59   : > { %s7144_s1 = scalar_lea.vmem %s7964_s27, 8192  ;;  %p7152_p7 = scmp.lt.s32.totalorder %s7964_s27, %s7964_s27 }
  0x5a   : > { %p7145_p0 = scmp.ne.s32.totalorder %s7964_s27, %s7144_s1  ;;  %p7153_p9 = scmp.lt.s32.totalorder %s7144_s1, %s7144_s1 }
  0x5c   : > { %p7147_p2 = pnand %p7145_p0, %p7976_p8  ;;  %p7154_p4 = por %p7153_p9, %p7152_p7 }
  0x5e   : > { %p7148_p5 = pneg %p7147_p2 }
  0x60   : > { %p7155_p10 = pnand %p7154_p4, %p7148_p5 }
  0x62   : > { %7158 = shalt.err (!%p7155_p10)
}
  0x63   : > { %s8769_s17 = smov 256   ;;  %s8771_s4 = smov 16  }
  0x64   : > { %6234 = dma.hbm_to_vmem [thread:$0]  (!%p7960_p6), %s8811_s18, 8192, %s7964_s27, [#allocation9], %s8769_s17, %s8769_s17, %s8771_s4  }
  0x65   : > { %s8812_s0 = sld [smem:[#allocation55_spill]] }
  0x6b   : > { %s7159_s28 = scalar_lea.hbm %s8812_s0, 16384 }
  0x6c   : > { %p7160_p11 = scmp.ne.s32.totalorder %s8812_s0, %s7159_s28  ;;  %p7166_p0 = scmp.lt.u32.totalorder %s7159_s28, %s8812_s0 }
  0x6e   : > { %p7162_p12 = pnand %p7160_p11, %p7976_p8 }
  0x70   : > { %p7163_p13 = pneg %p7162_p12 }
  0x72   : > { %p7168_p2 = pnand %p7166_p0, %p7163_p13 }
  0x74   : > { %7171 = shalt.err (!%p7168_p2)
}
  0x75   : > { %s7172_s26 = scalar_lea.vmem %s642_s29, 16384  ;;  %p7180_p4 = scmp.lt.s32.totalorder %s642_s29, %s642_s29 }
  0x76   : > { %p7173_p5 = scmp.ne.s32.totalorder %s642_s29, %s7172_s26  ;;  %p7181_p10 = scmp.lt.s32.totalorder %s7172_s26, %s7172_s26 }
  0x78   : > { %p7175_p7 = pnand %p7173_p5, %p7976_p8  ;;  %p7182_p1 = por %p7181_p10, %p7180_p4 }
  0x7a   : > { %p7176_p9 = pneg %p7175_p7 }
  0x7c   : > { %p7183_p3 = pnand %p7182_p1, %p7176_p9 }
  0x7e   : > { %7186 = shalt.err (!%p7183_p3)
}
  0x7f   : > { %6240 = dma.hbm_to_vmem [thread:$0]  (!%p7960_p6), %s8812_s0, 16384, %s642_s29, [#allocation12], %s8769_s17, %s8769_s17, %s8771_s4  }
  0x80   : > { %s7780_s20 = smov [#allocation14]   ;;  %s8813_s28 = sld [smem:[#allocation57_spill]] }
  0x81   : > { %s665_s2 = sshll.u32 %s7780_s20, 4  ;;  %s666_s2 = int_to_ptr.vmem [resolvable:$true] %s665_s2 }
  0x86   : > { %s7187_s21 = scalar_lea.hbm %s8813_s28, 4096 }
  0x87   : > { %p7188_p1 = scmp.ne.s32.totalorder %s8813_s28, %s7187_s21  ;;  %p7194_p12 = scmp.lt.u32.totalorder %s7187_s21, %s8813_s28 }
  0x89   : > { %p7190_p3 = pnand %p7188_p1, %p7976_p8 }
  0x8b   : > { %p7191_p11 = pneg %p7190_p3 }
  0x8d   : > { %p7196_p13 = pnand %p7194_p12, %p7191_p11 }
  0x8f   : > { %7199 = shalt.err (!%p7196_p13)
}
  0x90   : > { %s7200_s29 = scalar_lea.vmem %s666_s2, 4096  ;;  %p7208_p7 = scmp.lt.s32.totalorder %s666_s2, %s666_s2 }
  0x91   : > { %p7201_p0 = scmp.ne.s32.totalorder %s666_s2, %s7200_s29  ;;  %p7209_p9 = scmp.lt.s32.totalorder %s7200_s29, %s7200_s29 }
  0x93   : > { %p7203_p2 = pnand %p7201_p0, %p7976_p8  ;;  %p7210_p4 = por %p7209_p9, %p7208_p7 }
  0x95   : > { %p7204_p5 = pneg %p7203_p2 }
  0x97   : > { %p7211_p10 = pnand %p7210_p4, %p7204_p5 }
  0x99   : > { %7214 = shalt.err (!%p7211_p10)
}
  0x9a   : > { %s8773_s27 = smov 64   ;;  %s8775_s22 = smov 4  }
  0x9b   : > { %6246 = dma.hbm_to_vmem [thread:$0]  (!%p7960_p6), %s8813_s28, 4096, %s666_s2, [#allocation15], %s8773_s27, %s8773_s27, %s8775_s22  }
  0x9c   : > { %s7783_s20 = smov [#allocation17]   ;;  %s7784_s3 = smov [#allocation20]  }
  0x9d   : > { %s689_s23 = sshll.u32 %s7783_s20, 4  ;;  %s713_s21 = sshll.u32 %s7784_s3, 4  ;;  %s690_s23 = int_to_ptr.vmem [resolvable:$true] %s689_s23  ;;  %s8069_s21 = int_to_ptr.vmem [resolvable:$true] %s713_s21 }
  0x9e   : > { %s8814_s9 = sld [smem:[#allocation59_spill]] }
  0xa4   : > { %s7215_s29 = scalar_lea.hbm %s8814_s9, 4096 }
  0xa5   : > { %p7216_p1 = scmp.ne.s32.totalorder %s8814_s9, %s7215_s29  ;;  %p7222_p12 = scmp.lt.u32.totalorder %s7215_s29, %s8814_s9 }
  0xa7   : > { %p7218_p3 = pnand %p7216_p1, %p7976_p8 }
  0xa9   : > { %p7219_p11 = pneg %p7218_p3 }
  0xab   : > { %p7224_p13 = pnand %p7222_p12, %p7219_p11 }
  0xad   : > { %7227 = shalt.err (!%p7224_p13)
}
  0xae   : > { %s7228_s5 = scalar_lea.vmem %s690_s23, 4096  ;;  %p7236_p7 = scmp.lt.s32.totalorder %s690_s23, %s690_s23 }
  0xaf   : > { %p7229_p0 = scmp.ne.s32.totalorder %s690_s23, %s7228_s5  ;;  %p7237_p9 = scmp.lt.s32.totalorder %s7228_s5, %s7228_s5 }
  0xb1   : > { %p7231_p2 = pnand %p7229_p0, %p7976_p8  ;;  %p7238_p4 = por %p7237_p9, %p7236_p7 }
  0xb3   : > { %p7232_p5 = pneg %p7231_p2 }
  0xb5   : > { %p7239_p10 = pnand %p7238_p4, %p7232_p5 }
  0xb7   : > { %7242 = shalt.err (!%p7239_p10)
}
  0xb8   : > { %s8815_s17 = smov 16   ;;  %s8816_s4 = smov 256  }
  0xb9   : > { %6252 = dma.hbm_to_vmem [thread:$0]  (!%p7960_p6), %s8814_s9, 4096, %s690_s23, [#allocation18], %s8816_s4, %s8816_s4, %s8815_s17  }
  0xba   : > { %s8817_s11 = sld [smem:[#allocation61_spill]] }
  0xc0   : > { %s7243_s29 = scalar_lea.hbm %s8817_s11, 16384 }
  0xc1   : > { %p7244_p1 = scmp.ne.s32.totalorder %s8817_s11, %s7243_s29  ;;  %p7250_p12 = scmp.lt.u32.totalorder %s7243_s29, %s8817_s11 }
  0xc3   : > { %p7246_p3 = pnand %p7244_p1, %p7976_p8 }
  0xc5   : > { %p7247_p11 = pneg %p7246_p3 }
  0xc7   : > { %p7252_p13 = pnand %p7250_p12, %p7247_p11 }
  0xc9   : > { %7255 = shalt.err (!%p7252_p13)
}
  0xca   : > { %s7256_s23 = scalar_lea.vmem %s8069_s21, 16384  ;;  %p7264_p7 = scmp.lt.s32.totalorder %s8069_s21, %s8069_s21 }
  0xcb   : > { %p7257_p0 = scmp.ne.s32.totalorder %s8069_s21, %s7256_s23  ;;  %p7265_p9 = scmp.lt.s32.totalorder %s7256_s23, %s7256_s23 }
  0xcd   : > { %p7259_p2 = pnand %p7257_p0, %p7976_p8  ;;  %p7266_p4 = por %p7265_p9, %p7264_p7 }
  0xcf   : > { %p7260_p5 = pneg %p7259_p2 }
  0xd1   : > { %p7267_p10 = pnand %p7266_p4, %p7260_p5 }
  0xd3   : > { %7270 = shalt.err (!%p7267_p10)
}
  0xd4   : > { %6258 = dma.hbm_to_vmem [thread:$0]  (!%p7960_p6), %s8817_s11, 16384, %s8069_s21, [#allocation21], %s8816_s4, %s8816_s4, %s8815_s17  }
  0xd5   : > { %s7785_s3 = smov [#allocation23]   ;;  %s7786_s26 = smov [#allocation26]  }
  0xd6   : > { %s737_s1 = sshll.u32 %s7785_s3, 4  ;;  %s761_s29 = sshll.u32 %s7786_s26, 4  ;;  %s738_s1 = int_to_ptr.vmem [resolvable:$true] %s737_s1  ;;  %s8118_s29 = int_to_ptr.vmem [resolvable:$true] %s761_s29 }
  0xd7   : > { %s8818_s13 = sld [smem:[#allocation63_spill]] }
  0xdd   : > { %s7271_s5 = scalar_lea.hbm %s8818_s13, 8192 }
  0xde   : > { %p7272_p1 = scmp.ne.s32.totalorder %s8818_s13, %s7271_s5  ;;  %p7278_p12 = scmp.lt.u32.totalorder %s7271_s5, %s8818_s13 }
  0xe0   : > { %p7274_p3 = pnand %p7272_p1, %p7976_p8 }
  0xe2   : > { %p7275_p11 = pneg %p7274_p3 }
  0xe4   : > { %p7280_p13 = pnand %p7278_p12, %p7275_p11 }
  0xe6   : > { %7283 = shalt.err (!%p7280_p13)
}
  0xe7   : > { %s7284_s17 = scalar_lea.vmem %s738_s1, 8192  ;;  %p7292_p7 = scmp.lt.s32.totalorder %s738_s1, %s738_s1 }
  0xe8   : > { %p7285_p0 = scmp.ne.s32.totalorder %s738_s1, %s7284_s17  ;;  %p7293_p9 = scmp.lt.s32.totalorder %s7284_s17, %s7284_s17 }
  0xea   : > { %p7287_p2 = pnand %p7285_p0, %p7976_p8  ;;  %p7294_p4 = por %p7293_p9, %p7292_p7 }
  0xec   : > { %p7288_p5 = pneg %p7287_p2 }
  0xee   : > { %p7295_p10 = pnand %p7294_p4, %p7288_p5 }
  0xf0   : > { %7298 = shalt.err (!%p7295_p10)
}
  0xf1   : > { %s8819_s22 = smov 8   ;;  %s8820_s4 = smov 128  }
  0xf2   : > { %6264 = dma.hbm_to_vmem [thread:$0]  (!%p7960_p6), %s8818_s13, 8192, %s738_s1, [#allocation24], %s8820_s4, %s8820_s4, %s8819_s22  }
  0xf3   : > { %s8821_s15 = sld [smem:[#allocation65_spill]] }
  0xf9   : > { %s7299_s2 = scalar_lea.hbm %s8821_s15, 2048 }
  0xfa   : > { %p7300_p1 = scmp.ne.s32.totalorder %s8821_s15, %s7299_s2  ;;  %p7306_p12 = scmp.lt.u32.totalorder %s7299_s2, %s8821_s15 }
  0xfc   : > { %p7302_p3 = pnand %p7300_p1, %p7976_p8 }
  0xfe   : > { %p7303_p11 = pneg %p7302_p3 }
 0x100   : > { %p7308_p13 = pnand %p7306_p12, %p7303_p11 }
 0x102   : > { %7311 = shalt.err (!%p7308_p13)
}
 0x103   : > { %s7312_s1 = scalar_lea.vmem %s8118_s29, 2048  ;;  %p7320_p7 = scmp.lt.s32.totalorder %s8118_s29, %s8118_s29 }
 0x104   : > { %p7313_p0 = scmp.ne.s32.totalorder %s8118_s29, %s7312_s1  ;;  %p7321_p9 = scmp.lt.s32.totalorder %s7312_s1, %s7312_s1 }
 0x106   : > { %p7315_p2 = pnand %p7313_p0, %p7976_p8  ;;  %p7322_p4 = por %p7321_p9, %p7320_p7 }
 0x108   : > { %p7316_p5 = pneg %p7315_p2 }
 0x10a   : > { %p7323_p10 = pnand %p7322_p4, %p7316_p5 }
 0x10c   : > { %7326 = shalt.err (!%p7323_p10)
}
 0x10d   : > { %s8822_s17 = smov 4   ;;  %s8823_s22 = smov 64  }
 0x10e   : > { %6270 = dma.hbm_to_vmem [thread:$0]  (!%p7960_p6), %s8821_s15, 2048, %s8118_s29, [#allocation27], %s8823_s22, %s8823_s22, %s8822_s17  }
 0x10f   : > { %s7787_s3 = smov [#allocation7]   ;;  %s7788_s18 = smov [#allocation10]  }
 0x110   : > { %s607_s26 = sshll.u32 %s7787_s3, 4  ;;  %s631_s2 = sshll.u32 %s7788_s18, 4  ;;  %s608_s26 = int_to_ptr.vmem [resolvable:$true] %s607_s26  ;;  %s8167_s2 = int_to_ptr.vmem [resolvable:$true] %s631_s2 }
 0x111   : > { %s8824_s27 = sld [smem:[#allocation52_spill]] }
 0x117   : > { %s7327_s21 = scalar_lea.hbm %s8824_s27, 32 }
 0x118   : > { %p7328_p1 = scmp.ne.s32.totalorder %s8824_s27, %s7327_s21  ;;  %p7334_p12 = scmp.lt.u32.totalorder %s7327_s21, %s8824_s27 }
 0x11a   : > { %p7330_p3 = pnand %p7328_p1, %p7976_p8 }
 0x11c   : > { %p7331_p11 = pneg %p7330_p3 }
 0x11e   : > { %p7336_p13 = pnand %p7334_p12, %p7331_p11 }
 0x120   : > { %7339 = shalt.err (!%p7336_p13)
}
 0x121   : > { %s7340_s20 = scalar_lea.vmem %s608_s26, 32  ;;  %p7348_p7 = scmp.lt.s32.totalorder %s608_s26, %s608_s26 }
 0x122   : > { %p7341_p0 = scmp.ne.s32.totalorder %s608_s26, %s7340_s20  ;;  %p7349_p9 = scmp.lt.s32.totalorder %s7340_s20, %s7340_s20 }
 0x124   : > { %p7343_p2 = pnand %p7341_p0, %p7976_p8  ;;  %p7350_p4 = por %p7349_p9, %p7348_p7 }
 0x126   : > { %p7344_p5 = pneg %p7343_p2 }
 0x128   : > { %p7351_p10 = pnand %p7350_p4, %p7344_p5 }
 0x12a   : > { %7354 = shalt.err (!%p7351_p10)
}
 0x12b   : > { %6231 = dma.hbm_to_vmem [thread:$0]  (!%p7960_p6), %s8824_s27, 32, %s608_s26, [#allocation6]  }
 0x12c   : > { %s8825_s23 = sld [smem:[#allocation54_spill]] }
 0x132   : > { %s7355_s21 = scalar_lea.hbm %s8825_s23, 64 }
 0x133   : > { %p7356_p1 = scmp.ne.s32.totalorder %s8825_s23, %s7355_s21  ;;  %p7362_p12 = scmp.lt.u32.totalorder %s7355_s21, %s8825_s23 }
 0x135   : > { %p7358_p3 = pnand %p7356_p1, %p7976_p8 }
 0x137   : > { %p7359_p11 = pneg %p7358_p3 }
 0x139   : > { %p7364_p13 = pnand %p7362_p12, %p7359_p11 }
 0x13b   : > { %7367 = shalt.err (!%p7364_p13)
}
 0x13c   : > { %s7368_s26 = scalar_lea.vmem %s8167_s2, 64  ;;  %p7376_p7 = scmp.lt.s32.totalorder %s8167_s2, %s8167_s2 }
 0x13d   : > { %p7369_p0 = scmp.ne.s32.totalorder %s8167_s2, %s7368_s26  ;;  %p7377_p9 = scmp.lt.s32.totalorder %s7368_s26, %s7368_s26 }
 0x13f   : > { %p7371_p2 = pnand %p7369_p0, %p7976_p8  ;;  %p7378_p4 = por %p7377_p9, %p7376_p7 }
 0x141   : > { %p7372_p5 = pneg %p7371_p2 }
 0x143   : > { %p7379_p10 = pnand %p7378_p4, %p7372_p5 }
 0x145   : > { %7382 = shalt.err (!%p7379_p10)
}
 0x146   : > { %6237 = dma.hbm_to_vmem [thread:$0]  (!%p7960_p6), %s8825_s23, 64, %s8167_s2, [#allocation9]  }
 0x147   : > { %s7789_s18 = smov [#allocation13]   ;;  %s7790_s21 = smov [#allocation16]  }
 0x148   : > { %s655_s5 = sshll.u32 %s7789_s18, 4  ;;  %s679_s1 = sshll.u32 %s7790_s21, 4  ;;  %s656_s5 = int_to_ptr.vmem [resolvable:$true] %s655_s5  ;;  %s8210_s1 = int_to_ptr.vmem [resolvable:$true] %s679_s1 }
 0x149   : > { %s8826_s20 = sld [smem:[#allocation56_spill]] }
 0x14f   : > { %s7383_s26 = scalar_lea.hbm %s8826_s20, 64 }
 0x150   : > { %p7384_p1 = scmp.ne.s32.totalorder %s8826_s20, %s7383_s26  ;;  %p7390_p12 = scmp.lt.u32.totalorder %s7383_s26, %s8826_s20 }
 0x152   : > { %p7386_p3 = pnand %p7384_p1, %p7976_p8 }
 0x154   : > { %p7387_p11 = pneg %p7386_p3 }
 0x156   : > { %p7392_p13 = pnand %p7390_p12, %p7387_p11 }
 0x158   : > { %7395 = shalt.err (!%p7392_p13)
}
 0x159   : > { %s7396_s3 = scalar_lea.vmem %s656_s5, 64  ;;  %p7404_p7 = scmp.lt.s32.totalorder %s656_s5, %s656_s5 }
 0x15a   : > { %p7397_p0 = scmp.ne.s32.totalorder %s656_s5, %s7396_s3  ;;  %p7405_p9 = scmp.lt.s32.totalorder %s7396_s3, %s7396_s3 }
 0x15c   : > { %p7399_p2 = pnand %p7397_p0, %p7976_p8  ;;  %p7406_p4 = por %p7405_p9, %p7404_p7 }
 0x15e   : > { %p7400_p5 = pneg %p7399_p2 }
 0x160   : > { %p7407_p10 = pnand %p7406_p4, %p7400_p5 }
 0x162   : > { %7410 = shalt.err (!%p7407_p10)
}
 0x163   : > { %6243 = dma.hbm_to_vmem [thread:$0]  (!%p7960_p6), %s8826_s20, 64, %s656_s5, [#allocation12]  }
 0x164   : > { %s8827_s8 = sld [smem:[#allocation58_spill]] }
 0x16a   : > { %s7411_s4 = scalar_lea.hbm %s8827_s8, 16 }
 0x16b   : > { %p7412_p1 = scmp.ne.s32.totalorder %s8827_s8, %s7411_s4  ;;  %p7418_p12 = scmp.lt.u32.totalorder %s7411_s4, %s8827_s8 }
 0x16d   : > { %p7414_p3 = pnand %p7412_p1, %p7976_p8 }
 0x16f   : > { %p7415_p11 = pneg %p7414_p3 }
 0x171   : > { %p7420_p13 = pnand %p7418_p12, %p7415_p11 }
 0x173   : > { %7423 = shalt.err (!%p7420_p13)
}
 0x174   : > { %s7424_s5 = scalar_lea.vmem %s8210_s1, 16  ;;  %s7431_s3 = scalar_lea.vmem %s8210_s1, 32 }
 0x175   : > { %p7425_p0 = scmp.ne.s32.totalorder %s8210_s1, %s7424_s5  ;;  %p7432_p7 = scmp.lt.s32.totalorder %s8210_s1, %s8210_s1 }
 0x176   : > { %p7433_p9 = scmp.lt.s32.totalorder %s7431_s3, %s7424_s5 }
 0x177   : > { %p7427_p2 = pnand %p7425_p0, %p7976_p8 }
 0x178   : > { %p7434_p4 = por %p7433_p9, %p7432_p7 }
 0x179   : > { %p7428_p5 = pneg %p7427_p2 }
 0x17b   : > { %p7435_p10 = pnand %p7434_p4, %p7428_p5 }
 0x17d   : > { %7438 = shalt.err (!%p7435_p10)
}
 0x17e   : > { %6249 = dma.hbm_to_vmem [thread:$0]  (!%p7960_p6), %s8827_s8, 16, %s8210_s1, [#allocation15]  }
 0x17f   : > { %s7791_s18 = smov [#allocation19]   ;;  %s7792_s4 = smov [#allocation22]  }
 0x180   : > { %s703_s21 = sshll.u32 %s7791_s18, 4  ;;  %s727_s29 = sshll.u32 %s7792_s4, 4  ;;  %s704_s21 = int_to_ptr.vmem [resolvable:$true] %s703_s21  ;;  %s8254_s29 = int_to_ptr.vmem [resolvable:$true] %s727_s29 }
 0x181   : > { %s8828_s10 = sld [smem:[#allocation60_spill]] }
 0x187   : > { %s7439_s2 = scalar_lea.hbm %s8828_s10, 64 }
 0x188   : > { %p7440_p1 = scmp.ne.s32.totalorder %s8828_s10, %s7439_s2  ;;  %p7446_p12 = scmp.lt.u32.totalorder %s7439_s2, %s8828_s10 }
 0x18a   : > { %p7442_p3 = pnand %p7440_p1, %p7976_p8 }
 0x18c   : > { %p7443_p11 = pneg %p7442_p3 }
 0x18e   : > { %p7448_p13 = pnand %p7446_p12, %p7443_p11 }
 0x190   : > { %7451 = shalt.err (!%p7448_p13)
}
 0x191   : > { %s7452_s11 = scalar_lea.vmem %s704_s21, 64  ;;  %p7460_p7 = scmp.lt.s32.totalorder %s704_s21, %s704_s21 }
 0x192   : > { %p7453_p0 = scmp.ne.s32.totalorder %s704_s21, %s7452_s11  ;;  %p7461_p9 = scmp.lt.s32.totalorder %s7452_s11, %s7452_s11 }
 0x194   : > { %p7455_p2 = pnand %p7453_p0, %p7976_p8  ;;  %p7462_p4 = por %p7461_p9, %p7460_p7 }
 0x196   : > { %p7456_p5 = pneg %p7455_p2 }
 0x198   : > { %p7463_p10 = pnand %p7462_p4, %p7456_p5 }
 0x19a   : > { %7466 = shalt.err (!%p7463_p10)
}
 0x19b   : > { %6255 = dma.hbm_to_vmem [thread:$0]  (!%p7960_p6), %s8828_s10, 64, %s704_s21, [#allocation18]  }
 0x19c   : > { %s8829_s12 = sld [smem:[#allocation62_spill]] }
 0x1a2   : > { %s7467_s2 = scalar_lea.hbm %s8829_s12, 64 }
 0x1a3   : > { %p7468_p1 = scmp.ne.s32.totalorder %s8829_s12, %s7467_s2  ;;  %p7474_p12 = scmp.lt.u32.totalorder %s7467_s2, %s8829_s12 }
 0x1a5   : > { %p7470_p3 = pnand %p7468_p1, %p7976_p8 }
 0x1a7   : > { %p7471_p11 = pneg %p7470_p3 }
 0x1a9   : > { %p7476_p13 = pnand %p7474_p12, %p7471_p11 }
 0x1ab   : > { %7479 = shalt.err (!%p7476_p13)
}
 0x1ac   : > { %s7480_s21 = scalar_lea.vmem %s8254_s29, 64  ;;  %p7488_p7 = scmp.lt.s32.totalorder %s8254_s29, %s8254_s29 }
 0x1ad   : > { %p7481_p0 = scmp.ne.s32.totalorder %s8254_s29, %s7480_s21  ;;  %p7489_p9 = scmp.lt.s32.totalorder %s7480_s21, %s7480_s21 }
 0x1af   : > { %p7483_p2 = pnand %p7481_p0, %p7976_p8  ;;  %p7490_p4 = por %p7489_p9, %p7488_p7 }
 0x1b1   : > { %p7484_p5 = pneg %p7483_p2 }
 0x1b3   : > { %p7491_p10 = pnand %p7490_p4, %p7484_p5 }
 0x1b5   : > { %7494 = shalt.err (!%p7491_p10)
}
 0x1b6   : > { %6261 = dma.hbm_to_vmem [thread:$0]  (!%p7960_p6), %s8829_s12, 64, %s8254_s29, [#allocation21]  }
 0x1b7   : > { %s7793_s4 = smov [#allocation25]   ;;  %s7794_s0 = smov [#allocation28]  }
 0x1b8   : > { %s751_s26 = sshll.u32 %s7793_s4, 4  ;;  %s775_s2 = sshll.u32 %s7794_s0, 4  ;;  %s752_s26 = int_to_ptr.vmem [resolvable:$true] %s751_s26  ;;  %s8297_s2 = int_to_ptr.vmem [resolvable:$true] %s775_s2 }
 0x1b9   : > { %s8830_s14 = sld [smem:[#allocation64_spill]] }
 0x1bf   : > { %s7495_s9 = scalar_lea.hbm %s8830_s14, 32 }
 0x1c0   : > { %p7496_p1 = scmp.ne.s32.totalorder %s8830_s14, %s7495_s9  ;;  %p7502_p12 = scmp.lt.u32.totalorder %s7495_s9, %s8830_s14 }
 0x1c2   : > { %p7498_p3 = pnand %p7496_p1, %p7976_p8 }
 0x1c4   : > { %p7499_p11 = pneg %p7498_p3 }
 0x1c6   : > { %p7504_p13 = pnand %p7502_p12, %p7499_p11 }
 0x1c8   : > { %7507 = shalt.err (!%p7504_p13)
}
 0x1c9   : > { %s7508_s18 = scalar_lea.vmem %s752_s26, 32  ;;  %p7516_p7 = scmp.lt.s32.totalorder %s752_s26, %s752_s26 }
 0x1ca   : > { %p7509_p0 = scmp.ne.s32.totalorder %s752_s26, %s7508_s18  ;;  %p7517_p9 = scmp.lt.s32.totalorder %s7508_s18, %s7508_s18 }
 0x1cc   : > { %p7511_p2 = pnand %p7509_p0, %p7976_p8  ;;  %p7518_p4 = por %p7517_p9, %p7516_p7 }
 0x1ce   : > { %p7512_p5 = pneg %p7511_p2 }
 0x1d0   : > { %p7519_p10 = pnand %p7518_p4, %p7512_p5 }
 0x1d2   : > { %7522 = shalt.err (!%p7519_p10)
}
 0x1d3   : > { %6267 = dma.hbm_to_vmem [thread:$0]  (!%p7960_p6), %s8830_s14, 32, %s752_s26, [#allocation24]  }
 0x1d4   : > { %s7523_s9 = scalar_lea.hbm %s8739_s16, 16 }
 0x1d5   : > { %p7524_p1 = scmp.ne.s32.totalorder %s8739_s16, %s7523_s9  ;;  %p7530_p12 = scmp.lt.u32.totalorder %s7523_s9, %s8739_s16 }
 0x1d7   : > { %p7526_p3 = pnand %p7524_p1, %p7976_p8 }
 0x1d9   : > { %p7527_p11 = pneg %p7526_p3 }
 0x1db   : > { %p7532_p13 = pnand %p7530_p12, %p7527_p11 }
 0x1dd   : > { %7535 = shalt.err (!%p7532_p13)
}
 0x1de   : > { %s7536_s26 = scalar_lea.vmem %s8297_s2, 16  ;;  %s7543_s18 = scalar_lea.vmem %s8297_s2, 32 }
 0x1df   : > { %p7537_p0 = scmp.ne.s32.totalorder %s8297_s2, %s7536_s26  ;;  %p7544_p7 = scmp.lt.s32.totalorder %s8297_s2, %s8297_s2 }
 0x1e0   : > { %p7545_p9 = scmp.lt.s32.totalorder %s7543_s18, %s7536_s26 }
 0x1e1   : > { %p7539_p2 = pnand %p7537_p0, %p7976_p8 }
 0x1e2   : > { %p7546_p4 = por %p7545_p9, %p7544_p7 }
 0x1e3   : > { %p7540_p5 = pneg %p7539_p2 }
 0x1e5   : > { %p7547_p10 = pnand %p7546_p4, %p7540_p5 }
 0x1e7   : > { %7550 = shalt.err (!%p7547_p10)
}
 0x1e8   : > { %6273 = dma.hbm_to_vmem [thread:$0]  (!%p7960_p6), %s8739_s16, 16, %s8297_s2, [#allocation27]  }
 0x1e9   : > { %s7795_s5 = smov [#allocation29]   ;;  %s7551_s21 = scalar_lea.hbm %s8742_s19, 1024 }
 0x1ea   : > { %s791_s3 = sshll.u32 %s7795_s5, 4  ;;  %p7552_p1 = scmp.ne.s32.totalorder %s8742_s19, %s7551_s21  ;;  %s792_s3 = int_to_ptr.vmem [resolvable:$true] %s791_s3 }
 0x1eb   : > { %p7558_p12 = scmp.lt.u32.totalorder %s7551_s21, %s8742_s19 }
 0x1ec   : > { %p7554_p3 = pnand %p7552_p1, %p7976_p8 }
 0x1ee   : > { %p7555_p11 = pneg %p7554_p3 }
 0x1f0   : > { %p7560_p13 = pnand %p7558_p12, %p7555_p11 }
 0x1f2   : > { %7563 = shalt.err (!%p7560_p13)
}
 0x1f3   : > { %s7564_s2 = scalar_lea.vmem %s792_s3, 1024  ;;  %p7572_p7 = scmp.lt.s32.totalorder %s792_s3, %s792_s3 }
 0x1f4   : > { %p7565_p0 = scmp.ne.s32.totalorder %s792_s3, %s7564_s2  ;;  %p7573_p9 = scmp.lt.s32.totalorder %s7564_s2, %s7564_s2 }
 0x1f6   : > { %p7567_p2 = pnand %p7565_p0, %p7976_p8  ;;  %p7574_p4 = por %p7573_p9, %p7572_p7 }
 0x1f8   : > { %p7568_p5 = pneg %p7567_p2 }
 0x1fa   : > { %p7575_p10 = pnand %p7574_p4, %p7568_p5 }
 0x1fc   : > { %7578 = shalt.err (!%p7575_p10)
}
 0x1fd   : > { %s8831_s6 = sld [smem:[#allocation47_spill]]  ;;  %s8832_s5 = sld [smem:[#allocation48_spill]] }
 0x1fe   : > { %6276 = dma.hbm_to_vmem [thread:$0]  (!%p7960_p6), %s8742_s19, 1024, %s792_s3, [#allocation30], %s8823_s22, %s8823_s22, %s8822_s17  }
 0x1ff   : > { %s8778_s7 = sadd.s32 4294967294, %s7771_s25   ;;  %s8364_s9 = sadd.s32 1, %s7771_s25  }
 0x200   : > { %s59_s1 = sadd.s32 1, %s7767_s24  ;;  %s56_s21 = ssub.s32 %s7771_s25, %s8364_s9 }
 0x201   : > { %p66_p8 = scmp.ne.s32.totalorder %s7767_s24, %s7763_s30  ;;  %p57_p1 = scmp.eq.s32.totalorder %s56_s21, 0 }
 0x202   : > { %p67_p3 = scmp.eq.s32.totalorder %s7771_s25, 0  ;;  %p522_p5 = scmp.eq.s32.totalorder %s8778_s7, 1 }
 0x203   : > { %p72_p11 = scmp.ne.s32.totalorder %s7763_s30, %s8831_s6  ;;  %p516_p12 = scmp.eq.s32.totalorder %s8832_s5, 1 }
 0x204   : > { %s8376_s11 = scalar_select %p57_p1, %s7767_s24, %s59_s1  }
 0x205   : > { %p68_p13 = por %p67_p3, %p66_p8  ;;  %p8833_p0 = scmp.eq.s32.totalorder %s8832_s5, 0 }
 0x206   : > { %p8384_p6 = por %p516_p12, %p66_p8  ;;  %p6308_p7 = scmp.lt.s32.totalorder %s7771_s25, 2 }
 0x207   : > { %p8380_p2 = por %p8833_p0, %p72_p11  ;;  %s808_s22 = sand.u32 1, %s7767_s24  }
 0x208   : > { %s8835_s17 = scalar_select %p8384_p6, 1, 0 }
 0x209   : > { %p8392_p9 = por %p522_p5, %p72_p11  ;;  %s5463_s26 = sshll.u32 %s808_s22, 3 }
 0x20a   : > { %s5464_s18 = sshll.u32 %s7771_s25, 7  ;;  %s8837_s0 = sld [smem:[#allocation50_spill]] }
 0x20b   : > { %s8836_s3 = scalar_select %p8392_p9, 1, 0 }
 0x20c   : > { %s812_s5 = scalar_lea.vmem [#allocation2], %s5463_s26  ;;  %p8402_p4 = pnand %p6308_p7, %p68_p13 }
 0x20d   : > { %s819_s1 = sshll.u32 %s812_s5, 4  ;;  %s809_s7 = scalar_lea.sflag [#allocation3], %s808_s22  ;;  %s8406_s1 = int_to_ptr.vmem [resolvable:$true] %s819_s1 }
 0x20e   : > { %p7581_p8 = pneg %p8402_p4 }
 0x210   : > { %s8400_s6 = scalar_lea.hbm %s8837_s0, %s5464_s18  ;;  %s7584_s2 = scalar_lea.hbm %s8837_s0, 256 }
 0x211   : > { %s7579_s8 = scalar_lea.hbm %s8400_s6, 128  ;;  %p7585_p11 = scmp.lt.u32.totalorder %s8400_s6, %s8837_s0 }
 0x212   : > { %p7580_p10 = scmp.ne.s32.totalorder %s8400_s6, %s7579_s8  ;;  %p7586_p12 = scmp.lt.u32.totalorder %s7584_s2, %s7579_s8 }
 0x213   : > { %p7588_p0 = scmp.lt.u32.totalorder %s7579_s8, %s8400_s6 }
 0x214   : > { %p7582_p1 = pnand %p7581_p8, %p7580_p10  ;;  %p7587_p13 = por %p7586_p12, %p7585_p11 }
 0x216   : > { %p7583_p3 = pneg %p7582_p1  ;;  %p7589_p5 = por %p7588_p0, %p7587_p13 }
 0x218   : > { %p7590_p7 = pnand %p7589_p5, %p7583_p3 }
 0x21a   : > { %7593 = shalt.err (!%p7590_p7)
}
 0x21b   : > { %s7594_s22 = scalar_lea.vmem %s8406_s1, 128  ;;  %s7796_s18 = smov [#allocation2]  }
 0x21c   : > { %p7595_p10 = scmp.ne.s32.totalorder %s8406_s1, %s7594_s22  ;;  %s7599_s26 = sshll.u32 %s7796_s18, 4  ;;  %s7600_s26 = int_to_ptr.vmem [resolvable:$false] %s7599_s26 }
 0x21d   : > { %s7601_s4 = scalar_lea.vmem %s7600_s26, 256  ;;  %p7602_p6 = scmp.lt.s32.totalorder %s8406_s1, %s7600_s26 }
 0x21e   : > { %p7597_p1 = pnand %p7595_p10, %p7581_p8  ;;  %p7603_p11 = scmp.lt.s32.totalorder %s7601_s4, %s7594_s22 }
 0x220   : > { %p7598_p9 = pneg %p7597_p1  ;;  %p7604_p12 = por %p7603_p11, %p7602_p6 }
 0x222   : > { %p7605_p13 = pnand %p7604_p12, %p7598_p9 }
 0x224   : > { %7608 = shalt.err (!%p7605_p13)
}
 0x225   : > { %6280 = dma.hbm_to_vmem [thread:$0]  (!%p8402_p4), %s8400_s6, 128, %s8406_s1, %s809_s7  }
 0x226   : > { %s8839_s8 = sld [smem:[#allocation49_spill]] }
 0x22c   : > { %p8840_p3 = scmp.ne.s32.totalorder %s8839_s8, 0 }
 0x22d   : > { %s8436_s2 = sand.u32 (!%p8840_p3), 1, %s7763_s30  }
 0x22e   : > { %828 = sbr.rel (%p8840_p3) target bundleno = 3178 (0xc6a), region = 104  ;;  %s8439_s5 = sshll.u32 (!%p8840_p3), %s8436_s2, 3 }
 0x22f   : > { %s831_s22 = scalar_lea.sflag (!%p8840_p3), [#allocation3], %s8436_s2  ;;  %s834_s18 = scalar_lea.vmem (!%p8840_p3), [#allocation2], %s8439_s5 }
 0x235   : > { %7710 = dma.done.wait (%p8380_p2), %s831_s22, 128  }
 0x236   : > { %7712 = vsyncadd (%p8380_p2), %s831_s22, 4294967168  ;;  %s8841_s7 = sld [smem:[#allocation48_spill]] }
 0x23c   : > { %p8842_p6 = scmp.eq.s32.totalorder %s8841_s7, 0 }
 0x23e   : > { %7714 = dma.done.wait (%p8842_p6), [#allocation6], 2080   ;;  %p8843_p9 = pmov %p8842_p6 }
 0x23f   : > { %p8844_p4 = pmov %p8842_p6 }
 0x240   : > { %7716 = vsyncadd (%p8843_p9), [#allocation6], 4294965216 }
 0x241   : > { %7718 = dma.done.wait (%p8844_p4), [#allocation9], 8256   ;;  %p8845_p8 = pmov %p8844_p4 }
 0x242   : > { %p8846_p0 = pmov %p8844_p4 }
 0x243   : > { %7720 = vsyncadd (%p8845_p8), [#allocation9], 4294959040 }
 0x244   : > { %7722 = dma.done.wait (%p8846_p0), [#allocation12], 16448   ;;  %p8847_p5 = pmov %p8846_p0 }
 0x245   : > { %p8848_p2 = pmov %p8846_p0 }
 0x246   : > { %7724 = vsyncadd (%p8847_p5), [#allocation12], 4294950848 }
 0x247   : > { %7726 = dma.done.wait (%p8848_p2), [#allocation15], 4112   ;;  %p8849_p7 = pmov %p8846_p0 }
 0x248   : > { %p8850_p10 = pmov %p8846_p0 }
 0x249   : > { %7728 = vsyncadd (%p8849_p7), [#allocation15], 4294963184 }
 0x24a   : > { %7730 = dma.done.wait (%p8850_p10), [#allocation18], 4160   ;;  %p8851_p1 = pmov %p8846_p0 }
 0x24b   : > { %p8852_p11 = pmov %p8846_p0 }
 0x24c   : > { %7732 = vsyncadd (%p8851_p1), [#allocation18], 4294963136 }
 0x24d   : > { %7734 = dma.done.wait (%p8852_p11), [#allocation21], 16448   ;;  %p8853_p12 = pmov %p8846_p0 }
 0x24e   : > { %p8854_p13 = pmov %p8846_p0 }
 0x24f   : > { %7736 = vsyncadd (%p8853_p12), [#allocation21], 4294950848 }
 0x250   : > { %7738 = dma.done.wait (%p8854_p13), [#allocation24], 8224   ;;  %p8855_p3 = pmov %p8846_p0 }
 0x251   : > { %p8856_p6 = pmov %p8846_p0 }
 0x252   : > { %7740 = vsyncadd (%p8855_p3), [#allocation24], 4294959072 }
 0x253   : > { %7742 = dma.done.wait (%p8856_p6), [#allocation27], 2064   ;;  %p8857_p9 = pmov %p8846_p0 }
 0x254   : > { %p8858_p4 = pmov %p8846_p0 }
 0x255   : > { %7744 = vsyncadd (%p8857_p9), [#allocation27], 4294965232 }
 0x256   : > { %7746 = dma.done.wait (%p8858_p4), [#allocation30], 1024   ;;  %p8859_p8 = pmov %p8846_p0 }
 0x257   : > { %v7797_v0 = vmov 0   ;;  %v6385_v1 = vld [vmem:[#allocation5 + $0x4] ss:$8 sps:$4 sm:$0xff]   ;;  %v6387_v2 = vld [vmem:[#allocation5] ss:$8 sps:$4 sm:$0xff]   ;;  %v976_v26 = vld [vmem:[%s834_s18] sm:$0xff] }
 0x258   : > { %7748 = vsyncadd (%p8859_p8), [#allocation30], 4294966272  ;;  %1118 = vmatprep.mubr.bf16.mxu0 %v7797_v0  ;;  %1086 = vmatprep.subr.bf16.mxu0 %v6385_v1  ;;  %v6388_v3 = vld [vmem:[#allocation5 + $0x14] ss:$8 sps:$4 sm:$0xff]   ;;  %v6390_v4 = vld [vmem:[#allocation5 + $0x10] ss:$8 sps:$4 sm:$0xff]   ;;  %v977_v30 = vpack.c.bf16 %v976_v26, %v976_v26 }
 0x259   : > { %1087 = vmatpush1.bf16.msra.mxu0 %v6387_v2  ;;  %v6391_v5 = vld [vmem:[#allocation5 + $0x24] ss:$8 sps:$4 sm:$0xff]   ;;  %v6393_v6 = vld [vmem:[#allocation5 + $0x20] ss:$8 sps:$4 sm:$0xff]   ;;  %v6394_v7 = vld [vmem:[#allocation5 + $0x34] ss:$8 sps:$4 sm:$0xff]  }
 0x25a   : > { %1088 = vmatprep.subr.bf16.mxu0 %v6388_v3  ;;  %v6396_v8 = vld [vmem:[#allocation5 + $0x30] ss:$8 sps:$4 sm:$0xff]   ;;  %v6397_v10 = vld [vmem:[#allocation5 + $0x44] ss:$8 sps:$4 sm:$0xff]   ;;  %v6399_v13 = vld [vmem:[#allocation5 + $0x40] ss:$8 sps:$4 sm:$0xff]  }
 0x25b   : > { %v6409_v9 = vld [vmem:[#allocation8 + $0x4] ss:$16 sps:$4 sm:$0xff]   ;;  %v6414_v11 = vld [vmem:[#allocation8] ss:$16 sps:$4 sm:$0xff]   ;;  %v6413_v27 = vld [vmem:[#allocation8 + $0xc] ss:$16 sps:$4 sm:$0xff]  }
 0x25c   : > { %1537 = vmatprep.subr.bf16.mxu1 %v6409_v9  ;;  %v6415_v12 = vld [vmem:[#allocation8 + $0x24] ss:$16 sps:$4 sm:$0xff]   ;;  %v6420_v15 = vld [vmem:[#allocation8 + $0x20] ss:$16 sps:$4 sm:$0xff]   ;;  %v6411_v31 = vld [vmem:[#allocation8 + $0x8] ss:$16 sps:$4 sm:$0xff]  }
 0x25d   : > { %1089 = vmatpush1.bf16.msra.mxu0 %v6390_v4  ;;  %v6400_v14 = vld [vmem:[#allocation5 + $0x54] ss:$8 sps:$4 sm:$0xff]   ;;  %1538 = vmatpush1.bf16.msra.mxu1 %v6414_v11  ;;  %v6402_v17 = vld [vmem:[#allocation5 + $0x50] ss:$8 sps:$4 sm:$0xff]   ;;  %v6403_v18 = vld [vmem:[#allocation5 + $0x64] ss:$8 sps:$4 sm:$0xff]  }
 0x25e   : > { %1090 = vmatprep.subr.bf16.mxu0 %v6391_v5  ;;  %1539 = vmatprep.subr.bf16.mxu1 %v6415_v12  ;;  %v6421_v16 = vld [vmem:[#allocation8 + $0x44] ss:$16 sps:$4 sm:$0xff]   ;;  %v6426_v19 = vld [vmem:[#allocation8 + $0x40] ss:$16 sps:$4 sm:$0xff]   ;;  %v6419_v32 = vld [vmem:[#allocation8 + $0x2c] ss:$16 sps:$4 sm:$0xff]  }
 0x25f   : > { %v6427_v20 = vld [vmem:[#allocation8 + $0x64] ss:$16 sps:$4 sm:$0xff]   ;;  %v6432_v23 = vld [vmem:[#allocation8 + $0x60] ss:$16 sps:$4 sm:$0xff]   ;;  %v6417_v35 = vld [vmem:[#allocation8 + $0x28] ss:$16 sps:$4 sm:$0xff]  }
 0x260   : > { %v6405_v21 = vld [vmem:[#allocation5 + $0x60] ss:$8 sps:$4 sm:$0xff]   ;;  %v6406_v22 = vld [vmem:[#allocation5 + $0x74] ss:$8 sps:$4 sm:$0xff]   ;;  %v6408_v25 = vld [vmem:[#allocation5 + $0x70] ss:$8 sps:$4 sm:$0xff]  }
 0x261   : > { %1091 = vmatpush1.bf16.msra.mxu0 %v6393_v6  ;;  %1540 = vmatpush1.bf16.msra.mxu1 %v6420_v15  ;;  %v6433_v24 = vld [vmem:[#allocation8 + $0x84] ss:$16 sps:$4 sm:$0xff]   ;;  %v6438_v28 = vld [vmem:[#allocation8 + $0x80] ss:$16 sps:$4 sm:$0xff]   ;;  %v6425_v36 = vld [vmem:[#allocation8 + $0x4c] ss:$16 sps:$4 sm:$0xff]  }
 0x262   : > { %1092 = vmatprep.subr.bf16.mxu0 %v6394_v7  ;;  %1541 = vmatprep.subr.bf16.mxu1 %v6421_v16  ;;  %v6439_v29 = vld [vmem:[#allocation8 + $0xa4] ss:$16 sps:$4 sm:$0xff]   ;;  %v6444_v33 = vld [vmem:[#allocation8 + $0xa0] ss:$16 sps:$4 sm:$0xff]   ;;  %v6423_v39 = vld [vmem:[#allocation8 + $0x48] ss:$16 sps:$4 sm:$0xff]  }
 0x263   : > { %v6445_v34 = vld [vmem:[#allocation8 + $0xc4] ss:$16 sps:$4 sm:$0xff]   ;;  %v6450_v37 = vld [vmem:[#allocation8 + $0xc0] ss:$16 sps:$4 sm:$0xff]   ;;  %v6431_v40 = vld [vmem:[#allocation8 + $0x6c] ss:$16 sps:$4 sm:$0xff]  }
 0x264   : > { %v6451_v38 = vld [vmem:[#allocation8 + $0xe4] ss:$16 sps:$4 sm:$0xff]   ;;  %v6456_v41 = vld [vmem:[#allocation8 + $0xe0] ss:$16 sps:$4 sm:$0xff]   ;;  %v6429_v43 = vld [vmem:[#allocation8 + $0x68] ss:$16 sps:$4 sm:$0xff]  }
 0x265   : > { %1093 = vmatpush1.bf16.msra.mxu0 %v6396_v8  ;;  %1542 = vmatpush1.bf16.msra.mxu1 %v6426_v19  ;;  %v6457_v42 = vld [vmem:[#allocation8 + $0x104] ss:$16 sps:$4 sm:$0xff]   ;;  %v6437_v44 = vld [vmem:[#allocation8 + $0x8c] ss:$16 sps:$4 sm:$0xff]   ;;  %v6462_v45 = vld [vmem:[#allocation8 + $0x100] ss:$16 sps:$4 sm:$0xff]  }
 0x266   : > { %1094 = vmatprep.subr.bf16.mxu0 %v6397_v10  ;;  %1543 = vmatprep.subr.bf16.mxu1 %v6427_v20  ;;  %v6463_v46 = vld [vmem:[#allocation8 + $0x124] ss:$16 sps:$4 sm:$0xff]   ;;  %v6435_v47 = vld [vmem:[#allocation8 + $0x88] ss:$16 sps:$4 sm:$0xff]   ;;  %v6468_v48 = vld [vmem:[#allocation8 + $0x120] ss:$16 sps:$4 sm:$0xff]  }
 0x267   : > { %v6443_v49 = vld [vmem:[#allocation8 + $0xac] ss:$16 sps:$4 sm:$0xff]   ;;  %v6469_v50 = vld [vmem:[#allocation8 + $0x144] ss:$16 sps:$4 sm:$0xff]   ;;  %v6441_v51 = vld [vmem:[#allocation8 + $0xa8] ss:$16 sps:$4 sm:$0xff]  }
 0x268   : > { %v6474_v52 = vld [vmem:[#allocation8 + $0x140] ss:$16 sps:$4 sm:$0xff]   ;;  %v6449_v53 = vld [vmem:[#allocation8 + $0xcc] ss:$16 sps:$4 sm:$0xff]   ;;  %v6475_v54 = vld [vmem:[#allocation8 + $0x164] ss:$16 sps:$4 sm:$0xff]  }
 0x269   : > { %1095 = vmatpush1.bf16.msra.mxu0 %v6399_v13  ;;  %1544 = vmatpush1.bf16.msra.mxu1 %v6432_v23  ;;  %v6447_v55 = vld [vmem:[#allocation8 + $0xc8] ss:$16 sps:$4 sm:$0xff]   ;;  %v6480_v56 = vld [vmem:[#allocation8 + $0x160] ss:$16 sps:$4 sm:$0xff]   ;;  %v6455_v57 = vld [vmem:[#allocation8 + $0xec] ss:$16 sps:$4 sm:$0xff]  }
 0x26a   : > { %1096 = vmatprep.subr.bf16.mxu0 %v6400_v14  ;;  %1545 = vmatprep.subr.bf16.mxu1 %v6433_v24  ;;  %v6481_v58 = vld [vmem:[#allocation8 + $0x184] ss:$16 sps:$4 sm:$0xff]   ;;  %v6453_v59 = vld [vmem:[#allocation8 + $0xe8] ss:$16 sps:$4 sm:$0xff]   ;;  %v6486_v60 = vld [vmem:[#allocation8 + $0x180] ss:$16 sps:$4 sm:$0xff]  }
 0x26b   : > { %v6461_v61 = vld [vmem:[#allocation8 + $0x10c] ss:$16 sps:$4 sm:$0xff]   ;;  %v6487_v62 = vld [vmem:[#allocation8 + $0x1a4] ss:$16 sps:$4 sm:$0xff]   ;;  %v6459_v63 = vld [vmem:[#allocation8 + $0x108] ss:$16 sps:$4 sm:$0xff]  }
 0x26c   : > { %v6492_v1 = vld [vmem:[#allocation8 + $0x1a0] ss:$16 sps:$4 sm:$0xff]   ;;  %v6467_v2 = vld [vmem:[#allocation8 + $0x12c] ss:$16 sps:$4 sm:$0xff]   ;;  %v6465_v3 = vld [vmem:[#allocation8 + $0x128] ss:$16 sps:$4 sm:$0xff]  }
 0x26d   : > { %1097 = vmatpush1.bf16.msra.mxu0 %v6402_v17  ;;  %1546 = vmatpush1.bf16.msra.mxu1 %v6438_v28  ;;  %v6473_v4 = vld [vmem:[#allocation8 + $0x14c] ss:$16 sps:$4 sm:$0xff]   ;;  %v6471_v5 = vld [vmem:[#allocation8 + $0x148] ss:$16 sps:$4 sm:$0xff]   ;;  %v6493_v12 = vld [vmem:[#allocation8 + $0x1c4] ss:$16 sps:$4 sm:$0xff]  }
 0x26e   : > { %1098 = vmatprep.subr.bf16.mxu0 %v6403_v18  ;;  %1547 = vmatprep.subr.bf16.mxu1 %v6439_v29  ;;  %v6479_v6 = vld [vmem:[#allocation8 + $0x16c] ss:$16 sps:$4 sm:$0xff]   ;;  %v6477_v7 = vld [vmem:[#allocation8 + $0x168] ss:$16 sps:$4 sm:$0xff]   ;;  %v6498_v15 = vld [vmem:[#allocation8 + $0x1c0] ss:$16 sps:$4 sm:$0xff]  }
 0x26f   : > { %v6485_v8 = vld [vmem:[#allocation8 + $0x18c] ss:$16 sps:$4 sm:$0xff]   ;;  %v6483_v9 = vld [vmem:[#allocation8 + $0x188] ss:$16 sps:$4 sm:$0xff]   ;;  %v6499_v16 = vld [vmem:[#allocation8 + $0x1e4] ss:$16 sps:$4 sm:$0xff]  }
 0x270   : > { %v6491_v10 = vld [vmem:[#allocation8 + $0x1ac] ss:$16 sps:$4 sm:$0xff]   ;;  %v6489_v11 = vld [vmem:[#allocation8 + $0x1a8] ss:$16 sps:$4 sm:$0xff]   ;;  %v6504_v19 = vld [vmem:[#allocation8 + $0x1e0] ss:$16 sps:$4 sm:$0xff]  }
 0x271   : > { %1099 = vmatpush1.bf16.msra.mxu0 %v6405_v21  ;;  %1548 = vmatpush1.bf16.msra.mxu1 %v6444_v33  ;;  %v6497_v13 = vld [vmem:[#allocation8 + $0x1cc] ss:$16 sps:$4 sm:$0xff]   ;;  %v6495_v14 = vld [vmem:[#allocation8 + $0x1c8] ss:$16 sps:$4 sm:$0xff]   ;;  %v6510_v21 = vld [vmem:[#allocation11 + $0xc] ss:$16 sps:$4 sm:$0xff]  }
 0x272   : > { %1100 = vmatprep.subr.bf16.mxu0 %v6406_v22  ;;  %1549 = vmatprep.subr.bf16.mxu1 %v6445_v34  ;;  %v6503_v17 = vld [vmem:[#allocation8 + $0x1ec] ss:$16 sps:$4 sm:$0xff]   ;;  %v6501_v18 = vld [vmem:[#allocation8 + $0x1e8] ss:$16 sps:$4 sm:$0xff]   ;;  %v996_v22 = vlaneseq  ;;  %s967_s29 = scalar_lea.vmem [#allocation32], %s8439_s5  ;;  %s8860_s21 = sld [smem:[#allocation66_spill]] }
 0x273   : > { %v6507_v20 = vld [vmem:[#allocation11 + $0x4] ss:$16 sps:$4 sm:$0xff]   ;;  %vm7799_vm0 = vmmov 0   ;;  %s8780_s26 = scalar_lea.vmem [#allocation31], %s8439_s5  ;;  %s8861_s22 = sld [smem:[#allocation67_spill]] }
 0x274   : > { %v8486_v23 = vshrl.u32 %v996_v22, 7  ;;  %v6579_v22 = vld [vmem:[#allocation11 + $0x184] ss:$16 sps:$4 sm:$0xff]   ;;  %s8862_s1 = sld [smem:[#allocation68_spill]]  ;;  %s5105_s4 = sand.u32 1, %s8841_s7  }
 0x275   : > { %1101 = vmatpush1.bf16.msra.mxu0 %v6408_v25  ;;  %1550 = vmatpush1.bf16.msra.mxu1 %v6450_v37  ;;  %v994_v25 = vld [vmem:[#allocation7] sm:$0x3]  ;;  %s8615_s8 = sshll.u32 %s8841_s7, 7  ;;  %s8863_s6 = sld [smem:[#allocation70_spill]] }
 0x276   : > { %1578 = vmatprep.subr.bf16.mxu0 %v6413_v27  ;;  %1551 = vmatprep.subr.bf16.mxu1 %v6451_v38  ;;  %v8489_v24 = vsub.s32 0, %v8486_v23  ;;  %v8492_v26 = vsub.s32 1, %v8486_v23  ;;  %v6505_v38 = vld [vmem:[#allocation11] ss:$16 sps:$4 sm:$0xff]   ;;  %s8864_s12 = sld [smem:[#allocation69_spill]]  ;;  %s8633_s7 = scalar_lea.sflag [#allocation33], %s5105_s4 }
 0x277   : > { %p8865_p5 = scmp.ne.s32.totalorder %s8835_s17, 0 }
 0x278   : > { %1119 = vmatmul.mubr.bf16.vlgmr.msra.gmra.mrb[0].mxu0 %v977_v30  ;;  %v999_v27 = vrot.slane %v994_v25, %v8489_v24  ;;  %v1003_v28 = vrot.slane %v994_v25, %v8492_v26  ;;  %v6582_v25 = vld [vmem:[#allocation11 + $0x18c] ss:$16 sps:$4 sm:$0xff]  }
 0x279   : > { %1579 = vmatpush1.bf16.msra.mxu0 %v6411_v31  ;;  %1552 = vmatpush1.bf16.msra.mxu1 %v6456_v41  ;;  %v6513_v41 = vld [vmem:[#allocation11 + $0x24] ss:$16 sps:$4 sm:$0xff]  }
 0x27a   : > { %1580 = vmatprep.subr.bf16.mxu0 %v6419_v32  ;;  %1553 = vmatprep.subr.bf16.mxu1 %v6457_v42  ;;  %v6516_v42 = vld [vmem:[#allocation11 + $0x2c] ss:$16 sps:$4 sm:$0xff]  }
 0x27c   : > { %s8631_s13 = scalar_lea.hbm %s8864_s12, %s8615_s8 }
 0x27d   : > { %1581 = vmatpush1.bf16.msra.mxu0 %v6417_v35  ;;  %1554 = vmatpush1.bf16.msra.mxu1 %v6462_v45  ;;  %v6519_v45 = vld [vmem:[#allocation11 + $0x44] ss:$16 sps:$4 sm:$0xff]  }
 0x27e   : > { %1582 = vmatprep.subr.bf16.mxu0 %v6425_v36  ;;  %1555 = vmatprep.subr.bf16.mxu1 %v6463_v46  ;;  %v6522_v46 = vld [vmem:[#allocation11 + $0x4c] ss:$16 sps:$4 sm:$0xff]  }
 0x281   : > { %1583 = vmatpush1.bf16.msra.mxu0 %v6423_v39  ;;  %1556 = vmatpush1.bf16.msra.mxu1 %v6468_v48  ;;  %v6508_v39 = vld [vmem:[#allocation11 + $0x8] ss:$16 sps:$4 sm:$0xff]  }
 0x282   : > { %1584 = vmatprep.subr.bf16.mxu0 %v6431_v40  ;;  %1557 = vmatprep.subr.bf16.mxu1 %v6469_v50  ;;  %v6520_v48 = vld [vmem:[#allocation11 + $0x48] ss:$16 sps:$4 sm:$0xff]   ;;  %v6528_v50 = vld [vmem:[#allocation11 + $0x6c] ss:$16 sps:$4 sm:$0xff]  }
 0x285   : > { %1585 = vmatpush1.bf16.msra.mxu0 %v6429_v43  ;;  %1558 = vmatpush1.bf16.msra.mxu1 %v6474_v52  ;;  %v6511_v43 = vld [vmem:[#allocation11 + $0x20] ss:$16 sps:$4 sm:$0xff]   ;;  %v6526_v52 = vld [vmem:[#allocation11 + $0x68] ss:$16 sps:$4 sm:$0xff]  }
 0x286   : > { %1586 = vmatprep.subr.bf16.mxu0 %v6437_v44  ;;  %1559 = vmatprep.subr.bf16.mxu1 %v6475_v54  ;;  %v6514_v44 = vld [vmem:[#allocation11 + $0x28] ss:$16 sps:$4 sm:$0xff]   ;;  %v6534_v54 = vld [vmem:[#allocation11 + $0x8c] ss:$16 sps:$4 sm:$0xff]  }
 0x289   : > { %1587 = vmatpush1.bf16.msra.mxu0 %v6435_v47  ;;  %1560 = vmatpush1.bf16.msra.mxu1 %v6480_v56  ;;  %v6517_v47 = vld [vmem:[#allocation11 + $0x40] ss:$16 sps:$4 sm:$0xff]   ;;  %v6532_v56 = vld [vmem:[#allocation11 + $0x88] ss:$16 sps:$4 sm:$0xff]  }
 0x28a   : > { %1588 = vmatprep.subr.bf16.mxu0 %v6443_v49  ;;  %1561 = vmatprep.subr.bf16.mxu1 %v6481_v58  ;;  %v6525_v49 = vld [vmem:[#allocation11 + $0x64] ss:$16 sps:$4 sm:$0xff]   ;;  %v6540_v58 = vld [vmem:[#allocation11 + $0xac] ss:$16 sps:$4 sm:$0xff]  }
 0x28d   : > { %1589 = vmatpush1.bf16.msra.mxu0 %v6441_v51  ;;  %1562 = vmatpush1.bf16.msra.mxu1 %v6486_v60  ;;  %v6523_v51 = vld [vmem:[#allocation11 + $0x60] ss:$16 sps:$4 sm:$0xff]   ;;  %v6538_v60 = vld [vmem:[#allocation11 + $0xa8] ss:$16 sps:$4 sm:$0xff]  }
 0x28e   : > { %1590 = vmatprep.subr.bf16.mxu0 %v6449_v53  ;;  %1563 = vmatprep.subr.bf16.mxu1 %v6487_v62  ;;  %v6531_v53 = vld [vmem:[#allocation11 + $0x84] ss:$16 sps:$4 sm:$0xff]   ;;  %v6546_v62 = vld [vmem:[#allocation11 + $0xcc] ss:$16 sps:$4 sm:$0xff]  }
 0x291   : > { %1591 = vmatpush1.bf16.msra.mxu0 %v6447_v55  ;;  %1564 = vmatpush1.bf16.msra.mxu1 %v6492_v1  ;;  %v6529_v55 = vld [vmem:[#allocation11 + $0x80] ss:$16 sps:$4 sm:$0xff]   ;;  %v6544_v1 = vld [vmem:[#allocation11 + $0xc8] ss:$16 sps:$4 sm:$0xff]  }
 0x292   : > { %1592 = vmatprep.subr.bf16.mxu0 %v6455_v57  ;;  %1565 = vmatprep.subr.bf16.mxu1 %v6493_v12  ;;  %v6537_v57 = vld [vmem:[#allocation11 + $0xa4] ss:$16 sps:$4 sm:$0xff]   ;;  %v6559_v12 = vld [vmem:[#allocation11 + $0x120] ss:$16 sps:$4 sm:$0xff]  }
 0x295   : > { %1593 = vmatpush1.bf16.msra.mxu0 %v6453_v59  ;;  %1566 = vmatpush1.bf16.msra.mxu1 %v6498_v15  ;;  %v6535_v59 = vld [vmem:[#allocation11 + $0xa0] ss:$16 sps:$4 sm:$0xff]   ;;  %v6570_v15 = vld [vmem:[#allocation11 + $0x14c] ss:$16 sps:$4 sm:$0xff]  }
 0x296   : > { %1594 = vmatprep.subr.bf16.mxu0 %v6461_v61  ;;  %1567 = vmatprep.subr.bf16.mxu1 %v6499_v16  ;;  %v6543_v61 = vld [vmem:[#allocation11 + $0xc4] ss:$16 sps:$4 sm:$0xff]   ;;  %v6565_v16 = vld [vmem:[#allocation11 + $0x140] ss:$16 sps:$4 sm:$0xff]  }
 0x299   : > { %1595 = vmatpush1.bf16.msra.mxu0 %v6459_v63  ;;  %1568 = vmatpush1.bf16.msra.mxu1 %v6504_v19  ;;  %v6541_v63 = vld [vmem:[#allocation11 + $0xc0] ss:$16 sps:$4 sm:$0xff]   ;;  %v6576_v19 = vld [vmem:[#allocation11 + $0x16c] ss:$16 sps:$4 sm:$0xff]  }
 0x29a   : > { %1596 = vmatprep.subr.bf16.mxu0 %v6467_v2  ;;  %2417 = vmatprep.subr.bf16.mxu1 %v6507_v20  ;;  %v6549_v2 = vld [vmem:[#allocation11 + $0xe4] ss:$16 sps:$4 sm:$0xff]   ;;  %v6571_v20 = vld [vmem:[#allocation11 + $0x160] ss:$16 sps:$4 sm:$0xff]  }
 0x29d   : > { %1597 = vmatpush1.bf16.msra.mxu0 %v6465_v3  ;;  %v6552_v3 = vld [vmem:[#allocation11 + $0xec] ss:$16 sps:$4 sm:$0xff]  }
 0x29e   : > { %1598 = vmatprep.subr.bf16.mxu0 %v6473_v4  ;;  %v6547_v4 = vld [vmem:[#allocation11 + $0xe0] ss:$16 sps:$4 sm:$0xff]  }
 0x2a1   : > { %1599 = vmatpush1.bf16.msra.mxu0 %v6471_v5  ;;  %v6550_v5 = vld [vmem:[#allocation11 + $0xe8] ss:$16 sps:$4 sm:$0xff]  }
 0x2a2   : > { %1600 = vmatprep.subr.bf16.mxu0 %v6479_v6  ;;  %v6555_v6 = vld [vmem:[#allocation11 + $0x104] ss:$16 sps:$4 sm:$0xff]  }
 0x2a5   : > { %1601 = vmatpush1.bf16.msra.mxu0 %v6477_v7  ;;  %v6558_v7 = vld [vmem:[#allocation11 + $0x10c] ss:$16 sps:$4 sm:$0xff]  }
 0x2a6   : > { %1602 = vmatprep.subr.bf16.mxu0 %v6485_v8  ;;  %v6553_v8 = vld [vmem:[#allocation11 + $0x100] ss:$16 sps:$4 sm:$0xff]  }
 0x2a9   : > { %1603 = vmatpush1.bf16.msra.mxu0 %v6483_v9  ;;  %v6556_v9 = vld [vmem:[#allocation11 + $0x108] ss:$16 sps:$4 sm:$0xff]  }
 0x2aa   : > { %1604 = vmatprep.subr.bf16.mxu0 %v6491_v10  ;;  %v6561_v10 = vld [vmem:[#allocation11 + $0x124] ss:$16 sps:$4 sm:$0xff]  }
 0x2ad   : > { %1605 = vmatpush1.bf16.msra.mxu0 %v6489_v11  ;;  %v6564_v11 = vld [vmem:[#allocation11 + $0x12c] ss:$16 sps:$4 sm:$0xff]  }
 0x2ae   : > { %1606 = vmatprep.subr.bf16.mxu0 %v6497_v13  ;;  %v6562_v13 = vld [vmem:[#allocation11 + $0x128] ss:$16 sps:$4 sm:$0xff]  }
 0x2b1   : > { %1607 = vmatpush1.bf16.msra.mxu0 %v6495_v14  ;;  %v6567_v14 = vld [vmem:[#allocation11 + $0x144] ss:$16 sps:$4 sm:$0xff]  }
 0x2b2   : > { %1608 = vmatprep.subr.bf16.mxu0 %v6503_v17  ;;  %v6568_v17 = vld [vmem:[#allocation11 + $0x148] ss:$16 sps:$4 sm:$0xff]  }
 0x2b5   : > { %1609 = vmatpush1.bf16.msra.mxu0 %v6501_v18  ;;  %v6573_v18 = vld [vmem:[#allocation11 + $0x164] ss:$16 sps:$4 sm:$0xff]  }
 0x2b6   : > { %2499 = vmatprep.subr.bf16.mxu0 %v6510_v21  ;;  %v6574_v21 = vld [vmem:[#allocation11 + $0x168] ss:$16 sps:$4 sm:$0xff]  }
 0x34b   : > { %v1120_v29 = vpop.f32.mrb[0].mxu0 }
 0x34c   : > { %v1121_v30 = vadd.f32 %v1120_v29, %v999_v27  ;;  %v1122_v31 = vpop.f32.mrb[1].mxu0  ;;  %v6577_v27 = vld [vmem:[#allocation11 + $0x180] ss:$16 sps:$4 sm:$0xff]   ;;  %v6585_v29 = vld [vmem:[#allocation11 + $0x1a4] ss:$16 sps:$4 sm:$0xff]  }
 0x34d   : > { %v1123_v32 = vadd.f32 %v1122_v31, %v1003_v28  ;;  %v1124_v33 = vpop.f32.mrb[2].mxu0  ;;  %v6580_v28 = vld [vmem:[#allocation11 + $0x188] ss:$16 sps:$4 sm:$0xff]   ;;  %v6583_v31 = vld [vmem:[#allocation11 + $0x1a0] ss:$16 sps:$4 sm:$0xff]  }
 0x34e   : > { %v1127_v34 = vmax.f32 %v1121_v30, 0.0  ;;  %v1125_v35 = vpop.f32.mrb[3].mxu0  ;;  %v6588_v30 = vld [vmem:[#allocation11 + $0x1ac] ss:$16 sps:$4 sm:$0xff]   ;;  %v6591_v33 = vld [vmem:[#allocation11 + $0x1c4] ss:$16 sps:$4 sm:$0xff]  }
 0x34f   : > { %v1128_v36 = vmax.f32 %v1123_v32, 0.0  ;;  %v6586_v32 = vld [vmem:[#allocation11 + $0x1a8] ss:$16 sps:$4 sm:$0xff]   ;;  %v6589_v35 = vld [vmem:[#allocation11 + $0x1c0] ss:$16 sps:$4 sm:$0xff]  }
 0x350   : > { %v1129_v40 = vpack.c.bf16 %v1127_v34, %v1127_v34  ;;  %v6594_v34 = vld [vmem:[#allocation11 + $0x1cc] ss:$16 sps:$4 sm:$0xff]  }
 0x351   : > { %v1130_v37 = vpack.c.bf16 %v1128_v36, %v1128_v36  ;;  %v6592_v36 = vld [vmem:[#allocation11 + $0x1c8] ss:$16 sps:$4 sm:$0xff]  }
 0x353   : > { %1569 = vmatprep.mubr.bf16.mxu1 %v1130_v37  ;;  %1610 = vmatprep.mubr.bf16.mxu0 %v1130_v37  ;;  %v6597_v37 = vld [vmem:[#allocation11 + $0x1e4] ss:$16 sps:$4 sm:$0xff]  }
 0x354   : > { %1570 = vmatmul.mubr.bf16.vlgmr.msra.gmra.mrb[0].mxu1 %v1129_v40  ;;  %1611 = vmatmul.mubr.bf16.vlgmr.msra.gmra.mrb[4].mxu0 %v1129_v40  ;;  %v6598_v40 = vld [vmem:[#allocation11 + $0x1e8] ss:$16 sps:$4 sm:$0xff]  }
 0x355   : > { %2418 = vmatpush1.bf16.msra.mxu1 %v6505_v38  ;;  %2500 = vmatpush1.bf16.msra.mxu0 %v6508_v39  ;;  %v6600_v38 = vld [vmem:[#allocation11 + $0x1ec] ss:$16 sps:$4 sm:$0xff]   ;;  %v6595_v39 = vld [vmem:[#allocation11 + $0x1e0] ss:$16 sps:$4 sm:$0xff]  }
 0x356   : > { %2419 = vmatprep.subr.bf16.mxu1 %v6513_v41  ;;  %2501 = vmatprep.subr.bf16.mxu0 %v6516_v42  ;;  %v6603_v41 = vld [vmem:[#allocation11 + $0x204] ss:$16 sps:$4 sm:$0xff]   ;;  %v6606_v42 = vld [vmem:[#allocation11 + $0x20c] ss:$16 sps:$4 sm:$0xff]  }
 0x359   : > { %2420 = vmatpush1.bf16.msra.mxu1 %v6511_v43  ;;  %2502 = vmatpush1.bf16.msra.mxu0 %v6514_v44  ;;  %v8496_v43 = vld [vmem:[#allocation10] sm:$0xf]  ;;  %v8499_v44 = vsub.s32 3, %v8486_v23 }
 0x35a   : > { %2421 = vmatprep.subr.bf16.mxu1 %v6519_v45  ;;  %2503 = vmatprep.subr.bf16.mxu0 %v6522_v46  ;;  %v1200_v45 = vrot.slane %v8496_v43, %v8489_v24  ;;  %v1204_v46 = vrot.slane %v8496_v43, %v8492_v26 }
 0x35d   : > { %2422 = vmatpush1.bf16.msra.mxu1 %v6517_v47  ;;  %2504 = vmatpush1.bf16.msra.mxu0 %v6520_v48  ;;  %v1212_v47 = vrot.slane %v8496_v43, %v8499_v44 }
 0x35e   : > { %2423 = vmatprep.subr.bf16.mxu1 %v6525_v49  ;;  %2505 = vmatprep.subr.bf16.mxu0 %v6528_v50 }
 0x361   : > { %2424 = vmatpush1.bf16.msra.mxu1 %v6523_v51  ;;  %2506 = vmatpush1.bf16.msra.mxu0 %v6526_v52 }
 0x362   : > { %2425 = vmatprep.subr.bf16.mxu1 %v6531_v53  ;;  %2507 = vmatprep.subr.bf16.mxu0 %v6534_v54 }
 0x365   : > { %2426 = vmatpush1.bf16.msra.mxu1 %v6529_v55  ;;  %2508 = vmatpush1.bf16.msra.mxu0 %v6532_v56 }
 0x366   : > { %2427 = vmatprep.subr.bf16.mxu1 %v6537_v57  ;;  %2509 = vmatprep.subr.bf16.mxu0 %v6540_v58 }
 0x369   : > { %2428 = vmatpush1.bf16.msra.mxu1 %v6535_v59  ;;  %2510 = vmatpush1.bf16.msra.mxu0 %v6538_v60 }
 0x36a   : > { %2429 = vmatprep.subr.bf16.mxu1 %v6543_v61  ;;  %2511 = vmatprep.subr.bf16.mxu0 %v6546_v62 }
 0x36d   : > { %2430 = vmatpush1.bf16.msra.mxu1 %v6541_v63  ;;  %2512 = vmatpush1.bf16.msra.mxu0 %v6544_v1  ;;  %v6601_v63 = vld [vmem:[#allocation11 + $0x200] ss:$16 sps:$4 sm:$0xff]   ;;  %v6604_v1 = vld [vmem:[#allocation11 + $0x208] ss:$16 sps:$4 sm:$0xff]  }
 0x36e   : > { %2431 = vmatprep.subr.bf16.mxu1 %v6549_v2  ;;  %2513 = vmatprep.subr.bf16.mxu0 %v6552_v3  ;;  %v6609_v3 = vld [vmem:[#allocation11 + $0x224] ss:$16 sps:$4 sm:$0xff]  }
 0x371   : > { %2432 = vmatpush1.bf16.msra.mxu1 %v6547_v4  ;;  %2514 = vmatpush1.bf16.msra.mxu0 %v6550_v5  ;;  %v6612_v4 = vld [vmem:[#allocation11 + $0x22c] ss:$16 sps:$4 sm:$0xff]  }
 0x372   : > { %2433 = vmatprep.subr.bf16.mxu1 %v6555_v6  ;;  %2515 = vmatprep.subr.bf16.mxu0 %v6558_v7  ;;  %v6607_v6 = vld [vmem:[#allocation11 + $0x220] ss:$16 sps:$4 sm:$0xff]   ;;  %v6610_v7 = vld [vmem:[#allocation11 + $0x228] ss:$16 sps:$4 sm:$0xff]  }
 0x375   : > { %2434 = vmatpush1.bf16.msra.mxu1 %v6553_v8  ;;  %2516 = vmatpush1.bf16.msra.mxu0 %v6556_v9  ;;  %v6615_v8 = vld [vmem:[#allocation11 + $0x244] ss:$16 sps:$4 sm:$0xff]   ;;  %v6618_v9 = vld [vmem:[#allocation11 + $0x24c] ss:$16 sps:$4 sm:$0xff]  }
 0x376   : > { %2435 = vmatprep.subr.bf16.mxu1 %v6561_v10  ;;  %2517 = vmatprep.subr.bf16.mxu0 %v6564_v11  ;;  %v6613_v10 = vld [vmem:[#allocation11 + $0x240] ss:$16 sps:$4 sm:$0xff]   ;;  %v6616_v11 = vld [vmem:[#allocation11 + $0x248] ss:$16 sps:$4 sm:$0xff]  }
 0x379   : > { %2436 = vmatpush1.bf16.msra.mxu1 %v6559_v12  ;;  %2518 = vmatpush1.bf16.msra.mxu0 %v6562_v13  ;;  %v6621_v12 = vld [vmem:[#allocation11 + $0x264] ss:$16 sps:$4 sm:$0xff]   ;;  %v6624_v13 = vld [vmem:[#allocation11 + $0x26c] ss:$16 sps:$4 sm:$0xff]  }
 0x37a   : > { %2437 = vmatprep.subr.bf16.mxu1 %v6567_v14  ;;  %2519 = vmatprep.subr.bf16.mxu0 %v6570_v15  ;;  %v6619_v14 = vld [vmem:[#allocation11 + $0x260] ss:$16 sps:$4 sm:$0xff]   ;;  %v6622_v15 = vld [vmem:[#allocation11 + $0x268] ss:$16 sps:$4 sm:$0xff]  }
 0x37d   : > { %2438 = vmatpush1.bf16.msra.mxu1 %v6565_v16  ;;  %2520 = vmatpush1.bf16.msra.mxu0 %v6568_v17  ;;  %v6627_v16 = vld [vmem:[#allocation11 + $0x284] ss:$16 sps:$4 sm:$0xff]   ;;  %v6630_v17 = vld [vmem:[#allocation11 + $0x28c] ss:$16 sps:$4 sm:$0xff]  }
 0x37e   : > { %2439 = vmatprep.subr.bf16.mxu1 %v6573_v18  ;;  %2521 = vmatprep.subr.bf16.mxu0 %v6576_v19  ;;  %v6625_v18 = vld [vmem:[#allocation11 + $0x280] ss:$16 sps:$4 sm:$0xff]   ;;  %v6628_v19 = vld [vmem:[#allocation11 + $0x288] ss:$16 sps:$4 sm:$0xff]  }
 0x381   : > { %2440 = vmatpush1.bf16.msra.mxu1 %v6571_v20  ;;  %2522 = vmatpush1.bf16.msra.mxu0 %v6574_v21  ;;  %v6633_v20 = vld [vmem:[#allocation11 + $0x2a4] ss:$16 sps:$4 sm:$0xff]   ;;  %v6636_v21 = vld [vmem:[#allocation11 + $0x2ac] ss:$16 sps:$4 sm:$0xff]  }
 0x382   : > { %2441 = vmatprep.subr.bf16.mxu1 %v6579_v22  ;;  %2523 = vmatprep.subr.bf16.mxu0 %v6582_v25  ;;  %v6631_v22 = vld [vmem:[#allocation11 + $0x2a0] ss:$16 sps:$4 sm:$0xff]   ;;  %v6634_v25 = vld [vmem:[#allocation11 + $0x2a8] ss:$16 sps:$4 sm:$0xff]  }
 0x385   : > { %2442 = vmatpush1.bf16.msra.mxu1 %v6577_v27  ;;  %2524 = vmatpush1.bf16.msra.mxu0 %v6580_v28  ;;  %v6639_v27 = vld [vmem:[#allocation11 + $0x2c4] ss:$16 sps:$4 sm:$0xff]   ;;  %v6642_v28 = vld [vmem:[#allocation11 + $0x2cc] ss:$16 sps:$4 sm:$0xff]  }
 0x386   : > { %2443 = vmatprep.subr.bf16.mxu1 %v6585_v29  ;;  %2525 = vmatprep.subr.bf16.mxu0 %v6588_v30  ;;  %v6637_v29 = vld [vmem:[#allocation11 + $0x2c0] ss:$16 sps:$4 sm:$0xff]   ;;  %v6640_v30 = vld [vmem:[#allocation11 + $0x2c8] ss:$16 sps:$4 sm:$0xff]  }
 0x389   : > { %2444 = vmatpush1.bf16.msra.mxu1 %v6583_v31  ;;  %2526 = vmatpush1.bf16.msra.mxu0 %v6586_v32  ;;  %v6645_v31 = vld [vmem:[#allocation11 + $0x2e4] ss:$16 sps:$4 sm:$0xff]   ;;  %v6648_v32 = vld [vmem:[#allocation11 + $0x2ec] ss:$16 sps:$4 sm:$0xff]  }
 0x38a   : > { %2445 = vmatprep.subr.bf16.mxu1 %v6591_v33  ;;  %2527 = vmatprep.subr.bf16.mxu0 %v6594_v34  ;;  %v6643_v33 = vld [vmem:[#allocation11 + $0x2e0] ss:$16 sps:$4 sm:$0xff]   ;;  %v6646_v34 = vld [vmem:[#allocation11 + $0x2e8] ss:$16 sps:$4 sm:$0xff]  }
 0x38d   : > { %2446 = vmatpush1.bf16.msra.mxu1 %v6589_v35  ;;  %2528 = vmatpush1.bf16.msra.mxu0 %v6592_v36  ;;  %v6651_v35 = vld [vmem:[#allocation11 + $0x304] ss:$16 sps:$4 sm:$0xff]   ;;  %v6654_v36 = vld [vmem:[#allocation11 + $0x30c] ss:$16 sps:$4 sm:$0xff]  }
 0x38e   : > { %2447 = vmatprep.subr.bf16.mxu1 %v6597_v37  ;;  %2529 = vmatprep.subr.bf16.mxu0 %v6600_v38  ;;  %v6649_v37 = vld [vmem:[#allocation11 + $0x300] ss:$16 sps:$4 sm:$0xff]   ;;  %v6652_v38 = vld [vmem:[#allocation11 + $0x308] ss:$16 sps:$4 sm:$0xff]  }
 0x391   : > { %2448 = vmatpush1.bf16.msra.mxu1 %v6595_v39  ;;  %2530 = vmatpush1.bf16.msra.mxu0 %v6598_v40  ;;  %v6657_v39 = vld [vmem:[#allocation11 + $0x324] ss:$16 sps:$4 sm:$0xff]   ;;  %v6660_v40 = vld [vmem:[#allocation11 + $0x32c] ss:$16 sps:$4 sm:$0xff]  }
 0x392   : > { %2458 = vmatprep.subr.bf16.mxu1 %v6603_v41  ;;  %2540 = vmatprep.subr.bf16.mxu0 %v6606_v42  ;;  %v6655_v41 = vld [vmem:[#allocation11 + $0x320] ss:$16 sps:$4 sm:$0xff]   ;;  %v6658_v42 = vld [vmem:[#allocation11 + $0x328] ss:$16 sps:$4 sm:$0xff]  }
 0x427   : > { %v1571_v48 = vpop.f32.mrb[0].mxu1  ;;  %v8507_v49 = vpop.f32.mrb[4].mxu0 }
 0x428   : > { %v1572_v50 = vadd.f32 %v1571_v48, %v1200_v45  ;;  %v1573_v51 = vpop.f32.mrb[1].mxu1  ;;  %v1614_v52 = vpop.f32.mrb[5].mxu0  ;;  %v6663_v45 = vld [vmem:[#allocation11 + $0x344] ss:$16 sps:$4 sm:$0xff]   ;;  %v6664_v48 = vld [vmem:[#allocation11 + $0x348] ss:$16 sps:$4 sm:$0xff]  }
 0x429   : > { %v1574_v53 = vadd.f32 %v1573_v51, %v1204_v46  ;;  %v1615_v54 = vadd.f32 %v1614_v52, %v1212_v47  ;;  %v1575_v55 = vpop.f32.mrb[2].mxu1  ;;  %v1616_v56 = vpop.f32.mrb[6].mxu0  ;;  %v6666_v46 = vld [vmem:[#allocation11 + $0x34c] ss:$16 sps:$4 sm:$0xff]   ;;  %v6661_v47 = vld [vmem:[#allocation11 + $0x340] ss:$16 sps:$4 sm:$0xff]  }
 0x42a   : > { %v1619_v57 = vmax.f32 %v1572_v50, 0.0  ;;  %v1576_v58 = vpop.f32.mrb[3].mxu1  ;;  %v1617_v59 = vpop.f32.mrb[7].mxu0  ;;  %v6669_v50 = vld [vmem:[#allocation11 + $0x364] ss:$16 sps:$4 sm:$0xff]  }
 0x42b   : > { %v1620_v60 = vmax.f32 %v1574_v53, 0.0  ;;  %v1622_v61 = vmax.f32 %v1615_v54, 0.0  ;;  %v6672_v51 = vld [vmem:[#allocation11 + $0x36c] ss:$16 sps:$4 sm:$0xff]   ;;  %v6667_v52 = vld [vmem:[#allocation11 + $0x360] ss:$16 sps:$4 sm:$0xff]  }
 0x42c   : > { %v1623_v2 = vpack.c.bf16 %v1619_v57, %v1619_v57  ;;  %v6670_v53 = vld [vmem:[#allocation11 + $0x368] ss:$16 sps:$4 sm:$0xff]   ;;  %v6675_v54 = vld [vmem:[#allocation11 + $0x384] ss:$16 sps:$4 sm:$0xff]   ;;  %v6678_v55 = vld [vmem:[#allocation11 + $0x38c] ss:$16 sps:$4 sm:$0xff]  }
 0x42d   : > { %v1624_v62 = vpack.c.bf16 %v1620_v60, %v1620_v60  ;;  %v1626_v5 = vpack.c.bf16 %v1622_v61, %v1622_v61  ;;  %v6673_v56 = vld [vmem:[#allocation11 + $0x380] ss:$16 sps:$4 sm:$0xff]   ;;  %v6676_v57 = vld [vmem:[#allocation11 + $0x388] ss:$16 sps:$4 sm:$0xff]   ;;  %v8510_v58 = vsub.s32 2, %v8486_v23 }
 0x42e   : > { %v6681_v59 = vld [vmem:[#allocation11 + $0x3a4] ss:$16 sps:$4 sm:$0xff]   ;;  %v6684_v60 = vld [vmem:[#allocation11 + $0x3ac] ss:$16 sps:$4 sm:$0xff]   ;;  %v6679_v61 = vld [vmem:[#allocation11 + $0x3a0] ss:$16 sps:$4 sm:$0xff]  }
 0x42f   : > { %2449 = vmatprep.mubr.bf16.mxu1 %v1624_v62  ;;  %2531 = vmatprep.mubr.bf16.mxu0 %v1624_v62  ;;  %v6682_v62 = vld [vmem:[#allocation11 + $0x3a8] ss:$16 sps:$4 sm:$0xff]  }
 0x430   : > { %2450 = vmatmul.mubr.bf16.vlgmr.msra.gmra.mrb[4].mxu1 %v1623_v2  ;;  %2532 = vmatmul.mubr.bf16.vlgmr.msra.gmra.mrb[8].mxu0 %v1623_v2  ;;  %v6690_v2 = vld [vmem:[#allocation11 + $0x3cc] ss:$16 sps:$4 sm:$0xff]   ;;  %v6688_v23 = vld [vmem:[#allocation11 + $0x3c8] ss:$16 sps:$4 sm:$0xff]  }
 0x431   : > { %2459 = vmatpush1.bf16.msra.mxu1 %v6601_v63  ;;  %2541 = vmatpush1.bf16.msra.mxu0 %v6604_v1  ;;  %v1208_v63 = vrot.slane %v8496_v43, %v8510_v58  ;;  %v6687_v1 = vld [vmem:[#allocation11 + $0x3c4] ss:$16 sps:$4 sm:$0xff]  }
 0x432   : > { %2490 = vmatprep.mubr.bf16.mxu1 %v1626_v5  ;;  %2572 = vmatprep.mubr.bf16.mxu0 %v1626_v5  ;;  %v6693_v5 = vld [vmem:[#allocation11 + $0x3e4] ss:$16 sps:$4 sm:$0xff]  }
 0x433   : > { %2460 = vmatprep.subr.bf16.mxu1 %v6609_v3  ;;  %2542 = vmatprep.subr.bf16.mxu0 %v6612_v4  ;;  %v6685_v3 = vld [vmem:[#allocation11 + $0x3c0] ss:$16 sps:$4 sm:$0xff]   ;;  %v1613_v4 = vadd.f32 %v8507_v49, %v1208_v63  ;;  %v6697_v43 = vld [vmem:[#allocation14 + $0x40] sm:$0xff]  }
 0x434   : > { %v6701_v49 = vld [vmem:[#allocation14 + $0x48] sm:$0xff]  }
 0x435   : > { %2461 = vmatpush1.bf16.msra.mxu1 %v6607_v6  ;;  %2543 = vmatpush1.bf16.msra.mxu0 %v6610_v7  ;;  %v6696_v6 = vld [vmem:[#allocation11 + $0x3ec] ss:$16 sps:$4 sm:$0xff]   ;;  %v6691_v7 = vld [vmem:[#allocation11 + $0x3e0] ss:$16 sps:$4 sm:$0xff]  }
 0x436   : > { %2462 = vmatprep.subr.bf16.mxu1 %v6615_v8  ;;  %2544 = vmatprep.subr.bf16.mxu0 %v6618_v9  ;;  %v6694_v8 = vld [vmem:[#allocation11 + $0x3e8] ss:$16 sps:$4 sm:$0xff]   ;;  %v1621_v9 = vmax.f32 %v1613_v4, 0.0 }
 0x439   : > { %2463 = vmatpush1.bf16.msra.mxu1 %v6613_v10  ;;  %2545 = vmatpush1.bf16.msra.mxu0 %v6616_v11  ;;  %v6698_v10 = vld [vmem:[#allocation14 + $0xc0] sm:$0xff]  }
 0x43a   : > { %2464 = vmatprep.subr.bf16.mxu1 %v6621_v12  ;;  %2546 = vmatprep.subr.bf16.mxu0 %v6624_v13  ;;  %v6699_v11 = vld [vmem:[#allocation14] sm:$0xff]   ;;  %v1625_v13 = vpack.c.bf16 %v1621_v9, %v1621_v9 }
 0x43b   : > { %v6700_v12 = vld [vmem:[#allocation14 + $0x80] sm:$0xff]  }
 0x43c   : > { %v6729_v9 = vld [vmem:[#allocation17] ss:$16 sps:$4 sm:$0xff]  }
 0x43d   : > { %2465 = vmatpush1.bf16.msra.mxu1 %v6619_v14  ;;  %2547 = vmatpush1.bf16.msra.mxu0 %v6622_v15  ;;  %v6702_v14 = vld [vmem:[#allocation14 + $0xc8] sm:$0xff]  }
 0x43e   : > { %2466 = vmatprep.subr.bf16.mxu1 %v6627_v16  ;;  %2548 = vmatprep.subr.bf16.mxu0 %v6630_v17  ;;  %v6703_v15 = vld [vmem:[#allocation14 + $0x8] sm:$0xff]   ;;  %v6705_v17 = vld [vmem:[#allocation14 + $0x50] sm:$0xff]  }
 0x43f   : > { %v6704_v16 = vld [vmem:[#allocation14 + $0x88] sm:$0xff]  }
 0x441   : > { %2467 = vmatpush1.bf16.msra.mxu1 %v6625_v18  ;;  %2549 = vmatpush1.bf16.msra.mxu0 %v6628_v19  ;;  %v6706_v18 = vld [vmem:[#allocation14 + $0xd0] sm:$0xff]  }
 0x442   : > { %2468 = vmatprep.subr.bf16.mxu1 %v6633_v20  ;;  %2550 = vmatprep.subr.bf16.mxu0 %v6636_v21  ;;  %v6707_v19 = vld [vmem:[#allocation14 + $0x10] sm:$0xff]   ;;  %v6709_v21 = vld [vmem:[#allocation14 + $0x58] sm:$0xff]  }
 0x443   : > { %v6708_v20 = vld [vmem:[#allocation14 + $0x90] sm:$0xff]  }
 0x445   : > { %2469 = vmatpush1.bf16.msra.mxu1 %v6631_v22  ;;  %2551 = vmatpush1.bf16.msra.mxu0 %v6634_v25  ;;  %v6710_v22 = vld [vmem:[#allocation14 + $0xd8] sm:$0xff]  }
 0x446   : > { %2470 = vmatprep.subr.bf16.mxu1 %v6639_v27  ;;  %2552 = vmatprep.subr.bf16.mxu0 %v6642_v28  ;;  %v6711_v25 = vld [vmem:[#allocation14 + $0x18] sm:$0xff]   ;;  %v6713_v28 = vld [vmem:[#allocation14 + $0x60] sm:$0xff]  }
 0x447   : > { %v6712_v27 = vld [vmem:[#allocation14 + $0x98] sm:$0xff]  }
 0x449   : > { %2471 = vmatpush1.bf16.msra.mxu1 %v6637_v29  ;;  %2553 = vmatpush1.bf16.msra.mxu0 %v6640_v30  ;;  %v6714_v29 = vld [vmem:[#allocation14 + $0xe0] sm:$0xff]  }
 0x44a   : > { %2472 = vmatprep.subr.bf16.mxu1 %v6645_v31  ;;  %2554 = vmatprep.subr.bf16.mxu0 %v6648_v32  ;;  %v6715_v30 = vld [vmem:[#allocation14 + $0x20] sm:$0xff]   ;;  %v6717_v32 = vld [vmem:[#allocation14 + $0x68] sm:$0xff]  }
 0x44b   : > { %v6716_v31 = vld [vmem:[#allocation14 + $0xa0] sm:$0xff]  }
 0x44d   : > { %2473 = vmatpush1.bf16.msra.mxu1 %v6643_v33  ;;  %2555 = vmatpush1.bf16.msra.mxu0 %v6646_v34  ;;  %v6718_v33 = vld [vmem:[#allocation14 + $0xe8] sm:$0xff]  }
 0x44e   : > { %2474 = vmatprep.subr.bf16.mxu1 %v6651_v35  ;;  %2556 = vmatprep.subr.bf16.mxu0 %v6654_v36  ;;  %v6719_v34 = vld [vmem:[#allocation14 + $0x28] sm:$0xff]   ;;  %v6721_v36 = vld [vmem:[#allocation14 + $0x70] sm:$0xff]  }
 0x44f   : > { %v6720_v35 = vld [vmem:[#allocation14 + $0xa8] sm:$0xff]  }
 0x451   : > { %2475 = vmatpush1.bf16.msra.mxu1 %v6649_v37  ;;  %2557 = vmatpush1.bf16.msra.mxu0 %v6652_v38  ;;  %v6722_v37 = vld [vmem:[#allocation14 + $0xf0] sm:$0xff]  }
 0x452   : > { %2476 = vmatprep.subr.bf16.mxu1 %v6657_v39  ;;  %2558 = vmatprep.subr.bf16.mxu0 %v6660_v40  ;;  %v6723_v38 = vld [vmem:[#allocation14 + $0x30] sm:$0xff]   ;;  %v6725_v40 = vld [vmem:[#allocation14 + $0x78] sm:$0xff]  }
 0x453   : > { %v6724_v39 = vld [vmem:[#allocation14 + $0xb0] sm:$0xff]  }
 0x455   : > { %2477 = vmatpush1.bf16.msra.mxu1 %v6655_v41  ;;  %2559 = vmatpush1.bf16.msra.mxu0 %v6658_v42  ;;  %v6726_v41 = vld [vmem:[#allocation14 + $0xf8] sm:$0xff]  }
 0x456   : > { %2478 = vmatprep.subr.bf16.mxu1 %v6663_v45  ;;  %2560 = vmatprep.subr.bf16.mxu0 %v6666_v46  ;;  %v6727_v42 = vld [vmem:[#allocation14 + $0x38] sm:$0xff]  }
 0x457   : > { %v6728_v45 = vld [vmem:[#allocation14 + $0xb8] sm:$0xff]  }
 0x458   : > { %v6731_v46 = vld [vmem:[#allocation17 + $0x4] ss:$16 sps:$4 sm:$0xff]  }
 0x459   : > { %2479 = vmatpush1.bf16.msra.mxu1 %v6661_v47  ;;  %2561 = vmatpush1.bf16.msra.mxu0 %v6664_v48  ;;  %v6734_v47 = vld [vmem:[#allocation17 + $0xc] ss:$16 sps:$4 sm:$0xff]  }
 0x45a   : > { %2480 = vmatprep.subr.bf16.mxu1 %v6669_v50  ;;  %2562 = vmatprep.subr.bf16.mxu0 %v6672_v51  ;;  %v1755_v48 = vld [vmem:[#allocation13] sm:$0xf] }
 0x45b   : > { %v1760_v50 = vrot.slane %v1755_v48, %v8489_v24  ;;  %v1768_v51 = vrot.slane %v1755_v48, %v8510_v58 }
 0x45d   : > { %2481 = vmatpush1.bf16.msra.mxu1 %v6667_v52  ;;  %2563 = vmatpush1.bf16.msra.mxu0 %v6670_v53  ;;  %v1764_v52 = vrot.slane %v1755_v48, %v8492_v26  ;;  %v1772_v53 = vrot.slane %v1755_v48, %v8499_v44 }
 0x45e   : > { %2482 = vmatprep.subr.bf16.mxu1 %v6675_v54  ;;  %2564 = vmatprep.subr.bf16.mxu0 %v6678_v55 }
 0x461   : > { %2483 = vmatpush1.bf16.msra.mxu1 %v6673_v56  ;;  %2565 = vmatpush1.bf16.msra.mxu0 %v6676_v57 }
 0x462   : > { %2484 = vmatprep.subr.bf16.mxu1 %v6681_v59  ;;  %2566 = vmatprep.subr.bf16.mxu0 %v6684_v60 }
 0x465   : > { %2485 = vmatpush1.bf16.msra.mxu1 %v6679_v61  ;;  %2567 = vmatpush1.bf16.msra.mxu0 %v6682_v62 }
 0x466   : > { %2486 = vmatprep.subr.bf16.mxu1 %v6687_v1  ;;  %2568 = vmatprep.subr.bf16.mxu0 %v6690_v2 }
 0x469   : > { %2487 = vmatpush1.bf16.msra.mxu1 %v6685_v3  ;;  %2569 = vmatpush1.bf16.msra.mxu0 %v6688_v23 }
 0x46a   : > { %2488 = vmatprep.subr.bf16.mxu1 %v6693_v5  ;;  %2570 = vmatprep.subr.bf16.mxu0 %v6696_v6 }
 0x46d   : > { %2489 = vmatpush1.bf16.msra.mxu1 %v6691_v7  ;;  %2571 = vmatpush1.bf16.msra.mxu0 %v6694_v8 }
 0x46e   : > { %5995 = vmatprep.subr.bf16.mxu1 %v6697_v43  ;;  %6017 = vmatprep.subr.bf16.mxu0 %v6698_v10  ;;  %v6732_v43 = vld [vmem:[#allocation17 + $0x8] ss:$16 sps:$4 sm:$0xff]  }
 0x470   : > { %2491 = vmatmul.mubr.bf16.vlgmr.msra.gmra.mrb[4].mxu1 %v1625_v13  ;;  %2573 = vmatmul.mubr.bf16.vlgmr.msra.gmra.mrb[8].mxu0 %v1625_v13  ;;  %v6740_v13 = vld [vmem:[#allocation17 + $0x2c] ss:$16 sps:$4 sm:$0xff]  }
 0x471   : > { %5996 = vmatpush3.bf16.msra.mxu1 %v6699_v11  ;;  %6018 = vmatpush3.bf16.msra.mxu0 %v6700_v12  ;;  %v6737_v12 = vld [vmem:[#allocation17 + $0x24] ss:$16 sps:$4 sm:$0xff]  }
 0x472   : > { %5997 = vmatprep.subr.bf16.mxu1 %v6701_v49  ;;  %6019 = vmatprep.subr.bf16.mxu0 %v6702_v14  ;;  %v6735_v49 = vld [vmem:[#allocation17 + $0x20] ss:$16 sps:$4 sm:$0xff]   ;;  %v6738_v14 = vld [vmem:[#allocation17 + $0x28] ss:$16 sps:$4 sm:$0xff]  }
 0x475   : > { %5998 = vmatpush3.bf16.msra.mxu1 %v6703_v15  ;;  %6020 = vmatpush3.bf16.msra.mxu0 %v6704_v16  ;;  %v6743_v15 = vld [vmem:[#allocation17 + $0x44] ss:$16 sps:$4 sm:$0xff]   ;;  %v6746_v16 = vld [vmem:[#allocation17 + $0x4c] ss:$16 sps:$4 sm:$0xff]  }
 0x476   : > { %5999 = vmatprep.subr.bf16.mxu1 %v6705_v17  ;;  %6021 = vmatprep.subr.bf16.mxu0 %v6706_v18  ;;  %v6741_v17 = vld [vmem:[#allocation17 + $0x40] ss:$16 sps:$4 sm:$0xff]   ;;  %v6744_v18 = vld [vmem:[#allocation17 + $0x48] ss:$16 sps:$4 sm:$0xff]  }
 0x479   : > { %6000 = vmatpush3.bf16.msra.mxu1 %v6707_v19  ;;  %6022 = vmatpush3.bf16.msra.mxu0 %v6708_v20  ;;  %v6749_v19 = vld [vmem:[#allocation17 + $0x64] ss:$16 sps:$4 sm:$0xff]   ;;  %v6752_v20 = vld [vmem:[#allocation17 + $0x6c] ss:$16 sps:$4 sm:$0xff]  }
 0x47a   : > { %6001 = vmatprep.subr.bf16.mxu1 %v6709_v21  ;;  %6023 = vmatprep.subr.bf16.mxu0 %v6710_v22  ;;  %v6747_v21 = vld [vmem:[#allocation17 + $0x60] ss:$16 sps:$4 sm:$0xff]   ;;  %v6750_v22 = vld [vmem:[#allocation17 + $0x68] ss:$16 sps:$4 sm:$0xff]  }
 0x47d   : > { %6002 = vmatpush3.bf16.msra.mxu1 %v6711_v25  ;;  %6024 = vmatpush3.bf16.msra.mxu0 %v6712_v27  ;;  %v6755_v25 = vld [vmem:[#allocation17 + $0x84] ss:$16 sps:$4 sm:$0xff]   ;;  %v6758_v27 = vld [vmem:[#allocation17 + $0x8c] ss:$16 sps:$4 sm:$0xff]  }
 0x47e   : > { %6003 = vmatprep.subr.bf16.mxu1 %v6713_v28  ;;  %6025 = vmatprep.subr.bf16.mxu0 %v6714_v29  ;;  %v6753_v28 = vld [vmem:[#allocation17 + $0x80] ss:$16 sps:$4 sm:$0xff]   ;;  %v6761_v29 = vld [vmem:[#allocation17 + $0xa4] ss:$16 sps:$4 sm:$0xff]  }
 0x481   : > { %6004 = vmatpush3.bf16.msra.mxu1 %v6715_v30  ;;  %6026 = vmatpush3.bf16.msra.mxu0 %v6716_v31  ;;  %v6764_v30 = vld [vmem:[#allocation17 + $0xac] ss:$16 sps:$4 sm:$0xff]   ;;  %v6759_v31 = vld [vmem:[#allocation17 + $0xa0] ss:$16 sps:$4 sm:$0xff]  }
 0x482   : > { %6005 = vmatprep.subr.bf16.mxu1 %v6717_v32  ;;  %6027 = vmatprep.subr.bf16.mxu0 %v6718_v33  ;;  %v6762_v32 = vld [vmem:[#allocation17 + $0xa8] ss:$16 sps:$4 sm:$0xff]   ;;  %v6767_v33 = vld [vmem:[#allocation17 + $0xc4] ss:$16 sps:$4 sm:$0xff]  }
 0x485   : > { %6006 = vmatpush3.bf16.msra.mxu1 %v6719_v34  ;;  %6028 = vmatpush3.bf16.msra.mxu0 %v6720_v35  ;;  %v6770_v34 = vld [vmem:[#allocation17 + $0xcc] ss:$16 sps:$4 sm:$0xff]   ;;  %v6765_v35 = vld [vmem:[#allocation17 + $0xc0] ss:$16 sps:$4 sm:$0xff]  }
 0x486   : > { %6007 = vmatprep.subr.bf16.mxu1 %v6721_v36  ;;  %6029 = vmatprep.subr.bf16.mxu0 %v6722_v37  ;;  %v6768_v36 = vld [vmem:[#allocation17 + $0xc8] ss:$16 sps:$4 sm:$0xff]   ;;  %v6773_v37 = vld [vmem:[#allocation17 + $0xe4] ss:$16 sps:$4 sm:$0xff]  }
 0x489   : > { %6008 = vmatpush3.bf16.msra.mxu1 %v6723_v38  ;;  %6030 = vmatpush3.bf16.msra.mxu0 %v6724_v39  ;;  %v6776_v38 = vld [vmem:[#allocation17 + $0xec] ss:$16 sps:$4 sm:$0xff]   ;;  %v6771_v39 = vld [vmem:[#allocation17 + $0xe0] ss:$16 sps:$4 sm:$0xff]  }
 0x48a   : > { %6009 = vmatprep.subr.bf16.mxu1 %v6725_v40  ;;  %6031 = vmatprep.subr.bf16.mxu0 %v6726_v41  ;;  %v6774_v40 = vld [vmem:[#allocation17 + $0xe8] ss:$16 sps:$4 sm:$0xff]  }
 0x48b   : > { %v6779_v41 = vld [vmem:[#allocation20 + $0x4] ss:$16 sps:$4 sm:$0xff]  }
 0x48d   : > { %6010 = vmatpush3.bf16.msra.mxu1 %v6727_v42  ;;  %6032 = vmatpush3.bf16.msra.mxu0 %v6728_v45  ;;  %v6782_v42 = vld [vmem:[#allocation20 + $0xc] ss:$16 sps:$4 sm:$0xff]  }
 0x48e   : > { %3148 = vmatprep.subr.bf16.mxu1 %v6731_v46  ;;  %3189 = vmatprep.subr.bf16.mxu0 %v6734_v47  ;;  %v5695_v47 = vld [vmem:[#allocation16] ss:$0 sm:$0xff] }
 0x543   : > { %v2492_v54 = vpop.f32.mrb[4].mxu1  ;;  %v2574_v55 = vpop.f32.mrb[8].mxu0 }
 0x544   : > { %v6119_v56 = vadd.f32 %v2492_v54, %v1760_v50  ;;  %v6121_v57 = vadd.f32 %v2574_v55, %v1768_v51  ;;  %v2494_v59 = vpop.f32.mrb[5].mxu1  ;;  %v2576_v60 = vpop.f32.mrb[9].mxu0 }
 0x545   : > { %v6120_v61 = vadd.f32 %v2494_v59, %v1764_v52  ;;  %v6122_v62 = vadd.f32 %v2576_v60, %v1772_v53  ;;  %v2496_v63 = vpop.f32.mrb[6].mxu1  ;;  %v2578_v1 = vpop.f32.mrb[10].mxu0  ;;  %v6777_v60 = vld [vmem:[#allocation20] ss:$16 sps:$4 sm:$0xff]  }
 0x546   : > { %v2581_v2 = vmax.f32 %v6119_v56, 0.0  ;;  %v2583_v3 = vmax.f32 %v6121_v57, 0.0  ;;  %v2497_v23 = vpop.f32.mrb[7].mxu1  ;;  %v2579_v4 = vpop.f32.mrb[11].mxu0  ;;  %v6785_v63 = vld [vmem:[#allocation20 + $0x24] ss:$16 sps:$4 sm:$0xff]  }
 0x547   : > { %v2582_v5 = vmax.f32 %v6120_v61, 0.0  ;;  %v2584_v6 = vmax.f32 %v6122_v62, 0.0  ;;  %v6780_v61 = vld [vmem:[#allocation20 + $0x8] ss:$16 sps:$4 sm:$0xff]   ;;  %v6788_v1 = vld [vmem:[#allocation20 + $0x2c] ss:$16 sps:$4 sm:$0xff]  }
 0x548   : > { %v2585_v10 = vpack.c.bf16 %v2581_v2, %v2581_v2  ;;  %v2587_v11 = vpack.c.bf16 %v2583_v3, %v2583_v3  ;;  %v6783_v2 = vld [vmem:[#allocation20 + $0x20] ss:$16 sps:$4 sm:$0xff]   ;;  %v6786_v3 = vld [vmem:[#allocation20 + $0x28] ss:$16 sps:$4 sm:$0xff]   ;;  %v6791_v23 = vld [vmem:[#allocation20 + $0x44] ss:$16 sps:$4 sm:$0xff]  }
 0x549   : > { %v2586_v7 = vpack.c.bf16 %v2582_v5, %v2582_v5  ;;  %v2588_v8 = vpack.c.bf16 %v2584_v6, %v2584_v6  ;;  %v6794_v4 = vld [vmem:[#allocation20 + $0x4c] ss:$16 sps:$4 sm:$0xff]   ;;  %v6789_v5 = vld [vmem:[#allocation20 + $0x40] ss:$16 sps:$4 sm:$0xff]   ;;  %v6792_v6 = vld [vmem:[#allocation20 + $0x48] ss:$16 sps:$4 sm:$0xff]  }
 0x54b   : > { %2884 = vmatprep.mubr.bf16.mxu1 %v2586_v7  ;;  %2924 = vmatprep.mubr.bf16.mxu0 %v2588_v8  ;;  %v6797_v7 = vld [vmem:[#allocation20 + $0x64] ss:$16 sps:$4 sm:$0xff]   ;;  %v6800_v8 = vld [vmem:[#allocation20 + $0x6c] ss:$16 sps:$4 sm:$0xff]  }
 0x54c   : > { %2885 = vmatmul.mubr.bf16.vlgmr.msra.gmra.mrb[8].mxu1 %v2585_v10  ;;  %2925 = vmatmul.mubr.bf16.vlgmr.msra.gmra.mrb[12].mxu0 %v2587_v11  ;;  %v6803_v10 = vld [vmem:[#allocation20 + $0x84] ss:$16 sps:$4 sm:$0xff]   ;;  %v6806_v11 = vld [vmem:[#allocation20 + $0x8c] ss:$16 sps:$4 sm:$0xff]  }
 0x54d   : > { %3149 = vmatpush1.bf16.msra.mxu1 %v6729_v9  ;;  %3190 = vmatpush1.bf16.msra.mxu0 %v6732_v43  ;;  %v6795_v9 = vld [vmem:[#allocation20 + $0x60] ss:$16 sps:$4 sm:$0xff]   ;;  %v6798_v43 = vld [vmem:[#allocation20 + $0x68] ss:$16 sps:$4 sm:$0xff]  }
 0x54e   : > { %3150 = vmatprep.subr.bf16.mxu1 %v6737_v12  ;;  %3191 = vmatprep.subr.bf16.mxu0 %v6740_v13  ;;  %v6801_v12 = vld [vmem:[#allocation20 + $0x80] ss:$16 sps:$4 sm:$0xff]   ;;  %v6804_v13 = vld [vmem:[#allocation20 + $0x88] ss:$16 sps:$4 sm:$0xff]  }
 0x54f   : > { %3180 = vmatprep.mubr.bf16.mxu1 %v7797_v0  ;;  %3221 = vmatprep.mubr.bf16.mxu0 %v7797_v0  ;;  %v6756_v0 = vld [vmem:[#allocation17 + $0x88] ss:$16 sps:$4 sm:$0xff]  }
 0x551   : > { %3151 = vmatpush1.bf16.msra.mxu1 %v6735_v49  ;;  %3192 = vmatpush1.bf16.msra.mxu0 %v6738_v14  ;;  %v6809_v49 = vld [vmem:[#allocation20 + $0xa4] ss:$16 sps:$4 sm:$0xff]   ;;  %v6812_v14 = vld [vmem:[#allocation20 + $0xac] ss:$16 sps:$4 sm:$0xff]  }
 0x552   : > { %3152 = vmatprep.subr.bf16.mxu1 %v6743_v15  ;;  %3193 = vmatprep.subr.bf16.mxu0 %v6746_v16  ;;  %v6807_v15 = vld [vmem:[#allocation20 + $0xa0] ss:$16 sps:$4 sm:$0xff]   ;;  %v6810_v16 = vld [vmem:[#allocation20 + $0xa8] ss:$16 sps:$4 sm:$0xff]  }
 0x555   : > { %3153 = vmatpush1.bf16.msra.mxu1 %v6741_v17  ;;  %3194 = vmatpush1.bf16.msra.mxu0 %v6744_v18  ;;  %v6815_v17 = vld [vmem:[#allocation20 + $0xc4] ss:$16 sps:$4 sm:$0xff]   ;;  %v6818_v18 = vld [vmem:[#allocation20 + $0xcc] ss:$16 sps:$4 sm:$0xff]  }
 0x556   : > { %3154 = vmatprep.subr.bf16.mxu1 %v6749_v19  ;;  %3195 = vmatprep.subr.bf16.mxu0 %v6752_v20  ;;  %v6813_v19 = vld [vmem:[#allocation20 + $0xc0] ss:$16 sps:$4 sm:$0xff]   ;;  %v6816_v20 = vld [vmem:[#allocation20 + $0xc8] ss:$16 sps:$4 sm:$0xff]  }
 0x559   : > { %3155 = vmatpush1.bf16.msra.mxu1 %v6747_v21  ;;  %3196 = vmatpush1.bf16.msra.mxu0 %v6750_v22  ;;  %v6821_v21 = vld [vmem:[#allocation20 + $0xe4] ss:$16 sps:$4 sm:$0xff]   ;;  %v6824_v22 = vld [vmem:[#allocation20 + $0xec] ss:$16 sps:$4 sm:$0xff]  }
 0x55a   : > { %3156 = vmatprep.subr.bf16.mxu1 %v6755_v25  ;;  %3197 = vmatprep.subr.bf16.mxu0 %v6758_v27  ;;  %v6819_v25 = vld [vmem:[#allocation20 + $0xe0] ss:$16 sps:$4 sm:$0xff]   ;;  %v6822_v27 = vld [vmem:[#allocation20 + $0xe8] ss:$16 sps:$4 sm:$0xff]  }
 0x55d   : > { %3157 = vmatpush1.bf16.msra.mxu1 %v6753_v28  ;;  %3198 = vmatpush1.bf16.msra.mxu0 %v6756_v0  ;;  %v6827_v28 = vld [vmem:[#allocation20 + $0x104] ss:$16 sps:$4 sm:$0xff]   ;;  %v6830_v0 = vld [vmem:[#allocation20 + $0x10c] ss:$16 sps:$4 sm:$0xff]  }
 0x55e   : > { %3158 = vmatprep.subr.bf16.mxu1 %v6761_v29  ;;  %3199 = vmatprep.subr.bf16.mxu0 %v6764_v30  ;;  %v6825_v29 = vld [vmem:[#allocation20 + $0x100] ss:$16 sps:$4 sm:$0xff]   ;;  %v6828_v30 = vld [vmem:[#allocation20 + $0x108] ss:$16 sps:$4 sm:$0xff]  }
 0x561   : > { %3159 = vmatpush1.bf16.msra.mxu1 %v6759_v31  ;;  %3200 = vmatpush1.bf16.msra.mxu0 %v6762_v32  ;;  %v6833_v31 = vld [vmem:[#allocation20 + $0x124] ss:$16 sps:$4 sm:$0xff]   ;;  %v6836_v32 = vld [vmem:[#allocation20 + $0x12c] ss:$16 sps:$4 sm:$0xff]  }
 0x562   : > { %3160 = vmatprep.subr.bf16.mxu1 %v6767_v33  ;;  %3201 = vmatprep.subr.bf16.mxu0 %v6770_v34  ;;  %v6831_v33 = vld [vmem:[#allocation20 + $0x120] ss:$16 sps:$4 sm:$0xff]   ;;  %v6834_v34 = vld [vmem:[#allocation20 + $0x128] ss:$16 sps:$4 sm:$0xff]  }
 0x565   : > { %3161 = vmatpush1.bf16.msra.mxu1 %v6765_v35  ;;  %3202 = vmatpush1.bf16.msra.mxu0 %v6768_v36  ;;  %v6839_v35 = vld [vmem:[#allocation20 + $0x144] ss:$16 sps:$4 sm:$0xff]   ;;  %v6842_v36 = vld [vmem:[#allocation20 + $0x14c] ss:$16 sps:$4 sm:$0xff]  }
 0x566   : > { %3162 = vmatprep.subr.bf16.mxu1 %v6773_v37  ;;  %3203 = vmatprep.subr.bf16.mxu0 %v6776_v38  ;;  %v6837_v37 = vld [vmem:[#allocation20 + $0x140] ss:$16 sps:$4 sm:$0xff]   ;;  %v6840_v38 = vld [vmem:[#allocation20 + $0x148] ss:$16 sps:$4 sm:$0xff]  }
 0x569   : > { %3163 = vmatpush1.bf16.msra.mxu1 %v6771_v39  ;;  %3204 = vmatpush1.bf16.msra.mxu0 %v6774_v40  ;;  %v6845_v39 = vld [vmem:[#allocation20 + $0x164] ss:$16 sps:$4 sm:$0xff]   ;;  %v6848_v40 = vld [vmem:[#allocation20 + $0x16c] ss:$16 sps:$4 sm:$0xff]  }
 0x56a   : > { %4028 = vmatprep.subr.bf16.mxu1 %v6779_v41  ;;  %4110 = vmatprep.subr.bf16.mxu0 %v6782_v42  ;;  %v6843_v41 = vld [vmem:[#allocation20 + $0x160] ss:$16 sps:$4 sm:$0xff]   ;;  %v6846_v42 = vld [vmem:[#allocation20 + $0x168] ss:$16 sps:$4 sm:$0xff]  }
 0x61f   : > { %v6011_v45 = vpop.f32.mrb[8].mxu1  ;;  %v6033_v46 = vpop.f32.mrb[12].mxu0 }
 0x620   : > { %v6012_v48 = vpop.f32.mrb[9].mxu1  ;;  %v6034_v50 = vpop.f32.mrb[13].mxu0 }
 0x621   : > { %v6013_v51 = vadd.f32 %v6012_v48, %v6011_v45  ;;  %v6035_v52 = vadd.f32 %v6034_v50, %v6033_v46  ;;  %v6014_v53 = vpop.f32.mrb[10].mxu1  ;;  %v6036_v54 = vpop.f32.mrb[14].mxu0  ;;  %v6851_v45 = vld [vmem:[#allocation20 + $0x184] ss:$16 sps:$4 sm:$0xff]   ;;  %v6854_v46 = vld [vmem:[#allocation20 + $0x18c] ss:$16 sps:$4 sm:$0xff]  }
 0x622   : > { %v6015_v55 = vpop.f32.mrb[11].mxu1  ;;  %v6037_v56 = vpop.f32.mrb[15].mxu0  ;;  %v6852_v48 = vld [vmem:[#allocation20 + $0x188] ss:$16 sps:$4 sm:$0xff]   ;;  %v6857_v50 = vld [vmem:[#allocation20 + $0x1a4] ss:$16 sps:$4 sm:$0xff]  }
 0x623   : > { %v2887_v57 = vadd.f32 %v6013_v51, %v5695_v47  ;;  %v6849_v47 = vld [vmem:[#allocation20 + $0x180] ss:$16 sps:$4 sm:$0xff]   ;;  %v6860_v51 = vld [vmem:[#allocation20 + $0x1ac] ss:$16 sps:$4 sm:$0xff]   ;;  %v6858_v53 = vld [vmem:[#allocation20 + $0x1a8] ss:$16 sps:$4 sm:$0xff]  }
 0x624   : > { %v6863_v54 = vld [vmem:[#allocation20 + $0x1c4] ss:$16 sps:$4 sm:$0xff]   ;;  %v6866_v55 = vld [vmem:[#allocation20 + $0x1cc] ss:$16 sps:$4 sm:$0xff]   ;;  %v6861_v56 = vld [vmem:[#allocation20 + $0x1c0] ss:$16 sps:$4 sm:$0xff]  }
 0x625   : > { %v2927_v59 = vadd.f32 %v6035_v52, %v2887_v57  ;;  %v6855_v52 = vld [vmem:[#allocation20 + $0x1a0] ss:$16 sps:$4 sm:$0xff]   ;;  %v6864_v57 = vld [vmem:[#allocation20 + $0x1c8] ss:$16 sps:$4 sm:$0xff]  }
 0x627   : > { %v8521_v62 = vpack.c.bf16 %v2927_v59, %v2927_v59  ;;  %2932 = vst [vmem:[%s967_s29] sm:$0xff] %v2927_v59  ;;  %v6869_v59 = vld [vmem:[#allocation20 + $0x1e4] ss:$16 sps:$4 sm:$0xff]  }
 0x629   : > { %3181 = vmatmul.mubr.bf16.vlgmr.msra.gmra.mrb[12].mxu1 %v8521_v62  ;;  %3222 = vmatmul.mubr.bf16.vlgmr.msra.gmra.mrb[16].mxu0 %v8521_v62 }
 0x62a   : > { %4029 = vmatpush1.bf16.msra.mxu1 %v6777_v60  ;;  %4111 = vmatpush1.bf16.msra.mxu0 %v6780_v61  ;;  %v6872_v60 = vld [vmem:[#allocation20 + $0x1ec] ss:$16 sps:$4 sm:$0xff]   ;;  %v6867_v61 = vld [vmem:[#allocation20 + $0x1e0] ss:$16 sps:$4 sm:$0xff]  }
 0x62b   : > { %4030 = vmatprep.subr.bf16.mxu1 %v6785_v63  ;;  %4112 = vmatprep.subr.bf16.mxu0 %v6788_v1  ;;  %v6870_v63 = vld [vmem:[#allocation20 + $0x1e8] ss:$16 sps:$4 sm:$0xff]   ;;  %v6875_v1 = vld [vmem:[#allocation20 + $0x204] ss:$16 sps:$4 sm:$0xff]  }
 0x62e   : > { %4031 = vmatpush1.bf16.msra.mxu1 %v6783_v2  ;;  %4113 = vmatpush1.bf16.msra.mxu0 %v6786_v3  ;;  %v6878_v2 = vld [vmem:[#allocation20 + $0x20c] ss:$16 sps:$4 sm:$0xff]  }
 0x62f   : > { %4032 = vmatprep.subr.bf16.mxu1 %v6791_v23  ;;  %4114 = vmatprep.subr.bf16.mxu0 %v6794_v4  ;;  %v8528_v3 = vld [vmem:[#allocation19] sm:$0xf] }
 0x630   : > { %v2971_v23 = vrot.slane %v8528_v3, %v8489_v24  ;;  %v2975_v4 = vrot.slane %v8528_v3, %v8492_v26 }
 0x632   : > { %4033 = vmatpush1.bf16.msra.mxu1 %v6789_v5  ;;  %4115 = vmatpush1.bf16.msra.mxu0 %v6792_v6  ;;  %v2983_v5 = vrot.slane %v8528_v3, %v8499_v44 }
 0x633   : > { %4034 = vmatprep.subr.bf16.mxu1 %v6797_v7  ;;  %4116 = vmatprep.subr.bf16.mxu0 %v6800_v8 }
 0x636   : > { %4035 = vmatpush1.bf16.msra.mxu1 %v6795_v9  ;;  %4117 = vmatpush1.bf16.msra.mxu0 %v6798_v43 }
 0x637   : > { %4036 = vmatprep.subr.bf16.mxu1 %v6803_v10  ;;  %4118 = vmatprep.subr.bf16.mxu0 %v6806_v11 }
 0x63a   : > { %4037 = vmatpush1.bf16.msra.mxu1 %v6801_v12  ;;  %4119 = vmatpush1.bf16.msra.mxu0 %v6804_v13 }
 0x63b   : > { %4038 = vmatprep.subr.bf16.mxu1 %v6809_v49  ;;  %4120 = vmatprep.subr.bf16.mxu0 %v6812_v14 }
 0x63e   : > { %4039 = vmatpush1.bf16.msra.mxu1 %v6807_v15  ;;  %4121 = vmatpush1.bf16.msra.mxu0 %v6810_v16 }
 0x63f   : > { %4040 = vmatprep.subr.bf16.mxu1 %v6815_v17  ;;  %4122 = vmatprep.subr.bf16.mxu0 %v6818_v18 }
 0x642   : > { %4041 = vmatpush1.bf16.msra.mxu1 %v6813_v19  ;;  %4123 = vmatpush1.bf16.msra.mxu0 %v6816_v20  ;;  %v6873_v19 = vld [vmem:[#allocation20 + $0x200] ss:$16 sps:$4 sm:$0xff]   ;;  %v6876_v20 = vld [vmem:[#allocation20 + $0x208] ss:$16 sps:$4 sm:$0xff]  }
 0x643   : > { %4042 = vmatprep.subr.bf16.mxu1 %v6821_v21  ;;  %4124 = vmatprep.subr.bf16.mxu0 %v6824_v22  ;;  %v6881_v22 = vld [vmem:[#allocation20 + $0x224] ss:$16 sps:$4 sm:$0xff]  }
 0x646   : > { %4043 = vmatpush1.bf16.msra.mxu1 %v6819_v25  ;;  %4125 = vmatpush1.bf16.msra.mxu0 %v6822_v27  ;;  %v6884_v25 = vld [vmem:[#allocation20 + $0x22c] ss:$16 sps:$4 sm:$0xff]  }
 0x647   : > { %4044 = vmatprep.subr.bf16.mxu1 %v6827_v28  ;;  %4126 = vmatprep.subr.bf16.mxu0 %v6830_v0  ;;  %v6879_v28 = vld [vmem:[#allocation20 + $0x220] ss:$16 sps:$4 sm:$0xff]   ;;  %v6882_v0 = vld [vmem:[#allocation20 + $0x228] ss:$16 sps:$4 sm:$0xff]  }
 0x64a   : > { %4045 = vmatpush1.bf16.msra.mxu1 %v6825_v29  ;;  %4127 = vmatpush1.bf16.msra.mxu0 %v6828_v30  ;;  %v6887_v29 = vld [vmem:[#allocation20 + $0x244] ss:$16 sps:$4 sm:$0xff]   ;;  %v6890_v30 = vld [vmem:[#allocation20 + $0x24c] ss:$16 sps:$4 sm:$0xff]  }
 0x64b   : > { %4046 = vmatprep.subr.bf16.mxu1 %v6833_v31  ;;  %4128 = vmatprep.subr.bf16.mxu0 %v6836_v32  ;;  %v6885_v31 = vld [vmem:[#allocation20 + $0x240] ss:$16 sps:$4 sm:$0xff]   ;;  %v6888_v32 = vld [vmem:[#allocation20 + $0x248] ss:$16 sps:$4 sm:$0xff]  }
 0x64e   : > { %4047 = vmatpush1.bf16.msra.mxu1 %v6831_v33  ;;  %4129 = vmatpush1.bf16.msra.mxu0 %v6834_v34  ;;  %v6893_v33 = vld [vmem:[#allocation20 + $0x264] ss:$16 sps:$4 sm:$0xff]   ;;  %v6896_v34 = vld [vmem:[#allocation20 + $0x26c] ss:$16 sps:$4 sm:$0xff]  }
 0x64f   : > { %4048 = vmatprep.subr.bf16.mxu1 %v6839_v35  ;;  %4130 = vmatprep.subr.bf16.mxu0 %v6842_v36  ;;  %v6891_v35 = vld [vmem:[#allocation20 + $0x260] ss:$16 sps:$4 sm:$0xff]   ;;  %v6894_v36 = vld [vmem:[#allocation20 + $0x268] ss:$16 sps:$4 sm:$0xff]  }
 0x652   : > { %4049 = vmatpush1.bf16.msra.mxu1 %v6837_v37  ;;  %4131 = vmatpush1.bf16.msra.mxu0 %v6840_v38  ;;  %v6899_v37 = vld [vmem:[#allocation20 + $0x284] ss:$16 sps:$4 sm:$0xff]   ;;  %v6902_v38 = vld [vmem:[#allocation20 + $0x28c] ss:$16 sps:$4 sm:$0xff]  }
 0x653   : > { %4050 = vmatprep.subr.bf16.mxu1 %v6845_v39  ;;  %4132 = vmatprep.subr.bf16.mxu0 %v6848_v40  ;;  %v6897_v39 = vld [vmem:[#allocation20 + $0x280] ss:$16 sps:$4 sm:$0xff]   ;;  %v6900_v40 = vld [vmem:[#allocation20 + $0x288] ss:$16 sps:$4 sm:$0xff]  }
 0x656   : > { %4051 = vmatpush1.bf16.msra.mxu1 %v6843_v41  ;;  %4133 = vmatpush1.bf16.msra.mxu0 %v6846_v42  ;;  %v6905_v41 = vld [vmem:[#allocation20 + $0x2a4] ss:$16 sps:$4 sm:$0xff]   ;;  %v6908_v42 = vld [vmem:[#allocation20 + $0x2ac] ss:$16 sps:$4 sm:$0xff]  }
 0x657   : > { %4052 = vmatprep.subr.bf16.mxu1 %v6851_v45  ;;  %4134 = vmatprep.subr.bf16.mxu0 %v6854_v46  ;;  %v6903_v45 = vld [vmem:[#allocation20 + $0x2a0] ss:$16 sps:$4 sm:$0xff]   ;;  %v6906_v46 = vld [vmem:[#allocation20 + $0x2a8] ss:$16 sps:$4 sm:$0xff]  }
 0x65a   : > { %4053 = vmatpush1.bf16.msra.mxu1 %v6849_v47  ;;  %4135 = vmatpush1.bf16.msra.mxu0 %v6852_v48  ;;  %v6911_v47 = vld [vmem:[#allocation20 + $0x2c4] ss:$16 sps:$4 sm:$0xff]   ;;  %v6914_v48 = vld [vmem:[#allocation20 + $0x2cc] ss:$16 sps:$4 sm:$0xff]  }
 0x65b   : > { %4054 = vmatprep.subr.bf16.mxu1 %v6857_v50  ;;  %4136 = vmatprep.subr.bf16.mxu0 %v6860_v51  ;;  %v6909_v50 = vld [vmem:[#allocation20 + $0x2c0] ss:$16 sps:$4 sm:$0xff]   ;;  %v6912_v51 = vld [vmem:[#allocation20 + $0x2c8] ss:$16 sps:$4 sm:$0xff]  }
 0x65e   : > { %4055 = vmatpush1.bf16.msra.mxu1 %v6855_v52  ;;  %4137 = vmatpush1.bf16.msra.mxu0 %v6858_v53  ;;  %v6917_v52 = vld [vmem:[#allocation20 + $0x2e4] ss:$16 sps:$4 sm:$0xff]   ;;  %v6920_v53 = vld [vmem:[#allocation20 + $0x2ec] ss:$16 sps:$4 sm:$0xff]  }
 0x65f   : > { %4056 = vmatprep.subr.bf16.mxu1 %v6863_v54  ;;  %4138 = vmatprep.subr.bf16.mxu0 %v6866_v55  ;;  %v6915_v54 = vld [vmem:[#allocation20 + $0x2e0] ss:$16 sps:$4 sm:$0xff]   ;;  %v6918_v55 = vld [vmem:[#allocation20 + $0x2e8] ss:$16 sps:$4 sm:$0xff]  }
 0x662   : > { %4057 = vmatpush1.bf16.msra.mxu1 %v6861_v56  ;;  %4139 = vmatpush1.bf16.msra.mxu0 %v6864_v57  ;;  %v6923_v56 = vld [vmem:[#allocation20 + $0x304] ss:$16 sps:$4 sm:$0xff]   ;;  %v6926_v57 = vld [vmem:[#allocation20 + $0x30c] ss:$16 sps:$4 sm:$0xff]  }
 0x663   : > { %4058 = vmatprep.subr.bf16.mxu1 %v6869_v59  ;;  %4140 = vmatprep.subr.bf16.mxu0 %v6872_v60  ;;  %v6921_v59 = vld [vmem:[#allocation20 + $0x300] ss:$16 sps:$4 sm:$0xff]   ;;  %v6924_v60 = vld [vmem:[#allocation20 + $0x308] ss:$16 sps:$4 sm:$0xff]  }
 0x666   : > { %4059 = vmatpush1.bf16.msra.mxu1 %v6867_v61  ;;  %4141 = vmatpush1.bf16.msra.mxu0 %v6870_v63  ;;  %v6929_v61 = vld [vmem:[#allocation20 + $0x324] ss:$16 sps:$4 sm:$0xff]   ;;  %v6932_v63 = vld [vmem:[#allocation20 + $0x32c] ss:$16 sps:$4 sm:$0xff]  }
 0x667   : > { %4069 = vmatprep.subr.bf16.mxu1 %v6875_v1  ;;  %4151 = vmatprep.subr.bf16.mxu0 %v6878_v2  ;;  %v6927_v1 = vld [vmem:[#allocation20 + $0x320] ss:$16 sps:$4 sm:$0xff]   ;;  %v6930_v2 = vld [vmem:[#allocation20 + $0x328] ss:$16 sps:$4 sm:$0xff]  }
 0x6fc   : > { %v3182_v6 = vpop.f32.mrb[12].mxu1  ;;  %v8536_v7 = vpop.f32.mrb[16].mxu0 }
 0x6fd   : > { %v3183_v8 = vadd.f32 %v3182_v6, %v2971_v23  ;;  %v3184_v9 = vpop.f32.mrb[13].mxu1  ;;  %v3225_v43 = vpop.f32.mrb[17].mxu0  ;;  %v6935_v23 = vld [vmem:[#allocation20 + $0x344] ss:$16 sps:$4 sm:$0xff]   ;;  %v6936_v6 = vld [vmem:[#allocation20 + $0x348] ss:$16 sps:$4 sm:$0xff]  }
 0x6fe   : > { %v3185_v10 = vadd.f32 %v3184_v9, %v2975_v4  ;;  %v3226_v11 = vadd.f32 %v3225_v43, %v2983_v5  ;;  %v3186_v12 = vpop.f32.mrb[14].mxu1  ;;  %v3227_v13 = vpop.f32.mrb[18].mxu0  ;;  %v6938_v4 = vld [vmem:[#allocation20 + $0x34c] ss:$16 sps:$4 sm:$0xff]   ;;  %v6933_v5 = vld [vmem:[#allocation20 + $0x340] ss:$16 sps:$4 sm:$0xff]  }
 0x6ff   : > { %v3230_v49 = vmax.f32 %v3183_v8, 0.0  ;;  %v3187_v14 = vpop.f32.mrb[15].mxu1  ;;  %v3228_v15 = vpop.f32.mrb[19].mxu0  ;;  %v6941_v8 = vld [vmem:[#allocation20 + $0x364] ss:$16 sps:$4 sm:$0xff]  }
 0x700   : > { %v3231_v16 = vmax.f32 %v3185_v10, 0.0  ;;  %v3233_v17 = vmax.f32 %v3226_v11, 0.0  ;;  %v6944_v9 = vld [vmem:[#allocation20 + $0x36c] ss:$16 sps:$4 sm:$0xff]   ;;  %v6939_v43 = vld [vmem:[#allocation20 + $0x360] ss:$16 sps:$4 sm:$0xff]  }
 0x701   : > { %v3234_v21 = vpack.c.bf16 %v3230_v49, %v3230_v49  ;;  %v6942_v10 = vld [vmem:[#allocation20 + $0x368] ss:$16 sps:$4 sm:$0xff]   ;;  %v6947_v11 = vld [vmem:[#allocation20 + $0x384] ss:$16 sps:$4 sm:$0xff]   ;;  %v6950_v12 = vld [vmem:[#allocation20 + $0x38c] ss:$16 sps:$4 sm:$0xff]  }
 0x702   : > { %v3235_v18 = vpack.c.bf16 %v3231_v16, %v3231_v16  ;;  %v3237_v27 = vpack.c.bf16 %v3233_v17, %v3233_v17  ;;  %v6945_v13 = vld [vmem:[#allocation20 + $0x380] ss:$16 sps:$4 sm:$0xff]   ;;  %v6948_v49 = vld [vmem:[#allocation20 + $0x388] ss:$16 sps:$4 sm:$0xff]   ;;  %v6953_v14 = vld [vmem:[#allocation20 + $0x3a4] ss:$16 sps:$4 sm:$0xff]  }
 0x703   : > { %v6956_v15 = vld [vmem:[#allocation20 + $0x3ac] ss:$16 sps:$4 sm:$0xff]   ;;  %v6951_v16 = vld [vmem:[#allocation20 + $0x3a0] ss:$16 sps:$4 sm:$0xff]   ;;  %v6954_v17 = vld [vmem:[#allocation20 + $0x3a8] ss:$16 sps:$4 sm:$0xff]  }
 0x704   : > { %4060 = vmatprep.mubr.bf16.mxu1 %v3235_v18  ;;  %4142 = vmatprep.mubr.bf16.mxu0 %v3235_v18  ;;  %v2979_v18 = vrot.slane %v8528_v3, %v8510_v58  ;;  %v6971_v3 = vld [vmem:[#allocation23 + $0x4] ss:$8 sps:$4 sm:$0xff]  }
 0x705   : > { %4061 = vmatmul.mubr.bf16.vlgmr.msra.gmra.mrb[16].mxu1 %v3234_v21  ;;  %4143 = vmatmul.mubr.bf16.vlgmr.msra.gmra.mrb[20].mxu0 %v3234_v21  ;;  %v6957_v21 = vld [vmem:[#allocation20 + $0x3c0] ss:$16 sps:$4 sm:$0xff]  }
 0x706   : > { %4070 = vmatpush1.bf16.msra.mxu1 %v6873_v19  ;;  %4152 = vmatpush1.bf16.msra.mxu0 %v6876_v20  ;;  %v6959_v19 = vld [vmem:[#allocation20 + $0x3c4] ss:$16 sps:$4 sm:$0xff]   ;;  %v6962_v20 = vld [vmem:[#allocation20 + $0x3cc] ss:$16 sps:$4 sm:$0xff]  }
 0x707   : > { %4101 = vmatprep.mubr.bf16.mxu1 %v3237_v27  ;;  %4183 = vmatprep.mubr.bf16.mxu0 %v3237_v27  ;;  %v6965_v27 = vld [vmem:[#allocation20 + $0x3e4] ss:$16 sps:$4 sm:$0xff]  }
 0x708   : > { %4071 = vmatprep.subr.bf16.mxu1 %v6881_v22  ;;  %4153 = vmatprep.subr.bf16.mxu0 %v6884_v25  ;;  %v6960_v22 = vld [vmem:[#allocation20 + $0x3c8] ss:$16 sps:$4 sm:$0xff]   ;;  %v3224_v25 = vadd.f32 %v8536_v7, %v2979_v18  ;;  %v6972_v7 = vld [vmem:[#allocation23 + $0x10] ss:$8 sps:$4 sm:$0xff]  }
 0x70a   : > { %4072 = vmatpush1.bf16.msra.mxu1 %v6879_v28  ;;  %4154 = vmatpush1.bf16.msra.mxu0 %v6882_v0  ;;  %v6968_v28 = vld [vmem:[#allocation20 + $0x3ec] ss:$16 sps:$4 sm:$0xff]   ;;  %v6963_v0 = vld [vmem:[#allocation20 + $0x3e0] ss:$16 sps:$4 sm:$0xff]  }
 0x70b   : > { %4073 = vmatprep.subr.bf16.mxu1 %v6887_v29  ;;  %4155 = vmatprep.subr.bf16.mxu0 %v6890_v30  ;;  %v6966_v29 = vld [vmem:[#allocation20 + $0x3e8] ss:$16 sps:$4 sm:$0xff]   ;;  %v3232_v30 = vmax.f32 %v3224_v25, 0.0 }
 0x70e   : > { %4074 = vmatpush1.bf16.msra.mxu1 %v6885_v31  ;;  %4156 = vmatpush1.bf16.msra.mxu0 %v6888_v32  ;;  %v6969_v31 = vld [vmem:[#allocation23] ss:$8 sps:$4 sm:$0xff]   ;;  %v3236_v32 = vpack.c.bf16 %v3232_v30, %v3232_v30 }
 0x70f   : > { %4075 = vmatprep.subr.bf16.mxu1 %v6893_v33  ;;  %4157 = vmatprep.subr.bf16.mxu0 %v6896_v34  ;;  %v6974_v33 = vld [vmem:[#allocation23 + $0x14] ss:$8 sps:$4 sm:$0xff]   ;;  %v6977_v34 = vld [vmem:[#allocation23 + $0x24] ss:$8 sps:$4 sm:$0xff]  }
 0x712   : > { %4076 = vmatpush1.bf16.msra.mxu1 %v6891_v35  ;;  %4158 = vmatpush1.bf16.msra.mxu0 %v6894_v36  ;;  %v6975_v35 = vld [vmem:[#allocation23 + $0x20] ss:$8 sps:$4 sm:$0xff]   ;;  %v6980_v36 = vld [vmem:[#allocation23 + $0x34] ss:$8 sps:$4 sm:$0xff]  }
 0x713   : > { %4077 = vmatprep.subr.bf16.mxu1 %v6899_v37  ;;  %4159 = vmatprep.subr.bf16.mxu0 %v6902_v38  ;;  %v6978_v37 = vld [vmem:[#allocation23 + $0x30] ss:$8 sps:$4 sm:$0xff]   ;;  %v6983_v38 = vld [vmem:[#allocation23 + $0x44] ss:$8 sps:$4 sm:$0xff]  }
 0x716   : > { %4078 = vmatpush1.bf16.msra.mxu1 %v6897_v39  ;;  %4160 = vmatpush1.bf16.msra.mxu0 %v6900_v40  ;;  %v6981_v39 = vld [vmem:[#allocation23 + $0x40] ss:$8 sps:$4 sm:$0xff]   ;;  %v6986_v40 = vld [vmem:[#allocation23 + $0x54] ss:$8 sps:$4 sm:$0xff]  }
 0x717   : > { %4079 = vmatprep.subr.bf16.mxu1 %v6905_v41  ;;  %4161 = vmatprep.subr.bf16.mxu0 %v6908_v42  ;;  %v6984_v41 = vld [vmem:[#allocation23 + $0x50] ss:$8 sps:$4 sm:$0xff]   ;;  %v6989_v42 = vld [vmem:[#allocation23 + $0x64] ss:$8 sps:$4 sm:$0xff]  }
 0x71a   : > { %4080 = vmatpush1.bf16.msra.mxu1 %v6903_v45  ;;  %4162 = vmatpush1.bf16.msra.mxu0 %v6906_v46  ;;  %v6987_v45 = vld [vmem:[#allocation23 + $0x60] ss:$8 sps:$4 sm:$0xff]   ;;  %v6992_v46 = vld [vmem:[#allocation23 + $0x74] ss:$8 sps:$4 sm:$0xff]  }
 0x71b   : > { %4081 = vmatprep.subr.bf16.mxu1 %v6911_v47  ;;  %4163 = vmatprep.subr.bf16.mxu0 %v6914_v48  ;;  %v6990_v47 = vld [vmem:[#allocation23 + $0x70] ss:$8 sps:$4 sm:$0xff]   ;;  %v6995_v48 = vld [vmem:[#allocation23 + $0x84] ss:$8 sps:$4 sm:$0xff]  }
 0x71e   : > { %4082 = vmatpush1.bf16.msra.mxu1 %v6909_v50  ;;  %4164 = vmatpush1.bf16.msra.mxu0 %v6912_v51  ;;  %v6993_v50 = vld [vmem:[#allocation23 + $0x80] ss:$8 sps:$4 sm:$0xff]   ;;  %v6998_v51 = vld [vmem:[#allocation23 + $0x94] ss:$8 sps:$4 sm:$0xff]  }
 0x71f   : > { %4083 = vmatprep.subr.bf16.mxu1 %v6917_v52  ;;  %4165 = vmatprep.subr.bf16.mxu0 %v6920_v53  ;;  %v6996_v52 = vld [vmem:[#allocation23 + $0x90] ss:$8 sps:$4 sm:$0xff]   ;;  %v7001_v53 = vld [vmem:[#allocation23 + $0xa4] ss:$8 sps:$4 sm:$0xff]  }
 0x722   : > { %4084 = vmatpush1.bf16.msra.mxu1 %v6915_v54  ;;  %4166 = vmatpush1.bf16.msra.mxu0 %v6918_v55  ;;  %v6999_v54 = vld [vmem:[#allocation23 + $0xa0] ss:$8 sps:$4 sm:$0xff]   ;;  %v7004_v55 = vld [vmem:[#allocation23 + $0xb4] ss:$8 sps:$4 sm:$0xff]  }
 0x723   : > { %4085 = vmatprep.subr.bf16.mxu1 %v6923_v56  ;;  %4167 = vmatprep.subr.bf16.mxu0 %v6926_v57  ;;  %v7002_v56 = vld [vmem:[#allocation23 + $0xb0] ss:$8 sps:$4 sm:$0xff]   ;;  %v7007_v57 = vld [vmem:[#allocation23 + $0xc4] ss:$8 sps:$4 sm:$0xff]  }
 0x726   : > { %4086 = vmatpush1.bf16.msra.mxu1 %v6921_v59  ;;  %4168 = vmatpush1.bf16.msra.mxu0 %v6924_v60  ;;  %v7005_v59 = vld [vmem:[#allocation23 + $0xc0] ss:$8 sps:$4 sm:$0xff]   ;;  %v7010_v60 = vld [vmem:[#allocation23 + $0xd4] ss:$8 sps:$4 sm:$0xff]  }
 0x727   : > { %4087 = vmatprep.subr.bf16.mxu1 %v6929_v61  ;;  %4169 = vmatprep.subr.bf16.mxu0 %v6932_v63  ;;  %v7008_v61 = vld [vmem:[#allocation23 + $0xd0] ss:$8 sps:$4 sm:$0xff]   ;;  %v7013_v63 = vld [vmem:[#allocation23 + $0xe4] ss:$8 sps:$4 sm:$0xff]  }
 0x72a   : > { %4088 = vmatpush1.bf16.msra.mxu1 %v6927_v1  ;;  %4170 = vmatpush1.bf16.msra.mxu0 %v6930_v2  ;;  %v7011_v1 = vld [vmem:[#allocation23 + $0xe0] ss:$8 sps:$4 sm:$0xff]   ;;  %v7016_v2 = vld [vmem:[#allocation23 + $0xf4] ss:$8 sps:$4 sm:$0xff]  }
 0x72b   : > { %4089 = vmatprep.subr.bf16.mxu1 %v6935_v23  ;;  %4171 = vmatprep.subr.bf16.mxu0 %v6938_v4  ;;  %v7014_v23 = vld [vmem:[#allocation23 + $0xf0] ss:$8 sps:$4 sm:$0xff]   ;;  %v7019_v4 = vld [vmem:[#allocation23 + $0x104] ss:$8 sps:$4 sm:$0xff]  }
 0x72e   : > { %4090 = vmatpush1.bf16.msra.mxu1 %v6933_v5  ;;  %4172 = vmatpush1.bf16.msra.mxu0 %v6936_v6  ;;  %v7065_v5 = vld [vmem:[#allocation26 + $0x40] sm:$0xff]  }
 0x72f   : > { %4091 = vmatprep.subr.bf16.mxu1 %v6941_v8  ;;  %4173 = vmatprep.subr.bf16.mxu0 %v6944_v9  ;;  %v7066_v6 = vld [vmem:[#allocation26] sm:$0xff]   ;;  %v7067_v8 = vld [vmem:[#allocation26 + $0x48] sm:$0xff]  }
 0x730   : > { %v7068_v9 = vld [vmem:[#allocation26 + $0x8] sm:$0xff]  }
 0x732   : > { %4092 = vmatpush1.bf16.msra.mxu1 %v6939_v43  ;;  %4174 = vmatpush1.bf16.msra.mxu0 %v6942_v10  ;;  %v7069_v43 = vld [vmem:[#allocation26 + $0x50] sm:$0xff]  }
 0x733   : > { %4093 = vmatprep.subr.bf16.mxu1 %v6947_v11  ;;  %4175 = vmatprep.subr.bf16.mxu0 %v6950_v12  ;;  %v7070_v10 = vld [vmem:[#allocation26 + $0x10] sm:$0xff]   ;;  %v7071_v11 = vld [vmem:[#allocation26 + $0x58] sm:$0xff]  }
 0x734   : > { %v7072_v12 = vld [vmem:[#allocation26 + $0x18] sm:$0xff]  }
 0x736   : > { %4094 = vmatpush1.bf16.msra.mxu1 %v6945_v13  ;;  %4176 = vmatpush1.bf16.msra.mxu0 %v6948_v49  ;;  %v7073_v13 = vld [vmem:[#allocation26 + $0x60] sm:$0xff]  }
 0x737   : > { %4095 = vmatprep.subr.bf16.mxu1 %v6953_v14  ;;  %4177 = vmatprep.subr.bf16.mxu0 %v6956_v15  ;;  %v7074_v49 = vld [vmem:[#allocation26 + $0x20] sm:$0xff]   ;;  %v7075_v14 = vld [vmem:[#allocation26 + $0x68] sm:$0xff]  }
 0x738   : > { %v7076_v15 = vld [vmem:[#allocation26 + $0x28] sm:$0xff]  }
 0x73a   : > { %4096 = vmatpush1.bf16.msra.mxu1 %v6951_v16  ;;  %4178 = vmatpush1.bf16.msra.mxu0 %v6954_v17  ;;  %v8541_v16 = vld [vmem:[#allocation22] sm:$0xf] }
 0x73b   : > { %4097 = vmatprep.subr.bf16.mxu1 %v6959_v19  ;;  %4179 = vmatprep.subr.bf16.mxu0 %v6962_v20  ;;  %v3371_v17 = vrot.slane %v8541_v16, %v8489_v24  ;;  %v3375_v18 = vrot.slane %v8541_v16, %v8492_v26  ;;  %v3383_v19 = vrot.slane %v8541_v16, %v8499_v44 }
 0x73e   : > { %4098 = vmatpush1.bf16.msra.mxu1 %v6957_v21  ;;  %4180 = vmatpush1.bf16.msra.mxu0 %v6960_v22 }
 0x73f   : > { %4099 = vmatprep.subr.bf16.mxu1 %v6965_v27  ;;  %4181 = vmatprep.subr.bf16.mxu0 %v6968_v28 }
 0x742   : > { %4100 = vmatpush1.bf16.msra.mxu1 %v6963_v0  ;;  %4182 = vmatpush1.bf16.msra.mxu0 %v6966_v29 }
 0x743   : > { %4596 = vmatprep.subr.bf16.mxu1 %v6971_v3  ;;  %6039 = vmatprep.subr.bf16.mxu0 %v7065_v5  ;;  %v3379_v5 = vrot.slane %v8541_v16, %v8510_v58  ;;  %v7079_v58 = vld [vmem:[#allocation26 + $0x78] sm:$0xff]  }
 0x744   : > { %v4264_v16 = vld [vmem:[#allocation25] sm:$0x3] }
 0x745   : > { %4102 = vmatmul.mubr.bf16.vlgmr.msra.gmra.mrb[16].mxu1 %v3236_v32  ;;  %4184 = vmatmul.mubr.bf16.vlgmr.msra.gmra.mrb[20].mxu0 %v3236_v32 }
 0x746   : > { %4597 = vmatpush1.bf16.msra.mxu1 %v6969_v31  ;;  %6040 = vmatpush3.bf16.msra.mxu0 %v7066_v6  ;;  %v7061_v6 = vld [vmem:[#allocation23 + $0x1e4] ss:$8 sps:$4 sm:$0xff]  }
 0x747   : > { %4598 = vmatprep.subr.bf16.mxu1 %v6974_v33  ;;  %6041 = vmatprep.subr.bf16.mxu0 %v7067_v8  ;;  %v7059_v8 = vld [vmem:[#allocation23 + $0x1e0] ss:$8 sps:$4 sm:$0xff]  }
 0x74a   : > { %4599 = vmatpush1.bf16.msra.mxu1 %v6972_v7  ;;  %6042 = vmatpush3.bf16.msra.mxu0 %v7068_v9 }
 0x74b   : > { %4600 = vmatprep.subr.bf16.mxu1 %v6977_v34  ;;  %6043 = vmatprep.subr.bf16.mxu0 %v7069_v43  ;;  %v7064_v43 = vld [vmem:[#allocation23 + $0x1f4] ss:$8 sps:$4 sm:$0xff]  }
 0x74e   : > { %4601 = vmatpush1.bf16.msra.mxu1 %v6975_v35  ;;  %6044 = vmatpush3.bf16.msra.mxu0 %v7070_v10  ;;  %v7017_v35 = vld [vmem:[#allocation23 + $0x100] ss:$8 sps:$4 sm:$0xff]   ;;  %v7062_v10 = vld [vmem:[#allocation23 + $0x1f0] ss:$8 sps:$4 sm:$0xff]  }
 0x74f   : > { %4602 = vmatprep.subr.bf16.mxu1 %v6980_v36  ;;  %6045 = vmatprep.subr.bf16.mxu0 %v7071_v11 }
 0x752   : > { %4603 = vmatpush1.bf16.msra.mxu1 %v6978_v37  ;;  %6046 = vmatpush3.bf16.msra.mxu0 %v7072_v12  ;;  %v7022_v37 = vld [vmem:[#allocation23 + $0x114] ss:$8 sps:$4 sm:$0xff]  }
 0x753   : > { %4604 = vmatprep.subr.bf16.mxu1 %v6983_v38  ;;  %6047 = vmatprep.subr.bf16.mxu0 %v7073_v13  ;;  %v7020_v38 = vld [vmem:[#allocation23 + $0x110] ss:$8 sps:$4 sm:$0xff]  }
 0x754   : > { %v7077_v13 = vld [vmem:[#allocation26 + $0x70] sm:$0xff]  }
 0x756   : > { %4605 = vmatpush1.bf16.msra.mxu1 %v6981_v39  ;;  %6048 = vmatpush3.bf16.msra.mxu0 %v7074_v49  ;;  %v7025_v39 = vld [vmem:[#allocation23 + $0x124] ss:$8 sps:$4 sm:$0xff]   ;;  %v7078_v49 = vld [vmem:[#allocation26 + $0x30] sm:$0xff]  }
 0x757   : > { %4606 = vmatprep.subr.bf16.mxu1 %v6986_v40  ;;  %6049 = vmatprep.subr.bf16.mxu0 %v7075_v14  ;;  %v7023_v40 = vld [vmem:[#allocation23 + $0x120] ss:$8 sps:$4 sm:$0xff]  }
 0x758   : > { %v7080_v14 = vld [vmem:[#allocation26 + $0x38] sm:$0xff]  }
 0x75a   : > { %4607 = vmatpush1.bf16.msra.mxu1 %v6984_v41  ;;  %6050 = vmatpush3.bf16.msra.mxu0 %v7076_v15  ;;  %v7028_v41 = vld [vmem:[#allocation23 + $0x134] ss:$8 sps:$4 sm:$0xff]   ;;  %v7798_v15 = vmov 0.0  }
 0x75b   : > { %4608 = vmatprep.subr.bf16.mxu1 %v6989_v42  ;;  %v7026_v42 = vld [vmem:[#allocation23 + $0x130] ss:$8 sps:$4 sm:$0xff]   ;;  %6051 = vmatprep.subr.bf16.mxu0 %v7077_v13 }
 0x75e   : > { %4609 = vmatpush1.bf16.msra.mxu1 %v6987_v45  ;;  %v7031_v45 = vld [vmem:[#allocation23 + $0x144] ss:$8 sps:$4 sm:$0xff]   ;;  %6052 = vmatpush3.bf16.msra.mxu0 %v7078_v49 }
 0x75f   : > { %4610 = vmatprep.subr.bf16.mxu1 %v6992_v46  ;;  %v7029_v46 = vld [vmem:[#allocation23 + $0x140] ss:$8 sps:$4 sm:$0xff]   ;;  %6053 = vmatprep.subr.bf16.mxu0 %v7079_v58 }
 0x762   : > { %4611 = vmatpush1.bf16.msra.mxu1 %v6990_v47  ;;  %v7034_v47 = vld [vmem:[#allocation23 + $0x154] ss:$8 sps:$4 sm:$0xff]   ;;  %6054 = vmatpush3.bf16.msra.mxu0 %v7080_v14 }
 0x763   : > { %4612 = vmatprep.subr.bf16.mxu1 %v6995_v48  ;;  %v7032_v48 = vld [vmem:[#allocation23 + $0x150] ss:$8 sps:$4 sm:$0xff]   ;;  %6079 = vmatprep.subr.bf16.mxu0 %v7798_v15 }
 0x766   : > { %4613 = vmatpush1.bf16.msra.mxu1 %v6993_v50  ;;  %v7037_v50 = vld [vmem:[#allocation23 + $0x164] ss:$8 sps:$4 sm:$0xff]  }
 0x767   : > { %4614 = vmatprep.subr.bf16.mxu1 %v6998_v51  ;;  %v7035_v51 = vld [vmem:[#allocation23 + $0x160] ss:$8 sps:$4 sm:$0xff]  }
 0x76a   : > { %4615 = vmatpush1.bf16.msra.mxu1 %v6996_v52  ;;  %v7040_v52 = vld [vmem:[#allocation23 + $0x174] ss:$8 sps:$4 sm:$0xff]  }
 0x76b   : > { %4616 = vmatprep.subr.bf16.mxu1 %v7001_v53  ;;  %v7038_v53 = vld [vmem:[#allocation23 + $0x170] ss:$8 sps:$4 sm:$0xff]  }
 0x76e   : > { %4617 = vmatpush1.bf16.msra.mxu1 %v6999_v54  ;;  %v7043_v54 = vld [vmem:[#allocation23 + $0x184] ss:$8 sps:$4 sm:$0xff]  }
 0x76f   : > { %4618 = vmatprep.subr.bf16.mxu1 %v7004_v55  ;;  %v7041_v55 = vld [vmem:[#allocation23 + $0x180] ss:$8 sps:$4 sm:$0xff]  }
 0x772   : > { %4619 = vmatpush1.bf16.msra.mxu1 %v7002_v56  ;;  %v7046_v56 = vld [vmem:[#allocation23 + $0x194] ss:$8 sps:$4 sm:$0xff]  }
 0x773   : > { %4620 = vmatprep.subr.bf16.mxu1 %v7007_v57  ;;  %v7044_v57 = vld [vmem:[#allocation23 + $0x190] ss:$8 sps:$4 sm:$0xff]  }
 0x776   : > { %4621 = vmatpush1.bf16.msra.mxu1 %v7005_v59  ;;  %v7049_v59 = vld [vmem:[#allocation23 + $0x1a4] ss:$8 sps:$4 sm:$0xff]  }
 0x777   : > { %4622 = vmatprep.subr.bf16.mxu1 %v7010_v60  ;;  %v7047_v60 = vld [vmem:[#allocation23 + $0x1a0] ss:$8 sps:$4 sm:$0xff]  }
 0x77a   : > { %4623 = vmatpush1.bf16.msra.mxu1 %v7008_v61  ;;  %v7052_v61 = vld [vmem:[#allocation23 + $0x1b4] ss:$8 sps:$4 sm:$0xff]  }
 0x77b   : > { %4624 = vmatprep.subr.bf16.mxu1 %v7013_v63  ;;  %v7050_v63 = vld [vmem:[#allocation23 + $0x1b0] ss:$8 sps:$4 sm:$0xff]  }
 0x77e   : > { %4625 = vmatpush1.bf16.msra.mxu1 %v7011_v1  ;;  %v7055_v1 = vld [vmem:[#allocation23 + $0x1c4] ss:$8 sps:$4 sm:$0xff]  }
 0x77f   : > { %4626 = vmatprep.subr.bf16.mxu1 %v7016_v2  ;;  %v7053_v2 = vld [vmem:[#allocation23 + $0x1c0] ss:$8 sps:$4 sm:$0xff]  }
 0x782   : > { %4627 = vmatpush1.bf16.msra.mxu1 %v7014_v23  ;;  %v7058_v23 = vld [vmem:[#allocation23 + $0x1d4] ss:$8 sps:$4 sm:$0xff]  }
 0x783   : > { %4637 = vmatprep.subr.bf16.mxu1 %v7019_v4  ;;  %v7056_v4 = vld [vmem:[#allocation23 + $0x1d0] ss:$8 sps:$4 sm:$0xff]  }
 0x818   : > { %v4103_v20 = vpop.f32.mrb[16].mxu1  ;;  %v8549_v21 = vpop.f32.mrb[20].mxu0 }
 0x819   : > { %v6123_v22 = vadd.f32 %v4103_v20, %v3371_v17  ;;  %v4105_v25 = vpop.f32.mrb[17].mxu1  ;;  %v4187_v27 = vpop.f32.mrb[21].mxu0  ;;  %v6125_v9 = vadd.f32 %v8549_v21, %v3379_v5  ;;  %v4269_v17 = vrot.slane %v4264_v16, %v8489_v24  ;;  %v7082_v24 = vld [vmem:[%s8860_s21 + $0x8] sm:$0xff]  }
 0x81a   : > { %v6124_v28 = vadd.f32 %v4105_v25, %v3375_v18  ;;  %v6126_v0 = vadd.f32 %v4187_v27, %v3383_v19  ;;  %v4107_v29 = vpop.f32.mrb[18].mxu1  ;;  %v4189_v30 = vpop.f32.mrb[22].mxu0  ;;  %v4273_v18 = vrot.slane %v4264_v16, %v8492_v26  ;;  %v7083_v26 = vld [vmem:[%s8860_s21 + $0x10] sm:$0xff]  }
 0x81b   : > { %v4192_v3 = vmax.f32 %v6123_v22, 0.0  ;;  %v4108_v31 = vpop.f32.mrb[19].mxu1  ;;  %v4190_v32 = vpop.f32.mrb[23].mxu0  ;;  %v4194_v11 = vmax.f32 %v6125_v9, 0.0  ;;  %v7081_v30 = vld [vmem:[%s8860_s21] sm:$0xff]  }
 0x81c   : > { %v4193_v33 = vmax.f32 %v6124_v28, 0.0  ;;  %v4195_v7 = vmax.f32 %v6126_v0, 0.0  ;;  %v7084_v31 = vld [vmem:[%s8860_s21 + $0x18] sm:$0xff]   ;;  %v7085_v32 = vld [vmem:[%s8860_s21 + $0x20] sm:$0xff]  }
 0x81d   : > { %v4196_v36 = vpack.c.bf16 %v4192_v3, %v4192_v3  ;;  %v4198_v12 = vpack.c.bf16 %v4194_v11, %v4194_v11 }
 0x81e   : > { %v4197_v34 = vpack.c.bf16 %v4193_v33, %v4193_v33  ;;  %v4199_v44 = vpack.c.bf16 %v4195_v7, %v4195_v7  ;;  %v7086_v33 = vld [vmem:[%s8860_s21 + $0x28] sm:$0xff]   ;;  %v7087_v7 = vld [vmem:[%s8860_s21 + $0x30] sm:$0xff]  }
 0x820   : > { %4628 = vmatprep.mubr.bf16.mxu1 %v4197_v34  ;;  %v7088_v34 = vld [vmem:[%s8860_s21 + $0x38] sm:$0xff]  }
 0x821   : > { %4629 = vmatmul.mubr.bf16.vlgmr.msra.gmra.mrb[20].mxu1 %v4196_v36  ;;  %v7090_v36 = vld [vmem:[#allocation29 + $0x8] sm:$0xff]  }
 0x822   : > { %4638 = vmatpush1.bf16.msra.mxu1 %v7017_v35  ;;  %4669 = vmatprep.mubr.bf16.mxu1 %v4199_v44  ;;  %v7089_v35 = vld [vmem:[#allocation29] sm:$0xff]   ;;  %v7092_v44 = vld [vmem:[#allocation29 + $0x18] sm:$0xff]  }
 0x823   : > { %4639 = vmatprep.subr.bf16.mxu1 %v7022_v37  ;;  %v7091_v37 = vld [vmem:[#allocation29 + $0x10] sm:$0xff]  }
 0x826   : > { %4640 = vmatpush1.bf16.msra.mxu1 %v7020_v38  ;;  %v7093_v38 = vld [vmem:[#allocation29 + $0x20] sm:$0xff]  }
 0x827   : > { %4641 = vmatprep.subr.bf16.mxu1 %v7025_v39  ;;  %v7095_v39 = vld [vmem:[#allocation29 + $0x30] sm:$0xff]  }
 0x82a   : > { %4642 = vmatpush1.bf16.msra.mxu1 %v7023_v40  ;;  %v7096_v40 = vld [vmem:[#allocation29 + $0x38] sm:$0xff]  }
 0x82b   : > { %4643 = vmatprep.subr.bf16.mxu1 %v7028_v41 }
 0x82e   : > { %4644 = vmatpush1.bf16.msra.mxu1 %v7026_v42  ;;  %v5952_v42 = vld [vmem:[#allocation28] ss:$0 sm:$0xff] }
 0x82f   : > { %4645 = vmatprep.subr.bf16.mxu1 %v7031_v45 }
 0x832   : > { %4646 = vmatpush1.bf16.msra.mxu1 %v7029_v46 }
 0x833   : > { %4647 = vmatprep.subr.bf16.mxu1 %v7034_v47 }
 0x836   : > { %4648 = vmatpush1.bf16.msra.mxu1 %v7032_v48 }
 0x837   : > { %4649 = vmatprep.subr.bf16.mxu1 %v7037_v50 }
 0x83a   : > { %4650 = vmatpush1.bf16.msra.mxu1 %v7035_v51  ;;  %v5969_v51 = vld [vmem:[%s8861_s22] ss:$0 sm:$0xff]  ;;  %s7800_s22 = smov [#allocation32]  }
 0x83b   : > { %4651 = vmatprep.subr.bf16.mxu1 %v7040_v52  ;;  %s7613_s18 = sshll.u32 %s7800_s22, 4  ;;  %s7614_s18 = int_to_ptr.vmem [resolvable:$false] %s7613_s18 }
 0x83e   : > { %4652 = vmatpush1.bf16.msra.mxu1 %v7038_v53 }
 0x83f   : > { %4653 = vmatprep.subr.bf16.mxu1 %v7043_v54 }
 0x842   : > { %4654 = vmatpush1.bf16.msra.mxu1 %v7041_v55 }
 0x843   : > { %4655 = vmatprep.subr.bf16.mxu1 %v7046_v56 }
 0x846   : > { %4656 = vmatpush1.bf16.msra.mxu1 %v7044_v57 }
 0x847   : > { %4657 = vmatprep.subr.bf16.mxu1 %v7049_v59 }
 0x84a   : > { %4658 = vmatpush1.bf16.msra.mxu1 %v7047_v60 }
 0x84b   : > { %4659 = vmatprep.subr.bf16.mxu1 %v7052_v61 }
 0x84e   : > { %4660 = vmatpush1.bf16.msra.mxu1 %v7050_v63 }
 0x84f   : > { %4661 = vmatprep.subr.bf16.mxu1 %v7055_v1 }
 0x852   : > { %4662 = vmatpush1.bf16.msra.mxu1 %v7053_v2 }
 0x853   : > { %4663 = vmatprep.subr.bf16.mxu1 %v7058_v23 }
 0x856   : > { %4664 = vmatpush1.bf16.msra.mxu1 %v7056_v4 }
 0x857   : > { %4665 = vmatprep.subr.bf16.mxu1 %v7061_v6  ;;  %v5978_v6 = vld [vmem:[%s8862_s1] ss:$0 sm:$0xff]  ;;  %s8621_s1 = scalar_lea.hbm %s8863_s6, %s8615_s8 }
 0x85a   : > { %4666 = vmatpush1.bf16.msra.mxu1 %v7059_v8 }
 0x85b   : > { %4667 = vmatprep.subr.bf16.mxu1 %v7064_v43 }
 0x85e   : > { %4668 = vmatpush1.bf16.msra.mxu1 %v7062_v10 }
 0x861   : > { %4670 = vmatmul.mubr.bf16.vlgmr.msra.gmra.mrb[20].mxu1 %v4198_v12 }
 0x934   : > { %v4671_v19 = vpop.f32.mrb[20].mxu1 }
 0x935   : > { %v6127_v20 = vadd.f32 %v4671_v19, %v4269_v17  ;;  %v4673_v21 = vpop.f32.mrb[21].mxu1 }
 0x936   : > { %v6128_v22 = vadd.f32 %v4673_v21, %v4273_v18  ;;  %v4675_v25 = vpop.f32.mrb[22].mxu1 }
 0x937   : > { %v4678_v27 = vmax.f32 %v6127_v20, 0.0  ;;  %v4676_v28 = vpop.f32.mrb[23].mxu1 }
 0x938   : > { %v4679_v0 = vmax.f32 %v6128_v22, 0.0 }
 0x939   : > { %v4680_v3 = vpack.c.bf16 %v4678_v27, %v4678_v27 }
 0x93a   : > { %v4681_v29 = vpack.c.bf16 %v4679_v0, %v4679_v0 }
 0x93c   : > { %4849 = vmatprep.mubr.bf16.mxu0 %v4681_v29 }
 0x93d   : > { %4850 = vmatmul.mubr.bf16.vlgmr.msra.gmra.mrb[24].mxu0 %v4680_v3 }
 0x93e   : > { %6080 = vmatpush3.bf16.msra.mxu0 %v7081_v30  ;;  %6095 = vmatprep.mubr.msk.bf16.mxu0 %vm7799_vm0, %v7798_v15 }
 0x93f   : > { %6081 = vmatprep.subr.bf16.mxu0 %v7798_v15 }
 0x942   : > { %6082 = vmatpush3.bf16.msra.mxu0 %v7082_v24 }
 0x943   : > { %6083 = vmatprep.subr.bf16.mxu0 %v7798_v15 }
 0x946   : > { %6084 = vmatpush3.bf16.msra.mxu0 %v7083_v26 }
 0x947   : > { %6085 = vmatprep.subr.bf16.mxu0 %v7798_v15 }
 0x94a   : > { %6086 = vmatpush3.bf16.msra.mxu0 %v7084_v31 }
 0x94b   : > { %6087 = vmatprep.subr.bf16.mxu0 %v7798_v15 }
 0x94e   : > { %6088 = vmatpush3.bf16.msra.mxu0 %v7085_v32 }
 0x94f   : > { %6089 = vmatprep.subr.bf16.mxu0 %v7798_v15 }
 0x952   : > { %6090 = vmatpush3.bf16.msra.mxu0 %v7086_v33 }
 0x953   : > { %6091 = vmatprep.subr.bf16.mxu0 %v7798_v15 }
 0x956   : > { %6092 = vmatpush3.bf16.msra.mxu0 %v7087_v7 }
 0x957   : > { %6093 = vmatprep.subr.bf16.mxu0 %v7798_v15 }
 0x95a   : > { %6094 = vmatpush3.bf16.msra.mxu0 %v7088_v34 }
 0x95b   : > { %6099 = vmatprep.subr.bf16.mxu0 %v7798_v15 }
 0x95d   : > { %6096 = vmatmul.mubr.bf16.vlgmr.msra.gmra.mrb[28].mxu0 %v8521_v62  ;;  %v7094_v62 = vld [vmem:[#allocation29 + $0x28] sm:$0xff]  }
 0x95e   : > { %6115 = vmatprep.mubr.msk.bf16.mxu0 %vm7799_vm0, %v7798_v15  ;;  %6100 = vmatpush3.bf16.msra.mxu0 %v7089_v35 }
 0x95f   : > { %6101 = vmatprep.subr.bf16.mxu0 %v7798_v15 }
 0x962   : > { %6102 = vmatpush3.bf16.msra.mxu0 %v7090_v36 }
 0x963   : > { %6103 = vmatprep.subr.bf16.mxu0 %v7798_v15 }
 0x966   : > { %6104 = vmatpush3.bf16.msra.mxu0 %v7091_v37 }
 0x967   : > { %6105 = vmatprep.subr.bf16.mxu0 %v7798_v15 }
 0x96a   : > { %6106 = vmatpush3.bf16.msra.mxu0 %v7092_v44 }
 0x96b   : > { %6107 = vmatprep.subr.bf16.mxu0 %v7798_v15 }
 0x96e   : > { %6108 = vmatpush3.bf16.msra.mxu0 %v7093_v38 }
 0x96f   : > { %6109 = vmatprep.subr.bf16.mxu0 %v7798_v15 }
 0x972   : > { %6110 = vmatpush3.bf16.msra.mxu0 %v7094_v62 }
 0x973   : > { %6111 = vmatprep.subr.bf16.mxu0 %v7798_v15 }
 0x976   : > { %6112 = vmatpush3.bf16.msra.mxu0 %v7095_v39 }
 0x977   : > { %6113 = vmatprep.subr.bf16.mxu0 %v7798_v15 }
 0x97a   : > { %6114 = vmatpush3.bf16.msra.mxu0 %v7096_v40 }
 0xa10   : > { %v6055_v41 = vpop.f32.mrb[24].mxu0 }
 0xa11   : > { %v6056_v45 = vpop.f32.mrb[25].mxu0 }
 0xa12   : > { %v6057_v46 = vadd.f32 %v6056_v45, %v6055_v41  ;;  %v6058_v47 = vpop.f32.mrb[26].mxu0 }
 0xa13   : > { %v6059_v48 = vpop.f32.mrb[27].mxu0 }
 0xa14   : > { %v4852_v50 = vadd.f32 %v6057_v46, %v5952_v42 }
 0xa16   : > { %4857 = vst [vmem:[%s8780_s26] sm:$0xff] %v4852_v50  ;;  %s5137_s26 = sshll.u32 %s967_s29, 4  ;;  %s7615_s29 = scalar_lea.vmem %s7614_s18, 256  ;;  %s8625_s26 = int_to_ptr.vmem [resolvable:$true] %s5137_s26 }
 0xa17   : > { %s7609_s14 = scalar_lea.vmem %s8625_s26, 128  ;;  %p7616_p10 = scmp.lt.s32.totalorder %s8625_s26, %s7614_s18 }
 0xa18   : > { %p7610_p0 = scmp.ne.s32.totalorder %s8625_s26, %s7609_s14  ;;  %p7617_p1 = scmp.lt.s32.totalorder %s7615_s29, %s7609_s14 }
 0xa1a   : > { %p7611_p2 = pnand %p7610_p0, %p8865_p5  ;;  %p7618_p11 = por %p7617_p1, %p7616_p10 }
 0xa1c   : > { %p7612_p7 = pneg %p7611_p2 }
 0xa1e   : > { %p7619_p12 = pnand %p7618_p11, %p7612_p7 }
 0xa30   : > { %v4963_v52 = vpop.f32.mrb[28].mxu0 }
 0xa31   : > { %v4964_v53 = vadd.f32 %v5969_v51, %v4963_v52  ;;  %v6097_v54 = vpop.f32.mrb[29].mxu0 }
 0xa32   : > { %v4966_v55 = vpop.f32.mrb[30].mxu0 }
 0xa33   : > { %v4970_v56 = vmul.f32 0.044715, %v4964_v53  ;;  %v6098_v57 = vpop.f32.mrb[31].mxu0  ;;  %v4969_v2 = vmul.f32 0.5, %v4964_v53 }
 0xa35   : > { %v4971_v59 = vmul.f32 %v4970_v56, %v4964_v53 }
 0xa37   : > { %v4972_v60 = vmul.f32 %v4971_v59, %v4964_v53 }
 0xa39   : > { %v4973_v61 = vadd.f32 %v4972_v60, %v4964_v53 }
 0xa3b   : > { %v4974_v63 = vmul.f32 0.7978846, %v4973_v61 }
 0xa3d   : > { %7097 = vtanh.f32 %v4974_v63 }
 0xa47   : > { %v7098_v1 = vpop.eup %7097 }
 0xa48   : > { %v4976_v23 = vadd.f32 1.0, %v7098_v1 }
 0xa4a   : > { %v4977_v4 = vmul.f32 %v4976_v23, %v4969_v2 }
 0xa4c   : > { %v4978_v5 = vpack.c.bf16 %v4977_v4, %v4977_v4 }
 0xa4e   : > { %6116 = vmatmul.mubr.bf16.vlgmr.msra.gmra.mrb[32].mxu0 %v4978_v5 }
 0xb21   : > { %v5084_v8 = vpop.f32.mrb[32].mxu0 }
 0xb22   : > { %v5085_v9 = vadd.f32 %v5978_v6, %v5084_v8  ;;  %v6117_v43 = vpop.f32.mrb[33].mxu0 }
 0xb23   : > { %v5087_v10 = vpop.f32.mrb[34].mxu0 }
 0xb24   : > { %5090 = vmax.xlane.f32.xlu0 %v5085_v9  ;;  %v6118_v11 = vpop.f32.mrb[35].mxu0 }
 0xbb1   : > { %v5091_v12 = vpop.xlane.xlu0 %5090 }
 0xbb2   : > { %v5092_v13 = vsub.f32 %v5085_v9, %v5091_v12 }
 0xbb4   : > { %v5093_v49 = vmul.f32 1.442695, %v5092_v13 }
 0xbb6   : > { %7099 = vpow2.f32 %v5093_v49 }
 0xbc0   : > { %v8610_v58 = vpop.eup %7099 }
 0xbc1   : > { %5095 = vadd.xlane.f32.xlu0 %v8610_v58 }
 0xbc2   : > { %7622 = shalt.err (!%p7619_p12)
}
 0xbc3   : > { %s7623_s10 = scalar_lea.hbm %s8621_s1, 128  ;;  %s7627_s22 = scalar_lea.hbm %s8863_s6, 256 }
 0xbc4   : > { %p7624_p13 = scmp.ne.s32.totalorder %s8621_s1, %s7623_s10  ;;  %p7628_p9 = scmp.lt.u32.totalorder %s8621_s1, %s8863_s6 }
 0xbc5   : > { %p7629_p4 = scmp.lt.u32.totalorder %s7627_s22, %s7623_s10  ;;  %p7631_p0 = scmp.lt.u32.totalorder %s7623_s10, %s8621_s1 }
 0xbc6   : > { %p7625_p3 = pnand %p7624_p13, %p8865_p5 }
 0xbc7   : > { %p7630_p8 = por %p7629_p4, %p7628_p9 }
 0xbc8   : > { %p7626_p6 = pneg %p7625_p3 }
 0xbc9   : > { %p7632_p2 = por %p7631_p0, %p7630_p8 }
 0xbcb   : > { %p7633_p7 = pnand %p7632_p2, %p7626_p6 }
 0xbcd   : > { %7636 = shalt.err (!%p7633_p7)
}
 0xbce   : > { %6220 = dma.vmem_to_hbm [thread:$0]  (%p8865_p5), %s8625_s26, 128, %s8621_s1, %s8633_s7  }
 0xbcf   : > { %s8866_s14 = scalar_lea.vmem [#allocation31], %s8439_s5  ;;  %s5101_s15 = scalar_lea.sflag [#allocation4], %s8436_s2 }
 0xbd0   : > { %s5124_s29 = sshll.u32 %s8866_s14, 4  ;;  %s7801_s10 = smov [#allocation31]   ;;  %s5125_s29 = int_to_ptr.vmem [resolvable:$true] %s5124_s29 }
 0xbd1   : > { %s7637_s0 = scalar_lea.vmem %s5125_s29, 128  ;;  %s7641_s4 = sshll.u32 %s7801_s10, 4  ;;  %s7642_s4 = int_to_ptr.vmem [resolvable:$false] %s7641_s4 }
 0xbd2   : > { %p7638_p10 = scmp.ne.s32.totalorder %s5125_s29, %s7637_s0  ;;  %s7643_s22 = scalar_lea.vmem %s7642_s4, 256 }
 0xbd3   : > { %p7644_p12 = scmp.lt.s32.totalorder %s5125_s29, %s7642_s4  ;;  %p7645_p13 = scmp.lt.s32.totalorder %s7643_s22, %s7637_s0 }
 0xbd4   : > { %p7639_p1 = pnand %p7638_p10, %p8865_p5 }
 0xbd5   : > { %p7646_p3 = por %p7645_p13, %p7644_p12 }
 0xbd6   : > { %p7640_p11 = pneg %p7639_p1 }
 0xbd8   : > { %p7647_p6 = pnand %p7646_p3, %p7640_p11 }
 0xbda   : > { %7650 = shalt.err (!%p7647_p6)
}
 0xbdb   : > { %s7651_s2 = scalar_lea.hbm %s8631_s13, 128  ;;  %s7655_s18 = scalar_lea.hbm %s8864_s12, 256 }
 0xbdc   : > { %p7652_p9 = scmp.ne.s32.totalorder %s8631_s13, %s7651_s2  ;;  %p7656_p0 = scmp.lt.u32.totalorder %s8631_s13, %s8864_s12 }
 0xbdd   : > { %p7657_p2 = scmp.lt.u32.totalorder %s7655_s18, %s7651_s2  ;;  %p7659_p10 = scmp.lt.u32.totalorder %s7651_s2, %s8631_s13 }
 0xbde   : > { %p7653_p4 = pnand %p7652_p9, %p8865_p5 }
 0xbdf   : > { %p7658_p7 = por %p7657_p2, %p7656_p0 }
 0xbe0   : > { %p7654_p8 = pneg %p7653_p4 }
 0xbe1   : > { %p7660_p1 = por %p7659_p10, %p7658_p7 }
 0xbe3   : > { %p7661_p11 = pnand %p7660_p1, %p7654_p8 }
 0xbe5   : > { %7664 = shalt.err (!%p7661_p11)
}
 0xbe6   : > { %6219 = dma.vmem_to_hbm [thread:$0]  (%p8865_p5), %s5125_s29, 128, %s8631_s13, %s5101_s15  }
 0xbe7   : > { %s974_s0 = scalar_lea.vmem [#allocation34], %s8439_s5  ;;  %s8867_s2 = sld [smem:[#allocation71_spill]] }
 0xbe8   : > { %s5150_s4 = sshll.u32 %s974_s0, 4  ;;  %s7802_s13 = smov [#allocation34]   ;;  %s5151_s4 = int_to_ptr.vmem [resolvable:$true] %s5150_s4 }
 0xbe9   : > { %s7665_s18 = scalar_lea.vmem %s5151_s4, 128  ;;  %s7669_s29 = sshll.u32 %s7802_s13, 4  ;;  %s7670_s29 = int_to_ptr.vmem [resolvable:$false] %s7669_s29 }
 0xbea   : > { %p7666_p12 = scmp.ne.s32.totalorder %s5151_s4, %s7665_s18  ;;  %s7671_s5 = scalar_lea.vmem %s7670_s29, 256 }
 0xbeb   : > { %p7672_p6 = scmp.lt.s32.totalorder %s5151_s4, %s7670_s29  ;;  %p7673_p9 = scmp.lt.s32.totalorder %s7671_s5, %s7665_s18 }
 0xbec   : > { %p7667_p13 = pnand %p7666_p12, %p8865_p5 }
 0xbed   : > { %s8683_s1 = scalar_lea.hbm %s8867_s2, %s8615_s8  ;;  %p7674_p4 = por %p7673_p9, %p7672_p6 }
 0xbee   : > { %p7668_p3 = pneg %p7667_p13 }
 0xbf0   : > { %p7675_p8 = pnand %p7674_p4, %p7668_p3 }
 0xc4e   : > { %v5096_v14 = vpop.xlane.xlu0 %5095 }
 0xc4f   : > { %7101 = vrcp.f32 %v5096_v14 }
 0xc59   : > { %v7102_v15 = vpop.eup %7101 }
 0xc5a   : > { %v5098_v16 = vmul.f32 %v7102_v15, %v8610_v58 }
 0xc5c   : > { %5099 = vst [vmem:[%s974_s0] sm:$0xff] %v5098_v16 }
 0xc5d   : > { %7678 = shalt.err (!%p7675_p8)
}
 0xc5e   : > { %s7679_s8 = scalar_lea.hbm %s8683_s1, 128  ;;  %s7683_s10 = scalar_lea.hbm %s8867_s2, 256 }
 0xc5f   : > { %p7680_p0 = scmp.ne.s32.totalorder %s8683_s1, %s7679_s8  ;;  %p7684_p10 = scmp.lt.u32.totalorder %s8683_s1, %s8867_s2 }
 0xc60   : > { %p7685_p1 = scmp.lt.u32.totalorder %s7683_s10, %s7679_s8  ;;  %p7687_p12 = scmp.lt.u32.totalorder %s7679_s8, %s8683_s1 }
 0xc61   : > { %p7681_p2 = pnand %p7680_p0, %p8865_p5 }
 0xc62   : > { %p7686_p11 = por %p7685_p1, %p7684_p10 }
 0xc63   : > { %p7682_p7 = pneg %p7681_p2 }
 0xc64   : > { %p7688_p13 = por %p7687_p12, %p7686_p11 }
 0xc66   : > { %p7689_p3 = pnand %p7688_p13, %p7682_p7 }
 0xc68   : > { %7692 = shalt.err (!%p7689_p3)
}
 0xc69   : > { %6221 = dma.vmem_to_hbm [thread:$0]  (%p8865_p5), %s5151_s4, 128, %s8683_s1, %s8633_s7  }
 0xc6a PF: > { %s8868_s26 = sld [smem:[#allocation47_spill]]  ;;  %p8869_p6 = scmp.ne.s32.totalorder %s8836_s3, 0 }
 0xc6b   : > { %p8870_p9 = scmp.ge.s32.totalorder %s7771_s25, 2 }
 0xc6d   : > { %p6282_p4 = pnand %p8870_p9, %p8869_p6 }
 0xc70   : > { %s5162_s18 = sand.u32 1, %s8868_s26  }
 0xc71   : > { %s5163_s13 = scalar_lea.sflag [#allocation4], %s5162_s18 }
 0xc72   : > { %7750 = dma.done.wait (!%p6282_p4), %s5163_s13, 128  }
 0xc73   : > { %7752 = vsyncadd (!%p6282_p4), %s5163_s13, 4294967168  ;;  %s8871_s29 = sadd.s32 4294967294, %s7771_s25  }
 0xc74   : > { %s5171_s5 = sand.u32 1, %s8871_s29  }
 0xc75   : > { %s5172_s8 = scalar_lea.sflag [#allocation33], %s5171_s5 }
 0xc76   : > { %7754 = dma.done.wait (!%p6282_p4), %s5172_s8, 256  }
 0xc77   : > { %7756 = vsyncadd (!%p6282_p4), %s5172_s8, 4294967040  ;;  %p49_p5 = scmp.ge.s32.totalorder %s8364_s9, 4   ;;  %s8872_s4 = smov %s7763_s30 }
 0xc78   : > { %s8873_s30 = smov %s7767_s24  ;;  %s8874_s24 = smov %s8376_s11 }
 0xc79   : > { %s8875_s25 = smov %s8364_s9  ;;  %51 = sbr.rel (!%p49_p5) target bundleno = 39 (0x27), region = 249 }
 0xc80   :  { %5186 = vsyncpa [#allocation3], 1 }
 0xc81   :  { %5188 = vsyncpa [#allocation3 + $0x1], 1 }
 0xc82   :  { %5189 = vsyncpa [#allocation6], 1 }
 0xc83   :  { %5190 = vsyncpa [#allocation9], 1 }
 0xc84   :  { %5191 = vsyncpa [#allocation12], 1 }
 0xc85   :  { %5192 = vsyncpa [#allocation15], 1 }
 0xc86   :  { %5193 = vsyncpa [#allocation18], 1 }
 0xc87   :  { %5194 = vsyncpa [#allocation21], 1 }
 0xc88   :  { %5195 = vsyncpa [#allocation24], 1 }
 0xc89   :  { %5196 = vsyncpa [#allocation27], 1 }
 0xc8a   :  { %5197 = vsyncpa [#allocation30], 1 }
 0xc8b   :  { %5198 = vsyncpa [#allocation4], 1 }
 0xc8c   :  { %5200 = vsyncpa [#allocation4 + $0x1], 1 }
 0xc8d   :  { %5201 = vsyncpa [#allocation33], 1 }
 0xc8e   :  { %5203 = vsyncpa [#allocation33 + $0x1], 1 }

// kernel: tpu_custom_call.1
= control target key start
LH: loop header
LB: loop body
LE: loop exit
PB: predicated region body
PF: predicated region fallthrough
CT: control target
= control target key end

     0   :  { %s8723_s0 = inlined_call_operand.hbm [shape: f32[16,128], index: 0, kind: input, shape index: {}]   ;;  %s8724_s1 = inlined_call_operand.hbm [shape: bf16[128,256], index: 1, kind: input, shape index: {}]   ;;  %s8725_s2 = inlined_call_operand.hbm [shape: f32[1,256], index: 2, kind: input, shape index: {}]   ;;  %s8726_s3 = inlined_call_operand.hbm [shape: bf16[256,512], index: 3, kind: input, shape index: {}]   ;;  %s8727_s4 = inlined_call_operand.hbm [shape: f32[1,512], index: 4, kind: input, shape index: {}]   ;;  %s8728_s5 = inlined_call_operand.hbm [shape: bf16[512,512], index: 5, kind: input, shape index: {}]   ;;  %s8729_s6 = inlined_call_operand.hbm [shape: f32[1,512], index: 6, kind: input, shape index: {}]   ;;  %s8730_s7 = inlined_call_operand.hbm [shape: bf16[512,128], index: 7, kind: input, shape index: {}]   ;;  %s8731_s8 = inlined_call_operand.hbm [shape: f32[1,128], index: 8, kind: input, shape index: {}]   ;;  %s8732_s9 = inlined_call_operand.hbm [shape: bf16[128,512], index: 9, kind: input, shape index: {}]   ;;  %s8733_s10 = inlined_call_operand.hbm [shape: f32[1,512], index: 10, kind: input, shape index: {}]   ;;  %s8734_s11 = inlined_call_operand.hbm [shape: bf16[512,512], index: 11, kind: input, shape index: {}]   ;;  %s8735_s12 = inlined_call_operand.hbm [shape: f32[1,512], index: 12, kind: input, shape index: {}]   ;;  %s8736_s13 = inlined_call_operand.hbm [shape: bf16[512,256], index: 13, kind: input, shape index: {}]   ;;  %s8737_s14 = inlined_call_operand.hbm [shape: f32[1,256], index: 14, kind: input, shape index: {}]   ;;  %s8738_s15 = inlined_call_operand.hbm [shape: bf16[256,128], index: 15, kind: input, shape index: {}]   ;;  %s8739_s16 = inlined_call_operand.hbm [shape: f32[1,128], index: 16, kind: input, shape index: {}]   ;;  %s8740_s17 = inlined_call_operand.vmem [shape: bf16[128,128], index: 17, kind: input, shape index: {}]   ;;  %s8741_s18 = inlined_call_operand.vmem [shape: f32[1,128], index: 18, kind: input, shape index: {}]   ;;  %s8742_s19 = inlined_call_operand.hbm [shape: bf16[128,128], index: 19, kind: input, shape index: {}]   ;;  %s8743_s20 = inlined_call_operand.vmem [shape: f32[1,128], index: 20, kind: input, shape index: {}]   ;;  %s8744_s21 = inlined_call_operand.hbm [shape: f32[16,128], index: 21, kind: output, shape index: {0}]   ;;  %s8745_s22 = inlined_call_operand.hbm [shape: f32[16,128], index: 22, kind: output, shape index: {1}]   ;;  %s8746_s23 = inlined_call_operand.hbm [shape: f32[16,128], index: 23, kind: output, shape index: {2}]  }
   0x1   :  { %8782 = sst [smem:[#allocation50_spill]] %s8723_s0 }
   0x2   :  { %8783 = sst [smem:[#allocation51_spill]] %s8724_s1 }
   0x3   :  { %8784 = sst [smem:[#allocation52_spill]] %s8725_s2 }
   0x4   :  { %8785 = sst [smem:[#allocation53_spill]] %s8726_s3 }
   0x5   :  { %8786 = sst [smem:[#allocation54_spill]] %s8727_s4 }
   0x6   :  { %8787 = sst [smem:[#allocation55_spill]] %s8728_s5 }
   0x7   :  { %8788 = sst [smem:[#allocation56_spill]] %s8729_s6 }
   0x8   :  { %8789 = sst [smem:[#allocation57_spill]] %s8730_s7 }
   0x9   :  { %8790 = sst [smem:[#allocation58_spill]] %s8731_s8 }
   0xa   :  { %8791 = sst [smem:[#allocation59_spill]] %s8732_s9 }
   0xb   :  { %8792 = sst [smem:[#allocation60_spill]] %s8733_s10 }
   0xc   :  { %8793 = sst [smem:[#allocation61_spill]] %s8734_s11 }
   0xd   :  { %8794 = sst [smem:[#allocation62_spill]] %s8735_s12 }
   0xe   :  { %8795 = sst [smem:[#allocation63_spill]] %s8736_s13 }
   0xf   :  { %8796 = sst [smem:[#allocation64_spill]] %s8737_s14 }
  0x10   :  { %8797 = sst [smem:[#allocation65_spill]] %s8738_s15 }
  0x11   :  { %8798 = sst [smem:[#allocation66_spill]] %s8740_s17 }
  0x12   :  { %8799 = sst [smem:[#allocation67_spill]] %s8741_s18 }
  0x13   :  { %8800 = sst [smem:[#allocation68_spill]] %s8743_s20 }
  0x14   :  { %8801 = sst [smem:[#allocation69_spill]] %s8744_s21 }
  0x15   :  { %8802 = sst [smem:[#allocation70_spill]] %s8745_s22 }
  0x16   :  { %8803 = sst [smem:[#allocation71_spill]] %s8746_s23 }
  0x17   :  { %29 = vsyncpa [#allocation3], 0 }
  0x18   :  { %31 = vsyncpa [#allocation3 + $0x1], 0 }
  0x19   :  { %32 = vsyncpa [#allocation6], 0 }
  0x1a   :  { %33 = vsyncpa [#allocation9], 0 }
  0x1b   :  { %34 = vsyncpa [#allocation12], 0 }
  0x1c   :  { %35 = vsyncpa [#allocation15], 0 }
  0x1d   :  { %36 = vsyncpa [#allocation18], 0 }
  0x1e   :  { %37 = vsyncpa [#allocation21], 0 }
  0x1f   :  { %38 = vsyncpa [#allocation24], 0 }
  0x20   :  { %39 = vsyncpa [#allocation27], 0 }
  0x21   :  { %40 = vsyncpa [#allocation30], 0 }
  0x22   :  { %41 = vsyncpa [#allocation4], 0 }
  0x23   :  { %43 = vsyncpa [#allocation4 + $0x1], 0 }
  0x24   :  { %44 = vsyncpa [#allocation33], 0 }
  0x25   :  { %46 = vsyncpa [#allocation33 + $0x1], 0  ;;  %s7923_s4 = smov 0   ;;  %s7925_s30 = smov 0  }
  0x26   :  { %s7927_s24 = smov 0   ;;  %s7929_s25 = smov 0  }
  0x27 LB: > { %8804 = sst [smem:[#allocation47_spill]] %s7759_s4  ;;  %s7773_s5 = smov [#allocation5]   ;;  %s7771_s25 = sphi %s7929_s25, %s8875_s25   ;;  %s7767_s24 = sphi %s7927_s24, %s8874_s24   ;;  %s7763_s30 = sphi %s7925_s30, %s8873_s30   ;;  %s7759_s4 = sphi %s7923_s4, %s8872_s4  }
  0x28   : > { %s593_s1 = sshll.u32 %s7773_s5, 4  ;;  %s7944_s26 = sadd.s32 4294967295, %s7771_s25   ;;  %s7949_s1 = int_to_ptr.vmem [resolvable:$true] %s593_s1 }
  0x29   : > { %8805 = sst [smem:[#allocation48_spill]] %s7944_s26  ;;  %p5444_p0 = scmp.ge.s32.totalorder %s7771_s25, 1 }
  0x2a   : > { %p8765_p1 = scmp.eq.s32.totalorder %s7944_s26, 0  ;;  %p581_p2 = scmp.lt.s32.totalorder %s7771_s25, 3 }
  0x2b   : > { %s7774_s6 = smov [#allocation8]   ;;  %s7775_s28 = smov [#allocation11]  }
  0x2c   : > { %p7951_p3 = pnand %p5444_p0, %p581_p2  ;;  %s617_s27 = sshll.u32 %s7774_s6, 4  ;;  %s7964_s27 = int_to_ptr.vmem [resolvable:$true] %s617_s27 }
  0x2d   : > { %s7966_s29 = sshll.u32 %s7775_s28, 4  ;;  %s8809_s5 = sld [smem:[#allocation51_spill]]  ;;  %s642_s29 = int_to_ptr.vmem [resolvable:$true] %s7966_s29 }
  0x2e   : > { %s8806_s2 = scalar_select %p7951_p3, 1, 0 }
  0x2f   : > { %p6225_p5 = pneg %p7951_p3 }
  0x30   : > { %8807 = sst [smem:[#allocation49_spill]] %s8806_s2 }
  0x31   : > { %p7960_p6 = pnand %p6225_p5, %p8765_p1 }
  0x33   : > { %s7103_s23 = scalar_lea.hbm %s8809_s5, 2048  ;;  %p7976_p8 = pneg %p7960_p6 }
  0x34   : > { %p7104_p7 = scmp.ne.s32.totalorder %s8809_s5, %s7103_s23  ;;  %p7110_p11 = scmp.lt.u32.totalorder %s7103_s23, %s8809_s5 }
  0x36   : > { %p7106_p9 = pnand %p7976_p8, %p7104_p7 }
  0x38   : > { %p7107_p10 = pneg %p7106_p9 }
  0x3a   : > { %p7112_p12 = pnand %p7110_p11, %p7107_p10 }
  0x3c   : > { %7115 = shalt.err (!%p7112_p12)
}
  0x3d   : > { %s7116_s21 = scalar_lea.vmem %s7949_s1, 2048  ;;  %p7124_p5 = scmp.lt.s32.totalorder %s7949_s1, %s7949_s1 }
  0x3e   : > { %p7117_p13 = scmp.ne.s32.totalorder %s7949_s1, %s7116_s21  ;;  %p7125_p4 = scmp.lt.s32.totalorder %s7116_s21, %s7116_s21 }
  0x40   : > { %p7119_p0 = pnand %p7117_p13, %p7976_p8  ;;  %p7126_p7 = por %p7125_p4, %p7124_p5 }
  0x42   : > { %p7120_p2 = pneg %p7119_p0 }
  0x44   : > { %p7127_p9 = pnand %p7126_p7, %p7120_p2 }
  0x46   : > { %7130 = shalt.err (!%p7127_p9)
}
  0x47   : > { %s8763_s22 = smov 128   ;;  %s8764_s20 = smov 8  }
  0x48   : > { %6228 = dma.hbm_to_vmem [thread:$0]  (!%p7960_p6), %s8809_s5, 2048, %s7949_s1, [#allocation6], %s8763_s22, %s8763_s22, %s8764_s20  }
  0x49   : > { %s8811_s18 = sld [smem:[#allocation53_spill]] }
  0x4f   : > { %s7131_s21 = scalar_lea.hbm %s8811_s18, 8192 }
  0x50   : > { %p7132_p4 = scmp.ne.s32.totalorder %s8811_s18, %s7131_s21  ;;  %p7138_p12 = scmp.lt.u32.totalorder %s7131_s21, %s8811_s18 }
  0x52   : > { %p7134_p10 = pnand %p7132_p4, %p7976_p8 }
  0x54   : > { %p7135_p11 = pneg %p7134_p10 }
  0x56   : > { %p7140_p13 = pnand %p7138_p12, %p7135_p11 }
  0x58   : > { %7143 = shalt.err (!%p7140_p13)
}
  0x59   : > { %s7144_s1 = scalar_lea.vmem %s7964_s27, 8192  ;;  %p7152_p7 = scmp.lt.s32.totalorder %s7964_s27, %s7964_s27 }
  0x5a   : > { %p7145_p0 = scmp.ne.s32.totalorder %s7964_s27, %s7144_s1  ;;  %p7153_p9 = scmp.lt.s32.totalorder %s7144_s1, %s7144_s1 }
  0x5c   : > { %p7147_p2 = pnand %p7145_p0, %p7976_p8  ;;  %p7154_p4 = por %p7153_p9, %p7152_p7 }
  0x5e   : > { %p7148_p5 = pneg %p7147_p2 }
  0x60   : > { %p7155_p10 = pnand %p7154_p4, %p7148_p5 }
  0x62   : > { %7158 = shalt.err (!%p7155_p10)
}
  0x63   : > { %s8769_s17 = smov 256   ;;  %s8771_s4 = smov 16  }
  0x64   : > { %6234 = dma.hbm_to_vmem [thread:$0]  (!%p7960_p6), %s8811_s18, 8192, %s7964_s27, [#allocation9], %s8769_s17, %s8769_s17, %s8771_s4  }
  0x65   : > { %s8812_s0 = sld [smem:[#allocation55_spill]] }
  0x6b   : > { %s7159_s28 = scalar_lea.hbm %s8812_s0, 16384 }
  0x6c   : > { %p7160_p11 = scmp.ne.s32.totalorder %s8812_s0, %s7159_s28  ;;  %p7166_p0 = scmp.lt.u32.totalorder %s7159_s28, %s8812_s0 }
  0x6e   : > { %p7162_p12 = pnand %p7160_p11, %p7976_p8 }
  0x70   : > { %p7163_p13 = pneg %p7162_p12 }
  0x72   : > { %p7168_p2 = pnand %p7166_p0, %p7163_p13 }
  0x74   : > { %7171 = shalt.err (!%p7168_p2)
}
  0x75   : > { %s7172_s26 = scalar_lea.vmem %s642_s29, 16384  ;;  %p7180_p4 = scmp.lt.s32.totalorder %s642_s29, %s642_s29 }
  0x76   : > { %p7173_p5 = scmp.ne.s32.totalorder %s642_s29, %s7172_s26  ;;  %p7181_p10 = scmp.lt.s32.totalorder %s7172_s26, %s7172_s26 }
  0x78   : > { %p7175_p7 = pnand %p7173_p5, %p7976_p8  ;;  %p7182_p1 = por %p7181_p10, %p7180_p4 }
  0x7a   : > { %p7176_p9 = pneg %p7175_p7 }
  0x7c   : > { %p7183_p3 = pnand %p7182_p1, %p7176_p9 }
  0x7e   : > { %7186 = shalt.err (!%p7183_p3)
}
  0x7f   : > { %6240 = dma.hbm_to_vmem [thread:$0]  (!%p7960_p6), %s8812_s0, 16384, %s642_s29, [#allocation12], %s8769_s17, %s8769_s17, %s8771_s4  }
  0x80   : > { %s7780_s20 = smov [#allocation14]   ;;  %s8813_s28 = sld [smem:[#allocation57_spill]] }
  0x81   : > { %s665_s2 = sshll.u32 %s7780_s20, 4  ;;  %s666_s2 = int_to_ptr.vmem [resolvable:$true] %s665_s2 }
  0x86   : > { %s7187_s21 = scalar_lea.hbm %s8813_s28, 4096 }
  0x87   : > { %p7188_p1 = scmp.ne.s32.totalorder %s8813_s28, %s7187_s21  ;;  %p7194_p12 = scmp.lt.u32.totalorder %s7187_s21, %s8813_s28 }
  0x89   : > { %p7190_p3 = pnand %p7188_p1, %p7976_p8 }
  0x8b   : > { %p7191_p11 = pneg %p7190_p3 }
  0x8d   : > { %p7196_p13 = pnand %p7194_p12, %p7191_p11 }
  0x8f   : > { %7199 = shalt.err (!%p7196_p13)
}
  0x90   : > { %s7200_s29 = scalar_lea.vmem %s666_s2, 4096  ;;  %p7208_p7 = scmp.lt.s32.totalorder %s666_s2, %s666_s2 }
  0x91   : > { %p7201_p0 = scmp.ne.s32.totalorder %s666_s2, %s7200_s29  ;;  %p7209_p9 = scmp.lt.s32.totalorder %s7200_s29, %s7200_s29 }
  0x93   : > { %p7203_p2 = pnand %p7201_p0, %p7976_p8  ;;  %p7210_p4 = por %p7209_p9, %p7208_p7 }
  0x95   : > { %p7204_p5 = pneg %p7203_p2 }
  0x97   : > { %p7211_p10 = pnand %p7210_p4, %p7204_p5 }
  0x99   : > { %7214 = shalt.err (!%p7211_p10)
}
  0x9a   : > { %s8773_s27 = smov 64   ;;  %s8775_s22 = smov 4  }
  0x9b   : > { %6246 = dma.hbm_to_vmem [thread:$0]  (!%p7960_p6), %s8813_s28, 4096, %s666_s2, [#allocation15], %s8773_s27, %s8773_s27, %s8775_s22  }
  0x9c   : > { %s7783_s20 = smov [#allocation17]   ;;  %s7784_s3 = smov [#allocation20]  }
  0x9d   : > { %s689_s23 = sshll.u32 %s7783_s20, 4  ;;  %s713_s21 = sshll.u32 %s7784_s3, 4  ;;  %s690_s23 = int_to_ptr.vmem [resolvable:$true] %s689_s23  ;;  %s8069_s21 = int_to_ptr.vmem [resolvable:$true] %s713_s21 }
  0x9e   : > { %s8814_s9 = sld [smem:[#allocation59_spill]] }
  0xa4   : > { %s7215_s29 = scalar_lea.hbm %s8814_s9, 4096 }
  0xa5   : > { %p7216_p1 = scmp.ne.s32.totalorder %s8814_s9, %s7215_s29  ;;  %p7222_p12 = scmp.lt.u32.totalorder %s7215_s29, %s8814_s9 }
  0xa7   : > { %p7218_p3 = pnand %p7216_p1, %p7976_p8 }
  0xa9   : > { %p7219_p11 = pneg %p7218_p3 }
  0xab   : > { %p7224_p13 = pnand %p7222_p12, %p7219_p11 }
  0xad   : > { %7227 = shalt.err (!%p7224_p13)
}
  0xae   : > { %s7228_s5 = scalar_lea.vmem %s690_s23, 4096  ;;  %p7236_p7 = scmp.lt.s32.totalorder %s690_s23, %s690_s23 }
  0xaf   : > { %p7229_p0 = scmp.ne.s32.totalorder %s690_s23, %s7228_s5  ;;  %p7237_p9 = scmp.lt.s32.totalorder %s7228_s5, %s7228_s5 }
  0xb1   : > { %p7231_p2 = pnand %p7229_p0, %p7976_p8  ;;  %p7238_p4 = por %p7237_p9, %p7236_p7 }
  0xb3   : > { %p7232_p5 = pneg %p7231_p2 }
  0xb5   : > { %p7239_p10 = pnand %p7238_p4, %p7232_p5 }
  0xb7   : > { %7242 = shalt.err (!%p7239_p10)
}
  0xb8   : > { %s8815_s17 = smov 16   ;;  %s8816_s4 = smov 256  }
  0xb9   : > { %6252 = dma.hbm_to_vmem [thread:$0]  (!%p7960_p6), %s8814_s9, 4096, %s690_s23, [#allocation18], %s8816_s4, %s8816_s4, %s8815_s17  }
  0xba   : > { %s8817_s11 = sld [smem:[#allocation61_spill]] }
  0xc0   : > { %s7243_s29 = scalar_lea.hbm %s8817_s11, 16384 }
  0xc1   : > { %p7244_p1 = scmp.ne.s32.totalorder %s8817_s11, %s7243_s29  ;;  %p7250_p12 = scmp.lt.u32.totalorder %s7243_s29, %s8817_s11 }
  0xc3   : > { %p7246_p3 = pnand %p7244_p1, %p7976_p8 }
  0xc5   : > { %p7247_p11 = pneg %p7246_p3 }
  0xc7   : > { %p7252_p13 = pnand %p7250_p12, %p7247_p11 }
  0xc9   : > { %7255 = shalt.err (!%p7252_p13)
}
  0xca   : > { %s7256_s23 = scalar_lea.vmem %s8069_s21, 16384  ;;  %p7264_p7 = scmp.lt.s32.totalorder %s8069_s21, %s8069_s21 }
  0xcb   : > { %p7257_p0 = scmp.ne.s32.totalorder %s8069_s21, %s7256_s23  ;;  %p7265_p9 = scmp.lt.s32.totalorder %s7256_s23, %s7256_s23 }
  0xcd   : > { %p7259_p2 = pnand %p7257_p0, %p7976_p8  ;;  %p7266_p4 = por %p7265_p9, %p7264_p7 }
  0xcf   : > { %p7260_p5 = pneg %p7259_p2 }
  0xd1   : > { %p7267_p10 = pnand %p7266_p4, %p7260_p5 }
  0xd3   : > { %7270 = shalt.err (!%p7267_p10)
}
  0xd4   : > { %6258 = dma.hbm_to_vmem [thread:$0]  (!%p7960_p6), %s8817_s11, 16384, %s8069_s21, [#allocation21], %s8816_s4, %s8816_s4, %s8815_s17  }
  0xd5   : > { %s7785_s3 = smov [#allocation23]   ;;  %s7786_s26 = smov [#allocation26]  }
  0xd6   : > { %s737_s1 = sshll.u32 %s7785_s3, 4  ;;  %s761_s29 = sshll.u32 %s7786_s26, 4  ;;  %s738_s1 = int_to_ptr.vmem [resolvable:$true] %s737_s1  ;;  %s8118_s29 = int_to_ptr.vmem [resolvable:$true] %s761_s29 }
  0xd7   : > { %s8818_s13 = sld [smem:[#allocation63_spill]] }
  0xdd   : > { %s7271_s5 = scalar_lea.hbm %s8818_s13, 8192 }
  0xde   : > { %p7272_p1 = scmp.ne.s32.totalorder %s8818_s13, %s7271_s5  ;;  %p7278_p12 = scmp.lt.u32.totalorder %s7271_s5, %s8818_s13 }
  0xe0   : > { %p7274_p3 = pnand %p7272_p1, %p7976_p8 }
  0xe2   : > { %p7275_p11 = pneg %p7274_p3 }
  0xe4   : > { %p7280_p13 = pnand %p7278_p12, %p7275_p11 }
  0xe6   : > { %7283 = shalt.err (!%p7280_p13)
}
  0xe7   : > { %s7284_s17 = scalar_lea.vmem %s738_s1, 8192  ;;  %p7292_p7 = scmp.lt.s32.totalorder %s738_s1, %s738_s1 }
  0xe8   : > { %p7285_p0 = scmp.ne.s32.totalorder %s738_s1, %s7284_s17  ;;  %p7293_p9 = scmp.lt.s32.totalorder %s7284_s17, %s7284_s17 }
  0xea   : > { %p7287_p2 = pnand %p7285_p0, %p7976_p8  ;;  %p7294_p4 = por %p7293_p9, %p7292_p7 }
  0xec   : > { %p7288_p5 = pneg %p7287_p2 }
  0xee   : > { %p7295_p10 = pnand %p7294_p4, %p7288_p5 }
  0xf0   : > { %7298 = shalt.err (!%p7295_p10)
}
  0xf1   : > { %s8819_s22 = smov 8   ;;  %s8820_s4 = smov 128  }
  0xf2   : > { %6264 = dma.hbm_to_vmem [thread:$0]  (!%p7960_p6), %s8818_s13, 8192, %s738_s1, [#allocation24], %s8820_s4, %s8820_s4, %s8819_s22  }
  0xf3   : > { %s8821_s15 = sld [smem:[#allocation65_spill]] }
  0xf9   : > { %s7299_s2 = scalar_lea.hbm %s8821_s15, 2048 }
  0xfa   : > { %p7300_p1 = scmp.ne.s32.totalorder %s8821_s15, %s7299_s2  ;;  %p7306_p12 = scmp.lt.u32.totalorder %s7299_s2, %s8821_s15 }
  0xfc   : > { %p7302_p3 = pnand %p7300_p1, %p7976_p8 }
  0xfe   : > { %p7303_p11 = pneg %p7302_p3 }
 0x100   : > { %p7308_p13 = pnand %p7306_p12, %p7303_p11 }
 0x102   : > { %7311 = shalt.err (!%p7308_p13)
}
 0x103   : > { %s7312_s1 = scalar_lea.vmem %s8118_s29, 2048  ;;  %p7320_p7 = scmp.lt.s32.totalorder %s8118_s29, %s8118_s29 }
 0x104   : > { %p7313_p0 = scmp.ne.s32.totalorder %s8118_s29, %s7312_s1  ;;  %p7321_p9 = scmp.lt.s32.totalorder %s7312_s1, %s7312_s1 }
 0x106   : > { %p7315_p2 = pnand %p7313_p0, %p7976_p8  ;;  %p7322_p4 = por %p7321_p9, %p7320_p7 }
 0x108   : > { %p7316_p5 = pneg %p7315_p2 }
 0x10a   : > { %p7323_p10 = pnand %p7322_p4, %p7316_p5 }
 0x10c   : > { %7326 = shalt.err (!%p7323_p10)
}
 0x10d   : > { %s8822_s17 = smov 4   ;;  %s8823_s22 = smov 64  }
 0x10e   : > { %6270 = dma.hbm_to_vmem [thread:$0]  (!%p7960_p6), %s8821_s15, 2048, %s8118_s29, [#allocation27], %s8823_s22, %s8823_s22, %s8822_s17  }
 0x10f   : > { %s7787_s3 = smov [#allocation7]   ;;  %s7788_s18 = smov [#allocation10]  }
 0x110   : > { %s607_s26 = sshll.u32 %s7787_s3, 4  ;;  %s631_s2 = sshll.u32 %s7788_s18, 4  ;;  %s608_s26 = int_to_ptr.vmem [resolvable:$true] %s607_s26  ;;  %s8167_s2 = int_to_ptr.vmem [resolvable:$true] %s631_s2 }
 0x111   : > { %s8824_s27 = sld [smem:[#allocation52_spill]] }
 0x117   : > { %s7327_s21 = scalar_lea.hbm %s8824_s27, 32 }
 0x118   : > { %p7328_p1 = scmp.ne.s32.totalorder %s8824_s27, %s7327_s21  ;;  %p7334_p12 = scmp.lt.u32.totalorder %s7327_s21, %s8824_s27 }
 0x11a   : > { %p7330_p3 = pnand %p7328_p1, %p7976_p8 }
 0x11c   : > { %p7331_p11 = pneg %p7330_p3 }
 0x11e   : > { %p7336_p13 = pnand %p7334_p12, %p7331_p11 }
 0x120   : > { %7339 = shalt.err (!%p7336_p13)
}
 0x121   : > { %s7340_s20 = scalar_lea.vmem %s608_s26, 32  ;;  %p7348_p7 = scmp.lt.s32.totalorder %s608_s26, %s608_s26 }
 0x122   : > { %p7341_p0 = scmp.ne.s32.totalorder %s608_s26, %s7340_s20  ;;  %p7349_p9 = scmp.lt.s32.totalorder %s7340_s20, %s7340_s20 }
 0x124   : > { %p7343_p2 = pnand %p7341_p0, %p7976_p8  ;;  %p7350_p4 = por %p7349_p9, %p7348_p7 }
 0x126   : > { %p7344_p5 = pneg %p7343_p2 }
 0x128   : > { %p7351_p10 = pnand %p7350_p4, %p7344_p5 }
 0x12a   : > { %7354 = shalt.err (!%p7351_p10)
}
 0x12b   : > { %6231 = dma.hbm_to_vmem [thread:$0]  (!%p7960_p6), %s8824_s27, 32, %s608_s26, [#allocation6]  }
 0x12c   : > { %s8825_s23 = sld [smem:[#allocation54_spill]] }
 0x132   : > { %s7355_s21 = scalar_lea.hbm %s8825_s23, 64 }
 0x133   : > { %p7356_p1 = scmp.ne.s32.totalorder %s8825_s23, %s7355_s21  ;;  %p7362_p12 = scmp.lt.u32.totalorder %s7355_s21, %s8825_s23 }
 0x135   : > { %p7358_p3 = pnand %p7356_p1, %p7976_p8 }
 0x137   : > { %p7359_p11 = pneg %p7358_p3 }
 0x139   : > { %p7364_p13 = pnand %p7362_p12, %p7359_p11 }
 0x13b   : > { %7367 = shalt.err (!%p7364_p13)
}
 0x13c   : > { %s7368_s26 = scalar_lea.vmem %s8167_s2, 64  ;;  %p7376_p7 = scmp.lt.s32.totalorder %s8167_s2, %s8167_s2 }
 0x13d   : > { %p7369_p0 = scmp.ne.s32.totalorder %s8167_s2, %s7368_s26  ;;  %p7377_p9 = scmp.lt.s32.totalorder %s7368_s26, %s7368_s26 }
 0x13f   : > { %p7371_p2 = pnand %p7369_p0, %p7976_p8  ;;  %p7378_p4 = por %p7377_p9, %p7376_p7 }
 0x141   : > { %p7372_p5 = pneg %p7371_p2 }
 0x143   : > { %p7379_p10 = pnand %p7378_p4, %p7372_p5 }
 0x145   : > { %7382 = shalt.err (!%p7379_p10)
}
 0x146   : > { %6237 = dma.hbm_to_vmem [thread:$0]  (!%p7960_p6), %s8825_s23, 64, %s8167_s2, [#allocation9]  }
 0x147   : > { %s7789_s18 = smov [#allocation13]   ;;  %s7790_s21 = smov [#allocation16]  }
 0x148   : > { %s655_s5 = sshll.u32 %s7789_s18, 4  ;;  %s679_s1 = sshll.u32 %s7790_s21, 4  ;;  %s656_s5 = int_to_ptr.vmem [resolvable:$true] %s655_s5  ;;  %s8210_s1 = int_to_ptr.vmem [resolvable:$true] %s679_s1 }
 0x149   : > { %s8826_s20 = sld [smem:[#allocation56_spill]] }
 0x14f   : > { %s7383_s26 = scalar_lea.hbm %s8826_s20, 64 }
 0x150   : > { %p7384_p1 = scmp.ne.s32.totalorder %s8826_s20, %s7383_s26  ;;  %p7390_p12 = scmp.lt.u32.totalorder %s7383_s26, %s8826_s20 }
 0x152   : > { %p7386_p3 = pnand %p7384_p1, %p7976_p8 }
 0x154   : > { %p7387_p11 = pneg %p7386_p3 }
 0x156   : > { %p7392_p13 = pnand %p7390_p12, %p7387_p11 }
 0x158   : > { %7395 = shalt.err (!%p7392_p13)
}
 0x159   : > { %s7396_s3 = scalar_lea.vmem %s656_s5, 64  ;;  %p7404_p7 = scmp.lt.s32.totalorder %s656_s5, %s656_s5 }
 0x15a   : > { %p7397_p0 = scmp.ne.s32.totalorder %s656_s5, %s7396_s3  ;;  %p7405_p9 = scmp.lt.s32.totalorder %s7396_s3, %s7396_s3 }
 0x15c   : > { %p7399_p2 = pnand %p7397_p0, %p7976_p8  ;;  %p7406_p4 = por %p7405_p9, %p7404_p7 }
 0x15e   : > { %p7400_p5 = pneg %p7399_p2 }
 0x160   : > { %p7407_p10 = pnand %p7406_p4, %p7400_p5 }
 0x162   : > { %7410 = shalt.err (!%p7407_p10)
}
 0x163   : > { %6243 = dma.hbm_to_vmem [thread:$0]  (!%p7960_p6), %s8826_s20, 64, %s656_s5, [#allocation12]  }
 0x164   : > { %s8827_s8 = sld [smem:[#allocation58_spill]] }
 0x16a   : > { %s7411_s4 = scalar_lea.hbm %s8827_s8, 16 }
 0x16b   : > { %p7412_p1 = scmp.ne.s32.totalorder %s8827_s8, %s7411_s4  ;;  %p7418_p12 = scmp.lt.u32.totalorder %s7411_s4, %s8827_s8 }
 0x16d   : > { %p7414_p3 = pnand %p7412_p1, %p7976_p8 }
 0x16f   : > { %p7415_p11 = pneg %p7414_p3 }
 0x171   : > { %p7420_p13 = pnand %p7418_p12, %p7415_p11 }
 0x173   : > { %7423 = shalt.err (!%p7420_p13)
}
 0x174   : > { %s7424_s5 = scalar_lea.vmem %s8210_s1, 16  ;;  %s7431_s3 = scalar_lea.vmem %s8210_s1, 32 }
 0x175   : > { %p7425_p0 = scmp.ne.s32.totalorder %s8210_s1, %s7424_s5  ;;  %p7432_p7 = scmp.lt.s32.totalorder %s8210_s1, %s8210_s1 }
 0x176   : > { %p7433_p9 = scmp.lt.s32.totalorder %s7431_s3, %s7424_s5 }
 0x177   : > { %p7427_p2 = pnand %p7425_p0, %p7976_p8 }
 0x178   : > { %p7434_p4 = por %p7433_p9, %p7432_p7 }
 0x179   : > { %p7428_p5 = pneg %p7427_p2 }
 0x17b   : > { %p7435_p10 = pnand %p7434_p4, %p7428_p5 }
 0x17d   : > { %7438 = shalt.err (!%p7435_p10)
}
 0x17e   : > { %6249 = dma.hbm_to_vmem [thread:$0]  (!%p7960_p6), %s8827_s8, 16, %s8210_s1, [#allocation15]  }
 0x17f   : > { %s7791_s18 = smov [#allocation19]   ;;  %s7792_s4 = smov [#allocation22]  }
 0x180   : > { %s703_s21 = sshll.u32 %s7791_s18, 4  ;;  %s727_s29 = sshll.u32 %s7792_s4, 4  ;;  %s704_s21 = int_to_ptr.vmem [resolvable:$true] %s703_s21  ;;  %s8254_s29 = int_to_ptr.vmem [resolvable:$true] %s727_s29 }
 0x181   : > { %s8828_s10 = sld [smem:[#allocation60_spill]] }
 0x187   : > { %s7439_s2 = scalar_lea.hbm %s8828_s10, 64 }
 0x188   : > { %p7440_p1 = scmp.ne.s32.totalorder %s8828_s10, %s7439_s2  ;;  %p7446_p12 = scmp.lt.u32.totalorder %s7439_s2, %s8828_s10 }
 0x18a   : > { %p7442_p3 = pnand %p7440_p1, %p7976_p8 }
 0x18c   : > { %p7443_p11 = pneg %p7442_p3 }
 0x18e   : > { %p7448_p13 = pnand %p7446_p12, %p7443_p11 }
 0x190   : > { %7451 = shalt.err (!%p7448_p13)
}
 0x191   : > { %s7452_s11 = scalar_lea.vmem %s704_s21, 64  ;;  %p7460_p7 = scmp.lt.s32.totalorder %s704_s21, %s704_s21 }
 0x192   : > { %p7453_p0 = scmp.ne.s32.totalorder %s704_s21, %s7452_s11  ;;  %p7461_p9 = scmp.lt.s32.totalorder %s7452_s11, %s7452_s11 }
 0x194   : > { %p7455_p2 = pnand %p7453_p0, %p7976_p8  ;;  %p7462_p4 = por %p7461_p9, %p7460_p7 }
 0x196   : > { %p7456_p5 = pneg %p7455_p2 }
 0x198   : > { %p7463_p10 = pnand %p7462_p4, %p7456_p5 }
 0x19a   : > { %7466 = shalt.err (!%p7463_p10)
}
 0x19b   : > { %6255 = dma.hbm_to_vmem [thread:$0]  (!%p7960_p6), %s8828_s10, 64, %s704_s21, [#allocation18]  }
 0x19c   : > { %s8829_s12 = sld [smem:[#allocation62_spill]] }
 0x1a2   : > { %s7467_s2 = scalar_lea.hbm %s8829_s12, 64 }
 0x1a3   : > { %p7468_p1 = scmp.ne.s32.totalorder %s8829_s12, %s7467_s2  ;;  %p7474_p12 = scmp.lt.u32.totalorder %s7467_s2, %s8829_s12 }
 0x1a5   : > { %p7470_p3 = pnand %p7468_p1, %p7976_p8 }
 0x1a7   : > { %p7471_p11 = pneg %p7470_p3 }
 0x1a9   : > { %p7476_p13 = pnand %p7474_p12, %p7471_p11 }
 0x1ab   : > { %7479 = shalt.err (!%p7476_p13)
}
 0x1ac   : > { %s7480_s21 = scalar_lea.vmem %s8254_s29, 64  ;;  %p7488_p7 = scmp.lt.s32.totalorder %s8254_s29, %s8254_s29 }
 0x1ad   : > { %p7481_p0 = scmp.ne.s32.totalorder %s8254_s29, %s7480_s21  ;;  %p7489_p9 = scmp.lt.s32.totalorder %s7480_s21, %s7480_s21 }
 0x1af   : > { %p7483_p2 = pnand %p7481_p0, %p7976_p8  ;;  %p7490_p4 = por %p7489_p9, %p7488_p7 }
 0x1b1   : > { %p7484_p5 = pneg %p7483_p2 }
 0x1b3   : > { %p7491_p10 = pnand %p7490_p4, %p7484_p5 }
 0x1b5   : > { %7494 = shalt.err (!%p7491_p10)
}
 0x1b6   : > { %6261 = dma.hbm_to_vmem [thread:$0]  (!%p7960_p6), %s8829_s12, 64, %s8254_s29, [#allocation21]  }
 0x1b7   : > { %s7793_s4 = smov [#allocation25]   ;;  %s7794_s0 = smov [#allocation28]  }
 0x1b8   : > { %s751_s26 = sshll.u32 %s7793_s4, 4  ;;  %s775_s2 = sshll.u32 %s7794_s0, 4  ;;  %s752_s26 = int_to_ptr.vmem [resolvable:$true] %s751_s26  ;;  %s8297_s2 = int_to_ptr.vmem [resolvable:$true] %s775_s2 }
 0x1b9   : > { %s8830_s14 = sld [smem:[#allocation64_spill]] }
 0x1bf   : > { %s7495_s9 = scalar_lea.hbm %s8830_s14, 32 }
 0x1c0   : > { %p7496_p1 = scmp.ne.s32.totalorder %s8830_s14, %s7495_s9  ;;  %p7502_p12 = scmp.lt.u32.totalorder %s7495_s9, %s8830_s14 }
 0x1c2   : > { %p7498_p3 = pnand %p7496_p1, %p7976_p8 }
 0x1c4   : > { %p7499_p11 = pneg %p7498_p3 }
 0x1c6   : > { %p7504_p13 = pnand %p7502_p12, %p7499_p11 }
 0x1c8   : > { %7507 = shalt.err (!%p7504_p13)
}
 0x1c9   : > { %s7508_s18 = scalar_lea.vmem %s752_s26, 32  ;;  %p7516_p7 = scmp.lt.s32.totalorder %s752_s26, %s752_s26 }
 0x1ca   : > { %p7509_p0 = scmp.ne.s32.totalorder %s752_s26, %s7508_s18  ;;  %p7517_p9 = scmp.lt.s32.totalorder %s7508_s18, %s7508_s18 }
 0x1cc   : > { %p7511_p2 = pnand %p7509_p0, %p7976_p8  ;;  %p7518_p4 = por %p7517_p9, %p7516_p7 }
 0x1ce   : > { %p7512_p5 = pneg %p7511_p2 }
 0x1d0   : > { %p7519_p10 = pnand %p7518_p4, %p7512_p5 }
 0x1d2   : > { %7522 = shalt.err (!%p7519_p10)
}
 0x1d3   : > { %6267 = dma.hbm_to_vmem [thread:$0]  (!%p7960_p6), %s8830_s14, 32, %s752_s26, [#allocation24]  }
 0x1d4   : > { %s7523_s9 = scalar_lea.hbm %s8739_s16, 16 }
 0x1d5   : > { %p7524_p1 = scmp.ne.s32.totalorder %s8739_s16, %s7523_s9  ;;  %p7530_p12 = scmp.lt.u32.totalorder %s7523_s9, %s8739_s16 }
 0x1d7   : > { %p7526_p3 = pnand %p7524_p1, %p7976_p8 }
 0x1d9   : > { %p7527_p11 = pneg %p7526_p3 }
 0x1db   : > { %p7532_p13 = pnand %p7530_p12, %p7527_p11 }
 0x1dd   : > { %7535 = shalt.err (!%p7532_p13)
}
 0x1de   : > { %s7536_s26 = scalar_lea.vmem %s8297_s2, 16  ;;  %s7543_s18 = scalar_lea.vmem %s8297_s2, 32 }
 0x1df   : > { %p7537_p0 = scmp.ne.s32.totalorder %s8297_s2, %s7536_s26  ;;  %p7544_p7 = scmp.lt.s32.totalorder %s8297_s2, %s8297_s2 }
 0x1e0   : > { %p7545_p9 = scmp.lt.s32.totalorder %s7543_s18, %s7536_s26 }
 0x1e1   : > { %p7539_p2 = pnand %p7537_p0, %p7976_p8 }
 0x1e2   : > { %p7546_p4 = por %p7545_p9, %p7544_p7 }
 0x1e3   : > { %p7540_p5 = pneg %p7539_p2 }
 0x1e5   : > { %p7547_p10 = pnand %p7546_p4, %p7540_p5 }
 0x1e7   : > { %7550 = shalt.err (!%p7547_p10)
}
 0x1e8   : > { %6273 = dma.hbm_to_vmem [thread:$0]  (!%p7960_p6), %s8739_s16, 16, %s8297_s2, [#allocation27]  }
 0x1e9   : > { %s7795_s5 = smov [#allocation29]   ;;  %s7551_s21 = scalar_lea.hbm %s8742_s19, 1024 }
 0x1ea   : > { %s791_s3 = sshll.u32 %s7795_s5, 4  ;;  %p7552_p1 = scmp.ne.s32.totalorder %s8742_s19, %s7551_s21  ;;  %s792_s3 = int_to_ptr.vmem [resolvable:$true] %s791_s3 }
 0x1eb   : > { %p7558_p12 = scmp.lt.u32.totalorder %s7551_s21, %s8742_s19 }
 0x1ec   : > { %p7554_p3 = pnand %p7552_p1, %p7976_p8 }
 0x1ee   : > { %p7555_p11 = pneg %p7554_p3 }
 0x1f0   : > { %p7560_p13 = pnand %p7558_p12, %p7555_p11 }
 0x1f2   : > { %7563 = shalt.err (!%p7560_p13)
}
 0x1f3   : > { %s7564_s2 = scalar_lea.vmem %s792_s3, 1024  ;;  %p7572_p7 = scmp.lt.s32.totalorder %s792_s3, %s792_s3 }
 0x1f4   : > { %p7565_p0 = scmp.ne.s32.totalorder %s792_s3, %s7564_s2  ;;  %p7573_p9 = scmp.lt.s32.totalorder %s7564_s2, %s7564_s2 }
 0x1f6   : > { %p7567_p2 = pnand %p7565_p0, %p7976_p8  ;;  %p7574_p4 = por %p7573_p9, %p7572_p7 }
 0x1f8   : > { %p7568_p5 = pneg %p7567_p2 }
 0x1fa   : > { %p7575_p10 = pnand %p7574_p4, %p7568_p5 }
 0x1fc   : > { %7578 = shalt.err (!%p7575_p10)
}
 0x1fd   : > { %s8831_s6 = sld [smem:[#allocation47_spill]]  ;;  %s8832_s5 = sld [smem:[#allocation48_spill]] }
 0x1fe   : > { %6276 = dma.hbm_to_vmem [thread:$0]  (!%p7960_p6), %s8742_s19, 1024, %s792_s3, [#allocation30], %s8823_s22, %s8823_s22, %s8822_s17  }
 0x1ff   : > { %s8778_s7 = sadd.s32 4294967294, %s7771_s25   ;;  %s8364_s9 = sadd.s32 1, %s7771_s25  }
 0x200   : > { %s59_s1 = sadd.s32 1, %s7767_s24  ;;  %s56_s21 = ssub.s32 %s7771_s25, %s8364_s9 }
 0x201   : > { %p66_p8 = scmp.ne.s32.totalorder %s7767_s24, %s7763_s30  ;;  %p57_p1 = scmp.eq.s32.totalorder %s56_s21, 0 }
 0x202   : > { %p67_p3 = scmp.eq.s32.totalorder %s7771_s25, 0  ;;  %p522_p5 = scmp.eq.s32.totalorder %s8778_s7, 1 }
 0x203   : > { %p72_p11 = scmp.ne.s32.totalorder %s7763_s30, %s8831_s6  ;;  %p516_p12 = scmp.eq.s32.totalorder %s8832_s5, 1 }
 0x204   : > { %s8376_s11 = scalar_select %p57_p1, %s7767_s24, %s59_s1  }
 0x205   : > { %p68_p13 = por %p67_p3, %p66_p8  ;;  %p8833_p0 = scmp.eq.s32.totalorder %s8832_s5, 0 }
 0x206   : > { %p8384_p6 = por %p516_p12, %p66_p8  ;;  %p6308_p7 = scmp.lt.s32.totalorder %s7771_s25, 2 }
 0x207   : > { %p8380_p2 = por %p8833_p0, %p72_p11  ;;  %s808_s22 = sand.u32 1, %s7767_s24  }
 0x208   : > { %s8835_s17 = scalar_select %p8384_p6, 1, 0 }
 0x209   : > { %p8392_p9 = por %p522_p5, %p72_p11  ;;  %s5463_s26 = sshll.u32 %s808_s22, 3 }
 0x20a   : > { %s5464_s18 = sshll.u32 %s7771_s25, 7  ;;  %s8837_s0 = sld [smem:[#allocation50_spill]] }
 0x20b   : > { %s8836_s3 = scalar_select %p8392_p9, 1, 0 }
 0x20c   : > { %s812_s5 = scalar_lea.vmem [#allocation2], %s5463_s26  ;;  %p8402_p4 = pnand %p6308_p7, %p68_p13 }
 0x20d   : > { %s819_s1 = sshll.u32 %s812_s5, 4  ;;  %s809_s7 = scalar_lea.sflag [#allocation3], %s808_s22  ;;  %s8406_s1 = int_to_ptr.vmem [resolvable:$true] %s819_s1 }
 0x20e   : > { %p7581_p8 = pneg %p8402_p4 }
 0x210   : > { %s8400_s6 = scalar_lea.hbm %s8837_s0, %s5464_s18  ;;  %s7584_s2 = scalar_lea.hbm %s8837_s0, 256 }
 0x211   : > { %s7579_s8 = scalar_lea.hbm %s8400_s6, 128  ;;  %p7585_p11 = scmp.lt.u32.totalorder %s8400_s6, %s8837_s0 }
 0x212   : > { %p7580_p10 = scmp.ne.s32.totalorder %s8400_s6, %s7579_s8  ;;  %p7586_p12 = scmp.lt.u32.totalorder %s7584_s2, %s7579_s8 }
 0x213   : > { %p7588_p0 = scmp.lt.u32.totalorder %s7579_s8, %s8400_s6 }
 0x214   : > { %p7582_p1 = pnand %p7581_p8, %p7580_p10  ;;  %p7587_p13 = por %p7586_p12, %p7585_p11 }
 0x216   : > { %p7583_p3 = pneg %p7582_p1  ;;  %p7589_p5 = por %p7588_p0, %p7587_p13 }
 0x218   : > { %p7590_p7 = pnand %p7589_p5, %p7583_p3 }
 0x21a   : > { %7593 = shalt.err (!%p7590_p7)
}
 0x21b   : > { %s7594_s22 = scalar_lea.vmem %s8406_s1, 128  ;;  %s7796_s18 = smov [#allocation2]  }
 0x21c   : > { %p7595_p10 = scmp.ne.s32.totalorder %s8406_s1, %s7594_s22  ;;  %s7599_s26 = sshll.u32 %s7796_s18, 4  ;;  %s7600_s26 = int_to_ptr.vmem [resolvable:$false] %s7599_s26 }
 0x21d   : > { %s7601_s4 = scalar_lea.vmem %s7600_s26, 256  ;;  %p7602_p6 = scmp.lt.s32.totalorder %s8406_s1, %s7600_s26 }
 0x21e   : > { %p7597_p1 = pnand %p7595_p10, %p7581_p8  ;;  %p7603_p11 = scmp.lt.s32.totalorder %s7601_s4, %s7594_s22 }
 0x220   : > { %p7598_p9 = pneg %p7597_p1  ;;  %p7604_p12 = por %p7603_p11, %p7602_p6 }
 0x222   : > { %p7605_p13 = pnand %p7604_p12, %p7598_p9 }
 0x224   : > { %7608 = shalt.err (!%p7605_p13)
}
 0x225   : > { %6280 = dma.hbm_to_vmem [thread:$0]  (!%p8402_p4), %s8400_s6, 128, %s8406_s1, %s809_s7  }
 0x226   : > { %s8839_s8 = sld [smem:[#allocation49_spill]] }
 0x22c   : > { %p8840_p3 = scmp.ne.s32.totalorder %s8839_s8, 0 }
 0x22d   : > { %s8436_s2 = sand.u32 (!%p8840_p3), 1, %s7763_s30  }
 0x22e   : > { %828 = sbr.rel (%p8840_p3) target bundleno = 3178 (0xc6a), region = 104  ;;  %s8439_s5 = sshll.u32 (!%p8840_p3), %s8436_s2, 3 }
 0x22f   : > { %s831_s22 = scalar_lea.sflag (!%p8840_p3), [#allocation3], %s8436_s2  ;;  %s834_s18 = scalar_lea.vmem (!%p8840_p3), [#allocation2], %s8439_s5 }
 0x235   : > { %7710 = dma.done.wait (%p8380_p2), %s831_s22, 128  }
 0x236   : > { %7712 = vsyncadd (%p8380_p2), %s831_s22, 4294967168  ;;  %s8841_s7 = sld [smem:[#allocation48_spill]] }
 0x23c   : > { %p8842_p6 = scmp.eq.s32.totalorder %s8841_s7, 0 }
 0x23e   : > { %7714 = dma.done.wait (%p8842_p6), [#allocation6], 2080   ;;  %p8843_p9 = pmov %p8842_p6 }
 0x23f   : > { %p8844_p4 = pmov %p8842_p6 }
 0x240   : > { %7716 = vsyncadd (%p8843_p9), [#allocation6], 4294965216 }
 0x241   : > { %7718 = dma.done.wait (%p8844_p4), [#allocation9], 8256   ;;  %p8845_p8 = pmov %p8844_p4 }
 0x242   : > { %p8846_p0 = pmov %p8844_p4 }
 0x243   : > { %7720 = vsyncadd (%p8845_p8), [#allocation9], 4294959040 }
 0x244   : > { %7722 = dma.done.wait (%p8846_p0), [#allocation12], 16448   ;;  %p8847_p5 = pmov %p8846_p0 }
 0x245   : > { %p8848_p2 = pmov %p8846_p0 }
 0x246   : > { %7724 = vsyncadd (%p8847_p5), [#allocation12], 4294950848 }
 0x247   : > { %7726 = dma.done.wait (%p8848_p2), [#allocation15], 4112   ;;  %p8849_p7 = pmov %p8846_p0 }
 0x248   : > { %p8850_p10 = pmov %p8846_p0 }
 0x249   : > { %7728 = vsyncadd (%p8849_p7), [#allocation15], 4294963184 }
 0x24a   : > { %7730 = dma.done.wait (%p8850_p10), [#allocation18], 4160   ;;  %p8851_p1 = pmov %p8846_p0 }
 0x24b   : > { %p8852_p11 = pmov %p8846_p0 }
 0x24c   : > { %7732 = vsyncadd (%p8851_p1), [#allocation18], 4294963136 }
 0x24d   : > { %7734 = dma.done.wait (%p8852_p11), [#allocation21], 16448   ;;  %p8853_p12 = pmov %p8846_p0 }
 0x24e   : > { %p8854_p13 = pmov %p8846_p0 }
 0x24f   : > { %7736 = vsyncadd (%p8853_p12), [#allocation21], 4294950848 }
 0x250   : > { %7738 = dma.done.wait (%p8854_p13), [#allocation24], 8224   ;;  %p8855_p3 = pmov %p8846_p0 }
 0x251   : > { %p8856_p6 = pmov %p8846_p0 }
 0x252   : > { %7740 = vsyncadd (%p8855_p3), [#allocation24], 4294959072 }
 0x253   : > { %7742 = dma.done.wait (%p8856_p6), [#allocation27], 2064   ;;  %p8857_p9 = pmov %p8846_p0 }
 0x254   : > { %p8858_p4 = pmov %p8846_p0 }
 0x255   : > { %7744 = vsyncadd (%p8857_p9), [#allocation27], 4294965232 }
 0x256   : > { %7746 = dma.done.wait (%p8858_p4), [#allocation30], 1024   ;;  %p8859_p8 = pmov %p8846_p0 }
 0x257   : > { %v7797_v0 = vmov 0   ;;  %v6385_v1 = vld [vmem:[#allocation5 + $0x4] ss:$8 sps:$4 sm:$0xff]   ;;  %v6387_v2 = vld [vmem:[#allocation5] ss:$8 sps:$4 sm:$0xff]   ;;  %v976_v26 = vld [vmem:[%s834_s18] sm:$0xff] }
 0x258   : > { %7748 = vsyncadd (%p8859_p8), [#allocation30], 4294966272  ;;  %1118 = vmatprep.mubr.bf16.mxu0 %v7797_v0  ;;  %1086 = vmatprep.subr.bf16.mxu0 %v6385_v1  ;;  %v6388_v3 = vld [vmem:[#allocation5 + $0x14] ss:$8 sps:$4 sm:$0xff]   ;;  %v6390_v4 = vld [vmem:[#allocation5 + $0x10] ss:$8 sps:$4 sm:$0xff]   ;;  %v977_v30 = vpack.c.bf16 %v976_v26, %v976_v26 }
 0x259   : > { %1087 = vmatpush1.bf16.msra.mxu0 %v6387_v2  ;;  %v6391_v5 = vld [vmem:[#allocation5 + $0x24] ss:$8 sps:$4 sm:$0xff]   ;;  %v6393_v6 = vld [vmem:[#allocation5 + $0x20] ss:$8 sps:$4 sm:$0xff]   ;;  %v6394_v7 = vld [vmem:[#allocation5 + $0x34] ss:$8 sps:$4 sm:$0xff]  }
 0x25a   : > { %1088 = vmatprep.subr.bf16.mxu0 %v6388_v3  ;;  %v6396_v8 = vld [vmem:[#allocation5 + $0x30] ss:$8 sps:$4 sm:$0xff]   ;;  %v6397_v10 = vld [vmem:[#allocation5 + $0x44] ss:$8 sps:$4 sm:$0xff]   ;;  %v6399_v13 = vld [vmem:[#allocation5 + $0x40] ss:$8 sps:$4 sm:$0xff]  }
 0x25b   : > { %v6409_v9 = vld [vmem:[#allocation8 + $0x4] ss:$16 sps:$4 sm:$0xff]   ;;  %v6414_v11 = vld [vmem:[#allocation8] ss:$16 sps:$4 sm:$0xff]   ;;  %v6413_v27 = vld [vmem:[#allocation8 + $0xc] ss:$16 sps:$4 sm:$0xff]  }
 0x25c   : > { %1537 = vmatprep.subr.bf16.mxu1 %v6409_v9  ;;  %v6415_v12 = vld [vmem:[#allocation8 + $0x24] ss:$16 sps:$4 sm:$0xff]   ;;  %v6420_v15 = vld [vmem:[#allocation8 + $0x20] ss:$16 sps:$4 sm:$0xff]   ;;  %v6411_v31 = vld [vmem:[#allocation8 + $0x8] ss:$16 sps:$4 sm:$0xff]  }
 0x25d   : > { %1089 = vmatpush1.bf16.msra.mxu0 %v6390_v4  ;;  %v6400_v14 = vld [vmem:[#allocation5 + $0x54] ss:$8 sps:$4 sm:$0xff]   ;;  %1538 = vmatpush1.bf16.msra.mxu1 %v6414_v11  ;;  %v6402_v17 = vld [vmem:[#allocation5 + $0x50] ss:$8 sps:$4 sm:$0xff]   ;;  %v6403_v18 = vld [vmem:[#allocation5 + $0x64] ss:$8 sps:$4 sm:$0xff]  }
 0x25e   : > { %1090 = vmatprep.subr.bf16.mxu0 %v6391_v5  ;;  %1539 = vmatprep.subr.bf16.mxu1 %v6415_v12  ;;  %v6421_v16 = vld [vmem:[#allocation8 + $0x44] ss:$16 sps:$4 sm:$0xff]   ;;  %v6426_v19 = vld [vmem:[#allocation8 + $0x40] ss:$16 sps:$4 sm:$0xff]   ;;  %v6419_v32 = vld [vmem:[#allocation8 + $0x2c] ss:$16 sps:$4 sm:$0xff]  }
 0x25f   : > { %v6427_v20 = vld [vmem:[#allocation8 + $0x64] ss:$16 sps:$4 sm:$0xff]   ;;  %v6432_v23 = vld [vmem:[#allocation8 + $0x60] ss:$16 sps:$4 sm:$0xff]   ;;  %v6417_v35 = vld [vmem:[#allocation8 + $0x28] ss:$16 sps:$4 sm:$0xff]  }
 0x260   : > { %v6405_v21 = vld [vmem:[#allocation5 + $0x60] ss:$8 sps:$4 sm:$0xff]   ;;  %v6406_v22 = vld [vmem:[#allocation5 + $0x74] ss:$8 sps:$4 sm:$0xff]   ;;  %v6408_v25 = vld [vmem:[#allocation5 + $0x70] ss:$8 sps:$4 sm:$0xff]  }
 0x261   : > { %1091 = vmatpush1.bf16.msra.mxu0 %v6393_v6  ;;  %1540 = vmatpush1.bf16.msra.mxu1 %v6420_v15  ;;  %v6433_v24 = vld [vmem:[#allocation8 + $0x84] ss:$16 sps:$4 sm:$0xff]   ;;  %v6438_v28 = vld [vmem:[#allocation8 + $0x80] ss:$16 sps:$4 sm:$0xff]   ;;  %v6425_v36 = vld [vmem:[#allocation8 + $0x4c] ss:$16 sps:$4 sm:$0xff]  }
 0x262   : > { %1092 = vmatprep.subr.bf16.mxu0 %v6394_v7  ;;  %1541 = vmatprep.subr.bf16.mxu1 %v6421_v16  ;;  %v6439_v29 = vld [vmem:[#allocation8 + $0xa4] ss:$16 sps:$4 sm:$0xff]   ;;  %v6444_v33 = vld [vmem:[#allocation8 + $0xa0] ss:$16 sps:$4 sm:$0xff]   ;;  %v6423_v39 = vld [vmem:[#allocation8 + $0x48] ss:$16 sps:$4 sm:$0xff]  }
 0x263   : > { %v6445_v34 = vld [vmem:[#allocation8 + $0xc4] ss:$16 sps:$4 sm:$0xff]   ;;  %v6450_v37 = vld [vmem:[#allocation8 + $0xc0] ss:$16 sps:$4 sm:$0xff]   ;;  %v6431_v40 = vld [vmem:[#allocation8 + $0x6c] ss:$16 sps:$4 sm:$0xff]  }
 0x264   : > { %v6451_v38 = vld [vmem:[#allocation8 + $0xe4] ss:$16 sps:$4 sm:$0xff]   ;;  %v6456_v41 = vld [vmem:[#allocation8 + $0xe0] ss:$16 sps:$4 sm:$0xff]   ;;  %v6429_v43 = vld [vmem:[#allocation8 + $0x68] ss:$16 sps:$4 sm:$0xff]  }
 0x265   : > { %1093 = vmatpush1.bf16.msra.mxu0 %v6396_v8  ;;  %1542 = vmatpush1.bf16.msra.mxu1 %v6426_v19  ;;  %v6457_v42 = vld [vmem:[#allocation8 + $0x104] ss:$16 sps:$4 sm:$0xff]   ;;  %v6437_v44 = vld [vmem:[#allocation8 + $0x8c] ss:$16 sps:$4 sm:$0xff]   ;;  %v6462_v45 = vld [vmem:[#allocation8 + $0x100] ss:$16 sps:$4 sm:$0xff]  }
 0x266   : > { %1094 = vmatprep.subr.bf16.mxu0 %v6397_v10  ;;  %1543 = vmatprep.subr.bf16.mxu1 %v6427_v20  ;;  %v6463_v46 = vld [vmem:[#allocation8 + $0x124] ss:$16 sps:$4 sm:$0xff]   ;;  %v6435_v47 = vld [vmem:[#allocation8 + $0x88] ss:$16 sps:$4 sm:$0xff]   ;;  %v6468_v48 = vld [vmem:[#allocation8 + $0x120] ss:$16 sps:$4 sm:$0xff]  }
 0x267   : > { %v6443_v49 = vld [vmem:[#allocation8 + $0xac] ss:$16 sps:$4 sm:$0xff]   ;;  %v6469_v50 = vld [vmem:[#allocation8 + $0x144] ss:$16 sps:$4 sm:$0xff]   ;;  %v6441_v51 = vld [vmem:[#allocation8 + $0xa8] ss:$16 sps:$4 sm:$0xff]  }
 0x268   : > { %v6474_v52 = vld [vmem:[#allocation8 + $0x140] ss:$16 sps:$4 sm:$0xff]   ;;  %v6449_v53 = vld [vmem:[#allocation8 + $0xcc] ss:$16 sps:$4 sm:$0xff]   ;;  %v6475_v54 = vld [vmem:[#allocation8 + $0x164] ss:$16 sps:$4 sm:$0xff]  }
 0x269   : > { %1095 = vmatpush1.bf16.msra.mxu0 %v6399_v13  ;;  %1544 = vmatpush1.bf16.msra.mxu1 %v6432_v23  ;;  %v6447_v55 = vld [vmem:[#allocation8 + $0xc8] ss:$16 sps:$4 sm:$0xff]   ;;  %v6480_v56 = vld [vmem:[#allocation8 + $0x160] ss:$16 sps:$4 sm:$0xff]   ;;  %v6455_v57 = vld [vmem:[#allocation8 + $0xec] ss:$16 sps:$4 sm:$0xff]  }
 0x26a   : > { %1096 = vmatprep.subr.bf16.mxu0 %v6400_v14  ;;  %1545 = vmatprep.subr.bf16.mxu1 %v6433_v24  ;;  %v6481_v58 = vld [vmem:[#allocation8 + $0x184] ss:$16 sps:$4 sm:$0xff]   ;;  %v6453_v59 = vld [vmem:[#allocation8 + $0xe8] ss:$16 sps:$4 sm:$0xff]   ;;  %v6486_v60 = vld [vmem:[#allocation8 + $0x180] ss:$16 sps:$4 sm:$0xff]  }
 0x26b   : > { %v6461_v61 = vld [vmem:[#allocation8 + $0x10c] ss:$16 sps:$4 sm:$0xff]   ;;  %v6487_v62 = vld [vmem:[#allocation8 + $0x1a4] ss:$16 sps:$4 sm:$0xff]   ;;  %v6459_v63 = vld [vmem:[#allocation8 + $0x108] ss:$16 sps:$4 sm:$0xff]  }
 0x26c   : > { %v6492_v1 = vld [vmem:[#allocation8 + $0x1a0] ss:$16 sps:$4 sm:$0xff]   ;;  %v6467_v2 = vld [vmem:[#allocation8 + $0x12c] ss:$16 sps:$4 sm:$0xff]   ;;  %v6465_v3 = vld [vmem:[#allocation8 + $0x128] ss:$16 sps:$4 sm:$0xff]  }
 0x26d   : > { %1097 = vmatpush1.bf16.msra.mxu0 %v6402_v17  ;;  %1546 = vmatpush1.bf16.msra.mxu1 %v6438_v28  ;;  %v6473_v4 = vld [vmem:[#allocation8 + $0x14c] ss:$16 sps:$4 sm:$0xff]   ;;  %v6471_v5 = vld [vmem:[#allocation8 + $0x148] ss:$16 sps:$4 sm:$0xff]   ;;  %v6493_v12 = vld [vmem:[#allocation8 + $0x1c4] ss:$16 sps:$4 sm:$0xff]  }
 0x26e   : > { %1098 = vmatprep.subr.bf16.mxu0 %v6403_v18  ;;  %1547 = vmatprep.subr.bf16.mxu1 %v6439_v29  ;;  %v6479_v6 = vld [vmem:[#allocation8 + $0x16c] ss:$16 sps:$4 sm:$0xff]   ;;  %v6477_v7 = vld [vmem:[#allocation8 + $0x168] ss:$16 sps:$4 sm:$0xff]   ;;  %v6498_v15 = vld [vmem:[#allocation8 + $0x1c0] ss:$16 sps:$4 sm:$0xff]  }
 0x26f   : > { %v6485_v8 = vld [vmem:[#allocation8 + $0x18c] ss:$16 sps:$4 sm:$0xff]   ;;  %v6483_v9 = vld [vmem:[#allocation8 + $0x188] ss:$16 sps:$4 sm:$0xff]   ;;  %v6499_v16 = vld [vmem:[#allocation8 + $0x1e4] ss:$16 sps:$4 sm:$0xff]  }
 0x270   : > { %v6491_v10 = vld [vmem:[#allocation8 + $0x1ac] ss:$16 sps:$4 sm:$0xff]   ;;  %v6489_v11 = vld [vmem:[#allocation8 + $0x1a8] ss:$16 sps:$4 sm:$0xff]   ;;  %v6504_v19 = vld [vmem:[#allocation8 + $0x1e0] ss:$16 sps:$4 sm:$0xff]  }
 0x271   : > { %1099 = vmatpush1.bf16.msra.mxu0 %v6405_v21  ;;  %1548 = vmatpush1.bf16.msra.mxu1 %v6444_v33  ;;  %v6497_v13 = vld [vmem:[#allocation8 + $0x1cc] ss:$16 sps:$4 sm:$0xff]   ;;  %v6495_v14 = vld [vmem:[#allocation8 + $0x1c8] ss:$16 sps:$4 sm:$0xff]   ;;  %v6510_v21 = vld [vmem:[#allocation11 + $0xc] ss:$16 sps:$4 sm:$0xff]  }
 0x272   : > { %1100 = vmatprep.subr.bf16.mxu0 %v6406_v22  ;;  %1549 = vmatprep.subr.bf16.mxu1 %v6445_v34  ;;  %v6503_v17 = vld [vmem:[#allocation8 + $0x1ec] ss:$16 sps:$4 sm:$0xff]   ;;  %v6501_v18 = vld [vmem:[#allocation8 + $0x1e8] ss:$16 sps:$4 sm:$0xff]   ;;  %v996_v22 = vlaneseq  ;;  %s967_s29 = scalar_lea.vmem [#allocation32], %s8439_s5  ;;  %s8860_s21 = sld [smem:[#allocation66_spill]] }
 0x273   : > { %v6507_v20 = vld [vmem:[#allocation11 + $0x4] ss:$16 sps:$4 sm:$0xff]   ;;  %vm7799_vm0 = vmmov 0   ;;  %s8780_s26 = scalar_lea.vmem [#allocation31], %s8439_s5  ;;  %s8861_s22 = sld [smem:[#allocation67_spill]] }
 0x274   : > { %v8486_v23 = vshrl.u32 %v996_v22, 7  ;;  %v6579_v22 = vld [vmem:[#allocation11 + $0x184] ss:$16 sps:$4 sm:$0xff]   ;;  %s8862_s1 = sld [smem:[#allocation68_spill]]  ;;  %s5105_s4 = sand.u32 1, %s8841_s7  }
 0x275   : > { %1101 = vmatpush1.bf16.msra.mxu0 %v6408_v25  ;;  %1550 = vmatpush1.bf16.msra.mxu1 %v6450_v37  ;;  %v994_v25 = vld [vmem:[#allocation7] sm:$0x3]  ;;  %s8615_s8 = sshll.u32 %s8841_s7, 7  ;;  %s8863_s6 = sld [smem:[#allocation70_spill]] }
 0x276   : > { %1578 = vmatprep.subr.bf16.mxu0 %v6413_v27  ;;  %1551 = vmatprep.subr.bf16.mxu1 %v6451_v38  ;;  %v8489_v24 = vsub.s32 0, %v8486_v23  ;;  %v8492_v26 = vsub.s32 1, %v8486_v23  ;;  %v6505_v38 = vld [vmem:[#allocation11] ss:$16 sps:$4 sm:$0xff]   ;;  %s8864_s12 = sld [smem:[#allocation69_spill]]  ;;  %s8633_s7 = scalar_lea.sflag [#allocation33], %s5105_s4 }
 0x277   : > { %p8865_p5 = scmp.ne.s32.totalorder %s8835_s17, 0 }
 0x278   : > { %1119 = vmatmul.mubr.bf16.vlgmr.msra.gmra.mrb[0].mxu0 %v977_v30  ;;  %v999_v27 = vrot.slane %v994_v25, %v8489_v24  ;;  %v1003_v28 = vrot.slane %v994_v25, %v8492_v26  ;;  %v6582_v25 = vld [vmem:[#allocation11 + $0x18c] ss:$16 sps:$4 sm:$0xff]  }
 0x279   : > { %1579 = vmatpush1.bf16.msra.mxu0 %v6411_v31  ;;  %1552 = vmatpush1.bf16.msra.mxu1 %v6456_v41  ;;  %v6513_v41 = vld [vmem:[#allocation11 + $0x24] ss:$16 sps:$4 sm:$0xff]  }
 0x27a   : > { %1580 = vmatprep.subr.bf16.mxu0 %v6419_v32  ;;  %1553 = vmatprep.subr.bf16.mxu1 %v6457_v42  ;;  %v6516_v42 = vld [vmem:[#allocation11 + $0x2c] ss:$16 sps:$4 sm:$0xff]  }
 0x27c   : > { %s8631_s13 = scalar_lea.hbm %s8864_s12, %s8615_s8 }
 0x27d   : > { %1581 = vmatpush1.bf16.msra.mxu0 %v6417_v35  ;;  %1554 = vmatpush1.bf16.msra.mxu1 %v6462_v45  ;;  %v6519_v45 = vld [vmem:[#allocation11 + $0x44] ss:$16 sps:$4 sm:$0xff]  }
 0x27e   : > { %1582 = vmatprep.subr.bf16.mxu0 %v6425_v36  ;;  %1555 = vmatprep.subr.bf16.mxu1 %v6463_v46  ;;  %v6522_v46 = vld [vmem:[#allocation11 + $0x4c] ss:$16 sps:$4 sm:$0xff]  }
 0x281   : > { %1583 = vmatpush1.bf16.msra.mxu0 %v6423_v39  ;;  %1556 = vmatpush1.bf16.msra.mxu1 %v6468_v48  ;;  %v6508_v39 = vld [vmem:[#allocation11 + $0x8] ss:$16 sps:$4 sm:$0xff]  }
 0x282   : > { %1584 = vmatprep.subr.bf16.mxu0 %v6431_v40  ;;  %1557 = vmatprep.subr.bf16.mxu1 %v6469_v50  ;;  %v6520_v48 = vld [vmem:[#allocation11 + $0x48] ss:$16 sps:$4 sm:$0xff]   ;;  %v6528_v50 = vld [vmem:[#allocation11 + $0x6c] ss:$16 sps:$4 sm:$0xff]  }
 0x285   : > { %1585 = vmatpush1.bf16.msra.mxu0 %v6429_v43  ;;  %1558 = vmatpush1.bf16.msra.mxu1 %v6474_v52  ;;  %v6511_v43 = vld [vmem:[#allocation11 + $0x20] ss:$16 sps:$4 sm:$0xff]   ;;  %v6526_v52 = vld [vmem:[#allocation11 + $0x68] ss:$16 sps:$4 sm:$0xff]  }
 0x286   : > { %1586 = vmatprep.subr.bf16.mxu0 %v6437_v44  ;;  %1559 = vmatprep.subr.bf16.mxu1 %v6475_v54  ;;  %v6514_v44 = vld [vmem:[#allocation11 + $0x28] ss:$16 sps:$4 sm:$0xff]   ;;  %v6534_v54 = vld [vmem:[#allocation11 + $0x8c] ss:$16 sps:$4 sm:$0xff]  }
 0x289   : > { %1587 = vmatpush1.bf16.msra.mxu0 %v6435_v47  ;;  %1560 = vmatpush1.bf16.msra.mxu1 %v6480_v56  ;;  %v6517_v47 = vld [vmem:[#allocation11 + $0x40] ss:$16 sps:$4 sm:$0xff]   ;;  %v6532_v56 = vld [vmem:[#allocation11 + $0x88] ss:$16 sps:$4 sm:$0xff]  }
 0x28a   : > { %1588 = vmatprep.subr.bf16.mxu0 %v6443_v49  ;;  %1561 = vmatprep.subr.bf16.mxu1 %v6481_v58  ;;  %v6525_v49 = vld [vmem:[#allocation11 + $0x64] ss:$16 sps:$4 sm:$0xff]   ;;  %v6540_v58 = vld [vmem:[#allocation11 + $0xac] ss:$16 sps:$4 sm:$0xff]  }
 0x28d   : > { %1589 = vmatpush1.bf16.msra.mxu0 %v6441_v51  ;;  %1562 = vmatpush1.bf16.msra.mxu1 %v6486_v60  ;;  %v6523_v51 = vld [vmem:[#allocation11 + $0x60] ss:$16 sps:$4 sm:$0xff]   ;;  %v6538_v60 = vld [vmem:[#allocation11 + $0xa8] ss:$16 sps:$4 sm:$0xff]  }
 0x28e   : > { %1590 = vmatprep.subr.bf16.mxu0 %v6449_v53  ;;  %1563 = vmatprep.subr.bf16.mxu1 %v6487_v62  ;;  %v6531_v53 = vld [vmem:[#allocation11 + $0x84] ss:$16 sps:$4 sm:$0xff]   ;;  %v6546_v62 = vld [vmem:[#allocation11 + $0xcc] ss:$16 sps:$4 sm:$0xff]  }
 0x291   : > { %1591 = vmatpush1.bf16.msra.mxu0 %v6447_v55  ;;  %1564 = vmatpush1.bf16.msra.mxu1 %v6492_v1  ;;  %v6529_v55 = vld [vmem:[#allocation11 + $0x80] ss:$16 sps:$4 sm:$0xff]   ;;  %v6544_v1 = vld [vmem:[#allocation11 + $0xc8] ss:$16 sps:$4 sm:$0xff]  }
 0x292   : > { %1592 = vmatprep.subr.bf16.mxu0 %v6455_v57  ;;  %1565 = vmatprep.subr.bf16.mxu1 %v6493_v12  ;;  %v6537_v57 = vld [vmem:[#allocation11 + $0xa4] ss:$16 sps:$4 sm:$0xff]   ;;  %v6559_v12 = vld [vmem:[#allocation11 + $0x120] ss:$16 sps:$4 sm:$0xff]  }
 0x295   : > { %1593 = vmatpush1.bf16.msra.mxu0 %v6453_v59  ;;  %1566 = vmatpush1.bf16.msra.mxu1 %v6498_v15  ;;  %v6535_v59 = vld [vmem:[#allocation11 + $0xa0] ss:$16 sps:$4 sm:$0xff]   ;;  %v6570_v15 = vld [vmem:[#allocation11 + $0x14c] ss:$16 sps:$4 sm:$0xff]  }
 0x296   : > { %1594 = vmatprep.subr.bf16.mxu0 %v6461_v61  ;;  %1567 = vmatprep.subr.bf16.mxu1 %v6499_v16  ;;  %v6543_v61 = vld [vmem:[#allocation11 + $0xc4] ss:$16 sps:$4 sm:$0xff]   ;;  %v6565_v16 = vld [vmem:[#allocation11 + $0x140] ss:$16 sps:$4 sm:$0xff]  }
 0x299   : > { %1595 = vmatpush1.bf16.msra.mxu0 %v6459_v63  ;;  %1568 = vmatpush1.bf16.msra.mxu1 %v6504_v19  ;;  %v6541_v63 = vld [vmem:[#allocation11 + $0xc0] ss:$16 sps:$4 sm:$0xff]   ;;  %v6576_v19 = vld [vmem:[#allocation11 + $0x16c] ss:$16 sps:$4 sm:$0xff]  }
 0x29a   : > { %1596 = vmatprep.subr.bf16.mxu0 %v6467_v2  ;;  %2417 = vmatprep.subr.bf16.mxu1 %v6507_v20  ;;  %v6549_v2 = vld [vmem:[#allocation11 + $0xe4] ss:$16 sps:$4 sm:$0xff]   ;;  %v6571_v20 = vld [vmem:[#allocation11 + $0x160] ss:$16 sps:$4 sm:$0xff]  }
 0x29d   : > { %1597 = vmatpush1.bf16.msra.mxu0 %v6465_v3  ;;  %v6552_v3 = vld [vmem:[#allocation11 + $0xec] ss:$16 sps:$4 sm:$0xff]  }
 0x29e   : > { %1598 = vmatprep.subr.bf16.mxu0 %v6473_v4  ;;  %v6547_v4 = vld [vmem:[#allocation11 + $0xe0] ss:$16 sps:$4 sm:$0xff]  }
 0x2a1   : > { %1599 = vmatpush1.bf16.msra.mxu0 %v6471_v5  ;;  %v6550_v5 = vld [vmem:[#allocation11 + $0xe8] ss:$16 sps:$4 sm:$0xff]  }
 0x2a2   : > { %1600 = vmatprep.subr.bf16.mxu0 %v6479_v6  ;;  %v6555_v6 = vld [vmem:[#allocation11 + $0x104] ss:$16 sps:$4 sm:$0xff]  }
 0x2a5   : > { %1601 = vmatpush1.bf16.msra.mxu0 %v6477_v7  ;;  %v6558_v7 = vld [vmem:[#allocation11 + $0x10c] ss:$16 sps:$4 sm:$0xff]  }
 0x2a6   : > { %1602 = vmatprep.subr.bf16.mxu0 %v6485_v8  ;;  %v6553_v8 = vld [vmem:[#allocation11 + $0x100] ss:$16 sps:$4 sm:$0xff]  }
 0x2a9   : > { %1603 = vmatpush1.bf16.msra.mxu0 %v6483_v9  ;;  %v6556_v9 = vld [vmem:[#allocation11 + $0x108] ss:$16 sps:$4 sm:$0xff]  }
 0x2aa   : > { %1604 = vmatprep.subr.bf16.mxu0 %v6491_v10  ;;  %v6561_v10 = vld [vmem:[#allocation11 + $0x124] ss:$16 sps:$4 sm:$0xff]  }
 0x2ad   : > { %1605 = vmatpush1.bf16.msra.mxu0 %v6489_v11  ;;  %v6564_v11 = vld [vmem:[#allocation11 + $0x12c] ss:$16 sps:$4 sm:$0xff]  }
 0x2ae   : > { %1606 = vmatprep.subr.bf16.mxu0 %v6497_v13  ;;  %v6562_v13 = vld [vmem:[#allocation11 + $0x128] ss:$16 sps:$4 sm:$0xff]  }
 0x2b1   : > { %1607 = vmatpush1.bf16.msra.mxu0 %v6495_v14  ;;  %v6567_v14 = vld [vmem:[#allocation11 + $0x144] ss:$16 sps:$4 sm:$0xff]  }
 0x2b2   : > { %1608 = vmatprep.subr.bf16.mxu0 %v6503_v17  ;;  %v6568_v17 = vld [vmem:[#allocation11 + $0x148] ss:$16 sps:$4 sm:$0xff]  }
 0x2b5   : > { %1609 = vmatpush1.bf16.msra.mxu0 %v6501_v18  ;;  %v6573_v18 = vld [vmem:[#allocation11 + $0x164] ss:$16 sps:$4 sm:$0xff]  }
 0x2b6   : > { %2499 = vmatprep.subr.bf16.mxu0 %v6510_v21  ;;  %v6574_v21 = vld [vmem:[#allocation11 + $0x168] ss:$16 sps:$4 sm:$0xff]  }
 0x34b   : > { %v1120_v29 = vpop.f32.mrb[0].mxu0 }
 0x34c   : > { %v1121_v30 = vadd.f32 %v1120_v29, %v999_v27  ;;  %v1122_v31 = vpop.f32.mrb[1].mxu0  ;;  %v6577_v27 = vld [vmem:[#allocation11 + $0x180] ss:$16 sps:$4 sm:$0xff]   ;;  %v6585_v29 = vld [vmem:[#allocation11 + $0x1a4] ss:$16 sps:$4 sm:$0xff]  }
 0x34d   : > { %v1123_v32 = vadd.f32 %v1122_v31, %v1003_v28  ;;  %v1124_v33 = vpop.f32.mrb[2].mxu0  ;;  %v6580_v28 = vld [vmem:[#allocation11 + $0x188] ss:$16 sps:$4 sm:$0xff]   ;;  %v6583_v31 = vld [vmem:[#allocation11 + $0x1a0] ss:$16 sps:$4 sm:$0xff]  }
 0x34e   : > { %v1127_v34 = vmax.f32 %v1121_v30, 0.0  ;;  %v1125_v35 = vpop.f32.mrb[3].mxu0  ;;  %v6588_v30 = vld [vmem:[#allocation11 + $0x1ac] ss:$16 sps:$4 sm:$0xff]   ;;  %v6591_v33 = vld [vmem:[#allocation11 + $0x1c4] ss:$16 sps:$4 sm:$0xff]  }
 0x34f   : > { %v1128_v36 = vmax.f32 %v1123_v32, 0.0  ;;  %v6586_v32 = vld [vmem:[#allocation11 + $0x1a8] ss:$16 sps:$4 sm:$0xff]   ;;  %v6589_v35 = vld [vmem:[#allocation11 + $0x1c0] ss:$16 sps:$4 sm:$0xff]  }
 0x350   : > { %v1129_v40 = vpack.c.bf16 %v1127_v34, %v1127_v34  ;;  %v6594_v34 = vld [vmem:[#allocation11 + $0x1cc] ss:$16 sps:$4 sm:$0xff]  }
 0x351   : > { %v1130_v37 = vpack.c.bf16 %v1128_v36, %v1128_v36  ;;  %v6592_v36 = vld [vmem:[#allocation11 + $0x1c8] ss:$16 sps:$4 sm:$0xff]  }
 0x353   : > { %1569 = vmatprep.mubr.bf16.mxu1 %v1130_v37  ;;  %1610 = vmatprep.mubr.bf16.mxu0 %v1130_v37  ;;  %v6597_v37 = vld [vmem:[#allocation11 + $0x1e4] ss:$16 sps:$4 sm:$0xff]  }
 0x354   : > { %1570 = vmatmul.mubr.bf16.vlgmr.msra.gmra.mrb[0].mxu1 %v1129_v40  ;;  %1611 = vmatmul.mubr.bf16.vlgmr.msra.gmra.mrb[4].mxu0 %v1129_v40  ;;  %v6598_v40 = vld [vmem:[#allocation11 + $0x1e8] ss:$16 sps:$4 sm:$0xff]  }
 0x355   : > { %2418 = vmatpush1.bf16.msra.mxu1 %v6505_v38  ;;  %2500 = vmatpush1.bf16.msra.mxu0 %v6508_v39  ;;  %v6600_v38 = vld [vmem:[#allocation11 + $0x1ec] ss:$16 sps:$4 sm:$0xff]   ;;  %v6595_v39 = vld [vmem:[#allocation11 + $0x1e0] ss:$16 sps:$4 sm:$0xff]  }
 0x356   : > { %2419 = vmatprep.subr.bf16.mxu1 %v6513_v41  ;;  %2501 = vmatprep.subr.bf16.mxu0 %v6516_v42  ;;  %v6603_v41 = vld [vmem:[#allocation11 + $0x204] ss:$16 sps:$4 sm:$0xff]   ;;  %v6606_v42 = vld [vmem:[#allocation11 + $0x20c] ss:$16 sps:$4 sm:$0xff]  }
 0x359   : > { %2420 = vmatpush1.bf16.msra.mxu1 %v6511_v43  ;;  %2502 = vmatpush1.bf16.msra.mxu0 %v6514_v44  ;;  %v8496_v43 = vld [vmem:[#allocation10] sm:$0xf]  ;;  %v8499_v44 = vsub.s32 3, %v8486_v23 }
 0x35a   : > { %2421 = vmatprep.subr.bf16.mxu1 %v6519_v45  ;;  %2503 = vmatprep.subr.bf16.mxu0 %v6522_v46  ;;  %v1200_v45 = vrot.slane %v8496_v43, %v8489_v24  ;;  %v1204_v46 = vrot.slane %v8496_v43, %v8492_v26 }
 0x35d   : > { %2422 = vmatpush1.bf16.msra.mxu1 %v6517_v47  ;;  %2504 = vmatpush1.bf16.msra.mxu0 %v6520_v48  ;;  %v1212_v47 = vrot.slane %v8496_v43, %v8499_v44 }
 0x35e   : > { %2423 = vmatprep.subr.bf16.mxu1 %v6525_v49  ;;  %2505 = vmatprep.subr.bf16.mxu0 %v6528_v50 }
 0x361   : > { %2424 = vmatpush1.bf16.msra.mxu1 %v6523_v51  ;;  %2506 = vmatpush1.bf16.msra.mxu0 %v6526_v52 }
 0x362   : > { %2425 = vmatprep.subr.bf16.mxu1 %v6531_v53  ;;  %2507 = vmatprep.subr.bf16.mxu0 %v6534_v54 }
 0x365   : > { %2426 = vmatpush1.bf16.msra.mxu1 %v6529_v55  ;;  %2508 = vmatpush1.bf16.msra.mxu0 %v6532_v56 }
 0x366   : > { %2427 = vmatprep.subr.bf16.mxu1 %v6537_v57  ;;  %2509 = vmatprep.subr.bf16.mxu0 %v6540_v58 }
 0x369   : > { %2428 = vmatpush1.bf16.msra.mxu1 %v6535_v59  ;;  %2510 = vmatpush1.bf16.msra.mxu0 %v6538_v60 }
 0x36a   : > { %2429 = vmatprep.subr.bf16.mxu1 %v6543_v61  ;;  %2511 = vmatprep.subr.bf16.mxu0 %v6546_v62 }
 0x36d   : > { %2430 = vmatpush1.bf16.msra.mxu1 %v6541_v63  ;;  %2512 = vmatpush1.bf16.msra.mxu0 %v6544_v1  ;;  %v6601_v63 = vld [vmem:[#allocation11 + $0x200] ss:$16 sps:$4 sm:$0xff]   ;;  %v6604_v1 = vld [vmem:[#allocation11 + $0x208] ss:$16 sps:$4 sm:$0xff]  }
 0x36e   : > { %2431 = vmatprep.subr.bf16.mxu1 %v6549_v2  ;;  %2513 = vmatprep.subr.bf16.mxu0 %v6552_v3  ;;  %v6609_v3 = vld [vmem:[#allocation11 + $0x224] ss:$16 sps:$4 sm:$0xff]  }
 0x371   : > { %2432 = vmatpush1.bf16.msra.mxu1 %v6547_v4  ;;  %2514 = vmatpush1.bf16.msra.mxu0 %v6550_v5  ;;  %v6612_v4 = vld [vmem:[#allocation11 + $0x22c] ss:$16 sps:$4 sm:$0xff]  }
 0x372   : > { %2433 = vmatprep.subr.bf16.mxu1 %v6555_v6  ;;  %2515 = vmatprep.subr.bf16.mxu0 %v6558_v7  ;;  %v6607_v6 = vld [vmem:[#allocation11 + $0x220] ss:$16 sps:$4 sm:$0xff]   ;;  %v6610_v7 = vld [vmem:[#allocation11 + $0x228] ss:$16 sps:$4 sm:$0xff]  }
 0x375   : > { %2434 = vmatpush1.bf16.msra.mxu1 %v6553_v8  ;;  %2516 = vmatpush1.bf16.msra.mxu0 %v6556_v9  ;;  %v6615_v8 = vld [vmem:[#allocation11 + $0x244] ss:$16 sps:$4 sm:$0xff]   ;;  %v6618_v9 = vld [vmem:[#allocation11 + $0x24c] ss:$16 sps:$4 sm:$0xff]  }
 0x376   : > { %2435 = vmatprep.subr.bf16.mxu1 %v6561_v10  ;;  %2517 = vmatprep.subr.bf16.mxu0 %v6564_v11  ;;  %v6613_v10 = vld [vmem:[#allocation11 + $0x240] ss:$16 sps:$4 sm:$0xff]   ;;  %v6616_v11 = vld [vmem:[#allocation11 + $0x248] ss:$16 sps:$4 sm:$0xff]  }
 0x379   : > { %2436 = vmatpush1.bf16.msra.mxu1 %v6559_v12  ;;  %2518 = vmatpush1.bf16.msra.mxu0 %v6562_v13  ;;  %v6621_v12 = vld [vmem:[#allocation11 + $0x264] ss:$16 sps:$4 sm:$0xff]   ;;  %v6624_v13 = vld [vmem:[#allocation11 + $0x26c] ss:$16 sps:$4 sm:$0xff]  }
 0x37a   : > { %2437 = vmatprep.subr.bf16.mxu1 %v6567_v14  ;;  %2519 = vmatprep.subr.bf16.mxu0 %v6570_v15  ;;  %v6619_v14 = vld [vmem:[#allocation11 + $0x260] ss:$16 sps:$4 sm:$0xff]   ;;  %v6622_v15 = vld [vmem:[#allocation11 + $0x268] ss:$16 sps:$4 sm:$0xff]  }
 0x37d   : > { %2438 = vmatpush1.bf16.msra.mxu1 %v6565_v16  ;;  %2520 = vmatpush1.bf16.msra.mxu0 %v6568_v17  ;;  %v6627_v16 = vld [vmem:[#allocation11 + $0x284] ss:$16 sps:$4 sm:$0xff]   ;;  %v6630_v17 = vld [vmem:[#allocation11 + $0x28c] ss:$16 sps:$4 sm:$0xff]  }
 0x37e   : > { %2439 = vmatprep.subr.bf16.mxu1 %v6573_v18  ;;  %2521 = vmatprep.subr.bf16.mxu0 %v6576_v19  ;;  %v6625_v18 = vld [vmem:[#allocation11 + $0x280] ss:$16 sps:$4 sm:$0xff]   ;;  %v6628_v19 = vld [vmem:[#allocation11 + $0x288] ss:$16 sps:$4 sm:$0xff]  }
 0x381   : > { %2440 = vmatpush1.bf16.msra.mxu1 %v6571_v20  ;;  %2522 = vmatpush1.bf16.msra.mxu0 %v6574_v21  ;;  %v6633_v20 = vld [vmem:[#allocation11 + $0x2a4] ss:$16 sps:$4 sm:$0xff]   ;;  %v6636_v21 = vld [vmem:[#allocation11 + $0x2ac] ss:$16 sps:$4 sm:$0xff]  }
 0x382   : > { %2441 = vmatprep.subr.bf16.mxu1 %v6579_v22  ;;  %2523 = vmatprep.subr.bf16.mxu0 %v6582_v25  ;;  %v6631_v22 = vld [vmem:[#allocation11 + $0x2a0] ss:$16 sps:$4 sm:$0xff]   ;;  %v6634_v25 = vld [vmem:[#allocation11 + $0x2a8] ss:$16 sps:$4 sm:$0xff]  }
 0x385   : > { %2442 = vmatpush1.bf16.msra.mxu1 %v6577_v27  ;;  %2524 = vmatpush1.bf16.msra.mxu0 %v6580_v28  ;;  %v6639_v27 = vld [vmem:[#allocation11 + $0x2c4] ss:$16 sps:$4 sm:$0xff]   ;;  %v6642_v28 = vld [vmem:[#allocation11 + $0x2cc] ss:$16 sps:$4 sm:$0xff]  }
 0x386   : > { %2443 = vmatprep.subr.bf16.mxu1 %v6585_v29  ;;  %2525 = vmatprep.subr.bf16.mxu0 %v6588_v30  ;;  %v6637_v29 = vld [vmem:[#allocation11 + $0x2c0] ss:$16 sps:$4 sm:$0xff]   ;;  %v6640_v30 = vld [vmem:[#allocation11 + $0x2c8] ss:$16 sps:$4 sm:$0xff]  }
 0x389   : > { %2444 = vmatpush1.bf16.msra.mxu1 %v6583_v31  ;;  %2526 = vmatpush1.bf16.msra.mxu0 %v6586_v32  ;;  %v6645_v31 = vld [vmem:[#allocation11 + $0x2e4] ss:$16 sps:$4 sm:$0xff]   ;;  %v6648_v32 = vld [vmem:[#allocation11 + $0x2ec] ss:$16 sps:$4 sm:$0xff]  }
 0x38a   : > { %2445 = vmatprep.subr.bf16.mxu1 %v6591_v33  ;;  %2527 = vmatprep.subr.bf16.mxu0 %v6594_v34  ;;  %v6643_v33 = vld [vmem:[#allocation11 + $0x2e0] ss:$16 sps:$4 sm:$0xff]   ;;  %v6646_v34 = vld [vmem:[#allocation11 + $0x2e8] ss:$16 sps:$4 sm:$0xff]  }
 0x38d   : > { %2446 = vmatpush1.bf16.msra.mxu1 %v6589_v35  ;;  %2528 = vmatpush1.bf16.msra.mxu0 %v6592_v36  ;;  %v6651_v35 = vld [vmem:[#allocation11 + $0x304] ss:$16 sps:$4 sm:$0xff]   ;;  %v6654_v36 = vld [vmem:[#allocation11 + $0x30c] ss:$16 sps:$4 sm:$0xff]  }
 0x38e   : > { %2447 = vmatprep.subr.bf16.mxu1 %v6597_v37  ;;  %2529 = vmatprep.subr.bf16.mxu0 %v6600_v38  ;;  %v6649_v37 = vld [vmem:[#allocation11 + $0x300] ss:$16 sps:$4 sm:$0xff]   ;;  %v6652_v38 = vld [vmem:[#allocation11 + $0x308] ss:$16 sps:$4 sm:$0xff]  }
 0x391   : > { %2448 = vmatpush1.bf16.msra.mxu1 %v6595_v39  ;;  %2530 = vmatpush1.bf16.msra.mxu0 %v6598_v40  ;;  %v6657_v39 = vld [vmem:[#allocation11 + $0x324] ss:$16 sps:$4 sm:$0xff]   ;;  %v6660_v40 = vld [vmem:[#allocation11 + $0x32c] ss:$16 sps:$4 sm:$0xff]  }
 0x392   : > { %2458 = vmatprep.subr.bf16.mxu1 %v6603_v41  ;;  %2540 = vmatprep.subr.bf16.mxu0 %v6606_v42  ;;  %v6655_v41 = vld [vmem:[#allocation11 + $0x320] ss:$16 sps:$4 sm:$0xff]   ;;  %v6658_v42 = vld [vmem:[#allocation11 + $0x328] ss:$16 sps:$4 sm:$0xff]  }
 0x427   : > { %v1571_v48 = vpop.f32.mrb[0].mxu1  ;;  %v8507_v49 = vpop.f32.mrb[4].mxu0 }
 0x428   : > { %v1572_v50 = vadd.f32 %v1571_v48, %v1200_v45  ;;  %v1573_v51 = vpop.f32.mrb[1].mxu1  ;;  %v1614_v52 = vpop.f32.mrb[5].mxu0  ;;  %v6663_v45 = vld [vmem:[#allocation11 + $0x344] ss:$16 sps:$4 sm:$0xff]   ;;  %v6664_v48 = vld [vmem:[#allocation11 + $0x348] ss:$16 sps:$4 sm:$0xff]  }
 0x429   : > { %v1574_v53 = vadd.f32 %v1573_v51, %v1204_v46  ;;  %v1615_v54 = vadd.f32 %v1614_v52, %v1212_v47  ;;  %v1575_v55 = vpop.f32.mrb[2].mxu1  ;;  %v1616_v56 = vpop.f32.mrb[6].mxu0  ;;  %v6666_v46 = vld [vmem:[#allocation11 + $0x34c] ss:$16 sps:$4 sm:$0xff]   ;;  %v6661_v47 = vld [vmem:[#allocation11 + $0x340] ss:$16 sps:$4 sm:$0xff]  }
 0x42a   : > { %v1619_v57 = vmax.f32 %v1572_v50, 0.0  ;;  %v1576_v58 = vpop.f32.mrb[3].mxu1  ;;  %v1617_v59 = vpop.f32.mrb[7].mxu0  ;;  %v6669_v50 = vld [vmem:[#allocation11 + $0x364] ss:$16 sps:$4 sm:$0xff]  }
 0x42b   : > { %v1620_v60 = vmax.f32 %v1574_v53, 0.0  ;;  %v1622_v61 = vmax.f32 %v1615_v54, 0.0  ;;  %v6672_v51 = vld [vmem:[#allocation11 + $0x36c] ss:$16 sps:$4 sm:$0xff]   ;;  %v6667_v52 = vld [vmem:[#allocation11 + $0x360] ss:$16 sps:$4 sm:$0xff]  }
 0x42c   : > { %v1623_v2 = vpack.c.bf16 %v1619_v57, %v1619_v57  ;;  %v6670_v53 = vld [vmem:[#allocation11 + $0x368] ss:$16 sps:$4 sm:$0xff]   ;;  %v6675_v54 = vld [vmem:[#allocation11 + $0x384] ss:$16 sps:$4 sm:$0xff]   ;;  %v6678_v55 = vld [vmem:[#allocation11 + $0x38c] ss:$16 sps:$4 sm:$0xff]  }
 0x42d   : > { %v1624_v62 = vpack.c.bf16 %v1620_v60, %v1620_v60  ;;  %v1626_v5 = vpack.c.bf16 %v1622_v61, %v1622_v61  ;;  %v6673_v56 = vld [vmem:[#allocation11 + $0x380] ss:$16 sps:$4 sm:$0xff]   ;;  %v6676_v57 = vld [vmem:[#allocation11 + $0x388] ss:$16 sps:$4 sm:$0xff]   ;;  %v8510_v58 = vsub.s32 2, %v8486_v23 }
 0x42e   : > { %v6681_v59 = vld [vmem:[#allocation11 + $0x3a4] ss:$16 sps:$4 sm:$0xff]   ;;  %v6684_v60 = vld [vmem:[#allocation11 + $0x3ac] ss:$16 sps:$4 sm:$0xff]   ;;  %v6679_v61 = vld [vmem:[#allocation11 + $0x3a0] ss:$16 sps:$4 sm:$0xff]  }
 0x42f   : > { %2449 = vmatprep.mubr.bf16.mxu1 %v1624_v62  ;;  %2531 = vmatprep.mubr.bf16.mxu0 %v1624_v62  ;;  %v6682_v62 = vld [vmem:[#allocation11 + $0x3a8] ss:$16 sps:$4 sm:$0xff]  }
 0x430   : > { %2450 = vmatmul.mubr.bf16.vlgmr.msra.gmra.mrb[4].mxu1 %v1623_v2  ;;  %2532 = vmatmul.mubr.bf16.vlgmr.msra.gmra.mrb[8].mxu0 %v1623_v2  ;;  %v6690_v2 = vld [vmem:[#allocation11 + $0x3cc] ss:$16 sps:$4 sm:$0xff]   ;;  %v6688_v23 = vld [vmem:[#allocation11 + $0x3c8] ss:$16 sps:$4 sm:$0xff]  }
 0x431   : > { %2459 = vmatpush1.bf16.msra.mxu1 %v6601_v63  ;;  %2541 = vmatpush1.bf16.msra.mxu0 %v6604_v1  ;;  %v1208_v63 = vrot.slane %v8496_v43, %v8510_v58  ;;  %v6687_v1 = vld [vmem:[#allocation11 + $0x3c4] ss:$16 sps:$4 sm:$0xff]  }
 0x432   : > { %2490 = vmatprep.mubr.bf16.mxu1 %v1626_v5  ;;  %2572 = vmatprep.mubr.bf16.mxu0 %v1626_v5  ;;  %v6693_v5 = vld [vmem:[#allocation11 + $0x3e4] ss:$16 sps:$4 sm:$0xff]  }
 0x433   : > { %2460 = vmatprep.subr.bf16.mxu1 %v6609_v3  ;;  %2542 = vmatprep.subr.bf16.mxu0 %v6612_v4  ;;  %v6685_v3 = vld [vmem:[#allocation11 + $0x3c0] ss:$16 sps:$4 sm:$0xff]   ;;  %v1613_v4 = vadd.f32 %v8507_v49, %v1208_v63  ;;  %v6697_v43 = vld [vmem:[#allocation14 + $0x40] sm:$0xff]  }
 0x434   : > { %v6701_v49 = vld [vmem:[#allocation14 + $0x48] sm:$0xff]  }
 0x435   : > { %2461 = vmatpush1.bf16.msra.mxu1 %v6607_v6  ;;  %2543 = vmatpush1.bf16.msra.mxu0 %v6610_v7  ;;  %v6696_v6 = vld [vmem:[#allocation11 + $0x3ec] ss:$16 sps:$4 sm:$0xff]   ;;  %v6691_v7 = vld [vmem:[#allocation11 + $0x3e0] ss:$16 sps:$4 sm:$0xff]  }
 0x436   : > { %2462 = vmatprep.subr.bf16.mxu1 %v6615_v8  ;;  %2544 = vmatprep.subr.bf16.mxu0 %v6618_v9  ;;  %v6694_v8 = vld [vmem:[#allocation11 + $0x3e8] ss:$16 sps:$4 sm:$0xff]   ;;  %v1621_v9 = vmax.f32 %v1613_v4, 0.0 }
 0x439   : > { %2463 = vmatpush1.bf16.msra.mxu1 %v6613_v10  ;;  %2545 = vmatpush1.bf16.msra.mxu0 %v6616_v11  ;;  %v6698_v10 = vld [vmem:[#allocation14 + $0xc0] sm:$0xff]  }
 0x43a   : > { %2464 = vmatprep.subr.bf16.mxu1 %v6621_v12  ;;  %2546 = vmatprep.subr.bf16.mxu0 %v6624_v13  ;;  %v6699_v11 = vld [vmem:[#allocation14] sm:$0xff]   ;;  %v1625_v13 = vpack.c.bf16 %v1621_v9, %v1621_v9 }
 0x43b   : > { %v6700_v12 = vld [vmem:[#allocation14 + $0x80] sm:$0xff]  }
 0x43c   : > { %v6729_v9 = vld [vmem:[#allocation17] ss:$16 sps:$4 sm:$0xff]  }
 0x43d   : > { %2465 = vmatpush1.bf16.msra.mxu1 %v6619_v14  ;;  %2547 = vmatpush1.bf16.msra.mxu0 %v6622_v15  ;;  %v6702_v14 = vld [vmem:[#allocation14 + $0xc8] sm:$0xff]  }
 0x43e   : > { %2466 = vmatprep.subr.bf16.mxu1 %v6627_v16  ;;  %2548 = vmatprep.subr.bf16.mxu0 %v6630_v17  ;;  %v6703_v15 = vld [vmem:[#allocation14 + $0x8] sm:$0xff]   ;;  %v6705_v17 = vld [vmem:[#allocation14 + $0x50] sm:$0xff]  }
 0x43f   : > { %v6704_v16 = vld [vmem:[#allocation14 + $0x88] sm:$0xff]  }
 0x441   : > { %2467 = vmatpush1.bf16.msra.mxu1 %v6625_v18  ;;  %2549 = vmatpush1.bf16.msra.mxu0 %v6628_v19  ;;  %v6706_v18 = vld [vmem:[#allocation14 + $0xd0] sm:$0xff]  }
 0x442   : > { %2468 = vmatprep.subr.bf16.mxu1 %v6633_v20  ;;  %2550 = vmatprep.subr.bf16.mxu0 %v6636_v21  ;;  %v6707_v19 = vld [vmem:[#allocation14 + $0x10] sm:$0xff]   ;;  %v6709_v21 = vld [vmem:[#allocation14 + $0x58] sm:$0xff]  }
 0x443   : > { %v6708_v20 = vld [vmem:[#allocation14 + $0x90] sm:$0xff]  }
 0x445   : > { %2469 = vmatpush1.bf16.msra.mxu1 %v6631_v22  ;;  %2551 = vmatpush1.bf16.msra.mxu0 %v6634_v25  ;;  %v6710_v22 = vld [vmem:[#allocation14 + $0xd8] sm:$0xff]  }
 0x446   : > { %2470 = vmatprep.subr.bf16.mxu1 %v6639_v27  ;;  %2552 = vmatprep.subr.bf16.mxu0 %v6642_v28  ;;  %v6711_v25 = vld [vmem:[#allocation14 + $0x18] sm:$0xff]   ;;  %v6713_v28 = vld [vmem:[#allocation14 + $0x60] sm:$0xff]  }
 0x447   : > { %v6712_v27 = vld [vmem:[#allocation14 + $0x98] sm:$0xff]  }
 0x449   : > { %2471 = vmatpush1.bf16.msra.mxu1 %v6637_v29  ;;  %2553 = vmatpush1.bf16.msra.mxu0 %v6640_v30  ;;  %v6714_v29 = vld [vmem:[#allocation14 + $0xe0] sm:$0xff]  }
 0x44a   : > { %2472 = vmatprep.subr.bf16.mxu1 %v6645_v31  ;;  %2554 = vmatprep.subr.bf16.mxu0 %v6648_v32  ;;  %v6715_v30 = vld [vmem:[#allocation14 + $0x20] sm:$0xff]   ;;  %v6717_v32 = vld [vmem:[#allocation14 + $0x68] sm:$0xff]  }
 0x44b   : > { %v6716_v31 = vld [vmem:[#allocation14 + $0xa0] sm:$0xff]  }
 0x44d   : > { %2473 = vmatpush1.bf16.msra.mxu1 %v6643_v33  ;;  %2555 = vmatpush1.bf16.msra.mxu0 %v6646_v34  ;;  %v6718_v33 = vld [vmem:[#allocation14 + $0xe8] sm:$0xff]  }
 0x44e   : > { %2474 = vmatprep.subr.bf16.mxu1 %v6651_v35  ;;  %2556 = vmatprep.subr.bf16.mxu0 %v6654_v36  ;;  %v6719_v34 = vld [vmem:[#allocation14 + $0x28] sm:$0xff]   ;;  %v6721_v36 = vld [vmem:[#allocation14 + $0x70] sm:$0xff]  }
 0x44f   : > { %v6720_v35 = vld [vmem:[#allocation14 + $0xa8] sm:$0xff]  }
 0x451   : > { %2475 = vmatpush1.bf16.msra.mxu1 %v6649_v37  ;;  %2557 = vmatpush1.bf16.msra.mxu0 %v6652_v38  ;;  %v6722_v37 = vld [vmem:[#allocation14 + $0xf0] sm:$0xff]  }
 0x452   : > { %2476 = vmatprep.subr.bf16.mxu1 %v6657_v39  ;;  %2558 = vmatprep.subr.bf16.mxu0 %v6660_v40  ;;  %v6723_v38 = vld [vmem:[#allocation14 + $0x30] sm:$0xff]   ;;  %v6725_v40 = vld [vmem:[#allocation14 + $0x78] sm:$0xff]  }
 0x453   : > { %v6724_v39 = vld [vmem:[#allocation14 + $0xb0] sm:$0xff]  }
 0x455   : > { %2477 = vmatpush1.bf16.msra.mxu1 %v6655_v41  ;;  %2559 = vmatpush1.bf16.msra.mxu0 %v6658_v42  ;;  %v6726_v41 = vld [vmem:[#allocation14 + $0xf8] sm:$0xff]  }
 0x456   : > { %2478 = vmatprep.subr.bf16.mxu1 %v6663_v45  ;;  %2560 = vmatprep.subr.bf16.mxu0 %v6666_v46  ;;  %v6727_v42 = vld [vmem:[#allocation14 + $0x38] sm:$0xff]  }
 0x457   : > { %v6728_v45 = vld [vmem:[#allocation14 + $0xb8] sm:$0xff]  }
 0x458   : > { %v6731_v46 = vld [vmem:[#allocation17 + $0x4] ss:$16 sps:$4 sm:$0xff]  }
 0x459   : > { %2479 = vmatpush1.bf16.msra.mxu1 %v6661_v47  ;;  %2561 = vmatpush1.bf16.msra.mxu0 %v6664_v48  ;;  %v6734_v47 = vld [vmem:[#allocation17 + $0xc] ss:$16 sps:$4 sm:$0xff]  }
 0x45a   : > { %2480 = vmatprep.subr.bf16.mxu1 %v6669_v50  ;;  %2562 = vmatprep.subr.bf16.mxu0 %v6672_v51  ;;  %v1755_v48 = vld [vmem:[#allocation13] sm:$0xf] }
 0x45b   : > { %v1760_v50 = vrot.slane %v1755_v48, %v8489_v24  ;;  %v1768_v51 = vrot.slane %v1755_v48, %v8510_v58 }
 0x45d   : > { %2481 = vmatpush1.bf16.msra.mxu1 %v6667_v52  ;;  %2563 = vmatpush1.bf16.msra.mxu0 %v6670_v53  ;;  %v1764_v52 = vrot.slane %v1755_v48, %v8492_v26  ;;  %v1772_v53 = vrot.slane %v1755_v48, %v8499_v44 }
 0x45e   : > { %2482 = vmatprep.subr.bf16.mxu1 %v6675_v54  ;;  %2564 = vmatprep.subr.bf16.mxu0 %v6678_v55 }
 0x461   : > { %2483 = vmatpush1.bf16.msra.mxu1 %v6673_v56  ;;  %2565 = vmatpush1.bf16.msra.mxu0 %v6676_v57 }
 0x462   : > { %2484 = vmatprep.subr.bf16.mxu1 %v6681_v59  ;;  %2566 = vmatprep.subr.bf16.mxu0 %v6684_v60 }
 0x465   : > { %2485 = vmatpush1.bf16.msra.mxu1 %v6679_v61  ;;  %2567 = vmatpush1.bf16.msra.mxu0 %v6682_v62 }
 0x466   : > { %2486 = vmatprep.subr.bf16.mxu1 %v6687_v1  ;;  %2568 = vmatprep.subr.bf16.mxu0 %v6690_v2 }
 0x469   : > { %2487 = vmatpush1.bf16.msra.mxu1 %v6685_v3  ;;  %2569 = vmatpush1.bf16.msra.mxu0 %v6688_v23 }
 0x46a   : > { %2488 = vmatprep.subr.bf16.mxu1 %v6693_v5  ;;  %2570 = vmatprep.subr.bf16.mxu0 %v6696_v6 }
 0x46d   : > { %2489 = vmatpush1.bf16.msra.mxu1 %v6691_v7  ;;  %2571 = vmatpush1.bf16.msra.mxu0 %v6694_v8 }
 0x46e   : > { %5995 = vmatprep.subr.bf16.mxu1 %v6697_v43  ;;  %6017 = vmatprep.subr.bf16.mxu0 %v6698_v10  ;;  %v6732_v43 = vld [vmem:[#allocation17 + $0x8] ss:$16 sps:$4 sm:$0xff]  }
 0x470   : > { %2491 = vmatmul.mubr.bf16.vlgmr.msra.gmra.mrb[4].mxu1 %v1625_v13  ;;  %2573 = vmatmul.mubr.bf16.vlgmr.msra.gmra.mrb[8].mxu0 %v1625_v13  ;;  %v6740_v13 = vld [vmem:[#allocation17 + $0x2c] ss:$16 sps:$4 sm:$0xff]  }
 0x471   : > { %5996 = vmatpush3.bf16.msra.mxu1 %v6699_v11  ;;  %6018 = vmatpush3.bf16.msra.mxu0 %v6700_v12  ;;  %v6737_v12 = vld [vmem:[#allocation17 + $0x24] ss:$16 sps:$4 sm:$0xff]  }
 0x472   : > { %5997 = vmatprep.subr.bf16.mxu1 %v6701_v49  ;;  %6019 = vmatprep.subr.bf16.mxu0 %v6702_v14  ;;  %v6735_v49 = vld [vmem:[#allocation17 + $0x20] ss:$16 sps:$4 sm:$0xff]   ;;  %v6738_v14 = vld [vmem:[#allocation17 + $0x28] ss:$16 sps:$4 sm:$0xff]  }
 0x475   : > { %5998 = vmatpush3.bf16.msra.mxu1 %v6703_v15  ;;  %6020 = vmatpush3.bf16.msra.mxu0 %v6704_v16  ;;  %v6743_v15 = vld [vmem:[#allocation17 + $0x44] ss:$16 sps:$4 sm:$0xff]   ;;  %v6746_v16 = vld [vmem:[#allocation17 + $0x4c] ss:$16 sps:$4 sm:$0xff]  }
 0x476   : > { %5999 = vmatprep.subr.bf16.mxu1 %v6705_v17  ;;  %6021 = vmatprep.subr.bf16.mxu0 %v6706_v18  ;;  %v6741_v17 = vld [vmem:[#allocation17 + $0x40] ss:$16 sps:$4 sm:$0xff]   ;;  %v6744_v18 = vld [vmem:[#allocation17 + $0x48] ss:$16 sps:$4 sm:$0xff]  }
 0x479   : > { %6000 = vmatpush3.bf16.msra.mxu1 %v6707_v19  ;;  %6022 = vmatpush3.bf16.msra.mxu0 %v6708_v20  ;;  %v6749_v19 = vld [vmem:[#allocation17 + $0x64] ss:$16 sps:$4 sm:$0xff]   ;;  %v6752_v20 = vld [vmem:[#allocation17 + $0x6c] ss:$16 sps:$4 sm:$0xff]  }
 0x47a   : > { %6001 = vmatprep.subr.bf16.mxu1 %v6709_v21  ;;  %6023 = vmatprep.subr.bf16.mxu0 %v6710_v22  ;;  %v6747_v21 = vld [vmem:[#allocation17 + $0x60] ss:$16 sps:$4 sm:$0xff]   ;;  %v6750_v22 = vld [vmem:[#allocation17 + $0x68] ss:$16 sps:$4 sm:$0xff]  }
 0x47d   : > { %6002 = vmatpush3.bf16.msra.mxu1 %v6711_v25  ;;  %6024 = vmatpush3.bf16.msra.mxu0 %v6712_v27  ;;  %v6755_v25 = vld [vmem:[#allocation17 + $0x84] ss:$16 sps:$4 sm:$0xff]   ;;  %v6758_v27 = vld [vmem:[#allocation17 + $0x8c] ss:$16 sps:$4 sm:$0xff]  }
 0x47e   : > { %6003 = vmatprep.subr.bf16.mxu1 %v6713_v28  ;;  %6025 = vmatprep.subr.bf16.mxu0 %v6714_v29  ;;  %v6753_v28 = vld [vmem:[#allocation17 + $0x80] ss:$16 sps:$4 sm:$0xff]   ;;  %v6761_v29 = vld [vmem:[#allocation17 + $0xa4] ss:$16 sps:$4 sm:$0xff]  }
 0x481   : > { %6004 = vmatpush3.bf16.msra.mxu1 %v6715_v30  ;;  %6026 = vmatpush3.bf16.msra.mxu0 %v6716_v31  ;;  %v6764_v30 = vld [vmem:[#allocation17 + $0xac] ss:$16 sps:$4 sm:$0xff]   ;;  %v6759_v31 = vld [vmem:[#allocation17 + $0xa0] ss:$16 sps:$4 sm:$0xff]  }
 0x482   : > { %6005 = vmatprep.subr.bf16.mxu1 %v6717_v32  ;;  %6027 = vmatprep.subr.bf16.mxu0 %v6718_v33  ;;  %v6762_v32 = vld [vmem:[#allocation17 + $0xa8] ss:$16 sps:$4 sm:$0xff]   ;;  %v6767_v33 = vld [vmem:[#allocation17 + $0xc4] ss:$16 sps:$4 sm:$0xff]  }
 0x485   : > { %6006 = vmatpush3.bf16.msra.mxu1 %v6719_v34  ;;  %6028 = vmatpush3.bf16.msra.mxu0 %v6720_v35  ;;  %v6770_v34 = vld [vmem:[#allocation17 + $0xcc] ss:$16 sps:$4 sm:$0xff]   ;;  %v6765_v35 = vld [vmem:[#allocation17 + $0xc0] ss:$16 sps:$4 sm:$0xff]  }
 0x486   : > { %6007 = vmatprep.subr.bf16.mxu1 %v6721_v36  ;;  %6029 = vmatprep.subr.bf16.mxu0 %v6722_v37  ;;  %v6768_v36 = vld [vmem:[#allocation17 + $0xc8] ss:$16 sps:$4 sm:$0xff]   ;;  %v6773_v37 = vld [vmem:[#allocation17 + $0xe4] ss:$16 sps:$4 sm:$0xff]  }
 0x489   : > { %6008 = vmatpush3.bf16.msra.mxu1 %v6723_v38  ;;  %6030 = vmatpush3.bf16.msra.mxu0 %v6724_v39  ;;  %v6776_v38 = vld [vmem:[#allocation17 + $0xec] ss:$16 sps:$4 sm:$0xff]   ;;  %v6771_v39 = vld [vmem:[#allocation17 + $0xe0] ss:$16 sps:$4 sm:$0xff]  }
 0x48a   : > { %6009 = vmatprep.subr.bf16.mxu1 %v6725_v40  ;;  %6031 = vmatprep.subr.bf16.mxu0 %v6726_v41  ;;  %v6774_v40 = vld [vmem:[#allocation17 + $0xe8] ss:$16 sps:$4 sm:$0xff]  }
 0x48b   : > { %v6779_v41 = vld [vmem:[#allocation20 + $0x4] ss:$16 sps:$4 sm:$0xff]  }
 0x48d   : > { %6010 = vmatpush3.bf16.msra.mxu1 %v6727_v42  ;;  %6032 = vmatpush3.bf16.msra.mxu0 %v6728_v45  ;;  %v6782_v42 = vld [vmem:[#allocation20 + $0xc] ss:$16 sps:$4 sm:$0xff]  }
 0x48e   : > { %3148 = vmatprep.subr.bf16.mxu1 %v6731_v46  ;;  %3189 = vmatprep.subr.bf16.mxu0 %v6734_v47  ;;  %v5695_v47 = vld [vmem:[#allocation16] ss:$0 sm:$0xff] }
 0x543   : > { %v2492_v54 = vpop.f32.mrb[4].mxu1  ;;  %v2574_v55 = vpop.f32.mrb[8].mxu0 }
 0x544   : > { %v6119_v56 = vadd.f32 %v2492_v54, %v1760_v50  ;;  %v6121_v57 = vadd.f32 %v2574_v55, %v1768_v51  ;;  %v2494_v59 = vpop.f32.mrb[5].mxu1  ;;  %v2576_v60 = vpop.f32.mrb[9].mxu0 }
 0x545   : > { %v6120_v61 = vadd.f32 %v2494_v59, %v1764_v52  ;;  %v6122_v62 = vadd.f32 %v2576_v60, %v1772_v53  ;;  %v2496_v63 = vpop.f32.mrb[6].mxu1  ;;  %v2578_v1 = vpop.f32.mrb[10].mxu0  ;;  %v6777_v60 = vld [vmem:[#allocation20] ss:$16 sps:$4 sm:$0xff]  }
 0x546   : > { %v2581_v2 = vmax.f32 %v6119_v56, 0.0  ;;  %v2583_v3 = vmax.f32 %v6121_v57, 0.0  ;;  %v2497_v23 = vpop.f32.mrb[7].mxu1  ;;  %v2579_v4 = vpop.f32.mrb[11].mxu0  ;;  %v6785_v63 = vld [vmem:[#allocation20 + $0x24] ss:$16 sps:$4 sm:$0xff]  }
 0x547   : > { %v2582_v5 = vmax.f32 %v6120_v61, 0.0  ;;  %v2584_v6 = vmax.f32 %v6122_v62, 0.0  ;;  %v6780_v61 = vld [vmem:[#allocation20 + $0x8] ss:$16 sps:$4 sm:$0xff]   ;;  %v6788_v1 = vld [vmem:[#allocation20 + $0x2c] ss:$16 sps:$4 sm:$0xff]  }
 0x548   : > { %v2585_v10 = vpack.c.bf16 %v2581_v2, %v2581_v2  ;;  %v2587_v11 = vpack.c.bf16 %v2583_v3, %v2583_v3  ;;  %v6783_v2 = vld [vmem:[#allocation20 + $0x20] ss:$16 sps:$4 sm:$0xff]   ;;  %v6786_v3 = vld [vmem:[#allocation20 + $0x28] ss:$16 sps:$4 sm:$0xff]   ;;  %v6791_v23 = vld [vmem:[#allocation20 + $0x44] ss:$16 sps:$4 sm:$0xff]  }
 0x549   : > { %v2586_v7 = vpack.c.bf16 %v2582_v5, %v2582_v5  ;;  %v2588_v8 = vpack.c.bf16 %v2584_v6, %v2584_v6  ;;  %v6794_v4 = vld [vmem:[#allocation20 + $0x4c] ss:$16 sps:$4 sm:$0xff]   ;;  %v6789_v5 = vld [vmem:[#allocation20 + $0x40] ss:$16 sps:$4 sm:$0xff]   ;;  %v6792_v6 = vld [vmem:[#allocation20 + $0x48] ss:$16 sps:$4 sm:$0xff]  }
 0x54b   : > { %2884 = vmatprep.mubr.bf16.mxu1 %v2586_v7  ;;  %2924 = vmatprep.mubr.bf16.mxu0 %v2588_v8  ;;  %v6797_v7 = vld [vmem:[#allocation20 + $0x64] ss:$16 sps:$4 sm:$0xff]   ;;  %v6800_v8 = vld [vmem:[#allocation20 + $0x6c] ss:$16 sps:$4 sm:$0xff]  }
 0x54c   : > { %2885 = vmatmul.mubr.bf16.vlgmr.msra.gmra.mrb[8].mxu1 %v2585_v10  ;;  %2925 = vmatmul.mubr.bf16.vlgmr.msra.gmra.mrb[12].mxu0 %v2587_v11  ;;  %v6803_v10 = vld [vmem:[#allocation20 + $0x84] ss:$16 sps:$4 sm:$0xff]   ;;  %v6806_v11 = vld [vmem:[#allocation20 + $0x8c] ss:$16 sps:$4 sm:$0xff]  }
 0x54d   : > { %3149 = vmatpush1.bf16.msra.mxu1 %v6729_v9  ;;  %3190 = vmatpush1.bf16.msra.mxu0 %v6732_v43  ;;  %v6795_v9 = vld [vmem:[#allocation20 + $0x60] ss:$16 sps:$4 sm:$0xff]   ;;  %v6798_v43 = vld [vmem:[#allocation20 + $0x68] ss:$16 sps:$4 sm:$0xff]  }
 0x54e   : > { %3150 = vmatprep.subr.bf16.mxu1 %v6737_v12  ;;  %3191 = vmatprep.subr.bf16.mxu0 %v6740_v13  ;;  %v6801_v12 = vld [vmem:[#allocation20 + $0x80] ss:$16 sps:$4 sm:$0xff]   ;;  %v6804_v13 = vld [vmem:[#allocation20 + $0x88] ss:$16 sps:$4 sm:$0xff]  }
 0x54f   : > { %3180 = vmatprep.mubr.bf16.mxu1 %v7797_v0  ;;  %3221 = vmatprep.mubr.bf16.mxu0 %v7797_v0  ;;  %v6756_v0 = vld [vmem:[#allocation17 + $0x88] ss:$16 sps:$4 sm:$0xff]  }
 0x551   : > { %3151 = vmatpush1.bf16.msra.mxu1 %v6735_v49  ;;  %3192 = vmatpush1.bf16.msra.mxu0 %v6738_v14  ;;  %v6809_v49 = vld [vmem:[#allocation20 + $0xa4] ss:$16 sps:$4 sm:$0xff]   ;;  %v6812_v14 = vld [vmem:[#allocation20 + $0xac] ss:$16 sps:$4 sm:$0xff]  }
 0x552   : > { %3152 = vmatprep.subr.bf16.mxu1 %v6743_v15  ;;  %3193 = vmatprep.subr.bf16.mxu0 %v6746_v16  ;;  %v6807_v15 = vld [vmem:[#allocation20 + $0xa0] ss:$16 sps:$4 sm:$0xff]   ;;  %v6810_v16 = vld [vmem:[#allocation20 + $0xa8] ss:$16 sps:$4 sm:$0xff]  }
 0x555   : > { %3153 = vmatpush1.bf16.msra.mxu1 %v6741_v17  ;;  %3194 = vmatpush1.bf16.msra.mxu0 %v6744_v18  ;;  %v6815_v17 = vld [vmem:[#allocation20 + $0xc4] ss:$16 sps:$4 sm:$0xff]   ;;  %v6818_v18 = vld [vmem:[#allocation20 + $0xcc] ss:$16 sps:$4 sm:$0xff]  }
 0x556   : > { %3154 = vmatprep.subr.bf16.mxu1 %v6749_v19  ;;  %3195 = vmatprep.subr.bf16.mxu0 %v6752_v20  ;;  %v6813_v19 = vld [vmem:[#allocation20 + $0xc0] ss:$16 sps:$4 sm:$0xff]   ;;  %v6816_v20 = vld [vmem:[#allocation20 + $0xc8] ss:$16 sps:$4 sm:$0xff]  }
 0x559   : > { %3155 = vmatpush1.bf16.msra.mxu1 %v6747_v21  ;;  %3196 = vmatpush1.bf16.msra.mxu0 %v6750_v22  ;;  %v6821_v21 = vld [vmem:[#allocation20 + $0xe4] ss:$16 sps:$4 sm:$0xff]   ;;  %v6824_v22 = vld [vmem:[#allocation20 + $0xec] ss:$16 sps:$4 sm:$0xff]  }
 0x55a   : > { %3156 = vmatprep.subr.bf16.mxu1 %v6755_v25  ;;  %3197 = vmatprep.subr.bf16.mxu0 %v6758_v27  ;;  %v6819_v25 = vld [vmem:[#allocation20 + $0xe0] ss:$16 sps:$4 sm:$0xff]   ;;  %v6822_v27 = vld [vmem:[#allocation20 + $0xe8] ss:$16 sps:$4 sm:$0xff]  }
 0x55d   : > { %3157 = vmatpush1.bf16.msra.mxu1 %v6753_v28  ;;  %3198 = vmatpush1.bf16.msra.mxu0 %v6756_v0  ;;  %v6827_v28 = vld [vmem:[#allocation20 + $0x104] ss:$16 sps:$4 sm:$0xff]   ;;  %v6830_v0 = vld [vmem:[#allocation20 + $0x10c] ss:$16 sps:$4 sm:$0xff]  }
 0x55e   : > { %3158 = vmatprep.subr.bf16.mxu1 %v6761_v29  ;;  %3199 = vmatprep.subr.bf16.mxu0 %v6764_v30  ;;  %v6825_v29 = vld [vmem:[#allocation20 + $0x100] ss:$16 sps:$4 sm:$0xff]   ;;  %v6828_v30 = vld [vmem:[#allocation20 + $0x108] ss:$16 sps:$4 sm:$0xff]  }
 0x561   : > { %3159 = vmatpush1.bf16.msra.mxu1 %v6759_v31  ;;  %3200 = vmatpush1.bf16.msra.mxu0 %v6762_v32  ;;  %v6833_v31 = vld [vmem:[#allocation20 + $0x124] ss:$16 sps:$4 sm:$0xff]   ;;  %v6836_v32 = vld [vmem:[#allocation20 + $0x12c] ss:$16 sps:$4 sm:$0xff]  }
 0x562   : > { %3160 = vmatprep.subr.bf16.mxu1 %v6767_v33  ;;  %3201 = vmatprep.subr.bf16.mxu0 %v6770_v34  ;;  %v6831_v33 = vld [vmem:[#allocation20 + $0x120] ss:$16 sps:$4 sm:$0xff]   ;;  %v6834_v34 = vld [vmem:[#allocation20 + $0x128] ss:$16 sps:$4 sm:$0xff]  }
 0x565   : > { %3161 = vmatpush1.bf16.msra.mxu1 %v6765_v35  ;;  %3202 = vmatpush1.bf16.msra.mxu0 %v6768_v36  ;;  %v6839_v35 = vld [vmem:[#allocation20 + $0x144] ss:$16 sps:$4 sm:$0xff]   ;;  %v6842_v36 = vld [vmem:[#allocation20 + $0x14c] ss:$16 sps:$4 sm:$0xff]  }
 0x566   : > { %3162 = vmatprep.subr.bf16.mxu1 %v6773_v37  ;;  %3203 = vmatprep.subr.bf16.mxu0 %v6776_v38  ;;  %v6837_v37 = vld [vmem:[#allocation20 + $0x140] ss:$16 sps:$4 sm:$0xff]   ;;  %v6840_v38 = vld [vmem:[#allocation20 + $0x148] ss:$16 sps:$4 sm:$0xff]  }
 0x569   : > { %3163 = vmatpush1.bf16.msra.mxu1 %v6771_v39  ;;  %3204 = vmatpush1.bf16.msra.mxu0 %v6774_v40  ;;  %v6845_v39 = vld [vmem:[#allocation20 + $0x164] ss:$16 sps:$4 sm:$0xff]   ;;  %v6848_v40 = vld [vmem:[#allocation20 + $0x16c] ss:$16 sps:$4 sm:$0xff]  }
 0x56a   : > { %4028 = vmatprep.subr.bf16.mxu1 %v6779_v41  ;;  %4110 = vmatprep.subr.bf16.mxu0 %v6782_v42  ;;  %v6843_v41 = vld [vmem:[#allocation20 + $0x160] ss:$16 sps:$4 sm:$0xff]   ;;  %v6846_v42 = vld [vmem:[#allocation20 + $0x168] ss:$16 sps:$4 sm:$0xff]  }
 0x61f   : > { %v6011_v45 = vpop.f32.mrb[8].mxu1  ;;  %v6033_v46 = vpop.f32.mrb[12].mxu0 }
 0x620   : > { %v6012_v48 = vpop.f32.mrb[9].mxu1  ;;  %v6034_v50 = vpop.f32.mrb[13].mxu0 }
 0x621   : > { %v6013_v51 = vadd.f32 %v6012_v48, %v6011_v45  ;;  %v6035_v52 = vadd.f32 %v6034_v50, %v6033_v46  ;;  %v6014_v53 = vpop.f32.mrb[10].mxu1  ;;  %v6036_v54 = vpop.f32.mrb[14].mxu0  ;;  %v6851_v45 = vld [vmem:[#allocation20 + $0x184] ss:$16 sps:$4 sm:$0xff]   ;;  %v6854_v46 = vld [vmem:[#allocation20 + $0x18c] ss:$16 sps:$4 sm:$0xff]  }
 0x622   : > { %v6015_v55 = vpop.f32.mrb[11].mxu1  ;;  %v6037_v56 = vpop.f32.mrb[15].mxu0  ;;  %v6852_v48 = vld [vmem:[#allocation20 + $0x188] ss:$16 sps:$4 sm:$0xff]   ;;  %v6857_v50 = vld [vmem:[#allocation20 + $0x1a4] ss:$16 sps:$4 sm:$0xff]  }
 0x623   : > { %v2887_v57 = vadd.f32 %v6013_v51, %v5695_v47  ;;  %v6849_v47 = vld [vmem:[#allocation20 + $0x180] ss:$16 sps:$4 sm:$0xff]   ;;  %v6860_v51 = vld [vmem:[#allocation20 + $0x1ac] ss:$16 sps:$4 sm:$0xff]   ;;  %v6858_v53 = vld [vmem:[#allocation20 + $0x1a8] ss:$16 sps:$4 sm:$0xff]  }
 0x624   : > { %v6863_v54 = vld [vmem:[#allocation20 + $0x1c4] ss:$16 sps:$4 sm:$0xff]   ;;  %v6866_v55 = vld [vmem:[#allocation20 + $0x1cc] ss:$16 sps:$4 sm:$0xff]   ;;  %v6861_v56 = vld [vmem:[#allocation20 + $0x1c0] ss:$16 sps:$4 sm:$0xff]  }
 0x625   : > { %v2927_v59 = vadd.f32 %v6035_v52, %v2887_v57  ;;  %v6855_v52 = vld [vmem:[#allocation20 + $0x1a0] ss:$16 sps:$4 sm:$0xff]   ;;  %v6864_v57 = vld [vmem:[#allocation20 + $0x1c8] ss:$16 sps:$4 sm:$0xff]  }
 0x627   : > { %v8521_v62 = vpack.c.bf16 %v2927_v59, %v2927_v59  ;;  %2932 = vst [vmem:[%s967_s29] sm:$0xff] %v2927_v59  ;;  %v6869_v59 = vld [vmem:[#allocation20 + $0x1e4] ss:$16 sps:$4 sm:$0xff]  }
 0x629   : > { %3181 = vmatmul.mubr.bf16.vlgmr.msra.gmra.mrb[12].mxu1 %v8521_v62  ;;  %3222 = vmatmul.mubr.bf16.vlgmr.msra.gmra.mrb[16].mxu0 %v8521_v62 }
 0x62a   : > { %4029 = vmatpush1.bf16.msra.mxu1 %v6777_v60  ;;  %4111 = vmatpush1.bf16.msra.mxu0 %v6780_v61  ;;  %v6872_v60 = vld [vmem:[#allocation20 + $0x1ec] ss:$16 sps:$4 sm:$0xff]   ;;  %v6867_v61 = vld [vmem:[#allocation20 + $0x1e0] ss:$16 sps:$4 sm:$0xff]  }
 0x62b   : > { %4030 = vmatprep.subr.bf16.mxu1 %v6785_v63  ;;  %4112 = vmatprep.subr.bf16.mxu0 %v6788_v1  ;;  %v6870_v63 = vld [vmem:[#allocation20 + $0x1e8] ss:$16 sps:$4 sm:$0xff]   ;;  %v6875_v1 = vld [vmem:[#allocation20 + $0x204] ss:$16 sps:$4 sm:$0xff]  }
 0x62e   : > { %4031 = vmatpush1.bf16.msra.mxu1 %v6783_v2  ;;  %4113 = vmatpush1.bf16.msra.mxu0 %v6786_v3  ;;  %v6878_v2 = vld [vmem:[#allocation20 + $0x20c] ss:$16 sps:$4 sm:$0xff]  }
 0x62f   : > { %4032 = vmatprep.subr.bf16.mxu1 %v6791_v23  ;;  %4114 = vmatprep.subr.bf16.mxu0 %v6794_v4  ;;  %v8528_v3 = vld [vmem:[#allocation19] sm:$0xf] }
 0x630   : > { %v2971_v23 = vrot.slane %v8528_v3, %v8489_v24  ;;  %v2975_v4 = vrot.slane %v8528_v3, %v8492_v26 }
 0x632   : > { %4033 = vmatpush1.bf16.msra.mxu1 %v6789_v5  ;;  %4115 = vmatpush1.bf16.msra.mxu0 %v6792_v6  ;;  %v2983_v5 = vrot.slane %v8528_v3, %v8499_v44 }
 0x633   : > { %4034 = vmatprep.subr.bf16.mxu1 %v6797_v7  ;;  %4116 = vmatprep.subr.bf16.mxu0 %v6800_v8 }
 0x636   : > { %4035 = vmatpush1.bf16.msra.mxu1 %v6795_v9  ;;  %4117 = vmatpush1.bf16.msra.mxu0 %v6798_v43 }
 0x637   : > { %4036 = vmatprep.subr.bf16.mxu1 %v6803_v10  ;;  %4118 = vmatprep.subr.bf16.mxu0 %v6806_v11 }
 0x63a   : > { %4037 = vmatpush1.bf16.msra.mxu1 %v6801_v12  ;;  %4119 = vmatpush1.bf16.msra.mxu0 %v6804_v13 }
 0x63b   : > { %4038 = vmatprep.subr.bf16.mxu1 %v6809_v49  ;;  %4120 = vmatprep.subr.bf16.mxu0 %v6812_v14 }
 0x63e   : > { %4039 = vmatpush1.bf16.msra.mxu1 %v6807_v15  ;;  %4121 = vmatpush1.bf16.msra.mxu0 %v6810_v16 }
 0x63f   : > { %4040 = vmatprep.subr.bf16.mxu1 %v6815_v17  ;;  %4122 = vmatprep.subr.bf16.mxu0 %v6818_v18 }
 0x642   : > { %4041 = vmatpush1.bf16.msra.mxu1 %v6813_v19  ;;  %4123 = vmatpush1.bf16.msra.mxu0 %v6816_v20  ;;  %v6873_v19 = vld [vmem:[#allocation20 + $0x200] ss:$16 sps:$4 sm:$0xff]   ;;  %v6876_v20 = vld [vmem:[#allocation20 + $0x208] ss:$16 sps:$4 sm:$0xff]  }
 0x643   : > { %4042 = vmatprep.subr.bf16.mxu1 %v6821_v21  ;;  %4124 = vmatprep.subr.bf16.mxu0 %v6824_v22  ;;  %v6881_v22 = vld [vmem:[#allocation20 + $0x224] ss:$16 sps:$4 sm:$0xff]  }
 0x646   : > { %4043 = vmatpush1.bf16.msra.mxu1 %v6819_v25  ;;  %4125 = vmatpush1.bf16.msra.mxu0 %v6822_v27  ;;  %v6884_v25 = vld [vmem:[#allocation20 + $0x22c] ss:$16 sps:$4 sm:$0xff]  }
 0x647   : > { %4044 = vmatprep.subr.bf16.mxu1 %v6827_v28  ;;  %4126 = vmatprep.subr.bf16.mxu0 %v6830_v0  ;;  %v6879_v28 = vld [vmem:[#allocation20 + $0x220] ss:$16 sps:$4 sm:$0xff]   ;;  %v6882_v0 = vld [vmem:[#allocation20 + $0x228] ss:$16 sps:$4 sm:$0xff]  }
 0x64a   : > { %4045 = vmatpush1.bf16.msra.mxu1 %v6825_v29  ;;  %4127 = vmatpush1.bf16.msra.mxu0 %v6828_v30  ;;  %v6887_v29 = vld [vmem:[#allocation20 + $0x244] ss:$16 sps:$4 sm:$0xff]   ;;  %v6890_v30 = vld [vmem:[#allocation20 + $0x24c] ss:$16 sps:$4 sm:$0xff]  }
 0x64b   : > { %4046 = vmatprep.subr.bf16.mxu1 %v6833_v31  ;;  %4128 = vmatprep.subr.bf16.mxu0 %v6836_v32  ;;  %v6885_v31 = vld [vmem:[#allocation20 + $0x240] ss:$16 sps:$4 sm:$0xff]   ;;  %v6888_v32 = vld [vmem:[#allocation20 + $0x248] ss:$16 sps:$4 sm:$0xff]  }
 0x64e   : > { %4047 = vmatpush1.bf16.msra.mxu1 %v6831_v33  ;;  %4129 = vmatpush1.bf16.msra.mxu0 %v6834_v34  ;;  %v6893_v33 = vld [vmem:[#allocation20 + $0x264] ss:$16 sps:$4 sm:$0xff]   ;;  %v6896_v34 = vld [vmem:[#allocation20 + $0x26c] ss:$16 sps:$4 sm:$0xff]  }
 0x64f   : > { %4048 = vmatprep.subr.bf16.mxu1 %v6839_v35  ;;  %4130 = vmatprep.subr.bf16.mxu0 %v6842_v36  ;;  %v6891_v35 = vld [vmem:[#allocation20 + $0x260] ss:$16 sps:$4 sm:$0xff]   ;;  %v6894_v36 = vld [vmem:[#allocation20 + $0x268] ss:$16 sps:$4 sm:$0xff]  }
 0x652   : > { %4049 = vmatpush1.bf16.msra.mxu1 %v6837_v37  ;;  %4131 = vmatpush1.bf16.msra.mxu0 %v6840_v38  ;;  %v6899_v37 = vld [vmem:[#allocation20 + $0x284] ss:$16 sps:$4 sm:$0xff]   ;;  %v6902_v38 = vld [vmem:[#allocation20 + $0x28c] ss:$16 sps:$4 sm:$0xff]  }
 0x653   : > { %4050 = vmatprep.subr.bf16.mxu1 %v6845_v39  ;;  %4132 = vmatprep.subr.bf16.mxu0 %v6848_v40  ;;  %v6897_v39 = vld [vmem:[#allocation20 + $0x280] ss:$16 sps:$4 sm:$0xff]   ;;  %v6900_v40 = vld [vmem:[#allocation20 + $0x288] ss:$16 sps:$4 sm:$0xff]  }
 0x656   : > { %4051 = vmatpush1.bf16.msra.mxu1 %v6843_v41  ;;  %4133 = vmatpush1.bf16.msra.mxu0 %v6846_v42  ;;  %v6905_v41 = vld [vmem:[#allocation20 + $0x2a4] ss:$16 sps:$4 sm:$0xff]   ;;  %v6908_v42 = vld [vmem:[#allocation20 + $0x2ac] ss:$16 sps:$4 sm:$0xff]  }
 0x657   : > { %4052 = vmatprep.subr.bf16.mxu1 %v6851_v45  ;;  %4134 = vmatprep.subr.bf16.mxu0 %v6854_v46  ;;  %v6903_v45 = vld [vmem:[#allocation20 + $0x2a0] ss:$16 sps:$4 sm:$0xff]   ;;  %v6906_v46 = vld [vmem:[#allocation20 + $0x2a8] ss:$16 sps:$4 sm:$0xff]  }
 0x65a   : > { %4053 = vmatpush1.bf16.msra.mxu1 %v6849_v47  ;;  %4135 = vmatpush1.bf16.msra.mxu0 %v6852_v48  ;;  %v6911_v47 = vld [vmem:[#allocation20 + $0x2c4] ss:$16 sps:$4 sm:$0xff]   ;;  %v6914_v48 = vld [vmem:[#allocation20 + $0x2cc] ss:$16 sps:$4 sm:$0xff]  }
 0x65b   : > { %4054 = vmatprep.subr.bf16.mxu1 %v6857_v50  ;;  %4136 = vmatprep.subr.bf16.mxu0 %v6860_v51  ;;  %v6909_v50 = vld [vmem:[#allocation20 + $0x2c0] ss:$16 sps:$4 sm:$0xff]   ;;  %v6912_v51 = vld [vmem:[#allocation20 + $0x2c8] ss:$16 sps:$4 sm:$0xff]  }
 0x65e   : > { %4055 = vmatpush1.bf16.msra.mxu1 %v6855_v52  ;;  %4137 = vmatpush1.bf16.msra.mxu0 %v6858_v53  ;;  %v6917_v52 = vld [vmem:[#allocation20 + $0x2e4] ss:$16 sps:$4 sm:$0xff]   ;;  %v6920_v53 = vld [vmem:[#allocation20 + $0x2ec] ss:$16 sps:$4 sm:$0xff]  }
 0x65f   : > { %4056 = vmatprep.subr.bf16.mxu1 %v6863_v54  ;;  %4138 = vmatprep.subr.bf16.mxu0 %v6866_v55  ;;  %v6915_v54 = vld [vmem:[#allocation20 + $0x2e0] ss:$16 sps:$4 sm:$0xff]   ;;  %v6918_v55 = vld [vmem:[#allocation20 + $0x2e8] ss:$16 sps:$4 sm:$0xff]  }
 0x662   : > { %4057 = vmatpush1.bf16.msra.mxu1 %v6861_v56  ;;  %4139 = vmatpush1.bf16.msra.mxu0 %v6864_v57  ;;  %v6923_v56 = vld [vmem:[#allocation20 + $0x304] ss:$16 sps:$4 sm:$0xff]   ;;  %v6926_v57 = vld [vmem:[#allocation20 + $0x30c] ss:$16 sps:$4 sm:$0xff]  }
 0x663   : > { %4058 = vmatprep.subr.bf16.mxu1 %v6869_v59  ;;  %4140 = vmatprep.subr.bf16.mxu0 %v6872_v60  ;;  %v6921_v59 = vld [vmem:[#allocation20 + $0x300] ss:$16 sps:$4 sm:$0xff]   ;;  %v6924_v60 = vld [vmem:[#allocation20 + $0x308] ss:$16 sps:$4 sm:$0xff]  }
 0x666   : > { %4059 = vmatpush1.bf16.msra.mxu1 %v6867_v61  ;;  %4141 = vmatpush1.bf16.msra.mxu0 %v6870_v63  ;;  %v6929_v61 = vld [vmem:[#allocation20 + $0x324] ss:$16 sps:$4 sm:$0xff]   ;;  %v6932_v63 = vld [vmem:[#allocation20 + $0x32c] ss:$16 sps:$4 sm:$0xff]  }
 0x667   : > { %4069 = vmatprep.subr.bf16.mxu1 %v6875_v1  ;;  %4151 = vmatprep.subr.bf16.mxu0 %v6878_v2  ;;  %v6927_v1 = vld [vmem:[#allocation20 + $0x320] ss:$16 sps:$4 sm:$0xff]   ;;  %v6930_v2 = vld [vmem:[#allocation20 + $0x328] ss:$16 sps:$4 sm:$0xff]  }
 0x6fc   : > { %v3182_v6 = vpop.f32.mrb[12].mxu1  ;;  %v8536_v7 = vpop.f32.mrb[16].mxu0 }
 0x6fd   : > { %v3183_v8 = vadd.f32 %v3182_v6, %v2971_v23  ;;  %v3184_v9 = vpop.f32.mrb[13].mxu1  ;;  %v3225_v43 = vpop.f32.mrb[17].mxu0  ;;  %v6935_v23 = vld [vmem:[#allocation20 + $0x344] ss:$16 sps:$4 sm:$0xff]   ;;  %v6936_v6 = vld [vmem:[#allocation20 + $0x348] ss:$16 sps:$4 sm:$0xff]  }
 0x6fe   : > { %v3185_v10 = vadd.f32 %v3184_v9, %v2975_v4  ;;  %v3226_v11 = vadd.f32 %v3225_v43, %v2983_v5  ;;  %v3186_v12 = vpop.f32.mrb[14].mxu1  ;;  %v3227_v13 = vpop.f32.mrb[18].mxu0  ;;  %v6938_v4 = vld [vmem:[#allocation20 + $0x34c] ss:$16 sps:$4 sm:$0xff]   ;;  %v6933_v5 = vld [vmem:[#allocation20 + $0x340] ss:$16 sps:$4 sm:$0xff]  }
 0x6ff   : > { %v3230_v49 = vmax.f32 %v3183_v8, 0.0  ;;  %v3187_v14 = vpop.f32.mrb[15].mxu1  ;;  %v3228_v15 = vpop.f32.mrb[19].mxu0  ;;  %v6941_v8 = vld [vmem:[#allocation20 + $0x364] ss:$16 sps:$4 sm:$0xff]  }
 0x700   : > { %v3231_v16 = vmax.f32 %v3185_v10, 0.0  ;;  %v3233_v17 = vmax.f32 %v3226_v11, 0.0  ;;  %v6944_v9 = vld [vmem:[#allocation20 + $0x36c] ss:$16 sps:$4 sm:$0xff]   ;;  %v6939_v43 = vld [vmem:[#allocation20 + $0x360] ss:$16 sps:$4 sm:$0xff]  }
 0x701   : > { %v3234_v21 = vpack.c.bf16 %v3230_v49, %v3230_v49  ;;  %v6942_v10 = vld [vmem:[#allocation20 + $0x368] ss:$16 sps:$4 sm:$0xff]   ;;  %v6947_v11 = vld [vmem:[#allocation20 + $0x384] ss:$16 sps:$4 sm:$0xff]   ;;  %v6950_v12 = vld [vmem:[#allocation20 + $0x38c] ss:$16 sps:$4 sm:$0xff]  }
 0x702   : > { %v3235_v18 = vpack.c.bf16 %v3231_v16, %v3231_v16  ;;  %v3237_v27 = vpack.c.bf16 %v3233_v17, %v3233_v17  ;;  %v6945_v13 = vld [vmem:[#allocation20 + $0x380] ss:$16 sps:$4 sm:$0xff]   ;;  %v6948_v49 = vld [vmem:[#allocation20 + $0x388] ss:$16 sps:$4 sm:$0xff]   ;;  %v6953_v14 = vld [vmem:[#allocation20 + $0x3a4] ss:$16 sps:$4 sm:$0xff]  }
 0x703   : > { %v6956_v15 = vld [vmem:[#allocation20 + $0x3ac] ss:$16 sps:$4 sm:$0xff]   ;;  %v6951_v16 = vld [vmem:[#allocation20 + $0x3a0] ss:$16 sps:$4 sm:$0xff]   ;;  %v6954_v17 = vld [vmem:[#allocation20 + $0x3a8] ss:$16 sps:$4 sm:$0xff]  }
 0x704   : > { %4060 = vmatprep.mubr.bf16.mxu1 %v3235_v18  ;;  %4142 = vmatprep.mubr.bf16.mxu0 %v3235_v18  ;;  %v2979_v18 = vrot.slane %v8528_v3, %v8510_v58  ;;  %v6971_v3 = vld [vmem:[#allocation23 + $0x4] ss:$8 sps:$4 sm:$0xff]  }
 0x705   : > { %4061 = vmatmul.mubr.bf16.vlgmr.msra.gmra.mrb[16].mxu1 %v3234_v21  ;;  %4143 = vmatmul.mubr.bf16.vlgmr.msra.gmra.mrb[20].mxu0 %v3234_v21  ;;  %v6957_v21 = vld [vmem:[#allocation20 + $0x3c0] ss:$16 sps:$4 sm:$0xff]  }
 0x706   : > { %4070 = vmatpush1.bf16.msra.mxu1 %v6873_v19  ;;  %4152 = vmatpush1.bf16.msra.mxu0 %v6876_v20  ;;  %v6959_v19 = vld [vmem:[#allocation20 + $0x3c4] ss:$16 sps:$4 sm:$0xff]   ;;  %v6962_v20 = vld [vmem:[#allocation20 + $0x3cc] ss:$16 sps:$4 sm:$0xff]  }
 0x707   : > { %4101 = vmatprep.mubr.bf16.mxu1 %v3237_v27  ;;  %4183 = vmatprep.mubr.bf16.mxu0 %v3237_v27  ;;  %v6965_v27 = vld [vmem:[#allocation20 + $0x3e4] ss:$16 sps:$4 sm:$0xff]  }
 0x708   : > { %4071 = vmatprep.subr.bf16.mxu1 %v6881_v22  ;;  %4153 = vmatprep.subr.bf16.mxu0 %v6884_v25  ;;  %v6960_v22 = vld [vmem:[#allocation20 + $0x3c8] ss:$16 sps:$4 sm:$0xff]   ;;  %v3224_v25 = vadd.f32 %v8536_v7, %v2979_v18  ;;  %v6972_v7 = vld [vmem:[#allocation23 + $0x10] ss:$8 sps:$4 sm:$0xff]  }
 0x70a   : > { %4072 = vmatpush1.bf16.msra.mxu1 %v6879_v28  ;;  %4154 = vmatpush1.bf16.msra.mxu0 %v6882_v0  ;;  %v6968_v28 = vld [vmem:[#allocation20 + $0x3ec] ss:$16 sps:$4 sm:$0xff]   ;;  %v6963_v0 = vld [vmem:[#allocation20 + $0x3e0] ss:$16 sps:$4 sm:$0xff]  }
 0x70b   : > { %4073 = vmatprep.subr.bf16.mxu1 %v6887_v29  ;;  %4155 = vmatprep.subr.bf16.mxu0 %v6890_v30  ;;  %v6966_v29 = vld [vmem:[#allocation20 + $0x3e8] ss:$16 sps:$4 sm:$0xff]   ;;  %v3232_v30 = vmax.f32 %v3224_v25, 0.0 }
 0x70e   : > { %4074 = vmatpush1.bf16.msra.mxu1 %v6885_v31  ;;  %4156 = vmatpush1.bf16.msra.mxu0 %v6888_v32  ;;  %v6969_v31 = vld [vmem:[#allocation23] ss:$8 sps:$4 sm:$0xff]   ;;  %v3236_v32 = vpack.c.bf16 %v3232_v30, %v3232_v30 }
 0x70f   : > { %4075 = vmatprep.subr.bf16.mxu1 %v6893_v33  ;;  %4157 = vmatprep.subr.bf16.mxu0 %v6896_v34  ;;  %v6974_v33 = vld [vmem:[#allocation23 + $0x14] ss:$8 sps:$4 sm:$0xff]   ;;  %v6977_v34 = vld [vmem:[#allocation23 + $0x24] ss:$8 sps:$4 sm:$0xff]  }
 0x712   : > { %4076 = vmatpush1.bf16.msra.mxu1 %v6891_v35  ;;  %4158 = vmatpush1.bf16.msra.mxu0 %v6894_v36  ;;  %v6975_v35 = vld [vmem:[#allocation23 + $0x20] ss:$8 sps:$4 sm:$0xff]   ;;  %v6980_v36 = vld [vmem:[#allocation23 + $0x34] ss:$8 sps:$4 sm:$0xff]  }
 0x713   : > { %4077 = vmatprep.subr.bf16.mxu1 %v6899_v37  ;;  %4159 = vmatprep.subr.bf16.mxu0 %v6902_v38  ;;  %v6978_v37 = vld [vmem:[#allocation23 + $0x30] ss:$8 sps:$4 sm:$0xff]   ;;  %v6983_v38 = vld [vmem:[#allocation23 + $0x44] ss:$8 sps:$4 sm:$0xff]  }
 0x716   : > { %4078 = vmatpush1.bf16.msra.mxu1 %v6897_v39  ;;  %4160 = vmatpush1.bf16.msra.mxu0 %v6900_v40  ;;  %v6981_v39 = vld [vmem:[#allocation23 + $0x40] ss:$8 sps:$4 sm:$0xff]   ;;  %v6986_v40 = vld [vmem:[#allocation23 + $0x54] ss:$8 sps:$4 sm:$0xff]  }
 0x717   : > { %4079 = vmatprep.subr.bf16.mxu1 %v6905_v41  ;;  %4161 = vmatprep.subr.bf16.mxu0 %v6908_v42  ;;  %v6984_v41 = vld [vmem:[#allocation23 + $0x50] ss:$8 sps:$4 sm:$0xff]   ;;  %v6989_v42 = vld [vmem:[#allocation23 + $0x64] ss:$8 sps:$4 sm:$0xff]  }
 0x71a   : > { %4080 = vmatpush1.bf16.msra.mxu1 %v6903_v45  ;;  %4162 = vmatpush1.bf16.msra.mxu0 %v6906_v46  ;;  %v6987_v45 = vld [vmem:[#allocation23 + $0x60] ss:$8 sps:$4 sm:$0xff]   ;;  %v6992_v46 = vld [vmem:[#allocation23 + $0x74] ss:$8 sps:$4 sm:$0xff]  }
 0x71b   : > { %4081 = vmatprep.subr.bf16.mxu1 %v6911_v47  ;;  %4163 = vmatprep.subr.bf16.mxu0 %v6914_v48  ;;  %v6990_v47 = vld [vmem:[#allocation23 + $0x70] ss:$8 sps:$4 sm:$0xff]   ;;  %v6995_v48 = vld [vmem:[#allocation23 + $0x84] ss:$8 sps:$4 sm:$0xff]  }
 0x71e   : > { %4082 = vmatpush1.bf16.msra.mxu1 %v6909_v50  ;;  %4164 = vmatpush1.bf16.msra.mxu0 %v6912_v51  ;;  %v6993_v50 = vld [vmem:[#allocation23 + $0x80] ss:$8 sps:$4 sm:$0xff]   ;;  %v6998_v51 = vld [vmem:[#allocation23 + $0x94] ss:$8 sps:$4 sm:$0xff]  }
 0x71f   : > { %4083 = vmatprep.subr.bf16.mxu1 %v6917_v52  ;;  %4165 = vmatprep.subr.bf16.mxu0 %v6920_v53  ;;  %v6996_v52 = vld [vmem:[#allocation23 + $0x90] ss:$8 sps:$4 sm:$0xff]   ;;  %v7001_v53 = vld [vmem:[#allocation23 + $0xa4] ss:$8 sps:$4 sm:$0xff]  }
 0x722   : > { %4084 = vmatpush1.bf16.msra.mxu1 %v6915_v54  ;;  %4166 = vmatpush1.bf16.msra.mxu0 %v6918_v55  ;;  %v6999_v54 = vld [vmem:[#allocation23 + $0xa0] ss:$8 sps:$4 sm:$0xff]   ;;  %v7004_v55 = vld [vmem:[#allocation23 + $0xb4] ss:$8 sps:$4 sm:$0xff]  }
 0x723   : > { %4085 = vmatprep.subr.bf16.mxu1 %v6923_v56  ;;  %4167 = vmatprep.subr.bf16.mxu0 %v6926_v57  ;;  %v7002_v56 = vld [vmem:[#allocation23 + $0xb0] ss:$8 sps:$4 sm:$0xff]   ;;  %v7007_v57 = vld [vmem:[#allocation23 + $0xc4] ss:$8 sps:$4 sm:$0xff]  }
 0x726   : > { %4086 = vmatpush1.bf16.msra.mxu1 %v6921_v59  ;;  %4168 = vmatpush1.bf16.msra.mxu0 %v6924_v60  ;;  %v7005_v59 = vld [vmem:[#allocation23 + $0xc0] ss:$8 sps:$4 sm:$0xff]   ;;  %v7010_v60 = vld [vmem:[#allocation23 + $0xd4] ss:$8 sps:$4 sm:$0xff]  }
 0x727   : > { %4087 = vmatprep.subr.bf16.mxu1 %v6929_v61  ;;  %4169 = vmatprep.subr.bf16.mxu0 %v6932_v63  ;;  %v7008_v61 = vld [vmem:[#allocation23 + $0xd0] ss:$8 sps:$4 sm:$0xff]   ;;  %v7013_v63 = vld [vmem:[#allocation23 + $0xe4] ss:$8 sps:$4 sm:$0xff]  }
 0x72a   : > { %4088 = vmatpush1.bf16.msra.mxu1 %v6927_v1  ;;  %4170 = vmatpush1.bf16.msra.mxu0 %v6930_v2  ;;  %v7011_v1 = vld [vmem:[#allocation23 + $0xe0] ss:$8 sps:$4 sm:$0xff]   ;;  %v7016_v2 = vld [vmem:[#allocation23 + $0xf4] ss:$8 sps:$4 sm:$0xff]  }
 0x72b   : > { %4089 = vmatprep.subr.bf16.mxu1 %v6935_v23  ;;  %4171 = vmatprep.subr.bf16.mxu0 %v6938_v4  ;;  %v7014_v23 = vld [vmem:[#allocation23 + $0xf0] ss:$8 sps:$4 sm:$0xff]   ;;  %v7019_v4 = vld [vmem:[#allocation23 + $0x104] ss:$8 sps:$4 sm:$0xff]  }
 0x72e   : > { %4090 = vmatpush1.bf16.msra.mxu1 %v6933_v5  ;;  %4172 = vmatpush1.bf16.msra.mxu0 %v6936_v6  ;;  %v7065_v5 = vld [vmem:[#allocation26 + $0x40] sm:$0xff]  }
 0x72f   : > { %4091 = vmatprep.subr.bf16.mxu1 %v6941_v8  ;;  %4173 = vmatprep.subr.bf16.mxu0 %v6944_v9  ;;  %v7066_v6 = vld [vmem:[#allocation26] sm:$0xff]   ;;  %v7067_v8 = vld [vmem:[#allocation26 + $0x48] sm:$0xff]  }
 0x730   : > { %v7068_v9 = vld [vmem:[#allocation26 + $0x8] sm:$0xff]  }
 0x732   : > { %4092 = vmatpush1.bf16.msra.mxu1 %v6939_v43  ;;  %4174 = vmatpush1.bf16.msra.mxu0 %v6942_v10  ;;  %v7069_v43 = vld [vmem:[#allocation26 + $0x50] sm:$0xff]  }
 0x733   : > { %4093 = vmatprep.subr.bf16.mxu1 %v6947_v11  ;;  %4175 = vmatprep.subr.bf16.mxu0 %v6950_v12  ;;  %v7070_v10 = vld [vmem:[#allocation26 + $0x10] sm:$0xff]   ;;  %v7071_v11 = vld [vmem:[#allocation26 + $0x58] sm:$0xff]  }
 0x734   : > { %v7072_v12 = vld [vmem:[#allocation26 + $0x18] sm:$0xff]  }
 0x736   : > { %4094 = vmatpush1.bf16.msra.mxu1 %v6945_v13  ;;  %4176 = vmatpush1.bf16.msra.mxu0 %v6948_v49  ;;  %v7073_v13 = vld [vmem:[#allocation26 + $0x60] sm:$0xff]  }
 0x737   : > { %4095 = vmatprep.subr.bf16.mxu1 %v6953_v14  ;;  %4177 = vmatprep.subr.bf16.mxu0 %v6956_v15  ;;  %v7074_v49 = vld [vmem:[#allocation26 + $0x20] sm:$0xff]   ;;  %v7075_v14 = vld [vmem:[#allocation26 + $0x68] sm:$0xff]  }
 0x738   : > { %v7076_v15 = vld [vmem:[#allocation26 + $0x28] sm:$0xff]  }
 0x73a   : > { %4096 = vmatpush1.bf16.msra.mxu1 %v6951_v16  ;;  %4178 = vmatpush1.bf16.msra.mxu0 %v6954_v17  ;;  %v8541_v16 = vld [vmem:[#allocation22] sm:$0xf] }
 0x73b   : > { %4097 = vmatprep.subr.bf16.mxu1 %v6959_v19  ;;  %4179 = vmatprep.subr.bf16.mxu0 %v6962_v20  ;;  %v3371_v17 = vrot.slane %v8541_v16, %v8489_v24  ;;  %v3375_v18 = vrot.slane %v8541_v16, %v8492_v26  ;;  %v3383_v19 = vrot.slane %v8541_v16, %v8499_v44 }
 0x73e   : > { %4098 = vmatpush1.bf16.msra.mxu1 %v6957_v21  ;;  %4180 = vmatpush1.bf16.msra.mxu0 %v6960_v22 }
 0x73f   : > { %4099 = vmatprep.subr.bf16.mxu1 %v6965_v27  ;;  %4181 = vmatprep.subr.bf16.mxu0 %v6968_v28 }
 0x742   : > { %4100 = vmatpush1.bf16.msra.mxu1 %v6963_v0  ;;  %4182 = vmatpush1.bf16.msra.mxu0 %v6966_v29 }
 0x743   : > { %4596 = vmatprep.subr.bf16.mxu1 %v6971_v3  ;;  %6039 = vmatprep.subr.bf16.mxu0 %v7065_v5  ;;  %v3379_v5 = vrot.slane %v8541_v16, %v8510_v58  ;;  %v7079_v58 = vld [vmem:[#allocation26 + $0x78] sm:$0xff]  }
 0x744   : > { %v4264_v16 = vld [vmem:[#allocation25] sm:$0x3] }
 0x745   : > { %4102 = vmatmul.mubr.bf16.vlgmr.msra.gmra.mrb[16].mxu1 %v3236_v32  ;;  %4184 = vmatmul.mubr.bf16.vlgmr.msra.gmra.mrb[20].mxu0 %v3236_v32 }
 0x746   : > { %4597 = vmatpush1.bf16.msra.mxu1 %v6969_v31  ;;  %6040 = vmatpush3.bf16.msra.mxu0 %v7066_v6  ;;  %v7061_v6 = vld [vmem:[#allocation23 + $0x1e4] ss:$8 sps:$4 sm:$0xff]  }
 0x747   : > { %4598 = vmatprep.subr.bf16.mxu1 %v6974_v33  ;;  %6041 = vmatprep.subr.bf16.mxu0 %v7067_v8  ;;  %v7059_v8 = vld [vmem:[#allocation23 + $0x1e0] ss:$8 sps:$4 sm:$0xff]  }
 0x74a   : > { %4599 = vmatpush1.bf16.msra.mxu1 %v6972_v7  ;;  %6042 = vmatpush3.bf16.msra.mxu0 %v7068_v9 }
 0x74b   : > { %4600 = vmatprep.subr.bf16.mxu1 %v6977_v34  ;;  %6043 = vmatprep.subr.bf16.mxu0 %v7069_v43  ;;  %v7064_v43 = vld [vmem:[#allocation23 + $0x1f4] ss:$8 sps:$4 sm:$0xff]  }
 0x74e   : > { %4601 = vmatpush1.bf16.msra.mxu1 %v6975_v35  ;;  %6044 = vmatpush3.bf16.msra.mxu0 %v7070_v10  ;;  %v7017_v35 = vld [vmem:[#allocation23 + $0x100] ss:$8 sps:$4 sm:$0xff]   ;;  %v7062_v10 = vld [vmem:[#allocation23 + $0x1f0] ss:$8 sps:$4 sm:$0xff]  }
 0x74f   : > { %4602 = vmatprep.subr.bf16.mxu1 %v6980_v36  ;;  %6045 = vmatprep.subr.bf16.mxu0 %v7071_v11 }
 0x752   : > { %4603 = vmatpush1.bf16.msra.mxu1 %v6978_v37  ;;  %6046 = vmatpush3.bf16.msra.mxu0 %v7072_v12  ;;  %v7022_v37 = vld [vmem:[#allocation23 + $0x114] ss:$8 sps:$4 sm:$0xff]  }
 0x753   : > { %4604 = vmatprep.subr.bf16.mxu1 %v6983_v38  ;;  %6047 = vmatprep.subr.bf16.mxu0 %v7073_v13  ;;  %v7020_v38 = vld [vmem:[#allocation23 + $0x110] ss:$8 sps:$4 sm:$0xff]  }
 0x754   : > { %v7077_v13 = vld [vmem:[#allocation26 + $0x70] sm:$0xff]  }
 0x756   : > { %4605 = vmatpush1.bf16.msra.mxu1 %v6981_v39  ;;  %6048 = vmatpush3.bf16.msra.mxu0 %v7074_v49  ;;  %v7025_v39 = vld [vmem:[#allocation23 + $0x124] ss:$8 sps:$4 sm:$0xff]   ;;  %v7078_v49 = vld [vmem:[#allocation26 + $0x30] sm:$0xff]  }
 0x757   : > { %4606 = vmatprep.subr.bf16.mxu1 %v6986_v40  ;;  %6049 = vmatprep.subr.bf16.mxu0 %v7075_v14  ;;  %v7023_v40 = vld [vmem:[#allocation23 + $0x120] ss:$8 sps:$4 sm:$0xff]  }
 0x758   : > { %v7080_v14 = vld [vmem:[#allocation26 + $0x38] sm:$0xff]  }
 0x75a   : > { %4607 = vmatpush1.bf16.msra.mxu1 %v6984_v41  ;;  %6050 = vmatpush3.bf16.msra.mxu0 %v7076_v15  ;;  %v7028_v41 = vld [vmem:[#allocation23 + $0x134] ss:$8 sps:$4 sm:$0xff]   ;;  %v7798_v15 = vmov 0.0  }
 0x75b   : > { %4608 = vmatprep.subr.bf16.mxu1 %v6989_v42  ;;  %v7026_v42 = vld [vmem:[#allocation23 + $0x130] ss:$8 sps:$4 sm:$0xff]   ;;  %6051 = vmatprep.subr.bf16.mxu0 %v7077_v13 }
 0x75e   : > { %4609 = vmatpush1.bf16.msra.mxu1 %v6987_v45  ;;  %v7031_v45 = vld [vmem:[#allocation23 + $0x144] ss:$8 sps:$4 sm:$0xff]   ;;  %6052 = vmatpush3.bf16.msra.mxu0 %v7078_v49 }
 0x75f   : > { %4610 = vmatprep.subr.bf16.mxu1 %v6992_v46  ;;  %v7029_v46 = vld [vmem:[#allocation23 + $0x140] ss:$8 sps:$4 sm:$0xff]   ;;  %6053 = vmatprep.subr.bf16.mxu0 %v7079_v58 }
 0x762   : > { %4611 = vmatpush1.bf16.msra.mxu1 %v6990_v47  ;;  %v7034_v47 = vld [vmem:[#allocation23 + $0x154] ss:$8 sps:$4 sm:$0xff]   ;;  %6054 = vmatpush3.bf16.msra.mxu0 %v7080_v14 }
 0x763   : > { %4612 = vmatprep.subr.bf16.mxu1 %v6995_v48  ;;  %v7032_v48 = vld [vmem:[#allocation23 + $0x150] ss:$8 sps:$4 sm:$0xff]   ;;  %6079 = vmatprep.subr.bf16.mxu0 %v7798_v15 }
 0x766   : > { %4613 = vmatpush1.bf16.msra.mxu1 %v6993_v50  ;;  %v7037_v50 = vld [vmem:[#allocation23 + $0x164] ss:$8 sps:$4 sm:$0xff]  }
 0x767   : > { %4614 = vmatprep.subr.bf16.mxu1 %v6998_v51  ;;  %v7035_v51 = vld [vmem:[#allocation23 + $0x160] ss:$8 sps:$4 sm:$0xff]  }
 0x76a   : > { %4615 = vmatpush1.bf16.msra.mxu1 %v6996_v52  ;;  %v7040_v52 = vld [vmem:[#allocation23 + $0x174] ss:$8 sps:$4 sm:$0xff]  }
 0x76b   : > { %4616 = vmatprep.subr.bf16.mxu1 %v7001_v53  ;;  %v7038_v53 = vld [vmem:[#allocation23 + $0x170] ss:$8 sps:$4 sm:$0xff]  }
 0x76e   : > { %4617 = vmatpush1.bf16.msra.mxu1 %v6999_v54  ;;  %v7043_v54 = vld [vmem:[#allocation23 + $0x184] ss:$8 sps:$4 sm:$0xff]  }
 0x76f   : > { %4618 = vmatprep.subr.bf16.mxu1 %v7004_v55  ;;  %v7041_v55 = vld [vmem:[#allocation23 + $0x180] ss:$8 sps:$4 sm:$0xff]  }
 0x772   : > { %4619 = vmatpush1.bf16.msra.mxu1 %v7002_v56  ;;  %v7046_v56 = vld [vmem:[#allocation23 + $0x194] ss:$8 sps:$4 sm:$0xff]  }
 0x773   : > { %4620 = vmatprep.subr.bf16.mxu1 %v7007_v57  ;;  %v7044_v57 = vld [vmem:[#allocation23 + $0x190] ss:$8 sps:$4 sm:$0xff]  }
 0x776   : > { %4621 = vmatpush1.bf16.msra.mxu1 %v7005_v59  ;;  %v7049_v59 = vld [vmem:[#allocation23 + $0x1a4] ss:$8 sps:$4 sm:$0xff]  }
 0x777   : > { %4622 = vmatprep.subr.bf16.mxu1 %v7010_v60  ;;  %v7047_v60 = vld [vmem:[#allocation23 + $0x1a0] ss:$8 sps:$4 sm:$0xff]  }
 0x77a   : > { %4623 = vmatpush1.bf16.msra.mxu1 %v7008_v61  ;;  %v7052_v61 = vld [vmem:[#allocation23 + $0x1b4] ss:$8 sps:$4 sm:$0xff]  }
 0x77b   : > { %4624 = vmatprep.subr.bf16.mxu1 %v7013_v63  ;;  %v7050_v63 = vld [vmem:[#allocation23 + $0x1b0] ss:$8 sps:$4 sm:$0xff]  }
 0x77e   : > { %4625 = vmatpush1.bf16.msra.mxu1 %v7011_v1  ;;  %v7055_v1 = vld [vmem:[#allocation23 + $0x1c4] ss:$8 sps:$4 sm:$0xff]  }
 0x77f   : > { %4626 = vmatprep.subr.bf16.mxu1 %v7016_v2  ;;  %v7053_v2 = vld [vmem:[#allocation23 + $0x1c0] ss:$8 sps:$4 sm:$0xff]  }
 0x782   : > { %4627 = vmatpush1.bf16.msra.mxu1 %v7014_v23  ;;  %v7058_v23 = vld [vmem:[#allocation23 + $0x1d4] ss:$8 sps:$4 sm:$0xff]  }
 0x783   : > { %4637 = vmatprep.subr.bf16.mxu1 %v7019_v4  ;;  %v7056_v4 = vld [vmem:[#allocation23 + $0x1d0] ss:$8 sps:$4 sm:$0xff]  }
 0x818   : > { %v4103_v20 = vpop.f32.mrb[16].mxu1  ;;  %v8549_v21 = vpop.f32.mrb[20].mxu0 }
 0x819   : > { %v6123_v22 = vadd.f32 %v4103_v20, %v3371_v17  ;;  %v4105_v25 = vpop.f32.mrb[17].mxu1  ;;  %v4187_v27 = vpop.f32.mrb[21].mxu0  ;;  %v6125_v9 = vadd.f32 %v8549_v21, %v3379_v5  ;;  %v4269_v17 = vrot.slane %v4264_v16, %v8489_v24  ;;  %v7082_v24 = vld [vmem:[%s8860_s21 + $0x8] sm:$0xff]  }
 0x81a   : > { %v6124_v28 = vadd.f32 %v4105_v25, %v3375_v18  ;;  %v6126_v0 = vadd.f32 %v4187_v27, %v3383_v19  ;;  %v4107_v29 = vpop.f32.mrb[18].mxu1  ;;  %v4189_v30 = vpop.f32.mrb[22].mxu0  ;;  %v4273_v18 = vrot.slane %v4264_v16, %v8492_v26  ;;  %v7083_v26 = vld [vmem:[%s8860_s21 + $0x10] sm:$0xff]  }
 0x81b   : > { %v4192_v3 = vmax.f32 %v6123_v22, 0.0  ;;  %v4108_v31 = vpop.f32.mrb[19].mxu1  ;;  %v4190_v32 = vpop.f32.mrb[23].mxu0  ;;  %v4194_v11 = vmax.f32 %v6125_v9, 0.0  ;;  %v7081_v30 = vld [vmem:[%s8860_s21] sm:$0xff]  }
 0x81c   : > { %v4193_v33 = vmax.f32 %v6124_v28, 0.0  ;;  %v4195_v7 = vmax.f32 %v6126_v0, 0.0  ;;  %v7084_v31 = vld [vmem:[%s8860_s21 + $0x18] sm:$0xff]   ;;  %v7085_v32 = vld [vmem:[%s8860_s21 + $0x20] sm:$0xff]  }
 0x81d   : > { %v4196_v36 = vpack.c.bf16 %v4192_v3, %v4192_v3  ;;  %v4198_v12 = vpack.c.bf16 %v4194_v11, %v4194_v11 }
 0x81e   : > { %v4197_v34 = vpack.c.bf16 %v4193_v33, %v4193_v33  ;;  %v4199_v44 = vpack.c.bf16 %v4195_v7, %v4195_v7  ;;  %v7086_v33 = vld [vmem:[%s8860_s21 + $0x28] sm:$0xff]   ;;  %v7087_v7 = vld [vmem:[%s8860_s21 + $0x30] sm:$0xff]  }
 0x820   : > { %4628 = vmatprep.mubr.bf16.mxu1 %v4197_v34  ;;  %v7088_v34 = vld [vmem:[%s8860_s21 + $0x38] sm:$0xff]  }
 0x821   : > { %4629 = vmatmul.mubr.bf16.vlgmr.msra.gmra.mrb[20].mxu1 %v4196_v36  ;;  %v7090_v36 = vld [vmem:[#allocation29 + $0x8] sm:$0xff]  }
 0x822   : > { %4638 = vmatpush1.bf16.msra.mxu1 %v7017_v35  ;;  %4669 = vmatprep.mubr.bf16.mxu1 %v4199_v44  ;;  %v7089_v35 = vld [vmem:[#allocation29] sm:$0xff]   ;;  %v7092_v44 = vld [vmem:[#allocation29 + $0x18] sm:$0xff]  }
 0x823   : > { %4639 = vmatprep.subr.bf16.mxu1 %v7022_v37  ;;  %v7091_v37 = vld [vmem:[#allocation29 + $0x10] sm:$0xff]  }
 0x826   : > { %4640 = vmatpush1.bf16.msra.mxu1 %v7020_v38  ;;  %v7093_v38 = vld [vmem:[#allocation29 + $0x20] sm:$0xff]  }
 0x827   : > { %4641 = vmatprep.subr.bf16.mxu1 %v7025_v39  ;;  %v7095_v39 = vld [vmem:[#allocation29 + $0x30] sm:$0xff]  }
 0x82a   : > { %4642 = vmatpush1.bf16.msra.mxu1 %v7023_v40  ;;  %v7096_v40 = vld [vmem:[#allocation29 + $0x38] sm:$0xff]  }
 0x82b   : > { %4643 = vmatprep.subr.bf16.mxu1 %v7028_v41 }
 0x82e   : > { %4644 = vmatpush1.bf16.msra.mxu1 %v7026_v42  ;;  %v5952_v42 = vld [vmem:[#allocation28] ss:$0 sm:$0xff] }
 0x82f   : > { %4645 = vmatprep.subr.bf16.mxu1 %v7031_v45 }
 0x832   : > { %4646 = vmatpush1.bf16.msra.mxu1 %v7029_v46 }
 0x833   : > { %4647 = vmatprep.subr.bf16.mxu1 %v7034_v47 }
 0x836   : > { %4648 = vmatpush1.bf16.msra.mxu1 %v7032_v48 }
 0x837   : > { %4649 = vmatprep.subr.bf16.mxu1 %v7037_v50 }
 0x83a   : > { %4650 = vmatpush1.bf16.msra.mxu1 %v7035_v51  ;;  %v5969_v51 = vld [vmem:[%s8861_s22] ss:$0 sm:$0xff]  ;;  %s7800_s22 = smov [#allocation32]  }
 0x83b   : > { %4651 = vmatprep.subr.bf16.mxu1 %v7040_v52  ;;  %s7613_s18 = sshll.u32 %s7800_s22, 4  ;;  %s7614_s18 = int_to_ptr.vmem [resolvable:$false] %s7613_s18 }
 0x83e   : > { %4652 = vmatpush1.bf16.msra.mxu1 %v7038_v53 }
 0x83f   : > { %4653 = vmatprep.subr.bf16.mxu1 %v7043_v54 }
 0x842   : > { %4654 = vmatpush1.bf16.msra.mxu1 %v7041_v55 }
 0x843   : > { %4655 = vmatprep.subr.bf16.mxu1 %v7046_v56 }
 0x846   : > { %4656 = vmatpush1.bf16.msra.mxu1 %v7044_v57 }
 0x847   : > { %4657 = vmatprep.subr.bf16.mxu1 %v7049_v59 }
 0x84a   : > { %4658 = vmatpush1.bf16.msra.mxu1 %v7047_v60 }
 0x84b   : > { %4659 = vmatprep.subr.bf16.mxu1 %v7052_v61 }
 0x84e   : > { %4660 = vmatpush1.bf16.msra.mxu1 %v7050_v63 }
 0x84f   : > { %4661 = vmatprep.subr.bf16.mxu1 %v7055_v1 }
 0x852   : > { %4662 = vmatpush1.bf16.msra.mxu1 %v7053_v2 }
 0x853   : > { %4663 = vmatprep.subr.bf16.mxu1 %v7058_v23 }
 0x856   : > { %4664 = vmatpush1.bf16.msra.mxu1 %v7056_v4 }
 0x857   : > { %4665 = vmatprep.subr.bf16.mxu1 %v7061_v6  ;;  %v5978_v6 = vld [vmem:[%s8862_s1] ss:$0 sm:$0xff]  ;;  %s8621_s1 = scalar_lea.hbm %s8863_s6, %s8615_s8 }
 0x85a   : > { %4666 = vmatpush1.bf16.msra.mxu1 %v7059_v8 }
 0x85b   : > { %4667 = vmatprep.subr.bf16.mxu1 %v7064_v43 }
 0x85e   : > { %4668 = vmatpush1.bf16.msra.mxu1 %v7062_v10 }
 0x861   : > { %4670 = vmatmul.mubr.bf16.vlgmr.msra.gmra.mrb[20].mxu1 %v4198_v12 }
 0x934   : > { %v4671_v19 = vpop.f32.mrb[20].mxu1 }
 0x935   : > { %v6127_v20 = vadd.f32 %v4671_v19, %v4269_v17  ;;  %v4673_v21 = vpop.f32.mrb[21].mxu1 }
 0x936   : > { %v6128_v22 = vadd.f32 %v4673_v21, %v4273_v18  ;;  %v4675_v25 = vpop.f32.mrb[22].mxu1 }
 0x937   : > { %v4678_v27 = vmax.f32 %v6127_v20, 0.0  ;;  %v4676_v28 = vpop.f32.mrb[23].mxu1 }
 0x938   : > { %v4679_v0 = vmax.f32 %v6128_v22, 0.0 }
 0x939   : > { %v4680_v3 = vpack.c.bf16 %v4678_v27, %v4678_v27 }
 0x93a   : > { %v4681_v29 = vpack.c.bf16 %v4679_v0, %v4679_v0 }
 0x93c   : > { %4849 = vmatprep.mubr.bf16.mxu0 %v4681_v29 }
 0x93d   : > { %4850 = vmatmul.mubr.bf16.vlgmr.msra.gmra.mrb[24].mxu0 %v4680_v3 }
 0x93e   : > { %6080 = vmatpush3.bf16.msra.mxu0 %v7081_v30  ;;  %6095 = vmatprep.mubr.msk.bf16.mxu0 %vm7799_vm0, %v7798_v15 }
 0x93f   : > { %6081 = vmatprep.subr.bf16.mxu0 %v7798_v15 }
 0x942   : > { %6082 = vmatpush3.bf16.msra.mxu0 %v7082_v24 }
 0x943   : > { %6083 = vmatprep.subr.bf16.mxu0 %v7798_v15 }
 0x946   : > { %6084 = vmatpush3.bf16.msra.mxu0 %v7083_v26 }
 0x947   : > { %6085 = vmatprep.subr.bf16.mxu0 %v7798_v15 }
 0x94a   : > { %6086 = vmatpush3.bf16.msra.mxu0 %v7084_v31 }
 0x94b   : > { %6087 = vmatprep.subr.bf16.mxu0 %v7798_v15 }
 0x94e   : > { %6088 = vmatpush3.bf16.msra.mxu0 %v7085_v32 }
 0x94f   : > { %6089 = vmatprep.subr.bf16.mxu0 %v7798_v15 }
 0x952   : > { %6090 = vmatpush3.bf16.msra.mxu0 %v7086_v33 }
 0x953   : > { %6091 = vmatprep.subr.bf16.mxu0 %v7798_v15 }
 0x956   : > { %6092 = vmatpush3.bf16.msra.mxu0 %v7087_v7 }
 0x957   : > { %6093 = vmatprep.subr.bf16.mxu0 %v7798_v15 }
 0x95a   : > { %6094 = vmatpush3.bf16.msra.mxu0 %v7088_v34 }
 0x95b   : > { %6099 = vmatprep.subr.bf16.mxu0 %v7798_v15 }
 0x95d   : > { %6096 = vmatmul.mubr.bf16.vlgmr.msra.gmra.mrb[28].mxu0 %v8521_v62  ;;  %v7094_v62 = vld [vmem:[#allocation29 + $0x28] sm:$0xff]  }
 0x95e   : > { %6115 = vmatprep.mubr.msk.bf16.mxu0 %vm7799_vm0, %v7798_v15  ;;  %6100 = vmatpush3.bf16.msra.mxu0 %v7089_v35 }
 0x95f   : > { %6101 = vmatprep.subr.bf16.mxu0 %v7798_v15 }
 0x962   : > { %6102 = vmatpush3.bf16.msra.mxu0 %v7090_v36 }
 0x963   : > { %6103 = vmatprep.subr.bf16.mxu0 %v7798_v15 }
 0x966   : > { %6104 = vmatpush3.bf16.msra.mxu0 %v7091_v37 }
 0x967   : > { %6105 = vmatprep.subr.bf16.mxu0 %v7798_v15 }
 0x96a   : > { %6106 = vmatpush3.bf16.msra.mxu0 %v7092_v44 }
 0x96b   : > { %6107 = vmatprep.subr.bf16.mxu0 %v7798_v15 }
 0x96e   : > { %6108 = vmatpush3.bf16.msra.mxu0 %v7093_v38 }
 0x96f   : > { %6109 = vmatprep.subr.bf16.mxu0 %v7798_v15 }
 0x972   : > { %6110 = vmatpush3.bf16.msra.mxu0 %v7094_v62 }
 0x973   : > { %6111 = vmatprep.subr.bf16.mxu0 %v7798_v15 }
 0x976   : > { %6112 = vmatpush3.bf16.msra.mxu0 %v7095_v39 }
 0x977   : > { %6113 = vmatprep.subr.bf16.mxu0 %v7798_v15 }
 0x97a   : > { %6114 = vmatpush3.bf16.msra.mxu0 %v7096_v40 }
 0xa10   : > { %v6055_v41 = vpop.f32.mrb[24].mxu0 }
 0xa11   : > { %v6056_v45 = vpop.f32.mrb[25].mxu0 }
 0xa12   : > { %v6057_v46 = vadd.f32 %v6056_v45, %v6055_v41  ;;  %v6058_v47 = vpop.f32.mrb[26].mxu0 }
 0xa13   : > { %v6059_v48 = vpop.f32.mrb[27].mxu0 }
 0xa14   : > { %v4852_v50 = vadd.f32 %v6057_v46, %v5952_v42 }
 0xa16   : > { %4857 = vst [vmem:[%s8780_s26] sm:$0xff] %v4852_v50  ;;  %s5137_s26 = sshll.u32 %s967_s29, 4  ;;  %s7615_s29 = scalar_lea.vmem %s7614_s18, 256  ;;  %s8625_s26 = int_to_ptr.vmem [resolvable:$true] %s5137_s26 }
 0xa17   : > { %s7609_s14 = scalar_lea.vmem %s8625_s26, 128  ;;  %p7616_p10 = scmp.lt.s32.totalorder %s8625_s26, %s7614_s18 }
 0xa18   : > { %p7610_p0 = scmp.ne.s32.totalorder %s8625_s26, %s7609_s14  ;;  %p7617_p1 = scmp.lt.s32.totalorder %s7615_s29, %s7609_s14 }
 0xa1a   : > { %p7611_p2 = pnand %p7610_p0, %p8865_p5  ;;  %p7618_p11 = por %p7617_p1, %p7616_p10 }
 0xa1c   : > { %p7612_p7 = pneg %p7611_p2 }
 0xa1e   : > { %p7619_p12 = pnand %p7618_p11, %p7612_p7 }
 0xa30   : > { %v4963_v52 = vpop.f32.mrb[28].mxu0 }
 0xa31   : > { %v4964_v53 = vadd.f32 %v5969_v51, %v4963_v52  ;;  %v6097_v54 = vpop.f32.mrb[29].mxu0 }
 0xa32   : > { %v4966_v55 = vpop.f32.mrb[30].mxu0 }
 0xa33   : > { %v4970_v56 = vmul.f32 0.044715, %v4964_v53  ;;  %v6098_v57 = vpop.f32.mrb[31].mxu0  ;;  %v4969_v2 = vmul.f32 0.5, %v4964_v53 }
 0xa35   : > { %v4971_v59 = vmul.f32 %v4970_v56, %v4964_v53 }
 0xa37   : > { %v4972_v60 = vmul.f32 %v4971_v59, %v4964_v53 }
 0xa39   : > { %v4973_v61 = vadd.f32 %v4972_v60, %v4964_v53 }
 0xa3b   : > { %v4974_v63 = vmul.f32 0.7978846, %v4973_v61 }
 0xa3d   : > { %7097 = vtanh.f32 %v4974_v63 }
 0xa47   : > { %v7098_v1 = vpop.eup %7097 }
 0xa48   : > { %v4976_v23 = vadd.f32 1.0, %v7098_v1 }
 0xa4a   : > { %v4977_v4 = vmul.f32 %v4976_v23, %v4969_v2 }
 0xa4c   : > { %v4978_v5 = vpack.c.bf16 %v4977_v4, %v4977_v4 }
 0xa4e   : > { %6116 = vmatmul.mubr.bf16.vlgmr.msra.gmra.mrb[32].mxu0 %v4978_v5 }
 0xb21   : > { %v5084_v8 = vpop.f32.mrb[32].mxu0 }
 0xb22   : > { %v5085_v9 = vadd.f32 %v5978_v6, %v5084_v8  ;;  %v6117_v43 = vpop.f32.mrb[33].mxu0 }
 0xb23   : > { %v5087_v10 = vpop.f32.mrb[34].mxu0 }
 0xb24   : > { %5090 = vmax.xlane.f32.xlu0 %v5085_v9  ;;  %v6118_v11 = vpop.f32.mrb[35].mxu0 }
 0xbb1   : > { %v5091_v12 = vpop.xlane.xlu0 %5090 }
 0xbb2   : > { %v5092_v13 = vsub.f32 %v5085_v9, %v5091_v12 }
 0xbb4   : > { %v5093_v49 = vmul.f32 1.442695, %v5092_v13 }
 0xbb6   : > { %7099 = vpow2.f32 %v5093_v49 }
 0xbc0   : > { %v8610_v58 = vpop.eup %7099 }
 0xbc1   : > { %5095 = vadd.xlane.f32.xlu0 %v8610_v58 }
 0xbc2   : > { %7622 = shalt.err (!%p7619_p12)
}
 0xbc3   : > { %s7623_s10 = scalar_lea.hbm %s8621_s1, 128  ;;  %s7627_s22 = scalar_lea.hbm %s8863_s6, 256 }
 0xbc4   : > { %p7624_p13 = scmp.ne.s32.totalorder %s8621_s1, %s7623_s10  ;;  %p7628_p9 = scmp.lt.u32.totalorder %s8621_s1, %s8863_s6 }
 0xbc5   : > { %p7629_p4 = scmp.lt.u32.totalorder %s7627_s22, %s7623_s10  ;;  %p7631_p0 = scmp.lt.u32.totalorder %s7623_s10, %s8621_s1 }
 0xbc6   : > { %p7625_p3 = pnand %p7624_p13, %p8865_p5 }
 0xbc7   : > { %p7630_p8 = por %p7629_p4, %p7628_p9 }
 0xbc8   : > { %p7626_p6 = pneg %p7625_p3 }
 0xbc9   : > { %p7632_p2 = por %p7631_p0, %p7630_p8 }
 0xbcb   : > { %p7633_p7 = pnand %p7632_p2, %p7626_p6 }
 0xbcd   : > { %7636 = shalt.err (!%p7633_p7)
}
 0xbce   : > { %6220 = dma.vmem_to_hbm [thread:$0]  (%p8865_p5), %s8625_s26, 128, %s8621_s1, %s8633_s7  }
 0xbcf   : > { %s8866_s14 = scalar_lea.vmem [#allocation31], %s8439_s5  ;;  %s5101_s15 = scalar_lea.sflag [#allocation4], %s8436_s2 }
 0xbd0   : > { %s5124_s29 = sshll.u32 %s8866_s14, 4  ;;  %s7801_s10 = smov [#allocation31]   ;;  %s5125_s29 = int_to_ptr.vmem [resolvable:$true] %s5124_s29 }
 0xbd1   : > { %s7637_s0 = scalar_lea.vmem %s5125_s29, 128  ;;  %s7641_s4 = sshll.u32 %s7801_s10, 4  ;;  %s7642_s4 = int_to_ptr.vmem [resolvable:$false] %s7641_s4 }
 0xbd2   : > { %p7638_p10 = scmp.ne.s32.totalorder %s5125_s29, %s7637_s0  ;;  %s7643_s22 = scalar_lea.vmem %s7642_s4, 256 }
 0xbd3   : > { %p7644_p12 = scmp.lt.s32.totalorder %s5125_s29, %s7642_s4  ;;  %p7645_p13 = scmp.lt.s32.totalorder %s7643_s22, %s7637_s0 }
 0xbd4   : > { %p7639_p1 = pnand %p7638_p10, %p8865_p5 }
 0xbd5   : > { %p7646_p3 = por %p7645_p13, %p7644_p12 }
 0xbd6   : > { %p7640_p11 = pneg %p7639_p1 }
 0xbd8   : > { %p7647_p6 = pnand %p7646_p3, %p7640_p11 }
 0xbda   : > { %7650 = shalt.err (!%p7647_p6)
}
 0xbdb   : > { %s7651_s2 = scalar_lea.hbm %s8631_s13, 128  ;;  %s7655_s18 = scalar_lea.hbm %s8864_s12, 256 }
 0xbdc   : > { %p7652_p9 = scmp.ne.s32.totalorder %s8631_s13, %s7651_s2  ;;  %p7656_p0 = scmp.lt.u32.totalorder %s8631_s13, %s8864_s12 }
 0xbdd   : > { %p7657_p2 = scmp.lt.u32.totalorder %s7655_s18, %s7651_s2  ;;  %p7659_p10 = scmp.lt.u32.totalorder %s7651_s2, %s8631_s13 }
 0xbde   : > { %p7653_p4 = pnand %p7652_p9, %p8865_p5 }
 0xbdf   : > { %p7658_p7 = por %p7657_p2, %p7656_p0 }
 0xbe0   : > { %p7654_p8 = pneg %p7653_p4 }
 0xbe1   : > { %p7660_p1 = por %p7659_p10, %p7658_p7 }
 0xbe3   : > { %p7661_p11 = pnand %p7660_p1, %p7654_p8 }
 0xbe5   : > { %7664 = shalt.err (!%p7661_p11)
}
 0xbe6   : > { %6219 = dma.vmem_to_hbm [thread:$0]  (%p8865_p5), %s5125_s29, 128, %s8631_s13, %s5101_s15  }
 0xbe7   : > { %s974_s0 = scalar_lea.vmem [#allocation34], %s8439_s5  ;;  %s8867_s2 = sld [smem:[#allocation71_spill]] }
 0xbe8   : > { %s5150_s4 = sshll.u32 %s974_s0, 4  ;;  %s7802_s13 = smov [#allocation34]   ;;  %s5151_s4 = int_to_ptr.vmem [resolvable:$true] %s5150_s4 }
 0xbe9   : > { %s7665_s18 = scalar_lea.vmem %s5151_s4, 128  ;;  %s7669_s29 = sshll.u32 %s7802_s13, 4  ;;  %s7670_s29 = int_to_ptr.vmem [resolvable:$false] %s7669_s29 }
 0xbea   : > { %p7666_p12 = scmp.ne.s32.totalorder %s5151_s4, %s7665_s18  ;;  %s7671_s5 = scalar_lea.vmem %s7670_s29, 256 }
 0xbeb   : > { %p7672_p6 = scmp.lt.s32.totalorder %s5151_s4, %s7670_s29  ;;  %p7673_p9 = scmp.lt.s32.totalorder %s7671_s5, %s7665_s18 }
 0xbec   : > { %p7667_p13 = pnand %p7666_p12, %p8865_p5 }
 0xbed   : > { %s8683_s1 = scalar_lea.hbm %s8867_s2, %s8615_s8  ;;  %p7674_p4 = por %p7673_p9, %p7672_p6 }
 0xbee   : > { %p7668_p3 = pneg %p7667_p13 }
 0xbf0   : > { %p7675_p8 = pnand %p7674_p4, %p7668_p3 }
 0xc4e   : > { %v5096_v14 = vpop.xlane.xlu0 %5095 }
 0xc4f   : > { %7101 = vrcp.f32 %v5096_v14 }
 0xc59   : > { %v7102_v15 = vpop.eup %7101 }
 0xc5a   : > { %v5098_v16 = vmul.f32 %v7102_v15, %v8610_v58 }
 0xc5c   : > { %5099 = vst [vmem:[%s974_s0] sm:$0xff] %v5098_v16 }
 0xc5d   : > { %7678 = shalt.err (!%p7675_p8)
}
 0xc5e   : > { %s7679_s8 = scalar_lea.hbm %s8683_s1, 128  ;;  %s7683_s10 = scalar_lea.hbm %s8867_s2, 256 }
 0xc5f   : > { %p7680_p0 = scmp.ne.s32.totalorder %s8683_s1, %s7679_s8  ;;  %p7684_p10 = scmp.lt.u32.totalorder %s8683_s1, %s8867_s2 }
 0xc60   : > { %p7685_p1 = scmp.lt.u32.totalorder %s7683_s10, %s7679_s8  ;;  %p7687_p12 = scmp.lt.u32.totalorder %s7679_s8, %s8683_s1 }
 0xc61   : > { %p7681_p2 = pnand %p7680_p0, %p8865_p5 }
 0xc62   : > { %p7686_p11 = por %p7685_p1, %p7684_p10 }
 0xc63   : > { %p7682_p7 = pneg %p7681_p2 }
 0xc64   : > { %p7688_p13 = por %p7687_p12, %p7686_p11 }
 0xc66   : > { %p7689_p3 = pnand %p7688_p13, %p7682_p7 }
 0xc68   : > { %7692 = shalt.err (!%p7689_p3)
}
 0xc69   : > { %6221 = dma.vmem_to_hbm [thread:$0]  (%p8865_p5), %s5151_s4, 128, %s8683_s1, %s8633_s7  }
 0xc6a PF: > { %s8868_s26 = sld [smem:[#allocation47_spill]]  ;;  %p8869_p6 = scmp.ne.s32.totalorder %s8836_s3, 0 }
 0xc6b   : > { %p8870_p9 = scmp.ge.s32.totalorder %s7771_s25, 2 }
 0xc6d   : > { %p6282_p4 = pnand %p8870_p9, %p8869_p6 }
 0xc70   : > { %s5162_s18 = sand.u32 1, %s8868_s26  }
 0xc71   : > { %s5163_s13 = scalar_lea.sflag [#allocation4], %s5162_s18 }
 0xc72   : > { %7750 = dma.done.wait (!%p6282_p4), %s5163_s13, 128  }
 0xc73   : > { %7752 = vsyncadd (!%p6282_p4), %s5163_s13, 4294967168  ;;  %s8871_s29 = sadd.s32 4294967294, %s7771_s25  }
 0xc74   : > { %s5171_s5 = sand.u32 1, %s8871_s29  }
 0xc75   : > { %s5172_s8 = scalar_lea.sflag [#allocation33], %s5171_s5 }
 0xc76   : > { %7754 = dma.done.wait (!%p6282_p4), %s5172_s8, 256  }
 0xc77   : > { %7756 = vsyncadd (!%p6282_p4), %s5172_s8, 4294967040  ;;  %p49_p5 = scmp.ge.s32.totalorder %s8364_s9, 4   ;;  %s8872_s4 = smov %s7763_s30 }
 0xc78   : > { %s8873_s30 = smov %s7767_s24  ;;  %s8874_s24 = smov %s8376_s11 }
 0xc79   : > { %s8875_s25 = smov %s8364_s9  ;;  %51 = sbr.rel (!%p49_p5) target bundleno = 39 (0x27), region = 249 }
 0xc80   :  { %5186 = vsyncpa [#allocation3], 1 }
 0xc81   :  { %5188 = vsyncpa [#allocation3 + $0x1], 1 }
 0xc82   :  { %5189 = vsyncpa [#allocation6], 1 }
 0xc83   :  { %5190 = vsyncpa [#allocation9], 1 }
 0xc84   :  { %5191 = vsyncpa [#allocation12], 1 }
 0xc85   :  { %5192 = vsyncpa [#allocation15], 1 }
 0xc86   :  { %5193 = vsyncpa [#allocation18], 1 }
 0xc87   :  { %5194 = vsyncpa [#allocation21], 1 }
 0xc88   :  { %5195 = vsyncpa [#allocation24], 1 }
 0xc89   :  { %5196 = vsyncpa [#allocation27], 1 }
 0xc8a   :  { %5197 = vsyncpa [#allocation30], 1 }
 0xc8b   :  { %5198 = vsyncpa [#allocation4], 1 }
 0xc8c   :  { %5200 = vsyncpa [#allocation4 + $0x1], 1 }
 0xc8d   :  { %5201 = vsyncpa [#allocation33], 1 }
 0xc8e   :  { %5203 = vsyncpa [#allocation33 + $0x1], 1 }

</bundles_post_ra>
